<compile_context>
chip_gen: v7x
topology: tpu7x:2x2x1
jax: 0.10.0
libtpu: 0.0.40
codegen_flags: <defaults>
</compile_context>

<pallas_src>
import jax
import jax.numpy as jnp
from jax.experimental import pallas as pl
from jax.experimental.pallas import tpu as pltpu

F32_MIN = float(jnp.finfo(jnp.float32).min)   # -inf stand-in for maxpool padding


def _round_up(n, m):
    return ((n + m - 1) // m) * m


# ----------------------------------------------------------------------------
# Fused forward builder
# ----------------------------------------------------------------------------

def make_inception_forward(*, input_channels, num_classes, kss, nb_filters,
                           depth, bottleneck_size, use_residual, B, L):
    """Returns a jitted forward(x, params) running backbone + head (inference
    mode) in a single Pallas kernel. x: (B, input_channels, L) float32."""
    assert depth % 3 == 0
    assert all(k % 2 == 1 for k in kss), "'same' conv here assumes odd kernels"
    n_ks = len(kss) + 1
    out_ch = n_ks * nb_filters
    cb = bottleneck_size
    nb = nb_filters
    kmax = max(kss)
    pad_max = (kmax - 1) // 2
    # per-batch lane slot: 128-lane dense and wide enough that cyclic rolls
    # only ever wrap into zero padding.
    Lp = _round_up(max(L + pad_max, 128), 128)
    BL = B * Lp
    n_sc = depth // 3 if use_residual else 0
    n_in = 1 + 5 * depth + 3 * n_sc + 2

    # ------------------------- kernel body ----------------------------------
    def kernel(*refs):
        assert len(refs) == n_in + 1
        o_ref = refs[-1]
        it = iter(refs[:-1])
        x_ref = next(it)
        blocks = [tuple(next(it) for _ in range(5)) for _ in range(depth)]
        shortcuts = [tuple(next(it) for _ in range(3)) for _ in range(n_sc)]
        wh_ref = next(it)
        bh_ref = next(it)

        lane = jax.lax.broadcasted_iota(jnp.int32, (1, BL), 1)
        t = lane % Lp                       # position inside each batch slot
        valid = t < L                       # valid (non-pad) lanes

        def shift(v, d):
            # out[:, p] = v[:, (p + d) % BL].  Every batch slot is zero padded
            # out to Lp >= L + pad_max, so the cyclic wrap only reads zeros,
            # which is exactly the conv's implicit zero padding.
            if d == 0:
                return v
            return pltpu.roll(v, (-d) % BL, axis=1)

        xa = x_ref[...]                     # (Cin0, BL) f32, pad lanes are zero
        input_res = xa

        for d in range(depth):
            wbn_ref, wbr_ref, wbt_ref, s_ref, b_ref = blocks[d]

            # bottleneck 1x1 conv -> one MXU matmul
            bottled = jnp.dot(wbn_ref[...], xa.astype(jnp.bfloat16),
                              preferred_element_type=jnp.float32)     # (cb, BL)

            # shared im2col for all three branch convs, one fused matmul
            cols = jnp.concatenate(
                [shift(bottled, dd) for dd in range(-pad_max, pad_max + 1)],
                axis=0).astype(jnp.bfloat16)                          # (kmax*cb, BL)
            branches = jnp.dot(wbr_ref[...], cols,
                               preferred_element_type=jnp.float32)    # (3*nb, BL)

            # MaxPool1d(3, stride=1, padding=1) (-inf padding) + 1x1 conv
            xm1 = jnp.where(t >= 1, shift(xa, -1), F32_MIN)
            xp1 = jnp.where(t <= L - 2, shift(xa, 1), F32_MIN)
            pooled = jnp.maximum(jnp.maximum(xm1, xa), xp1)
            pooled = jnp.where(valid, pooled, 0.0)
            pool_out = jnp.dot(wbt_ref[...], pooled.astype(jnp.bfloat16),
                               preferred_element_type=jnp.float32)    # (nb, BL)

            # channel concat + folded BatchNorm + ReLU (applied in-register)
            cat = jnp.concatenate([branches, pool_out], axis=0)       # (out_ch, BL)
            y = jnp.maximum(cat * s_ref[...] + b_ref[...], 0.0)

            # Shortcut1d: relu(out + BN(conv1x1(input_res)))
            if use_residual and d % 3 == 2:
                ws_ref, ss_ref, bs_ref = shortcuts[d // 3]
                sc = jnp.dot(ws_ref[...], input_res.astype(jnp.bfloat16),
                             preferred_element_type=jnp.float32)
                y = jnp.maximum(y + (sc * ss_ref[...] + bs_ref[...]), 0.0)
                y = jnp.where(valid, y, 0.0)     # keep pad lanes exactly zero
                input_res = y
            else:
                y = jnp.where(valid, y, 0.0)
            xa = y

        # Head: AdaptiveConcatPool1d(1) -> Flatten -> BN -> Dropout(eval)
        #       -> Linear.  The head BN is already folded into wh/bh.
        tl = jax.lax.broadcasted_iota(jnp.int32, (1, Lp), 1)
        valid_l = tl < L
        mx, av = [], []
        for b in range(B):
            xb = xa[:, b * Lp:(b + 1) * Lp]                  # lane-aligned slice
            mx.append(jnp.max(jnp.where(valid_l, xb, F32_MIN),
                              axis=-1, keepdims=True))       # (out_ch, 1)
            av.append(jnp.sum(xb, axis=-1, keepdims=True) * (1.0 / L))
        mx_cat = jnp.concatenate(mx, axis=1)                 # (out_ch, B)
        av_cat = jnp.concatenate(av, axis=1)                 # (out_ch, B)
        feat = jnp.concatenate([mx_cat, av_cat], axis=0)     # (2*out_ch, B)
        logits = jnp.dot(wh_ref[...], feat,
                         preferred_element_type=jnp.float32) + bh_ref[...]
        o_ref[...] = logits.astype(o_ref.dtype)              # (num_classes, B)

    # ------------- trace-time parameter folding / packing -------------------
    def prepare_inputs(x, params):
        # activations -> (C, B*Lp), zero in the pad lanes
        xt = jnp.transpose(x, (1, 0, 2)).astype(jnp.float32)      # (Cin, B, L)
        xt = jnp.pad(xt, ((0, 0), (0, 0), (0, Lp - L)))
        flat = [xt.reshape(input_channels, BL)]

        for d in range(depth):
            p = params["blocks"][d]
            wbn = p["bottleneck_w"][:, :, 0].astype(jnp.bfloat16)      # (cb, ni)
            mats = []
            for w, k in zip(p["conv_ws"], kss):
                pk = (k - 1) // 2
                wp = jnp.pad(w, ((0, 0), (0, 0),
                                 (pad_max - pk, pad_max - pk)))        # (nb, cb, kmax)
                mats.append(jnp.transpose(wp, (0, 2, 1)).reshape(nb, kmax * cb))
            wbr = jnp.concatenate(mats, axis=0).astype(jnp.bfloat16)   # (3nb, kmax*cb)
            wbt = p["bottle_w"][:, :, 0].astype(jnp.bfloat16)          # (nb, ni)
            flat += [wbn, wbr, wbt,
                     p["bn_scale"].reshape(out_ch, 1).astype(jnp.float32),
                     p["bn_bias"].reshape(out_ch, 1).astype(jnp.float32)]

        for s in range(n_sc):
            p = params["shortcuts"][s]
            flat += [p["conv_w"][:, :, 0].astype(jnp.bfloat16),
                     p["bn_scale"].reshape(out_ch, 1).astype(jnp.float32),
                     p["bn_bias"].reshape(out_ch, 1).astype(jnp.float32)]

        h = params["head"]
        # fold the head BatchNorm (eval) straight into the Linear layer
        w_eff = h["lin_w"] * h["bn_scale"][None, :]                    # (ncls, 2C)
        b_eff = h["lin_b"] + h["lin_w"] @ h["bn_bias"]                 # (ncls,)
        flat += [w_eff.astype(jnp.float32),
                 b_eff.reshape(num_classes, 1).astype(jnp.float32)]
        return flat

    # advisory cost estimate for XLA scheduling
    flops = 0
    for d in range(depth):
        ni = input_channels if d == 0 else out_ch
        flops += 2 * B * L * (cb * ni + len(kss) * nb * kmax * cb + nb * ni)
    for s in range(n_sc):
        ni = input_channels if s == 0 else out_ch
        flops += 2 * B * L * out_ch * ni
    flops += 2 * B * num_classes * 2 * out_ch
    w_bytes = 2 * depth * (cb * out_ch + len(kss) * nb * kmax * cb + nb * out_ch)
    bytes_accessed = 4 * input_channels * BL + 4 * num_classes * B + w_bytes
    cost = pl.CostEstimate(flops=int(flops), transcendentals=0,
                           bytes_accessed=int(bytes_accessed))

    call = pl.pallas_call(
        kernel,
        out_shape=jax.ShapeDtypeStruct((num_classes, B), jnp.float32),
        cost_estimate=cost,
    )

    @jax.jit
    def forward(x, params):
        flat = prepare_inputs(x, params)
        logits_nb = call(*flat)                 # (num_classes, B)
        return jnp.transpose(logits_nb)         # (B, num_classes)

    return forward


# ----------------------------------------------------------------------------
# Parameter init (deterministic, synthetic; BN folded to inference affine)
# ----------------------------------------------------------------------------

def _conv_w(key, cout, cin, k):
    fan_in = cin * k
    return jax.random.normal(key, (cout, cin, k), jnp.float32) / jnp.sqrt(fan_in)


def _bn_affine(key, c):
    k1, k2, k3, k4 = jax.random.split(key, 4)
    gamma = 1.0 + 0.1 * jax.random.normal(k1, (c,), jnp.float32)
    beta = 0.1 * jax.random.normal(k2, (c,), jnp.float32)
    mean = 0.1 * jax.random.normal(k3, (c,), jnp.float32)
    var = jax.random.uniform(k4, (c,), jnp.float32, 0.5, 1.5)
    scale = gamma / jnp.sqrt(var + 1e-5)
    bias = beta - mean * scale
    return scale, bias


def init_params(key, input_channels, num_classes, kss, nb_filters, depth,
                bottleneck_size, use_residual=True):
    n_ks = len(kss) + 1
    out_ch = n_ks * nb_filters
    params = {"blocks": [], "shortcuts": []}

    for d in range(depth):
        ni = input_channels if d == 0 else out_ch
        key, k0, k1, k2, k3 = jax.random.split(key, 5)
        conv_ws = [_conv_w(jax.random.fold_in(k1, j), nb_filters,
                           bottleneck_size, ks) for j, ks in enumerate(kss)]
        scale, bias = _bn_affine(k3, out_ch)
        params["blocks"].append({
            "bottleneck_w": _conv_w(k0, bottleneck_size, ni, 1),
            "conv_ws": conv_ws,
            "bottle_w": _conv_w(k2, nb_filters, ni, 1),
            "bn_scale": scale, "bn_bias": bias,
        })

    n_sc = depth // 3 if use_residual else 0
    for s in range(n_sc):
        ni = input_channels if s == 0 else out_ch
        key, k0, k1 = jax.random.split(key, 3)
        scale, bias = _bn_affine(k1, out_ch)
        params["shortcuts"].append({
            "conv_w": _conv_w(k0, out_ch, ni, 1),
            "bn_scale": scale, "bn_bias": bias,
        })

    feat = 2 * out_ch
    key, kh0, kh1, kh2 = jax.random.split(key, 4)
    h_scale, h_bias = _bn_affine(kh0, feat)
    params["head"] = {
        "bn_scale": h_scale, "bn_bias": h_bias,
        "lin_w": (jax.random.normal(kh1, (num_classes, feat), jnp.float32)
                  / jnp.sqrt(feat)),
        "lin_b": 0.01 * jax.random.normal(kh2, (num_classes,), jnp.float32),
    }
    return params


# ----------------------------------------------------------------------------
# Main
# ----------------------------------------------------------------------------

if __name__ == "__main__":
    # InceptionTime(input_channels=4, num_classes=5, kernel_sizes=[9,19,39],
    #               nb_filters=8, depth=6, bottleneck_size=8, use_residual=True)
    input_channels = 4
    num_classes = 5
    kernel_sizes = [k - 1 if k % 2 == 0 else k for k in [9, 19, 39]]
    nb_filters = 8
    depth = 6
    bottleneck_size = 8
    use_residual = True
    B, L = 2, 64

    key = jax.random.PRNGKey(0)
    kx, kp = jax.random.split(key)
    x = jax.random.normal(kx, (B, input_channels, L), jnp.float32)
    params = init_params(kp, input_channels, num_classes, kernel_sizes,
                         nb_filters, depth, bottleneck_size, use_residual)

    forward = make_inception_forward(
        input_channels=input_channels, num_classes=num_classes,
        kss=kernel_sizes, nb_filters=nb_filters, depth=depth,
        bottleneck_size=bottleneck_size, use_residual=use_residual, B=B, L=L)

    out = jax.block_until_ready(forward(x, params))
    assert out.shape == (B, num_classes), out.shape
    assert bool(jnp.all(jnp.isfinite(out))), "non-finite output"
    print("KERNEL_OK")
</pallas_src>

<mosaic_0001>
module attributes {stable_mosaic.version = 11 : i64} {
  func.func @kernel(%arg0: memref<4x256xf32, #tpu.memory_space<vmem>>, %arg1: memref<8x4xbf16, #tpu.memory_space<vmem>>, %arg2: memref<24x312xbf16, #tpu.memory_space<vmem>>, %arg3: memref<8x4xbf16, #tpu.memory_space<vmem>>, %arg4: memref<32x1xf32, #tpu.memory_space<vmem>>, %arg5: memref<32x1xf32, #tpu.memory_space<vmem>>, %arg6: memref<8x32xbf16, #tpu.memory_space<vmem>>, %arg7: memref<24x312xbf16, #tpu.memory_space<vmem>>, %arg8: memref<8x32xbf16, #tpu.memory_space<vmem>>, %arg9: memref<32x1xf32, #tpu.memory_space<vmem>>, %arg10: memref<32x1xf32, #tpu.memory_space<vmem>>, %arg11: memref<8x32xbf16, #tpu.memory_space<vmem>>, %arg12: memref<24x312xbf16, #tpu.memory_space<vmem>>, %arg13: memref<8x32xbf16, #tpu.memory_space<vmem>>, %arg14: memref<32x1xf32, #tpu.memory_space<vmem>>, %arg15: memref<32x1xf32, #tpu.memory_space<vmem>>, %arg16: memref<8x32xbf16, #tpu.memory_space<vmem>>, %arg17: memref<24x312xbf16, #tpu.memory_space<vmem>>, %arg18: memref<8x32xbf16, #tpu.memory_space<vmem>>, %arg19: memref<32x1xf32, #tpu.memory_space<vmem>>, %arg20: memref<32x1xf32, #tpu.memory_space<vmem>>, %arg21: memref<8x32xbf16, #tpu.memory_space<vmem>>, %arg22: memref<24x312xbf16, #tpu.memory_space<vmem>>, %arg23: memref<8x32xbf16, #tpu.memory_space<vmem>>, %arg24: memref<32x1xf32, #tpu.memory_space<vmem>>, %arg25: memref<32x1xf32, #tpu.memory_space<vmem>>, %arg26: memref<8x32xbf16, #tpu.memory_space<vmem>>, %arg27: memref<24x312xbf16, #tpu.memory_space<vmem>>, %arg28: memref<8x32xbf16, #tpu.memory_space<vmem>>, %arg29: memref<32x1xf32, #tpu.memory_space<vmem>>, %arg30: memref<32x1xf32, #tpu.memory_space<vmem>>, %arg31: memref<32x4xbf16, #tpu.memory_space<vmem>>, %arg32: memref<32x1xf32, #tpu.memory_space<vmem>>, %arg33: memref<32x1xf32, #tpu.memory_space<vmem>>, %arg34: memref<32x32xbf16, #tpu.memory_space<vmem>>, %arg35: memref<32x1xf32, #tpu.memory_space<vmem>>, %arg36: memref<32x1xf32, #tpu.memory_space<vmem>>, %arg37: memref<5x64xf32, #tpu.memory_space<vmem>>, %arg38: memref<5x1xf32, #tpu.memory_space<vmem>>, %arg39: memref<5x2xf32, #tpu.memory_space<vmem>>) attributes {dimension_semantics = [], scalar_prefetch = 0 : i64, scratch_operands = 0 : i64, tpu.core_type = #tpu.core_type<tc>} {
    %0 = tpu.iota {dimensions = array<i32: 1>} : vector<1x256xi32>
    %c128_i32 = arith.constant 128 : i32
    %c0_i32 = arith.constant 0 : i32
    %1 = arith.cmpi eq, %c128_i32, %c0_i32 : i32
    %c1_i32 = arith.constant 1 : i32
    %2 = arith.select %1, %c1_i32, %c128_i32 : i32
    %3 = vector.broadcast %2 : i32 to vector<1x256xi32>
    %4 = arith.remsi %0, %3 : vector<1x256xi32>
    %c0_i32_0 = arith.constant 0 : i32
    %5 = vector.broadcast %c0_i32_0 : i32 to vector<1x256xi32>
    %6 = arith.cmpi ne, %4, %5 : vector<1x256xi32>
    %c0_i32_1 = arith.constant 0 : i32
    %7 = vector.broadcast %c0_i32_1 : i32 to vector<1x256xi32>
    %8 = arith.cmpi slt, %4, %7 : vector<1x256xi32>
    %c0_i32_2 = arith.constant 0 : i32
    %9 = arith.cmpi slt, %2, %c0_i32_2 : i32
    %10 = vector.broadcast %9 : i1 to vector<1x256xi1>
    %11 = vector.broadcast %10 : vector<1x256xi1> to vector<1x256xi1>
    %12 = arith.xori %8, %11 : vector<1x256xi1>
    %13 = arith.andi %12, %6 : vector<1x256xi1>
    %14 = vector.broadcast %2 : i32 to vector<1x256xi32>
    %15 = arith.addi %4, %14 : vector<1x256xi32>
    %16 = arith.select %13, %15, %4 : vector<1x256xi1>, vector<1x256xi32>
    %c64_i32 = arith.constant 64 : i32
    %17 = vector.broadcast %c64_i32 : i32 to vector<1x256xi32>
    %18 = arith.cmpi slt, %16, %17 : vector<1x256xi32>
    %c0 = arith.constant 0 : index
    %c0_3 = arith.constant 0 : index
    %19 = vector.load %arg0[%c0, %c0_3] : memref<4x256xf32, #tpu.memory_space<vmem>>, vector<4x256xf32>
    %c0_4 = arith.constant 0 : index
    %c0_5 = arith.constant 0 : index
    %20 = vector.load %arg1[%c0_4, %c0_5] : memref<8x4xbf16, #tpu.memory_space<vmem>>, vector<8x4xbf16>
    %21 = arith.truncf %19 : vector<4x256xf32> to vector<4x256xbf16>
    %cst = arith.constant dense<0.000000e+00> : vector<8x256xf32>
    %22 = tpu.matmul %20, %21, %cst {dimension_numbers = #tpu.dot_dimension_numbers<[1], [0], [0], [1], [0, 0, 1, 1], [], []>} : vector<8x4xbf16>, vector<4x256xbf16>, vector<8x256xf32> -> vector<8x256xf32>
    %c19_i32 = arith.constant 19 : i32
    %23 = tpu.dynamic_rotate %22 by %c19_i32 dim 1 : vector<8x256xf32>, i32 -> vector<8x256xf32>
    %c18_i32 = arith.constant 18 : i32
    %24 = tpu.dynamic_rotate %22 by %c18_i32 dim 1 : vector<8x256xf32>, i32 -> vector<8x256xf32>
    %c17_i32 = arith.constant 17 : i32
    %25 = tpu.dynamic_rotate %22 by %c17_i32 dim 1 : vector<8x256xf32>, i32 -> vector<8x256xf32>
    %c16_i32 = arith.constant 16 : i32
    %26 = tpu.dynamic_rotate %22 by %c16_i32 dim 1 : vector<8x256xf32>, i32 -> vector<8x256xf32>
    %c15_i32 = arith.constant 15 : i32
    %27 = tpu.dynamic_rotate %22 by %c15_i32 dim 1 : vector<8x256xf32>, i32 -> vector<8x256xf32>
    %c14_i32 = arith.constant 14 : i32
    %28 = tpu.dynamic_rotate %22 by %c14_i32 dim 1 : vector<8x256xf32>, i32 -> vector<8x256xf32>
    %c13_i32 = arith.constant 13 : i32
    %29 = tpu.dynamic_rotate %22 by %c13_i32 dim 1 : vector<8x256xf32>, i32 -> vector<8x256xf32>
    %c12_i32 = arith.constant 12 : i32
    %30 = tpu.dynamic_rotate %22 by %c12_i32 dim 1 : vector<8x256xf32>, i32 -> vector<8x256xf32>
    %c11_i32 = arith.constant 11 : i32
    %31 = tpu.dynamic_rotate %22 by %c11_i32 dim 1 : vector<8x256xf32>, i32 -> vector<8x256xf32>
    %c10_i32 = arith.constant 10 : i32
    %32 = tpu.dynamic_rotate %22 by %c10_i32 dim 1 : vector<8x256xf32>, i32 -> vector<8x256xf32>
    %c9_i32 = arith.constant 9 : i32
    %33 = tpu.dynamic_rotate %22 by %c9_i32 dim 1 : vector<8x256xf32>, i32 -> vector<8x256xf32>
    %c8_i32 = arith.constant 8 : i32
    %34 = tpu.dynamic_rotate %22 by %c8_i32 dim 1 : vector<8x256xf32>, i32 -> vector<8x256xf32>
    %c7_i32 = arith.constant 7 : i32
    %35 = tpu.dynamic_rotate %22 by %c7_i32 dim 1 : vector<8x256xf32>, i32 -> vector<8x256xf32>
    %c6_i32 = arith.constant 6 : i32
    %36 = tpu.dynamic_rotate %22 by %c6_i32 dim 1 : vector<8x256xf32>, i32 -> vector<8x256xf32>
    %c5_i32 = arith.constant 5 : i32
    %37 = tpu.dynamic_rotate %22 by %c5_i32 dim 1 : vector<8x256xf32>, i32 -> vector<8x256xf32>
    %c4_i32 = arith.constant 4 : i32
    %38 = tpu.dynamic_rotate %22 by %c4_i32 dim 1 : vector<8x256xf32>, i32 -> vector<8x256xf32>
    %c3_i32 = arith.constant 3 : i32
    %39 = tpu.dynamic_rotate %22 by %c3_i32 dim 1 : vector<8x256xf32>, i32 -> vector<8x256xf32>
    %c2_i32 = arith.constant 2 : i32
    %40 = tpu.dynamic_rotate %22 by %c2_i32 dim 1 : vector<8x256xf32>, i32 -> vector<8x256xf32>
    %c1_i32_6 = arith.constant 1 : i32
    %41 = tpu.dynamic_rotate %22 by %c1_i32_6 dim 1 : vector<8x256xf32>, i32 -> vector<8x256xf32>
    %c255_i32 = arith.constant 255 : i32
    %42 = tpu.dynamic_rotate %22 by %c255_i32 dim 1 : vector<8x256xf32>, i32 -> vector<8x256xf32>
    %c254_i32 = arith.constant 254 : i32
    %43 = tpu.dynamic_rotate %22 by %c254_i32 dim 1 : vector<8x256xf32>, i32 -> vector<8x256xf32>
    %c253_i32 = arith.constant 253 : i32
    %44 = tpu.dynamic_rotate %22 by %c253_i32 dim 1 : vector<8x256xf32>, i32 -> vector<8x256xf32>
    %c252_i32 = arith.constant 252 : i32
    %45 = tpu.dynamic_rotate %22 by %c252_i32 dim 1 : vector<8x256xf32>, i32 -> vector<8x256xf32>
    %c251_i32 = arith.constant 251 : i32
    %46 = tpu.dynamic_rotate %22 by %c251_i32 dim 1 : vector<8x256xf32>, i32 -> vector<8x256xf32>
    %c250_i32 = arith.constant 250 : i32
    %47 = tpu.dynamic_rotate %22 by %c250_i32 dim 1 : vector<8x256xf32>, i32 -> vector<8x256xf32>
    %c249_i32 = arith.constant 249 : i32
    %48 = tpu.dynamic_rotate %22 by %c249_i32 dim 1 : vector<8x256xf32>, i32 -> vector<8x256xf32>
    %c248_i32 = arith.constant 248 : i32
    %49 = tpu.dynamic_rotate %22 by %c248_i32 dim 1 : vector<8x256xf32>, i32 -> vector<8x256xf32>
    %c247_i32 = arith.constant 247 : i32
    %50 = tpu.dynamic_rotate %22 by %c247_i32 dim 1 : vector<8x256xf32>, i32 -> vector<8x256xf32>
    %c246_i32 = arith.constant 246 : i32
    %51 = tpu.dynamic_rotate %22 by %c246_i32 dim 1 : vector<8x256xf32>, i32 -> vector<8x256xf32>
    %c245_i32 = arith.constant 245 : i32
    %52 = tpu.dynamic_rotate %22 by %c245_i32 dim 1 : vector<8x256xf32>, i32 -> vector<8x256xf32>
    %c244_i32 = arith.constant 244 : i32
    %53 = tpu.dynamic_rotate %22 by %c244_i32 dim 1 : vector<8x256xf32>, i32 -> vector<8x256xf32>
    %c243_i32 = arith.constant 243 : i32
    %54 = tpu.dynamic_rotate %22 by %c243_i32 dim 1 : vector<8x256xf32>, i32 -> vector<8x256xf32>
    %c242_i32 = arith.constant 242 : i32
    %55 = tpu.dynamic_rotate %22 by %c242_i32 dim 1 : vector<8x256xf32>, i32 -> vector<8x256xf32>
    %c241_i32 = arith.constant 241 : i32
    %56 = tpu.dynamic_rotate %22 by %c241_i32 dim 1 : vector<8x256xf32>, i32 -> vector<8x256xf32>
    %c240_i32 = arith.constant 240 : i32
    %57 = tpu.dynamic_rotate %22 by %c240_i32 dim 1 : vector<8x256xf32>, i32 -> vector<8x256xf32>
    %c239_i32 = arith.constant 239 : i32
    %58 = tpu.dynamic_rotate %22 by %c239_i32 dim 1 : vector<8x256xf32>, i32 -> vector<8x256xf32>
    %c238_i32 = arith.constant 238 : i32
    %59 = tpu.dynamic_rotate %22 by %c238_i32 dim 1 : vector<8x256xf32>, i32 -> vector<8x256xf32>
    %c237_i32 = arith.constant 237 : i32
    %60 = tpu.dynamic_rotate %22 by %c237_i32 dim 1 : vector<8x256xf32>, i32 -> vector<8x256xf32>
    %61 = tpu.concatenate %23, %24, %25, %26, %27, %28, %29, %30, %31, %32, %33, %34, %35, %36, %37, %38 in 0 : vector<8x256xf32>, vector<8x256xf32>, vector<8x256xf32>, vector<8x256xf32>, vector<8x256xf32>, vector<8x256xf32>, vector<8x256xf32>, vector<8x256xf32>, vector<8x256xf32>, vector<8x256xf32>, vector<8x256xf32>, vector<8x256xf32>, vector<8x256xf32>, vector<8x256xf32>, vector<8x256xf32>, vector<8x256xf32> -> vector<128x256xf32>
    %62 = tpu.concatenate %39, %40, %41, %22, %42, %43, %44, %45, %46, %47, %48, %49, %50, %51, %52, %53 in 0 : vector<8x256xf32>, vector<8x256xf32>, vector<8x256xf32>, vector<8x256xf32>, vector<8x256xf32>, vector<8x256xf32>, vector<8x256xf32>, vector<8x256xf32>, vector<8x256xf32>, vector<8x256xf32>, vector<8x256xf32>, vector<8x256xf32>, vector<8x256xf32>, vector<8x256xf32>, vector<8x256xf32>, vector<8x256xf32> -> vector<128x256xf32>
    %63 = tpu.concatenate %54, %55, %56, %57, %58, %59, %60 in 0 : vector<8x256xf32>, vector<8x256xf32>, vector<8x256xf32>, vector<8x256xf32>, vector<8x256xf32>, vector<8x256xf32>, vector<8x256xf32> -> vector<56x256xf32>
    %64 = tpu.concatenate %61, %62, %63 in 0 : vector<128x256xf32>, vector<128x256xf32>, vector<56x256xf32> -> vector<312x256xf32>
    %65 = arith.truncf %64 : vector<312x256xf32> to vector<312x256xbf16>
    %c0_7 = arith.constant 0 : index
    %c0_8 = arith.constant 0 : index
    %66 = vector.load %arg2[%c0_7, %c0_8] : memref<24x312xbf16, #tpu.memory_space<vmem>>, vector<24x312xbf16>
    %cst_9 = arith.constant dense<0.000000e+00> : vector<24x256xf32>
    %67 = tpu.matmul %66, %65, %cst_9 {dimension_numbers = #tpu.dot_dimension_numbers<[1], [0], [0], [1], [0, 0, 1, 1], [], []>} : vector<24x312xbf16>, vector<312x256xbf16>, vector<24x256xf32> -> vector<24x256xf32>
    %c1_i32_10 = arith.constant 1 : i32
    %68 = vector.broadcast %c1_i32_10 : i32 to vector<1x256xi32>
    %69 = arith.cmpi sge, %16, %68 : vector<1x256xi32>
    %c1_i32_11 = arith.constant 1 : i32
    %70 = tpu.dynamic_rotate %19 by %c1_i32_11 dim 1 : vector<4x256xf32>, i32 -> vector<4x256xf32>
    %cst_12 = arith.constant -3.40282347E+38 : f32
    %71 = vector.shape_cast %69 : vector<1x256xi1> to vector<1x256xi1>
    %72 = vector.broadcast %71 : vector<1x256xi1> to vector<4x256xi1>
    %73 = vector.broadcast %cst_12 : f32 to vector<4x256xf32>
    %74 = arith.select %72, %70, %73 : vector<4x256xi1>, vector<4x256xf32>
    %c62_i32 = arith.constant 62 : i32
    %75 = vector.broadcast %c62_i32 : i32 to vector<1x256xi32>
    %76 = arith.cmpi sle, %16, %75 : vector<1x256xi32>
    %c255_i32_13 = arith.constant 255 : i32
    %77 = tpu.dynamic_rotate %19 by %c255_i32_13 dim 1 : vector<4x256xf32>, i32 -> vector<4x256xf32>
    %cst_14 = arith.constant -3.40282347E+38 : f32
    %78 = vector.shape_cast %76 : vector<1x256xi1> to vector<1x256xi1>
    %79 = vector.broadcast %78 : vector<1x256xi1> to vector<4x256xi1>
    %80 = vector.broadcast %cst_14 : f32 to vector<4x256xf32>
    %81 = arith.select %79, %77, %80 : vector<4x256xi1>, vector<4x256xf32>
    %82 = arith.maximumf %74, %19 : vector<4x256xf32>
    %83 = arith.maximumf %82, %81 : vector<4x256xf32>
    %cst_15 = arith.constant 0.000000e+00 : f32
    %84 = vector.shape_cast %18 : vector<1x256xi1> to vector<1x256xi1>
    %85 = vector.broadcast %84 : vector<1x256xi1> to vector<4x256xi1>
    %86 = vector.broadcast %cst_15 : f32 to vector<4x256xf32>
    %87 = arith.select %85, %83, %86 : vector<4x256xi1>, vector<4x256xf32>
    %c0_16 = arith.constant 0 : index
    %c0_17 = arith.constant 0 : index
    %88 = vector.load %arg3[%c0_16, %c0_17] : memref<8x4xbf16, #tpu.memory_space<vmem>>, vector<8x4xbf16>
    %89 = arith.truncf %87 : vector<4x256xf32> to vector<4x256xbf16>
    %cst_18 = arith.constant dense<0.000000e+00> : vector<8x256xf32>
    %90 = tpu.matmul %88, %89, %cst_18 {dimension_numbers = #tpu.dot_dimension_numbers<[1], [0], [0], [1], [0, 0, 1, 1], [], []>} : vector<8x4xbf16>, vector<4x256xbf16>, vector<8x256xf32> -> vector<8x256xf32>
    %91 = tpu.concatenate %67, %90 in 0 : vector<24x256xf32>, vector<8x256xf32> -> vector<32x256xf32>
    %c0_19 = arith.constant 0 : index
    %c0_20 = arith.constant 0 : index
    %92 = vector.load %arg4[%c0_19, %c0_20] : memref<32x1xf32, #tpu.memory_space<vmem>>, vector<32x1xf32>
    %93 = vector.broadcast %92 : vector<32x1xf32> to vector<32x256xf32>
    %94 = arith.mulf %91, %93 : vector<32x256xf32>
    %c0_21 = arith.constant 0 : index
    %c0_22 = arith.constant 0 : index
    %95 = vector.load %arg5[%c0_21, %c0_22] : memref<32x1xf32, #tpu.memory_space<vmem>>, vector<32x1xf32>
    %96 = vector.broadcast %95 : vector<32x1xf32> to vector<32x256xf32>
    %97 = arith.addf %94, %96 : vector<32x256xf32>
    %cst_23 = arith.constant 0.000000e+00 : f32
    %98 = vector.broadcast %cst_23 : f32 to vector<32x256xf32>
    %99 = arith.maximumf %97, %98 : vector<32x256xf32>
    %cst_24 = arith.constant 0.000000e+00 : f32
    %100 = vector.shape_cast %18 : vector<1x256xi1> to vector<1x256xi1>
    %101 = vector.broadcast %100 : vector<1x256xi1> to vector<32x256xi1>
    %102 = vector.broadcast %cst_24 : f32 to vector<32x256xf32>
    %103 = arith.select %101, %99, %102 : vector<32x256xi1>, vector<32x256xf32>
    %c0_25 = arith.constant 0 : index
    %c0_26 = arith.constant 0 : index
    %104 = vector.load %arg6[%c0_25, %c0_26] : memref<8x32xbf16, #tpu.memory_space<vmem>>, vector<8x32xbf16>
    %105 = arith.truncf %103 : vector<32x256xf32> to vector<32x256xbf16>
    %cst_27 = arith.constant dense<0.000000e+00> : vector<8x256xf32>
    %106 = tpu.matmul %104, %105, %cst_27 {dimension_numbers = #tpu.dot_dimension_numbers<[1], [0], [0], [1], [0, 0, 1, 1], [], []>} : vector<8x32xbf16>, vector<32x256xbf16>, vector<8x256xf32> -> vector<8x256xf32>
    %c19_i32_28 = arith.constant 19 : i32
    %107 = tpu.dynamic_rotate %106 by %c19_i32_28 dim 1 : vector<8x256xf32>, i32 -> vector<8x256xf32>
    %c18_i32_29 = arith.constant 18 : i32
    %108 = tpu.dynamic_rotate %106 by %c18_i32_29 dim 1 : vector<8x256xf32>, i32 -> vector<8x256xf32>
    %c17_i32_30 = arith.constant 17 : i32
    %109 = tpu.dynamic_rotate %106 by %c17_i32_30 dim 1 : vector<8x256xf32>, i32 -> vector<8x256xf32>
    %c16_i32_31 = arith.constant 16 : i32
    %110 = tpu.dynamic_rotate %106 by %c16_i32_31 dim 1 : vector<8x256xf32>, i32 -> vector<8x256xf32>
    %c15_i32_32 = arith.constant 15 : i32
    %111 = tpu.dynamic_rotate %106 by %c15_i32_32 dim 1 : vector<8x256xf32>, i32 -> vector<8x256xf32>
    %c14_i32_33 = arith.constant 14 : i32
    %112 = tpu.dynamic_rotate %106 by %c14_i32_33 dim 1 : vector<8x256xf32>, i32 -> vector<8x256xf32>
    %c13_i32_34 = arith.constant 13 : i32
    %113 = tpu.dynamic_rotate %106 by %c13_i32_34 dim 1 : vector<8x256xf32>, i32 -> vector<8x256xf32>
    %c12_i32_35 = arith.constant 12 : i32
    %114 = tpu.dynamic_rotate %106 by %c12_i32_35 dim 1 : vector<8x256xf32>, i32 -> vector<8x256xf32>
    %c11_i32_36 = arith.constant 11 : i32
    %115 = tpu.dynamic_rotate %106 by %c11_i32_36 dim 1 : vector<8x256xf32>, i32 -> vector<8x256xf32>
    %c10_i32_37 = arith.constant 10 : i32
    %116 = tpu.dynamic_rotate %106 by %c10_i32_37 dim 1 : vector<8x256xf32>, i32 -> vector<8x256xf32>
    %c9_i32_38 = arith.constant 9 : i32
    %117 = tpu.dynamic_rotate %106 by %c9_i32_38 dim 1 : vector<8x256xf32>, i32 -> vector<8x256xf32>
    %c8_i32_39 = arith.constant 8 : i32
    %118 = tpu.dynamic_rotate %106 by %c8_i32_39 dim 1 : vector<8x256xf32>, i32 -> vector<8x256xf32>
    %c7_i32_40 = arith.constant 7 : i32
    %119 = tpu.dynamic_rotate %106 by %c7_i32_40 dim 1 : vector<8x256xf32>, i32 -> vector<8x256xf32>
    %c6_i32_41 = arith.constant 6 : i32
    %120 = tpu.dynamic_rotate %106 by %c6_i32_41 dim 1 : vector<8x256xf32>, i32 -> vector<8x256xf32>
    %c5_i32_42 = arith.constant 5 : i32
    %121 = tpu.dynamic_rotate %106 by %c5_i32_42 dim 1 : vector<8x256xf32>, i32 -> vector<8x256xf32>
    %c4_i32_43 = arith.constant 4 : i32
    %122 = tpu.dynamic_rotate %106 by %c4_i32_43 dim 1 : vector<8x256xf32>, i32 -> vector<8x256xf32>
    %c3_i32_44 = arith.constant 3 : i32
    %123 = tpu.dynamic_rotate %106 by %c3_i32_44 dim 1 : vector<8x256xf32>, i32 -> vector<8x256xf32>
    %c2_i32_45 = arith.constant 2 : i32
    %124 = tpu.dynamic_rotate %106 by %c2_i32_45 dim 1 : vector<8x256xf32>, i32 -> vector<8x256xf32>
    %c1_i32_46 = arith.constant 1 : i32
    %125 = tpu.dynamic_rotate %106 by %c1_i32_46 dim 1 : vector<8x256xf32>, i32 -> vector<8x256xf32>
    %c255_i32_47 = arith.constant 255 : i32
    %126 = tpu.dynamic_rotate %106 by %c255_i32_47 dim 1 : vector<8x256xf32>, i32 -> vector<8x256xf32>
    %c254_i32_48 = arith.constant 254 : i32
    %127 = tpu.dynamic_rotate %106 by %c254_i32_48 dim 1 : vector<8x256xf32>, i32 -> vector<8x256xf32>
    %c253_i32_49 = arith.constant 253 : i32
    %128 = tpu.dynamic_rotate %106 by %c253_i32_49 dim 1 : vector<8x256xf32>, i32 -> vector<8x256xf32>
    %c252_i32_50 = arith.constant 252 : i32
    %129 = tpu.dynamic_rotate %106 by %c252_i32_50 dim 1 : vector<8x256xf32>, i32 -> vector<8x256xf32>
    %c251_i32_51 = arith.constant 251 : i32
    %130 = tpu.dynamic_rotate %106 by %c251_i32_51 dim 1 : vector<8x256xf32>, i32 -> vector<8x256xf32>
    %c250_i32_52 = arith.constant 250 : i32
    %131 = tpu.dynamic_rotate %106 by %c250_i32_52 dim 1 : vector<8x256xf32>, i32 -> vector<8x256xf32>
    %c249_i32_53 = arith.constant 249 : i32
    %132 = tpu.dynamic_rotate %106 by %c249_i32_53 dim 1 : vector<8x256xf32>, i32 -> vector<8x256xf32>
    %c248_i32_54 = arith.constant 248 : i32
    %133 = tpu.dynamic_rotate %106 by %c248_i32_54 dim 1 : vector<8x256xf32>, i32 -> vector<8x256xf32>
    %c247_i32_55 = arith.constant 247 : i32
    %134 = tpu.dynamic_rotate %106 by %c247_i32_55 dim 1 : vector<8x256xf32>, i32 -> vector<8x256xf32>
    %c246_i32_56 = arith.constant 246 : i32
    %135 = tpu.dynamic_rotate %106 by %c246_i32_56 dim 1 : vector<8x256xf32>, i32 -> vector<8x256xf32>
    %c245_i32_57 = arith.constant 245 : i32
    %136 = tpu.dynamic_rotate %106 by %c245_i32_57 dim 1 : vector<8x256xf32>, i32 -> vector<8x256xf32>
    %c244_i32_58 = arith.constant 244 : i32
    %137 = tpu.dynamic_rotate %106 by %c244_i32_58 dim 1 : vector<8x256xf32>, i32 -> vector<8x256xf32>
    %c243_i32_59 = arith.constant 243 : i32
    %138 = tpu.dynamic_rotate %106 by %c243_i32_59 dim 1 : vector<8x256xf32>, i32 -> vector<8x256xf32>
    %c242_i32_60 = arith.constant 242 : i32
    %139 = tpu.dynamic_rotate %106 by %c242_i32_60 dim 1 : vector<8x256xf32>, i32 -> vector<8x256xf32>
    %c241_i32_61 = arith.constant 241 : i32
    %140 = tpu.dynamic_rotate %106 by %c241_i32_61 dim 1 : vector<8x256xf32>, i32 -> vector<8x256xf32>
    %c240_i32_62 = arith.constant 240 : i32
    %141 = tpu.dynamic_rotate %106 by %c240_i32_62 dim 1 : vector<8x256xf32>, i32 -> vector<8x256xf32>
    %c239_i32_63 = arith.constant 239 : i32
    %142 = tpu.dynamic_rotate %106 by %c239_i32_63 dim 1 : vector<8x256xf32>, i32 -> vector<8x256xf32>
    %c238_i32_64 = arith.constant 238 : i32
    %143 = tpu.dynamic_rotate %106 by %c238_i32_64 dim 1 : vector<8x256xf32>, i32 -> vector<8x256xf32>
    %c237_i32_65 = arith.constant 237 : i32
    %144 = tpu.dynamic_rotate %106 by %c237_i32_65 dim 1 : vector<8x256xf32>, i32 -> vector<8x256xf32>
    %145 = tpu.concatenate %107, %108, %109, %110, %111, %112, %113, %114, %115, %116, %117, %118, %119, %120, %121, %122 in 0 : vector<8x256xf32>, vector<8x256xf32>, vector<8x256xf32>, vector<8x256xf32>, vector<8x256xf32>, vector<8x256xf32>, vector<8x256xf32>, vector<8x256xf32>, vector<8x256xf32>, vector<8x256xf32>, vector<8x256xf32>, vector<8x256xf32>, vector<8x256xf32>, vector<8x256xf32>, vector<8x256xf32>, vector<8x256xf32> -> vector<128x256xf32>
    %146 = tpu.concatenate %123, %124, %125, %106, %126, %127, %128, %129, %130, %131, %132, %133, %134, %135, %136, %137 in 0 : vector<8x256xf32>, vector<8x256xf32>, vector<8x256xf32>, vector<8x256xf32>, vector<8x256xf32>, vector<8x256xf32>, vector<8x256xf32>, vector<8x256xf32>, vector<8x256xf32>, vector<8x256xf32>, vector<8x256xf32>, vector<8x256xf32>, vector<8x256xf32>, vector<8x256xf32>, vector<8x256xf32>, vector<8x256xf32> -> vector<128x256xf32>
    %147 = tpu.concatenate %138, %139, %140, %141, %142, %143, %144 in 0 : vector<8x256xf32>, vector<8x256xf32>, vector<8x256xf32>, vector<8x256xf32>, vector<8x256xf32>, vector<8x256xf32>, vector<8x256xf32> -> vector<56x256xf32>
    %148 = tpu.concatenate %145, %146, %147 in 0 : vector<128x256xf32>, vector<128x256xf32>, vector<56x256xf32> -> vector<312x256xf32>
    %149 = arith.truncf %148 : vector<312x256xf32> to vector<312x256xbf16>
    %c0_66 = arith.constant 0 : index
    %c0_67 = arith.constant 0 : index
    %150 = vector.load %arg7[%c0_66, %c0_67] : memref<24x312xbf16, #tpu.memory_space<vmem>>, vector<24x312xbf16>
    %cst_68 = arith.constant dense<0.000000e+00> : vector<24x256xf32>
    %151 = tpu.matmul %150, %149, %cst_68 {dimension_numbers = #tpu.dot_dimension_numbers<[1], [0], [0], [1], [0, 0, 1, 1], [], []>} : vector<24x312xbf16>, vector<312x256xbf16>, vector<24x256xf32> -> vector<24x256xf32>
    %c1_i32_69 = arith.constant 1 : i32
    %152 = vector.broadcast %c1_i32_69 : i32 to vector<1x256xi32>
    %153 = arith.cmpi sge, %16, %152 : vector<1x256xi32>
    %c1_i32_70 = arith.constant 1 : i32
    %154 = tpu.dynamic_rotate %103 by %c1_i32_70 dim 1 : vector<32x256xf32>, i32 -> vector<32x256xf32>
    %cst_71 = arith.constant -3.40282347E+38 : f32
    %155 = vector.shape_cast %153 : vector<1x256xi1> to vector<1x256xi1>
    %156 = vector.broadcast %155 : vector<1x256xi1> to vector<32x256xi1>
    %157 = vector.broadcast %cst_71 : f32 to vector<32x256xf32>
    %158 = arith.select %156, %154, %157 : vector<32x256xi1>, vector<32x256xf32>
    %c62_i32_72 = arith.constant 62 : i32
    %159 = vector.broadcast %c62_i32_72 : i32 to vector<1x256xi32>
    %160 = arith.cmpi sle, %16, %159 : vector<1x256xi32>
    %c255_i32_73 = arith.constant 255 : i32
    %161 = tpu.dynamic_rotate %103 by %c255_i32_73 dim 1 : vector<32x256xf32>, i32 -> vector<32x256xf32>
    %cst_74 = arith.constant -3.40282347E+38 : f32
    %162 = vector.shape_cast %160 : vector<1x256xi1> to vector<1x256xi1>
    %163 = vector.broadcast %162 : vector<1x256xi1> to vector<32x256xi1>
    %164 = vector.broadcast %cst_74 : f32 to vector<32x256xf32>
    %165 = arith.select %163, %161, %164 : vector<32x256xi1>, vector<32x256xf32>
    %166 = arith.maximumf %158, %103 : vector<32x256xf32>
    %167 = arith.maximumf %166, %165 : vector<32x256xf32>
    %cst_75 = arith.constant 0.000000e+00 : f32
    %168 = vector.shape_cast %18 : vector<1x256xi1> to vector<1x256xi1>
    %169 = vector.broadcast %168 : vector<1x256xi1> to vector<32x256xi1>
    %170 = vector.broadcast %cst_75 : f32 to vector<32x256xf32>
    %171 = arith.select %169, %167, %170 : vector<32x256xi1>, vector<32x256xf32>
    %c0_76 = arith.constant 0 : index
    %c0_77 = arith.constant 0 : index
    %172 = vector.load %arg8[%c0_76, %c0_77] : memref<8x32xbf16, #tpu.memory_space<vmem>>, vector<8x32xbf16>
    %173 = arith.truncf %171 : vector<32x256xf32> to vector<32x256xbf16>
    %cst_78 = arith.constant dense<0.000000e+00> : vector<8x256xf32>
    %174 = tpu.matmul %172, %173, %cst_78 {dimension_numbers = #tpu.dot_dimension_numbers<[1], [0], [0], [1], [0, 0, 1, 1], [], []>} : vector<8x32xbf16>, vector<32x256xbf16>, vector<8x256xf32> -> vector<8x256xf32>
    %175 = tpu.concatenate %151, %174 in 0 : vector<24x256xf32>, vector<8x256xf32> -> vector<32x256xf32>
    %c0_79 = arith.constant 0 : index
    %c0_80 = arith.constant 0 : index
    %176 = vector.load %arg9[%c0_79, %c0_80] : memref<32x1xf32, #tpu.memory_space<vmem>>, vector<32x1xf32>
    %177 = vector.broadcast %176 : vector<32x1xf32> to vector<32x256xf32>
    %178 = arith.mulf %175, %177 : vector<32x256xf32>
    %c0_81 = arith.constant 0 : index
    %c0_82 = arith.constant 0 : index
    %179 = vector.load %arg10[%c0_81, %c0_82] : memref<32x1xf32, #tpu.memory_space<vmem>>, vector<32x1xf32>
    %180 = vector.broadcast %179 : vector<32x1xf32> to vector<32x256xf32>
    %181 = arith.addf %178, %180 : vector<32x256xf32>
    %cst_83 = arith.constant 0.000000e+00 : f32
    %182 = vector.broadcast %cst_83 : f32 to vector<32x256xf32>
    %183 = arith.maximumf %181, %182 : vector<32x256xf32>
    %cst_84 = arith.constant 0.000000e+00 : f32
    %184 = vector.shape_cast %18 : vector<1x256xi1> to vector<1x256xi1>
    %185 = vector.broadcast %184 : vector<1x256xi1> to vector<32x256xi1>
    %186 = vector.broadcast %cst_84 : f32 to vector<32x256xf32>
    %187 = arith.select %185, %183, %186 : vector<32x256xi1>, vector<32x256xf32>
    %c0_85 = arith.constant 0 : index
    %c0_86 = arith.constant 0 : index
    %188 = vector.load %arg11[%c0_85, %c0_86] : memref<8x32xbf16, #tpu.memory_space<vmem>>, vector<8x32xbf16>
    %189 = arith.truncf %187 : vector<32x256xf32> to vector<32x256xbf16>
    %cst_87 = arith.constant dense<0.000000e+00> : vector<8x256xf32>
    %190 = tpu.matmul %188, %189, %cst_87 {dimension_numbers = #tpu.dot_dimension_numbers<[1], [0], [0], [1], [0, 0, 1, 1], [], []>} : vector<8x32xbf16>, vector<32x256xbf16>, vector<8x256xf32> -> vector<8x256xf32>
    %c19_i32_88 = arith.constant 19 : i32
    %191 = tpu.dynamic_rotate %190 by %c19_i32_88 dim 1 : vector<8x256xf32>, i32 -> vector<8x256xf32>
    %c18_i32_89 = arith.constant 18 : i32
    %192 = tpu.dynamic_rotate %190 by %c18_i32_89 dim 1 : vector<8x256xf32>, i32 -> vector<8x256xf32>
    %c17_i32_90 = arith.constant 17 : i32
    %193 = tpu.dynamic_rotate %190 by %c17_i32_90 dim 1 : vector<8x256xf32>, i32 -> vector<8x256xf32>
    %c16_i32_91 = arith.constant 16 : i32
    %194 = tpu.dynamic_rotate %190 by %c16_i32_91 dim 1 : vector<8x256xf32>, i32 -> vector<8x256xf32>
    %c15_i32_92 = arith.constant 15 : i32
    %195 = tpu.dynamic_rotate %190 by %c15_i32_92 dim 1 : vector<8x256xf32>, i32 -> vector<8x256xf32>
    %c14_i32_93 = arith.constant 14 : i32
    %196 = tpu.dynamic_rotate %190 by %c14_i32_93 dim 1 : vector<8x256xf32>, i32 -> vector<8x256xf32>
    %c13_i32_94 = arith.constant 13 : i32
    %197 = tpu.dynamic_rotate %190 by %c13_i32_94 dim 1 : vector<8x256xf32>, i32 -> vector<8x256xf32>
    %c12_i32_95 = arith.constant 12 : i32
    %198 = tpu.dynamic_rotate %190 by %c12_i32_95 dim 1 : vector<8x256xf32>, i32 -> vector<8x256xf32>
    %c11_i32_96 = arith.constant 11 : i32
    %199 = tpu.dynamic_rotate %190 by %c11_i32_96 dim 1 : vector<8x256xf32>, i32 -> vector<8x256xf32>
    %c10_i32_97 = arith.constant 10 : i32
    %200 = tpu.dynamic_rotate %190 by %c10_i32_97 dim 1 : vector<8x256xf32>, i32 -> vector<8x256xf32>
    %c9_i32_98 = arith.constant 9 : i32
    %201 = tpu.dynamic_rotate %190 by %c9_i32_98 dim 1 : vector<8x256xf32>, i32 -> vector<8x256xf32>
    %c8_i32_99 = arith.constant 8 : i32
    %202 = tpu.dynamic_rotate %190 by %c8_i32_99 dim 1 : vector<8x256xf32>, i32 -> vector<8x256xf32>
    %c7_i32_100 = arith.constant 7 : i32
    %203 = tpu.dynamic_rotate %190 by %c7_i32_100 dim 1 : vector<8x256xf32>, i32 -> vector<8x256xf32>
    %c6_i32_101 = arith.constant 6 : i32
    %204 = tpu.dynamic_rotate %190 by %c6_i32_101 dim 1 : vector<8x256xf32>, i32 -> vector<8x256xf32>
    %c5_i32_102 = arith.constant 5 : i32
    %205 = tpu.dynamic_rotate %190 by %c5_i32_102 dim 1 : vector<8x256xf32>, i32 -> vector<8x256xf32>
    %c4_i32_103 = arith.constant 4 : i32
    %206 = tpu.dynamic_rotate %190 by %c4_i32_103 dim 1 : vector<8x256xf32>, i32 -> vector<8x256xf32>
    %c3_i32_104 = arith.constant 3 : i32
    %207 = tpu.dynamic_rotate %190 by %c3_i32_104 dim 1 : vector<8x256xf32>, i32 -> vector<8x256xf32>
    %c2_i32_105 = arith.constant 2 : i32
    %208 = tpu.dynamic_rotate %190 by %c2_i32_105 dim 1 : vector<8x256xf32>, i32 -> vector<8x256xf32>
    %c1_i32_106 = arith.constant 1 : i32
    %209 = tpu.dynamic_rotate %190 by %c1_i32_106 dim 1 : vector<8x256xf32>, i32 -> vector<8x256xf32>
    %c255_i32_107 = arith.constant 255 : i32
    %210 = tpu.dynamic_rotate %190 by %c255_i32_107 dim 1 : vector<8x256xf32>, i32 -> vector<8x256xf32>
    %c254_i32_108 = arith.constant 254 : i32
    %211 = tpu.dynamic_rotate %190 by %c254_i32_108 dim 1 : vector<8x256xf32>, i32 -> vector<8x256xf32>
    %c253_i32_109 = arith.constant 253 : i32
    %212 = tpu.dynamic_rotate %190 by %c253_i32_109 dim 1 : vector<8x256xf32>, i32 -> vector<8x256xf32>
    %c252_i32_110 = arith.constant 252 : i32
    %213 = tpu.dynamic_rotate %190 by %c252_i32_110 dim 1 : vector<8x256xf32>, i32 -> vector<8x256xf32>
    %c251_i32_111 = arith.constant 251 : i32
    %214 = tpu.dynamic_rotate %190 by %c251_i32_111 dim 1 : vector<8x256xf32>, i32 -> vector<8x256xf32>
    %c250_i32_112 = arith.constant 250 : i32
    %215 = tpu.dynamic_rotate %190 by %c250_i32_112 dim 1 : vector<8x256xf32>, i32 -> vector<8x256xf32>
    %c249_i32_113 = arith.constant 249 : i32
    %216 = tpu.dynamic_rotate %190 by %c249_i32_113 dim 1 : vector<8x256xf32>, i32 -> vector<8x256xf32>
    %c248_i32_114 = arith.constant 248 : i32
    %217 = tpu.dynamic_rotate %190 by %c248_i32_114 dim 1 : vector<8x256xf32>, i32 -> vector<8x256xf32>
    %c247_i32_115 = arith.constant 247 : i32
    %218 = tpu.dynamic_rotate %190 by %c247_i32_115 dim 1 : vector<8x256xf32>, i32 -> vector<8x256xf32>
    %c246_i32_116 = arith.constant 246 : i32
    %219 = tpu.dynamic_rotate %190 by %c246_i32_116 dim 1 : vector<8x256xf32>, i32 -> vector<8x256xf32>
    %c245_i32_117 = arith.constant 245 : i32
    %220 = tpu.dynamic_rotate %190 by %c245_i32_117 dim 1 : vector<8x256xf32>, i32 -> vector<8x256xf32>
    %c244_i32_118 = arith.constant 244 : i32
    %221 = tpu.dynamic_rotate %190 by %c244_i32_118 dim 1 : vector<8x256xf32>, i32 -> vector<8x256xf32>
    %c243_i32_119 = arith.constant 243 : i32
    %222 = tpu.dynamic_rotate %190 by %c243_i32_119 dim 1 : vector<8x256xf32>, i32 -> vector<8x256xf32>
    %c242_i32_120 = arith.constant 242 : i32
    %223 = tpu.dynamic_rotate %190 by %c242_i32_120 dim 1 : vector<8x256xf32>, i32 -> vector<8x256xf32>
    %c241_i32_121 = arith.constant 241 : i32
    %224 = tpu.dynamic_rotate %190 by %c241_i32_121 dim 1 : vector<8x256xf32>, i32 -> vector<8x256xf32>
    %c240_i32_122 = arith.constant 240 : i32
    %225 = tpu.dynamic_rotate %190 by %c240_i32_122 dim 1 : vector<8x256xf32>, i32 -> vector<8x256xf32>
    %c239_i32_123 = arith.constant 239 : i32
    %226 = tpu.dynamic_rotate %190 by %c239_i32_123 dim 1 : vector<8x256xf32>, i32 -> vector<8x256xf32>
    %c238_i32_124 = arith.constant 238 : i32
    %227 = tpu.dynamic_rotate %190 by %c238_i32_124 dim 1 : vector<8x256xf32>, i32 -> vector<8x256xf32>
    %c237_i32_125 = arith.constant 237 : i32
    %228 = tpu.dynamic_rotate %190 by %c237_i32_125 dim 1 : vector<8x256xf32>, i32 -> vector<8x256xf32>
    %229 = tpu.concatenate %191, %192, %193, %194, %195, %196, %197, %198, %199, %200, %201, %202, %203, %204, %205, %206 in 0 : vector<8x256xf32>, vector<8x256xf32>, vector<8x256xf32>, vector<8x256xf32>, vector<8x256xf32>, vector<8x256xf32>, vector<8x256xf32>, vector<8x256xf32>, vector<8x256xf32>, vector<8x256xf32>, vector<8x256xf32>, vector<8x256xf32>, vector<8x256xf32>, vector<8x256xf32>, vector<8x256xf32>, vector<8x256xf32> -> vector<128x256xf32>
    %230 = tpu.concatenate %207, %208, %209, %190, %210, %211, %212, %213, %214, %215, %216, %217, %218, %219, %220, %221 in 0 : vector<8x256xf32>, vector<8x256xf32>, vector<8x256xf32>, vector<8x256xf32>, vector<8x256xf32>, vector<8x256xf32>, vector<8x256xf32>, vector<8x256xf32>, vector<8x256xf32>, vector<8x256xf32>, vector<8x256xf32>, vector<8x256xf32>, vector<8x256xf32>, vector<8x256xf32>, vector<8x256xf32>, vector<8x256xf32> -> vector<128x256xf32>
    %231 = tpu.concatenate %222, %223, %224, %225, %226, %227, %228 in 0 : vector<8x256xf32>, vector<8x256xf32>, vector<8x256xf32>, vector<8x256xf32>, vector<8x256xf32>, vector<8x256xf32>, vector<8x256xf32> -> vector<56x256xf32>
    %232 = tpu.concatenate %229, %230, %231 in 0 : vector<128x256xf32>, vector<128x256xf32>, vector<56x256xf32> -> vector<312x256xf32>
    %233 = arith.truncf %232 : vector<312x256xf32> to vector<312x256xbf16>
    %c0_126 = arith.constant 0 : index
    %c0_127 = arith.constant 0 : index
    %234 = vector.load %arg12[%c0_126, %c0_127] : memref<24x312xbf16, #tpu.memory_space<vmem>>, vector<24x312xbf16>
    %cst_128 = arith.constant dense<0.000000e+00> : vector<24x256xf32>
    %235 = tpu.matmul %234, %233, %cst_128 {dimension_numbers = #tpu.dot_dimension_numbers<[1], [0], [0], [1], [0, 0, 1, 1], [], []>} : vector<24x312xbf16>, vector<312x256xbf16>, vector<24x256xf32> -> vector<24x256xf32>
    %c1_i32_129 = arith.constant 1 : i32
    %236 = vector.broadcast %c1_i32_129 : i32 to vector<1x256xi32>
    %237 = arith.cmpi sge, %16, %236 : vector<1x256xi32>
    %c1_i32_130 = arith.constant 1 : i32
    %238 = tpu.dynamic_rotate %187 by %c1_i32_130 dim 1 : vector<32x256xf32>, i32 -> vector<32x256xf32>
    %cst_131 = arith.constant -3.40282347E+38 : f32
    %239 = vector.shape_cast %237 : vector<1x256xi1> to vector<1x256xi1>
    %240 = vector.broadcast %239 : vector<1x256xi1> to vector<32x256xi1>
    %241 = vector.broadcast %cst_131 : f32 to vector<32x256xf32>
    %242 = arith.select %240, %238, %241 : vector<32x256xi1>, vector<32x256xf32>
    %c62_i32_132 = arith.constant 62 : i32
    %243 = vector.broadcast %c62_i32_132 : i32 to vector<1x256xi32>
    %244 = arith.cmpi sle, %16, %243 : vector<1x256xi32>
    %c255_i32_133 = arith.constant 255 : i32
    %245 = tpu.dynamic_rotate %187 by %c255_i32_133 dim 1 : vector<32x256xf32>, i32 -> vector<32x256xf32>
    %cst_134 = arith.constant -3.40282347E+38 : f32
    %246 = vector.shape_cast %244 : vector<1x256xi1> to vector<1x256xi1>
    %247 = vector.broadcast %246 : vector<1x256xi1> to vector<32x256xi1>
    %248 = vector.broadcast %cst_134 : f32 to vector<32x256xf32>
    %249 = arith.select %247, %245, %248 : vector<32x256xi1>, vector<32x256xf32>
    %250 = arith.maximumf %242, %187 : vector<32x256xf32>
    %251 = arith.maximumf %250, %249 : vector<32x256xf32>
    %cst_135 = arith.constant 0.000000e+00 : f32
    %252 = vector.shape_cast %18 : vector<1x256xi1> to vector<1x256xi1>
    %253 = vector.broadcast %252 : vector<1x256xi1> to vector<32x256xi1>
    %254 = vector.broadcast %cst_135 : f32 to vector<32x256xf32>
    %255 = arith.select %253, %251, %254 : vector<32x256xi1>, vector<32x256xf32>
    %c0_136 = arith.constant 0 : index
    %c0_137 = arith.constant 0 : index
    %256 = vector.load %arg13[%c0_136, %c0_137] : memref<8x32xbf16, #tpu.memory_space<vmem>>, vector<8x32xbf16>
    %257 = arith.truncf %255 : vector<32x256xf32> to vector<32x256xbf16>
    %cst_138 = arith.constant dense<0.000000e+00> : vector<8x256xf32>
    %258 = tpu.matmul %256, %257, %cst_138 {dimension_numbers = #tpu.dot_dimension_numbers<[1], [0], [0], [1], [0, 0, 1, 1], [], []>} : vector<8x32xbf16>, vector<32x256xbf16>, vector<8x256xf32> -> vector<8x256xf32>
    %259 = tpu.concatenate %235, %258 in 0 : vector<24x256xf32>, vector<8x256xf32> -> vector<32x256xf32>
    %c0_139 = arith.constant 0 : index
    %c0_140 = arith.constant 0 : index
    %260 = vector.load %arg14[%c0_139, %c0_140] : memref<32x1xf32, #tpu.memory_space<vmem>>, vector<32x1xf32>
    %261 = vector.broadcast %260 : vector<32x1xf32> to vector<32x256xf32>
    %262 = arith.mulf %259, %261 : vector<32x256xf32>
    %c0_141 = arith.constant 0 : index
    %c0_142 = arith.constant 0 : index
    %263 = vector.load %arg15[%c0_141, %c0_142] : memref<32x1xf32, #tpu.memory_space<vmem>>, vector<32x1xf32>
    %264 = vector.broadcast %263 : vector<32x1xf32> to vector<32x256xf32>
    %265 = arith.addf %262, %264 : vector<32x256xf32>
    %cst_143 = arith.constant 0.000000e+00 : f32
    %266 = vector.broadcast %cst_143 : f32 to vector<32x256xf32>
    %267 = arith.maximumf %265, %266 : vector<32x256xf32>
    %c0_144 = arith.constant 0 : index
    %c0_145 = arith.constant 0 : index
    %268 = vector.load %arg31[%c0_144, %c0_145] : memref<32x4xbf16, #tpu.memory_space<vmem>>, vector<32x4xbf16>
    %269 = arith.truncf %19 : vector<4x256xf32> to vector<4x256xbf16>
    %cst_146 = arith.constant dense<0.000000e+00> : vector<32x256xf32>
    %270 = tpu.matmul %268, %269, %cst_146 {dimension_numbers = #tpu.dot_dimension_numbers<[1], [0], [0], [1], [0, 0, 1, 1], [], []>} : vector<32x4xbf16>, vector<4x256xbf16>, vector<32x256xf32> -> vector<32x256xf32>
    %c0_147 = arith.constant 0 : index
    %c0_148 = arith.constant 0 : index
    %271 = vector.load %arg32[%c0_147, %c0_148] : memref<32x1xf32, #tpu.memory_space<vmem>>, vector<32x1xf32>
    %272 = vector.broadcast %271 : vector<32x1xf32> to vector<32x256xf32>
    %273 = arith.mulf %270, %272 : vector<32x256xf32>
    %c0_149 = arith.constant 0 : index
    %c0_150 = arith.constant 0 : index
    %274 = vector.load %arg33[%c0_149, %c0_150] : memref<32x1xf32, #tpu.memory_space<vmem>>, vector<32x1xf32>
    %275 = vector.broadcast %274 : vector<32x1xf32> to vector<32x256xf32>
    %276 = arith.addf %273, %275 : vector<32x256xf32>
    %277 = arith.addf %267, %276 : vector<32x256xf32>
    %cst_151 = arith.constant 0.000000e+00 : f32
    %278 = vector.broadcast %cst_151 : f32 to vector<32x256xf32>
    %279 = arith.maximumf %277, %278 : vector<32x256xf32>
    %cst_152 = arith.constant 0.000000e+00 : f32
    %280 = vector.shape_cast %18 : vector<1x256xi1> to vector<1x256xi1>
    %281 = vector.broadcast %280 : vector<1x256xi1> to vector<32x256xi1>
    %282 = vector.broadcast %cst_152 : f32 to vector<32x256xf32>
    %283 = arith.select %281, %279, %282 : vector<32x256xi1>, vector<32x256xf32>
    %c0_153 = arith.constant 0 : index
    %c0_154 = arith.constant 0 : index
    %284 = vector.load %arg16[%c0_153, %c0_154] : memref<8x32xbf16, #tpu.memory_space<vmem>>, vector<8x32xbf16>
    %285 = arith.truncf %283 : vector<32x256xf32> to vector<32x256xbf16>
    %cst_155 = arith.constant dense<0.000000e+00> : vector<8x256xf32>
    %286 = tpu.matmul %284, %285, %cst_155 {dimension_numbers = #tpu.dot_dimension_numbers<[1], [0], [0], [1], [0, 0, 1, 1], [], []>} : vector<8x32xbf16>, vector<32x256xbf16>, vector<8x256xf32> -> vector<8x256xf32>
    %c19_i32_156 = arith.constant 19 : i32
    %287 = tpu.dynamic_rotate %286 by %c19_i32_156 dim 1 : vector<8x256xf32>, i32 -> vector<8x256xf32>
    %c18_i32_157 = arith.constant 18 : i32
    %288 = tpu.dynamic_rotate %286 by %c18_i32_157 dim 1 : vector<8x256xf32>, i32 -> vector<8x256xf32>
    %c17_i32_158 = arith.constant 17 : i32
    %289 = tpu.dynamic_rotate %286 by %c17_i32_158 dim 1 : vector<8x256xf32>, i32 -> vector<8x256xf32>
    %c16_i32_159 = arith.constant 16 : i32
    %290 = tpu.dynamic_rotate %286 by %c16_i32_159 dim 1 : vector<8x256xf32>, i32 -> vector<8x256xf32>
    %c15_i32_160 = arith.constant 15 : i32
    %291 = tpu.dynamic_rotate %286 by %c15_i32_160 dim 1 : vector<8x256xf32>, i32 -> vector<8x256xf32>
    %c14_i32_161 = arith.constant 14 : i32
    %292 = tpu.dynamic_rotate %286 by %c14_i32_161 dim 1 : vector<8x256xf32>, i32 -> vector<8x256xf32>
    %c13_i32_162 = arith.constant 13 : i32
    %293 = tpu.dynamic_rotate %286 by %c13_i32_162 dim 1 : vector<8x256xf32>, i32 -> vector<8x256xf32>
    %c12_i32_163 = arith.constant 12 : i32
    %294 = tpu.dynamic_rotate %286 by %c12_i32_163 dim 1 : vector<8x256xf32>, i32 -> vector<8x256xf32>
    %c11_i32_164 = arith.constant 11 : i32
    %295 = tpu.dynamic_rotate %286 by %c11_i32_164 dim 1 : vector<8x256xf32>, i32 -> vector<8x256xf32>
    %c10_i32_165 = arith.constant 10 : i32
    %296 = tpu.dynamic_rotate %286 by %c10_i32_165 dim 1 : vector<8x256xf32>, i32 -> vector<8x256xf32>
    %c9_i32_166 = arith.constant 9 : i32
    %297 = tpu.dynamic_rotate %286 by %c9_i32_166 dim 1 : vector<8x256xf32>, i32 -> vector<8x256xf32>
    %c8_i32_167 = arith.constant 8 : i32
    %298 = tpu.dynamic_rotate %286 by %c8_i32_167 dim 1 : vector<8x256xf32>, i32 -> vector<8x256xf32>
    %c7_i32_168 = arith.constant 7 : i32
    %299 = tpu.dynamic_rotate %286 by %c7_i32_168 dim 1 : vector<8x256xf32>, i32 -> vector<8x256xf32>
    %c6_i32_169 = arith.constant 6 : i32
    %300 = tpu.dynamic_rotate %286 by %c6_i32_169 dim 1 : vector<8x256xf32>, i32 -> vector<8x256xf32>
    %c5_i32_170 = arith.constant 5 : i32
    %301 = tpu.dynamic_rotate %286 by %c5_i32_170 dim 1 : vector<8x256xf32>, i32 -> vector<8x256xf32>
    %c4_i32_171 = arith.constant 4 : i32
    %302 = tpu.dynamic_rotate %286 by %c4_i32_171 dim 1 : vector<8x256xf32>, i32 -> vector<8x256xf32>
    %c3_i32_172 = arith.constant 3 : i32
    %303 = tpu.dynamic_rotate %286 by %c3_i32_172 dim 1 : vector<8x256xf32>, i32 -> vector<8x256xf32>
    %c2_i32_173 = arith.constant 2 : i32
    %304 = tpu.dynamic_rotate %286 by %c2_i32_173 dim 1 : vector<8x256xf32>, i32 -> vector<8x256xf32>
    %c1_i32_174 = arith.constant 1 : i32
    %305 = tpu.dynamic_rotate %286 by %c1_i32_174 dim 1 : vector<8x256xf32>, i32 -> vector<8x256xf32>
    %c255_i32_175 = arith.constant 255 : i32
    %306 = tpu.dynamic_rotate %286 by %c255_i32_175 dim 1 : vector<8x256xf32>, i32 -> vector<8x256xf32>
    %c254_i32_176 = arith.constant 254 : i32
    %307 = tpu.dynamic_rotate %286 by %c254_i32_176 dim 1 : vector<8x256xf32>, i32 -> vector<8x256xf32>
    %c253_i32_177 = arith.constant 253 : i32
    %308 = tpu.dynamic_rotate %286 by %c253_i32_177 dim 1 : vector<8x256xf32>, i32 -> vector<8x256xf32>
    %c252_i32_178 = arith.constant 252 : i32
    %309 = tpu.dynamic_rotate %286 by %c252_i32_178 dim 1 : vector<8x256xf32>, i32 -> vector<8x256xf32>
    %c251_i32_179 = arith.constant 251 : i32
    %310 = tpu.dynamic_rotate %286 by %c251_i32_179 dim 1 : vector<8x256xf32>, i32 -> vector<8x256xf32>
    %c250_i32_180 = arith.constant 250 : i32
    %311 = tpu.dynamic_rotate %286 by %c250_i32_180 dim 1 : vector<8x256xf32>, i32 -> vector<8x256xf32>
    %c249_i32_181 = arith.constant 249 : i32
    %312 = tpu.dynamic_rotate %286 by %c249_i32_181 dim 1 : vector<8x256xf32>, i32 -> vector<8x256xf32>
    %c248_i32_182 = arith.constant 248 : i32
    %313 = tpu.dynamic_rotate %286 by %c248_i32_182 dim 1 : vector<8x256xf32>, i32 -> vector<8x256xf32>
    %c247_i32_183 = arith.constant 247 : i32
    %314 = tpu.dynamic_rotate %286 by %c247_i32_183 dim 1 : vector<8x256xf32>, i32 -> vector<8x256xf32>
    %c246_i32_184 = arith.constant 246 : i32
    %315 = tpu.dynamic_rotate %286 by %c246_i32_184 dim 1 : vector<8x256xf32>, i32 -> vector<8x256xf32>
    %c245_i32_185 = arith.constant 245 : i32
    %316 = tpu.dynamic_rotate %286 by %c245_i32_185 dim 1 : vector<8x256xf32>, i32 -> vector<8x256xf32>
    %c244_i32_186 = arith.constant 244 : i32
    %317 = tpu.dynamic_rotate %286 by %c244_i32_186 dim 1 : vector<8x256xf32>, i32 -> vector<8x256xf32>
    %c243_i32_187 = arith.constant 243 : i32
    %318 = tpu.dynamic_rotate %286 by %c243_i32_187 dim 1 : vector<8x256xf32>, i32 -> vector<8x256xf32>
    %c242_i32_188 = arith.constant 242 : i32
    %319 = tpu.dynamic_rotate %286 by %c242_i32_188 dim 1 : vector<8x256xf32>, i32 -> vector<8x256xf32>
    %c241_i32_189 = arith.constant 241 : i32
    %320 = tpu.dynamic_rotate %286 by %c241_i32_189 dim 1 : vector<8x256xf32>, i32 -> vector<8x256xf32>
    %c240_i32_190 = arith.constant 240 : i32
    %321 = tpu.dynamic_rotate %286 by %c240_i32_190 dim 1 : vector<8x256xf32>, i32 -> vector<8x256xf32>
    %c239_i32_191 = arith.constant 239 : i32
    %322 = tpu.dynamic_rotate %286 by %c239_i32_191 dim 1 : vector<8x256xf32>, i32 -> vector<8x256xf32>
    %c238_i32_192 = arith.constant 238 : i32
    %323 = tpu.dynamic_rotate %286 by %c238_i32_192 dim 1 : vector<8x256xf32>, i32 -> vector<8x256xf32>
    %c237_i32_193 = arith.constant 237 : i32
    %324 = tpu.dynamic_rotate %286 by %c237_i32_193 dim 1 : vector<8x256xf32>, i32 -> vector<8x256xf32>
    %325 = tpu.concatenate %287, %288, %289, %290, %291, %292, %293, %294, %295, %296, %297, %298, %299, %300, %301, %302 in 0 : vector<8x256xf32>, vector<8x256xf32>, vector<8x256xf32>, vector<8x256xf32>, vector<8x256xf32>, vector<8x256xf32>, vector<8x256xf32>, vector<8x256xf32>, vector<8x256xf32>, vector<8x256xf32>, vector<8x256xf32>, vector<8x256xf32>, vector<8x256xf32>, vector<8x256xf32>, vector<8x256xf32>, vector<8x256xf32> -> vector<128x256xf32>
    %326 = tpu.concatenate %303, %304, %305, %286, %306, %307, %308, %309, %310, %311, %312, %313, %314, %315, %316, %317 in 0 : vector<8x256xf32>, vector<8x256xf32>, vector<8x256xf32>, vector<8x256xf32>, vector<8x256xf32>, vector<8x256xf32>, vector<8x256xf32>, vector<8x256xf32>, vector<8x256xf32>, vector<8x256xf32>, vector<8x256xf32>, vector<8x256xf32>, vector<8x256xf32>, vector<8x256xf32>, vector<8x256xf32>, vector<8x256xf32> -> vector<128x256xf32>
    %327 = tpu.concatenate %318, %319, %320, %321, %322, %323, %324 in 0 : vector<8x256xf32>, vector<8x256xf32>, vector<8x256xf32>, vector<8x256xf32>, vector<8x256xf32>, vector<8x256xf32>, vector<8x256xf32> -> vector<56x256xf32>
    %328 = tpu.concatenate %325, %326, %327 in 0 : vector<128x256xf32>, vector<128x256xf32>, vector<56x256xf32> -> vector<312x256xf32>
    %329 = arith.truncf %328 : vector<312x256xf32> to vector<312x256xbf16>
    %c0_194 = arith.constant 0 : index
    %c0_195 = arith.constant 0 : index
    %330 = vector.load %arg17[%c0_194, %c0_195] : memref<24x312xbf16, #tpu.memory_space<vmem>>, vector<24x312xbf16>
    %cst_196 = arith.constant dense<0.000000e+00> : vector<24x256xf32>
    %331 = tpu.matmul %330, %329, %cst_196 {dimension_numbers = #tpu.dot_dimension_numbers<[1], [0], [0], [1], [0, 0, 1, 1], [], []>} : vector<24x312xbf16>, vector<312x256xbf16>, vector<24x256xf32> -> vector<24x256xf32>
    %c1_i32_197 = arith.constant 1 : i32
    %332 = vector.broadcast %c1_i32_197 : i32 to vector<1x256xi32>
    %333 = arith.cmpi sge, %16, %332 : vector<1x256xi32>
    %c1_i32_198 = arith.constant 1 : i32
    %334 = tpu.dynamic_rotate %283 by %c1_i32_198 dim 1 : vector<32x256xf32>, i32 -> vector<32x256xf32>
    %cst_199 = arith.constant -3.40282347E+38 : f32
    %335 = vector.shape_cast %333 : vector<1x256xi1> to vector<1x256xi1>
    %336 = vector.broadcast %335 : vector<1x256xi1> to vector<32x256xi1>
    %337 = vector.broadcast %cst_199 : f32 to vector<32x256xf32>
    %338 = arith.select %336, %334, %337 : vector<32x256xi1>, vector<32x256xf32>
    %c62_i32_200 = arith.constant 62 : i32
    %339 = vector.broadcast %c62_i32_200 : i32 to vector<1x256xi32>
    %340 = arith.cmpi sle, %16, %339 : vector<1x256xi32>
    %c255_i32_201 = arith.constant 255 : i32
    %341 = tpu.dynamic_rotate %283 by %c255_i32_201 dim 1 : vector<32x256xf32>, i32 -> vector<32x256xf32>
    %cst_202 = arith.constant -3.40282347E+38 : f32
    %342 = vector.shape_cast %340 : vector<1x256xi1> to vector<1x256xi1>
    %343 = vector.broadcast %342 : vector<1x256xi1> to vector<32x256xi1>
    %344 = vector.broadcast %cst_202 : f32 to vector<32x256xf32>
    %345 = arith.select %343, %341, %344 : vector<32x256xi1>, vector<32x256xf32>
    %346 = arith.maximumf %338, %283 : vector<32x256xf32>
    %347 = arith.maximumf %346, %345 : vector<32x256xf32>
    %cst_203 = arith.constant 0.000000e+00 : f32
    %348 = vector.shape_cast %18 : vector<1x256xi1> to vector<1x256xi1>
    %349 = vector.broadcast %348 : vector<1x256xi1> to vector<32x256xi1>
    %350 = vector.broadcast %cst_203 : f32 to vector<32x256xf32>
    %351 = arith.select %349, %347, %350 : vector<32x256xi1>, vector<32x256xf32>
    %c0_204 = arith.constant 0 : index
    %c0_205 = arith.constant 0 : index
    %352 = vector.load %arg18[%c0_204, %c0_205] : memref<8x32xbf16, #tpu.memory_space<vmem>>, vector<8x32xbf16>
    %353 = arith.truncf %351 : vector<32x256xf32> to vector<32x256xbf16>
    %cst_206 = arith.constant dense<0.000000e+00> : vector<8x256xf32>
    %354 = tpu.matmul %352, %353, %cst_206 {dimension_numbers = #tpu.dot_dimension_numbers<[1], [0], [0], [1], [0, 0, 1, 1], [], []>} : vector<8x32xbf16>, vector<32x256xbf16>, vector<8x256xf32> -> vector<8x256xf32>
    %355 = tpu.concatenate %331, %354 in 0 : vector<24x256xf32>, vector<8x256xf32> -> vector<32x256xf32>
    %c0_207 = arith.constant 0 : index
    %c0_208 = arith.constant 0 : index
    %356 = vector.load %arg19[%c0_207, %c0_208] : memref<32x1xf32, #tpu.memory_space<vmem>>, vector<32x1xf32>
    %357 = vector.broadcast %356 : vector<32x1xf32> to vector<32x256xf32>
    %358 = arith.mulf %355, %357 : vector<32x256xf32>
    %c0_209 = arith.constant 0 : index
    %c0_210 = arith.constant 0 : index
    %359 = vector.load %arg20[%c0_209, %c0_210] : memref<32x1xf32, #tpu.memory_space<vmem>>, vector<32x1xf32>
    %360 = vector.broadcast %359 : vector<32x1xf32> to vector<32x256xf32>
    %361 = arith.addf %358, %360 : vector<32x256xf32>
    %cst_211 = arith.constant 0.000000e+00 : f32
    %362 = vector.broadcast %cst_211 : f32 to vector<32x256xf32>
    %363 = arith.maximumf %361, %362 : vector<32x256xf32>
    %cst_212 = arith.constant 0.000000e+00 : f32
    %364 = vector.shape_cast %18 : vector<1x256xi1> to vector<1x256xi1>
    %365 = vector.broadcast %364 : vector<1x256xi1> to vector<32x256xi1>
    %366 = vector.broadcast %cst_212 : f32 to vector<32x256xf32>
    %367 = arith.select %365, %363, %366 : vector<32x256xi1>, vector<32x256xf32>
    %c0_213 = arith.constant 0 : index
    %c0_214 = arith.constant 0 : index
    %368 = vector.load %arg21[%c0_213, %c0_214] : memref<8x32xbf16, #tpu.memory_space<vmem>>, vector<8x32xbf16>
    %369 = arith.truncf %367 : vector<32x256xf32> to vector<32x256xbf16>
    %cst_215 = arith.constant dense<0.000000e+00> : vector<8x256xf32>
    %370 = tpu.matmul %368, %369, %cst_215 {dimension_numbers = #tpu.dot_dimension_numbers<[1], [0], [0], [1], [0, 0, 1, 1], [], []>} : vector<8x32xbf16>, vector<32x256xbf16>, vector<8x256xf32> -> vector<8x256xf32>
    %c19_i32_216 = arith.constant 19 : i32
    %371 = tpu.dynamic_rotate %370 by %c19_i32_216 dim 1 : vector<8x256xf32>, i32 -> vector<8x256xf32>
    %c18_i32_217 = arith.constant 18 : i32
    %372 = tpu.dynamic_rotate %370 by %c18_i32_217 dim 1 : vector<8x256xf32>, i32 -> vector<8x256xf32>
    %c17_i32_218 = arith.constant 17 : i32
    %373 = tpu.dynamic_rotate %370 by %c17_i32_218 dim 1 : vector<8x256xf32>, i32 -> vector<8x256xf32>
    %c16_i32_219 = arith.constant 16 : i32
    %374 = tpu.dynamic_rotate %370 by %c16_i32_219 dim 1 : vector<8x256xf32>, i32 -> vector<8x256xf32>
    %c15_i32_220 = arith.constant 15 : i32
    %375 = tpu.dynamic_rotate %370 by %c15_i32_220 dim 1 : vector<8x256xf32>, i32 -> vector<8x256xf32>
    %c14_i32_221 = arith.constant 14 : i32
    %376 = tpu.dynamic_rotate %370 by %c14_i32_221 dim 1 : vector<8x256xf32>, i32 -> vector<8x256xf32>
    %c13_i32_222 = arith.constant 13 : i32
    %377 = tpu.dynamic_rotate %370 by %c13_i32_222 dim 1 : vector<8x256xf32>, i32 -> vector<8x256xf32>
    %c12_i32_223 = arith.constant 12 : i32
    %378 = tpu.dynamic_rotate %370 by %c12_i32_223 dim 1 : vector<8x256xf32>, i32 -> vector<8x256xf32>
    %c11_i32_224 = arith.constant 11 : i32
    %379 = tpu.dynamic_rotate %370 by %c11_i32_224 dim 1 : vector<8x256xf32>, i32 -> vector<8x256xf32>
    %c10_i32_225 = arith.constant 10 : i32
    %380 = tpu.dynamic_rotate %370 by %c10_i32_225 dim 1 : vector<8x256xf32>, i32 -> vector<8x256xf32>
    %c9_i32_226 = arith.constant 9 : i32
    %381 = tpu.dynamic_rotate %370 by %c9_i32_226 dim 1 : vector<8x256xf32>, i32 -> vector<8x256xf32>
    %c8_i32_227 = arith.constant 8 : i32
    %382 = tpu.dynamic_rotate %370 by %c8_i32_227 dim 1 : vector<8x256xf32>, i32 -> vector<8x256xf32>
    %c7_i32_228 = arith.constant 7 : i32
    %383 = tpu.dynamic_rotate %370 by %c7_i32_228 dim 1 : vector<8x256xf32>, i32 -> vector<8x256xf32>
    %c6_i32_229 = arith.constant 6 : i32
    %384 = tpu.dynamic_rotate %370 by %c6_i32_229 dim 1 : vector<8x256xf32>, i32 -> vector<8x256xf32>
    %c5_i32_230 = arith.constant 5 : i32
    %385 = tpu.dynamic_rotate %370 by %c5_i32_230 dim 1 : vector<8x256xf32>, i32 -> vector<8x256xf32>
    %c4_i32_231 = arith.constant 4 : i32
    %386 = tpu.dynamic_rotate %370 by %c4_i32_231 dim 1 : vector<8x256xf32>, i32 -> vector<8x256xf32>
    %c3_i32_232 = arith.constant 3 : i32
    %387 = tpu.dynamic_rotate %370 by %c3_i32_232 dim 1 : vector<8x256xf32>, i32 -> vector<8x256xf32>
    %c2_i32_233 = arith.constant 2 : i32
    %388 = tpu.dynamic_rotate %370 by %c2_i32_233 dim 1 : vector<8x256xf32>, i32 -> vector<8x256xf32>
    %c1_i32_234 = arith.constant 1 : i32
    %389 = tpu.dynamic_rotate %370 by %c1_i32_234 dim 1 : vector<8x256xf32>, i32 -> vector<8x256xf32>
    %c255_i32_235 = arith.constant 255 : i32
    %390 = tpu.dynamic_rotate %370 by %c255_i32_235 dim 1 : vector<8x256xf32>, i32 -> vector<8x256xf32>
    %c254_i32_236 = arith.constant 254 : i32
    %391 = tpu.dynamic_rotate %370 by %c254_i32_236 dim 1 : vector<8x256xf32>, i32 -> vector<8x256xf32>
    %c253_i32_237 = arith.constant 253 : i32
    %392 = tpu.dynamic_rotate %370 by %c253_i32_237 dim 1 : vector<8x256xf32>, i32 -> vector<8x256xf32>
    %c252_i32_238 = arith.constant 252 : i32
    %393 = tpu.dynamic_rotate %370 by %c252_i32_238 dim 1 : vector<8x256xf32>, i32 -> vector<8x256xf32>
    %c251_i32_239 = arith.constant 251 : i32
    %394 = tpu.dynamic_rotate %370 by %c251_i32_239 dim 1 : vector<8x256xf32>, i32 -> vector<8x256xf32>
    %c250_i32_240 = arith.constant 250 : i32
    %395 = tpu.dynamic_rotate %370 by %c250_i32_240 dim 1 : vector<8x256xf32>, i32 -> vector<8x256xf32>
    %c249_i32_241 = arith.constant 249 : i32
    %396 = tpu.dynamic_rotate %370 by %c249_i32_241 dim 1 : vector<8x256xf32>, i32 -> vector<8x256xf32>
    %c248_i32_242 = arith.constant 248 : i32
    %397 = tpu.dynamic_rotate %370 by %c248_i32_242 dim 1 : vector<8x256xf32>, i32 -> vector<8x256xf32>
    %c247_i32_243 = arith.constant 247 : i32
    %398 = tpu.dynamic_rotate %370 by %c247_i32_243 dim 1 : vector<8x256xf32>, i32 -> vector<8x256xf32>
    %c246_i32_244 = arith.constant 246 : i32
    %399 = tpu.dynamic_rotate %370 by %c246_i32_244 dim 1 : vector<8x256xf32>, i32 -> vector<8x256xf32>
    %c245_i32_245 = arith.constant 245 : i32
    %400 = tpu.dynamic_rotate %370 by %c245_i32_245 dim 1 : vector<8x256xf32>, i32 -> vector<8x256xf32>
    %c244_i32_246 = arith.constant 244 : i32
    %401 = tpu.dynamic_rotate %370 by %c244_i32_246 dim 1 : vector<8x256xf32>, i32 -> vector<8x256xf32>
    %c243_i32_247 = arith.constant 243 : i32
    %402 = tpu.dynamic_rotate %370 by %c243_i32_247 dim 1 : vector<8x256xf32>, i32 -> vector<8x256xf32>
    %c242_i32_248 = arith.constant 242 : i32
    %403 = tpu.dynamic_rotate %370 by %c242_i32_248 dim 1 : vector<8x256xf32>, i32 -> vector<8x256xf32>
    %c241_i32_249 = arith.constant 241 : i32
    %404 = tpu.dynamic_rotate %370 by %c241_i32_249 dim 1 : vector<8x256xf32>, i32 -> vector<8x256xf32>
    %c240_i32_250 = arith.constant 240 : i32
    %405 = tpu.dynamic_rotate %370 by %c240_i32_250 dim 1 : vector<8x256xf32>, i32 -> vector<8x256xf32>
    %c239_i32_251 = arith.constant 239 : i32
    %406 = tpu.dynamic_rotate %370 by %c239_i32_251 dim 1 : vector<8x256xf32>, i32 -> vector<8x256xf32>
    %c238_i32_252 = arith.constant 238 : i32
    %407 = tpu.dynamic_rotate %370 by %c238_i32_252 dim 1 : vector<8x256xf32>, i32 -> vector<8x256xf32>
    %c237_i32_253 = arith.constant 237 : i32
    %408 = tpu.dynamic_rotate %370 by %c237_i32_253 dim 1 : vector<8x256xf32>, i32 -> vector<8x256xf32>
    %409 = tpu.concatenate %371, %372, %373, %374, %375, %376, %377, %378, %379, %380, %381, %382, %383, %384, %385, %386 in 0 : vector<8x256xf32>, vector<8x256xf32>, vector<8x256xf32>, vector<8x256xf32>, vector<8x256xf32>, vector<8x256xf32>, vector<8x256xf32>, vector<8x256xf32>, vector<8x256xf32>, vector<8x256xf32>, vector<8x256xf32>, vector<8x256xf32>, vector<8x256xf32>, vector<8x256xf32>, vector<8x256xf32>, vector<8x256xf32> -> vector<128x256xf32>
    %410 = tpu.concatenate %387, %388, %389, %370, %390, %391, %392, %393, %394, %395, %396, %397, %398, %399, %400, %401 in 0 : vector<8x256xf32>, vector<8x256xf32>, vector<8x256xf32>, vector<8x256xf32>, vector<8x256xf32>, vector<8x256xf32>, vector<8x256xf32>, vector<8x256xf32>, vector<8x256xf32>, vector<8x256xf32>, vector<8x256xf32>, vector<8x256xf32>, vector<8x256xf32>, vector<8x256xf32>, vector<8x256xf32>, vector<8x256xf32> -> vector<128x256xf32>
    %411 = tpu.concatenate %402, %403, %404, %405, %406, %407, %408 in 0 : vector<8x256xf32>, vector<8x256xf32>, vector<8x256xf32>, vector<8x256xf32>, vector<8x256xf32>, vector<8x256xf32>, vector<8x256xf32> -> vector<56x256xf32>
    %412 = tpu.concatenate %409, %410, %411 in 0 : vector<128x256xf32>, vector<128x256xf32>, vector<56x256xf32> -> vector<312x256xf32>
    %413 = arith.truncf %412 : vector<312x256xf32> to vector<312x256xbf16>
    %c0_254 = arith.constant 0 : index
    %c0_255 = arith.constant 0 : index
    %414 = vector.load %arg22[%c0_254, %c0_255] : memref<24x312xbf16, #tpu.memory_space<vmem>>, vector<24x312xbf16>
    %cst_256 = arith.constant dense<0.000000e+00> : vector<24x256xf32>
    %415 = tpu.matmul %414, %413, %cst_256 {dimension_numbers = #tpu.dot_dimension_numbers<[1], [0], [0], [1], [0, 0, 1, 1], [], []>} : vector<24x312xbf16>, vector<312x256xbf16>, vector<24x256xf32> -> vector<24x256xf32>
    %c1_i32_257 = arith.constant 1 : i32
    %416 = vector.broadcast %c1_i32_257 : i32 to vector<1x256xi32>
    %417 = arith.cmpi sge, %16, %416 : vector<1x256xi32>
    %c1_i32_258 = arith.constant 1 : i32
    %418 = tpu.dynamic_rotate %367 by %c1_i32_258 dim 1 : vector<32x256xf32>, i32 -> vector<32x256xf32>
    %cst_259 = arith.constant -3.40282347E+38 : f32
    %419 = vector.shape_cast %417 : vector<1x256xi1> to vector<1x256xi1>
    %420 = vector.broadcast %419 : vector<1x256xi1> to vector<32x256xi1>
    %421 = vector.broadcast %cst_259 : f32 to vector<32x256xf32>
    %422 = arith.select %420, %418, %421 : vector<32x256xi1>, vector<32x256xf32>
    %c62_i32_260 = arith.constant 62 : i32
    %423 = vector.broadcast %c62_i32_260 : i32 to vector<1x256xi32>
    %424 = arith.cmpi sle, %16, %423 : vector<1x256xi32>
    %c255_i32_261 = arith.constant 255 : i32
    %425 = tpu.dynamic_rotate %367 by %c255_i32_261 dim 1 : vector<32x256xf32>, i32 -> vector<32x256xf32>
    %cst_262 = arith.constant -3.40282347E+38 : f32
    %426 = vector.shape_cast %424 : vector<1x256xi1> to vector<1x256xi1>
    %427 = vector.broadcast %426 : vector<1x256xi1> to vector<32x256xi1>
    %428 = vector.broadcast %cst_262 : f32 to vector<32x256xf32>
    %429 = arith.select %427, %425, %428 : vector<32x256xi1>, vector<32x256xf32>
    %430 = arith.maximumf %422, %367 : vector<32x256xf32>
    %431 = arith.maximumf %430, %429 : vector<32x256xf32>
    %cst_263 = arith.constant 0.000000e+00 : f32
    %432 = vector.shape_cast %18 : vector<1x256xi1> to vector<1x256xi1>
    %433 = vector.broadcast %432 : vector<1x256xi1> to vector<32x256xi1>
    %434 = vector.broadcast %cst_263 : f32 to vector<32x256xf32>
    %435 = arith.select %433, %431, %434 : vector<32x256xi1>, vector<32x256xf32>
    %c0_264 = arith.constant 0 : index
    %c0_265 = arith.constant 0 : index
    %436 = vector.load %arg23[%c0_264, %c0_265] : memref<8x32xbf16, #tpu.memory_space<vmem>>, vector<8x32xbf16>
    %437 = arith.truncf %435 : vector<32x256xf32> to vector<32x256xbf16>
    %cst_266 = arith.constant dense<0.000000e+00> : vector<8x256xf32>
    %438 = tpu.matmul %436, %437, %cst_266 {dimension_numbers = #tpu.dot_dimension_numbers<[1], [0], [0], [1], [0, 0, 1, 1], [], []>} : vector<8x32xbf16>, vector<32x256xbf16>, vector<8x256xf32> -> vector<8x256xf32>
    %439 = tpu.concatenate %415, %438 in 0 : vector<24x256xf32>, vector<8x256xf32> -> vector<32x256xf32>
    %c0_267 = arith.constant 0 : index
    %c0_268 = arith.constant 0 : index
    %440 = vector.load %arg24[%c0_267, %c0_268] : memref<32x1xf32, #tpu.memory_space<vmem>>, vector<32x1xf32>
    %441 = vector.broadcast %440 : vector<32x1xf32> to vector<32x256xf32>
    %442 = arith.mulf %439, %441 : vector<32x256xf32>
    %c0_269 = arith.constant 0 : index
    %c0_270 = arith.constant 0 : index
    %443 = vector.load %arg25[%c0_269, %c0_270] : memref<32x1xf32, #tpu.memory_space<vmem>>, vector<32x1xf32>
    %444 = vector.broadcast %443 : vector<32x1xf32> to vector<32x256xf32>
    %445 = arith.addf %442, %444 : vector<32x256xf32>
    %cst_271 = arith.constant 0.000000e+00 : f32
    %446 = vector.broadcast %cst_271 : f32 to vector<32x256xf32>
    %447 = arith.maximumf %445, %446 : vector<32x256xf32>
    %cst_272 = arith.constant 0.000000e+00 : f32
    %448 = vector.shape_cast %18 : vector<1x256xi1> to vector<1x256xi1>
    %449 = vector.broadcast %448 : vector<1x256xi1> to vector<32x256xi1>
    %450 = vector.broadcast %cst_272 : f32 to vector<32x256xf32>
    %451 = arith.select %449, %447, %450 : vector<32x256xi1>, vector<32x256xf32>
    %c0_273 = arith.constant 0 : index
    %c0_274 = arith.constant 0 : index
    %452 = vector.load %arg26[%c0_273, %c0_274] : memref<8x32xbf16, #tpu.memory_space<vmem>>, vector<8x32xbf16>
    %453 = arith.truncf %451 : vector<32x256xf32> to vector<32x256xbf16>
    %cst_275 = arith.constant dense<0.000000e+00> : vector<8x256xf32>
    %454 = tpu.matmul %452, %453, %cst_275 {dimension_numbers = #tpu.dot_dimension_numbers<[1], [0], [0], [1], [0, 0, 1, 1], [], []>} : vector<8x32xbf16>, vector<32x256xbf16>, vector<8x256xf32> -> vector<8x256xf32>
    %c19_i32_276 = arith.constant 19 : i32
    %455 = tpu.dynamic_rotate %454 by %c19_i32_276 dim 1 : vector<8x256xf32>, i32 -> vector<8x256xf32>
    %c18_i32_277 = arith.constant 18 : i32
    %456 = tpu.dynamic_rotate %454 by %c18_i32_277 dim 1 : vector<8x256xf32>, i32 -> vector<8x256xf32>
    %c17_i32_278 = arith.constant 17 : i32
    %457 = tpu.dynamic_rotate %454 by %c17_i32_278 dim 1 : vector<8x256xf32>, i32 -> vector<8x256xf32>
    %c16_i32_279 = arith.constant 16 : i32
    %458 = tpu.dynamic_rotate %454 by %c16_i32_279 dim 1 : vector<8x256xf32>, i32 -> vector<8x256xf32>
    %c15_i32_280 = arith.constant 15 : i32
    %459 = tpu.dynamic_rotate %454 by %c15_i32_280 dim 1 : vector<8x256xf32>, i32 -> vector<8x256xf32>
    %c14_i32_281 = arith.constant 14 : i32
    %460 = tpu.dynamic_rotate %454 by %c14_i32_281 dim 1 : vector<8x256xf32>, i32 -> vector<8x256xf32>
    %c13_i32_282 = arith.constant 13 : i32
    %461 = tpu.dynamic_rotate %454 by %c13_i32_282 dim 1 : vector<8x256xf32>, i32 -> vector<8x256xf32>
    %c12_i32_283 = arith.constant 12 : i32
    %462 = tpu.dynamic_rotate %454 by %c12_i32_283 dim 1 : vector<8x256xf32>, i32 -> vector<8x256xf32>
    %c11_i32_284 = arith.constant 11 : i32
    %463 = tpu.dynamic_rotate %454 by %c11_i32_284 dim 1 : vector<8x256xf32>, i32 -> vector<8x256xf32>
    %c10_i32_285 = arith.constant 10 : i32
    %464 = tpu.dynamic_rotate %454 by %c10_i32_285 dim 1 : vector<8x256xf32>, i32 -> vector<8x256xf32>
    %c9_i32_286 = arith.constant 9 : i32
    %465 = tpu.dynamic_rotate %454 by %c9_i32_286 dim 1 : vector<8x256xf32>, i32 -> vector<8x256xf32>
    %c8_i32_287 = arith.constant 8 : i32
    %466 = tpu.dynamic_rotate %454 by %c8_i32_287 dim 1 : vector<8x256xf32>, i32 -> vector<8x256xf32>
    %c7_i32_288 = arith.constant 7 : i32
    %467 = tpu.dynamic_rotate %454 by %c7_i32_288 dim 1 : vector<8x256xf32>, i32 -> vector<8x256xf32>
    %c6_i32_289 = arith.constant 6 : i32
    %468 = tpu.dynamic_rotate %454 by %c6_i32_289 dim 1 : vector<8x256xf32>, i32 -> vector<8x256xf32>
    %c5_i32_290 = arith.constant 5 : i32
    %469 = tpu.dynamic_rotate %454 by %c5_i32_290 dim 1 : vector<8x256xf32>, i32 -> vector<8x256xf32>
    %c4_i32_291 = arith.constant 4 : i32
    %470 = tpu.dynamic_rotate %454 by %c4_i32_291 dim 1 : vector<8x256xf32>, i32 -> vector<8x256xf32>
    %c3_i32_292 = arith.constant 3 : i32
    %471 = tpu.dynamic_rotate %454 by %c3_i32_292 dim 1 : vector<8x256xf32>, i32 -> vector<8x256xf32>
    %c2_i32_293 = arith.constant 2 : i32
    %472 = tpu.dynamic_rotate %454 by %c2_i32_293 dim 1 : vector<8x256xf32>, i32 -> vector<8x256xf32>
    %c1_i32_294 = arith.constant 1 : i32
    %473 = tpu.dynamic_rotate %454 by %c1_i32_294 dim 1 : vector<8x256xf32>, i32 -> vector<8x256xf32>
    %c255_i32_295 = arith.constant 255 : i32
    %474 = tpu.dynamic_rotate %454 by %c255_i32_295 dim 1 : vector<8x256xf32>, i32 -> vector<8x256xf32>
    %c254_i32_296 = arith.constant 254 : i32
    %475 = tpu.dynamic_rotate %454 by %c254_i32_296 dim 1 : vector<8x256xf32>, i32 -> vector<8x256xf32>
    %c253_i32_297 = arith.constant 253 : i32
    %476 = tpu.dynamic_rotate %454 by %c253_i32_297 dim 1 : vector<8x256xf32>, i32 -> vector<8x256xf32>
    %c252_i32_298 = arith.constant 252 : i32
    %477 = tpu.dynamic_rotate %454 by %c252_i32_298 dim 1 : vector<8x256xf32>, i32 -> vector<8x256xf32>
    %c251_i32_299 = arith.constant 251 : i32
    %478 = tpu.dynamic_rotate %454 by %c251_i32_299 dim 1 : vector<8x256xf32>, i32 -> vector<8x256xf32>
    %c250_i32_300 = arith.constant 250 : i32
    %479 = tpu.dynamic_rotate %454 by %c250_i32_300 dim 1 : vector<8x256xf32>, i32 -> vector<8x256xf32>
    %c249_i32_301 = arith.constant 249 : i32
    %480 = tpu.dynamic_rotate %454 by %c249_i32_301 dim 1 : vector<8x256xf32>, i32 -> vector<8x256xf32>
    %c248_i32_302 = arith.constant 248 : i32
    %481 = tpu.dynamic_rotate %454 by %c248_i32_302 dim 1 : vector<8x256xf32>, i32 -> vector<8x256xf32>
    %c247_i32_303 = arith.constant 247 : i32
    %482 = tpu.dynamic_rotate %454 by %c247_i32_303 dim 1 : vector<8x256xf32>, i32 -> vector<8x256xf32>
    %c246_i32_304 = arith.constant 246 : i32
    %483 = tpu.dynamic_rotate %454 by %c246_i32_304 dim 1 : vector<8x256xf32>, i32 -> vector<8x256xf32>
    %c245_i32_305 = arith.constant 245 : i32
    %484 = tpu.dynamic_rotate %454 by %c245_i32_305 dim 1 : vector<8x256xf32>, i32 -> vector<8x256xf32>
    %c244_i32_306 = arith.constant 244 : i32
    %485 = tpu.dynamic_rotate %454 by %c244_i32_306 dim 1 : vector<8x256xf32>, i32 -> vector<8x256xf32>
    %c243_i32_307 = arith.constant 243 : i32
    %486 = tpu.dynamic_rotate %454 by %c243_i32_307 dim 1 : vector<8x256xf32>, i32 -> vector<8x256xf32>
    %c242_i32_308 = arith.constant 242 : i32
    %487 = tpu.dynamic_rotate %454 by %c242_i32_308 dim 1 : vector<8x256xf32>, i32 -> vector<8x256xf32>
    %c241_i32_309 = arith.constant 241 : i32
    %488 = tpu.dynamic_rotate %454 by %c241_i32_309 dim 1 : vector<8x256xf32>, i32 -> vector<8x256xf32>
    %c240_i32_310 = arith.constant 240 : i32
    %489 = tpu.dynamic_rotate %454 by %c240_i32_310 dim 1 : vector<8x256xf32>, i32 -> vector<8x256xf32>
    %c239_i32_311 = arith.constant 239 : i32
    %490 = tpu.dynamic_rotate %454 by %c239_i32_311 dim 1 : vector<8x256xf32>, i32 -> vector<8x256xf32>
    %c238_i32_312 = arith.constant 238 : i32
    %491 = tpu.dynamic_rotate %454 by %c238_i32_312 dim 1 : vector<8x256xf32>, i32 -> vector<8x256xf32>
    %c237_i32_313 = arith.constant 237 : i32
    %492 = tpu.dynamic_rotate %454 by %c237_i32_313 dim 1 : vector<8x256xf32>, i32 -> vector<8x256xf32>
    %493 = tpu.concatenate %455, %456, %457, %458, %459, %460, %461, %462, %463, %464, %465, %466, %467, %468, %469, %470 in 0 : vector<8x256xf32>, vector<8x256xf32>, vector<8x256xf32>, vector<8x256xf32>, vector<8x256xf32>, vector<8x256xf32>, vector<8x256xf32>, vector<8x256xf32>, vector<8x256xf32>, vector<8x256xf32>, vector<8x256xf32>, vector<8x256xf32>, vector<8x256xf32>, vector<8x256xf32>, vector<8x256xf32>, vector<8x256xf32> -> vector<128x256xf32>
    %494 = tpu.concatenate %471, %472, %473, %454, %474, %475, %476, %477, %478, %479, %480, %481, %482, %483, %484, %485 in 0 : vector<8x256xf32>, vector<8x256xf32>, vector<8x256xf32>, vector<8x256xf32>, vector<8x256xf32>, vector<8x256xf32>, vector<8x256xf32>, vector<8x256xf32>, vector<8x256xf32>, vector<8x256xf32>, vector<8x256xf32>, vector<8x256xf32>, vector<8x256xf32>, vector<8x256xf32>, vector<8x256xf32>, vector<8x256xf32> -> vector<128x256xf32>
    %495 = tpu.concatenate %486, %487, %488, %489, %490, %491, %492 in 0 : vector<8x256xf32>, vector<8x256xf32>, vector<8x256xf32>, vector<8x256xf32>, vector<8x256xf32>, vector<8x256xf32>, vector<8x256xf32> -> vector<56x256xf32>
    %496 = tpu.concatenate %493, %494, %495 in 0 : vector<128x256xf32>, vector<128x256xf32>, vector<56x256xf32> -> vector<312x256xf32>
    %497 = arith.truncf %496 : vector<312x256xf32> to vector<312x256xbf16>
    %c0_314 = arith.constant 0 : index
    %c0_315 = arith.constant 0 : index
    %498 = vector.load %arg27[%c0_314, %c0_315] : memref<24x312xbf16, #tpu.memory_space<vmem>>, vector<24x312xbf16>
    %cst_316 = arith.constant dense<0.000000e+00> : vector<24x256xf32>
    %499 = tpu.matmul %498, %497, %cst_316 {dimension_numbers = #tpu.dot_dimension_numbers<[1], [0], [0], [1], [0, 0, 1, 1], [], []>} : vector<24x312xbf16>, vector<312x256xbf16>, vector<24x256xf32> -> vector<24x256xf32>
    %c1_i32_317 = arith.constant 1 : i32
    %500 = vector.broadcast %c1_i32_317 : i32 to vector<1x256xi32>
    %501 = arith.cmpi sge, %16, %500 : vector<1x256xi32>
    %c1_i32_318 = arith.constant 1 : i32
    %502 = tpu.dynamic_rotate %451 by %c1_i32_318 dim 1 : vector<32x256xf32>, i32 -> vector<32x256xf32>
    %cst_319 = arith.constant -3.40282347E+38 : f32
    %503 = vector.shape_cast %501 : vector<1x256xi1> to vector<1x256xi1>
    %504 = vector.broadcast %503 : vector<1x256xi1> to vector<32x256xi1>
    %505 = vector.broadcast %cst_319 : f32 to vector<32x256xf32>
    %506 = arith.select %504, %502, %505 : vector<32x256xi1>, vector<32x256xf32>
    %c62_i32_320 = arith.constant 62 : i32
    %507 = vector.broadcast %c62_i32_320 : i32 to vector<1x256xi32>
    %508 = arith.cmpi sle, %16, %507 : vector<1x256xi32>
    %c255_i32_321 = arith.constant 255 : i32
    %509 = tpu.dynamic_rotate %451 by %c255_i32_321 dim 1 : vector<32x256xf32>, i32 -> vector<32x256xf32>
    %cst_322 = arith.constant -3.40282347E+38 : f32
    %510 = vector.shape_cast %508 : vector<1x256xi1> to vector<1x256xi1>
    %511 = vector.broadcast %510 : vector<1x256xi1> to vector<32x256xi1>
    %512 = vector.broadcast %cst_322 : f32 to vector<32x256xf32>
    %513 = arith.select %511, %509, %512 : vector<32x256xi1>, vector<32x256xf32>
    %514 = arith.maximumf %506, %451 : vector<32x256xf32>
    %515 = arith.maximumf %514, %513 : vector<32x256xf32>
    %cst_323 = arith.constant 0.000000e+00 : f32
    %516 = vector.shape_cast %18 : vector<1x256xi1> to vector<1x256xi1>
    %517 = vector.broadcast %516 : vector<1x256xi1> to vector<32x256xi1>
    %518 = vector.broadcast %cst_323 : f32 to vector<32x256xf32>
    %519 = arith.select %517, %515, %518 : vector<32x256xi1>, vector<32x256xf32>
    %c0_324 = arith.constant 0 : index
    %c0_325 = arith.constant 0 : index
    %520 = vector.load %arg28[%c0_324, %c0_325] : memref<8x32xbf16, #tpu.memory_space<vmem>>, vector<8x32xbf16>
    %521 = arith.truncf %519 : vector<32x256xf32> to vector<32x256xbf16>
    %cst_326 = arith.constant dense<0.000000e+00> : vector<8x256xf32>
    %522 = tpu.matmul %520, %521, %cst_326 {dimension_numbers = #tpu.dot_dimension_numbers<[1], [0], [0], [1], [0, 0, 1, 1], [], []>} : vector<8x32xbf16>, vector<32x256xbf16>, vector<8x256xf32> -> vector<8x256xf32>
    %523 = tpu.concatenate %499, %522 in 0 : vector<24x256xf32>, vector<8x256xf32> -> vector<32x256xf32>
    %c0_327 = arith.constant 0 : index
    %c0_328 = arith.constant 0 : index
    %524 = vector.load %arg29[%c0_327, %c0_328] : memref<32x1xf32, #tpu.memory_space<vmem>>, vector<32x1xf32>
    %525 = vector.broadcast %524 : vector<32x1xf32> to vector<32x256xf32>
    %526 = arith.mulf %523, %525 : vector<32x256xf32>
    %c0_329 = arith.constant 0 : index
    %c0_330 = arith.constant 0 : index
    %527 = vector.load %arg30[%c0_329, %c0_330] : memref<32x1xf32, #tpu.memory_space<vmem>>, vector<32x1xf32>
    %528 = vector.broadcast %527 : vector<32x1xf32> to vector<32x256xf32>
    %529 = arith.addf %526, %528 : vector<32x256xf32>
    %cst_331 = arith.constant 0.000000e+00 : f32
    %530 = vector.broadcast %cst_331 : f32 to vector<32x256xf32>
    %531 = arith.maximumf %529, %530 : vector<32x256xf32>
    %c0_332 = arith.constant 0 : index
    %c0_333 = arith.constant 0 : index
    %532 = vector.load %arg34[%c0_332, %c0_333] : memref<32x32xbf16, #tpu.memory_space<vmem>>, vector<32x32xbf16>
    %533 = arith.truncf %283 : vector<32x256xf32> to vector<32x256xbf16>
    %cst_334 = arith.constant dense<0.000000e+00> : vector<32x256xf32>
    %534 = tpu.matmul %532, %533, %cst_334 {dimension_numbers = #tpu.dot_dimension_numbers<[1], [0], [0], [1], [0, 0, 1, 1], [], []>} : vector<32x32xbf16>, vector<32x256xbf16>, vector<32x256xf32> -> vector<32x256xf32>
    %c0_335 = arith.constant 0 : index
    %c0_336 = arith.constant 0 : index
    %535 = vector.load %arg35[%c0_335, %c0_336] : memref<32x1xf32, #tpu.memory_space<vmem>>, vector<32x1xf32>
    %536 = vector.broadcast %535 : vector<32x1xf32> to vector<32x256xf32>
    %537 = arith.mulf %534, %536 : vector<32x256xf32>
    %c0_337 = arith.constant 0 : index
    %c0_338 = arith.constant 0 : index
    %538 = vector.load %arg36[%c0_337, %c0_338] : memref<32x1xf32, #tpu.memory_space<vmem>>, vector<32x1xf32>
    %539 = vector.broadcast %538 : vector<32x1xf32> to vector<32x256xf32>
    %540 = arith.addf %537, %539 : vector<32x256xf32>
    %541 = arith.addf %531, %540 : vector<32x256xf32>
    %cst_339 = arith.constant 0.000000e+00 : f32
    %542 = vector.broadcast %cst_339 : f32 to vector<32x256xf32>
    %543 = arith.maximumf %541, %542 : vector<32x256xf32>
    %cst_340 = arith.constant 0.000000e+00 : f32
    %544 = vector.shape_cast %18 : vector<1x256xi1> to vector<1x256xi1>
    %545 = vector.broadcast %544 : vector<1x256xi1> to vector<32x256xi1>
    %546 = vector.broadcast %cst_340 : f32 to vector<32x256xf32>
    %547 = arith.select %545, %543, %546 : vector<32x256xi1>, vector<32x256xf32>
    %548 = tpu.iota {dimensions = array<i32: 1>} : vector<1x128xi32>
    %c64_i32_341 = arith.constant 64 : i32
    %549 = vector.broadcast %c64_i32_341 : i32 to vector<1x128xi32>
    %550 = arith.cmpi slt, %548, %549 : vector<1x128xi32>
    %551 = vector.extract_strided_slice %547 {offsets = [0, 0], sizes = [32, 128], strides = [1, 1]} : vector<32x256xf32> to vector<32x128xf32>
    %cst_342 = arith.constant -3.40282347E+38 : f32
    %552 = vector.shape_cast %550 : vector<1x128xi1> to vector<1x128xi1>
    %553 = vector.broadcast %552 : vector<1x128xi1> to vector<32x128xi1>
    %554 = vector.broadcast %cst_342 : f32 to vector<32x128xf32>
    %555 = arith.select %553, %551, %554 : vector<32x128xi1>, vector<32x128xf32>
    %cst_343 = arith.constant dense<0xFF800000> : vector<32xf32>
    %556 = vector.multi_reduction <maximumf>, %555, %cst_343 [1] : vector<32x128xf32> to vector<32xf32>
    %557 = vector.shape_cast %556 : vector<32xf32> to vector<32x1xf32>
    %cst_344 = arith.constant dense<0.000000e+00> : vector<32xf32>
    %558 = vector.multi_reduction <add>, %551, %cst_344 [1] : vector<32x128xf32> to vector<32xf32>
    %559 = vector.shape_cast %558 : vector<32xf32> to vector<32x1xf32>
    %cst_345 = arith.constant 1.562500e-02 : f32
    %560 = vector.broadcast %cst_345 : f32 to vector<32x1xf32>
    %561 = arith.mulf %559, %560 : vector<32x1xf32>
    %562 = vector.extract_strided_slice %547 {offsets = [0, 128], sizes = [32, 128], strides = [1, 1]} : vector<32x256xf32> to vector<32x128xf32>
    %cst_346 = arith.constant -3.40282347E+38 : f32
    %563 = vector.shape_cast %550 : vector<1x128xi1> to vector<1x128xi1>
    %564 = vector.broadcast %563 : vector<1x128xi1> to vector<32x128xi1>
    %565 = vector.broadcast %cst_346 : f32 to vector<32x128xf32>
    %566 = arith.select %564, %562, %565 : vector<32x128xi1>, vector<32x128xf32>
    %cst_347 = arith.constant dense<0xFF800000> : vector<32xf32>
    %567 = vector.multi_reduction <maximumf>, %566, %cst_347 [1] : vector<32x128xf32> to vector<32xf32>
    %568 = vector.shape_cast %567 : vector<32xf32> to vector<32x1xf32>
    %cst_348 = arith.constant dense<0.000000e+00> : vector<32xf32>
    %569 = vector.multi_reduction <add>, %562, %cst_348 [1] : vector<32x128xf32> to vector<32xf32>
    %570 = vector.shape_cast %569 : vector<32xf32> to vector<32x1xf32>
    %cst_349 = arith.constant 1.562500e-02 : f32
    %571 = vector.broadcast %cst_349 : f32 to vector<32x1xf32>
    %572 = arith.mulf %570, %571 : vector<32x1xf32>
    %573 = tpu.concatenate %557, %568 in 1 : vector<32x1xf32>, vector<32x1xf32> -> vector<32x2xf32>
    %574 = tpu.concatenate %561, %572 in 1 : vector<32x1xf32>, vector<32x1xf32> -> vector<32x2xf32>
    %575 = tpu.concatenate %573, %574 in 0 : vector<32x2xf32>, vector<32x2xf32> -> vector<64x2xf32>
    %c0_350 = arith.constant 0 : index
    %c0_351 = arith.constant 0 : index
    %576 = vector.load %arg37[%c0_350, %c0_351] : memref<5x64xf32, #tpu.memory_space<vmem>>, vector<5x64xf32>
    %cst_352 = arith.constant dense<0.000000e+00> : vector<5x2xf32>
    %577 = tpu.matmul %576, %575, %cst_352 {dimension_numbers = #tpu.dot_dimension_numbers<[1], [0], [0], [1], [0, 0, 1, 1], [], []>} : vector<5x64xf32>, vector<64x2xf32>, vector<5x2xf32> -> vector<5x2xf32>
    %c0_353 = arith.constant 0 : index
    %c0_354 = arith.constant 0 : index
    %578 = vector.load %arg38[%c0_353, %c0_354] : memref<5x1xf32, #tpu.memory_space<vmem>>, vector<5x1xf32>
    %579 = vector.broadcast %578 : vector<5x1xf32> to vector<5x2xf32>
    %580 = arith.addf %577, %579 : vector<5x2xf32>
    %c0_355 = arith.constant 0 : index
    %c0_356 = arith.constant 0 : index
    %581 = vector.load %arg39[%c0_355, %c0_356] : memref<5x2xf32, #tpu.memory_space<vmem>>, vector<5x2xf32>
    tpu.vector_store %arg39[%c0_355, %c0_356], %580 {strides = array<i32>} : memref<5x2xf32, #tpu.memory_space<vmem>>, vector<5x2xf32>,
    return
  }
}

</mosaic_0001>

<bundles_post_ra>
// kernel: forward.1
= control target key start
LH: loop header
LB: loop body
LE: loop exit
PB: predicated region body
PF: predicated region fallthrough
CT: control target
= control target key end

     0   :  { %v6522_v0 = vmov 0   ;;  %s9189_s6 = smov 1   ;;  %vm9152_vm0 = vcmask 1041408   ;;  %vm9151_vm1 = vcmask 31744   ;;  %s9172_s10 = smov 17   ;;  %v163_v22 = vlaneseq  ;;  %s9082_s0 = inlined_call_operand.smem [shape: u32[40], index: -1, kind: input, shape index: {}] }
   0x1   :  { %s1_s5 = sld [smem:[%s9082_s0]]   ;;  %242 = vmatprep.mubr.bf16.mxu0 %v6522_v0  ;;  %5324 = vset.pattern.permute.xlu1 %v6522_v0  ;;  %s9166_s14 = smov 12  }
   0x2   :  { %5323 = vset.pattern.permute.xlu0 %v6522_v0  ;;  %s4724_s9 = sld [smem:[%s9082_s0 + %s9189_s6]]   ;;  %s9160_s18 = smov 7   ;;  %v6740_v23 = vand.u32 127, %v163_v22 }
   0x3   :  { %s6623_s13 = sld [smem:[%s9082_s0 + %s9172_s10]]   ;;  %s9115_s22 = smov 2  }
   0x4   :  { %s6629_s17 = sld [smem:[%s9082_s0 + %s9166_s14]]   ;;  %s9176_s26 = smov 19   ;;  %vm9184_vm2 = vcmp.lt.s32.totalorder %v6740_v23, 19  ;;  %vm9188_vm3 = vcmp.lt.s32.totalorder %v6740_v23, 18  ;;  %vm9185_vm4 = vcmp.lt.s32.totalorder %v6740_v23, 17  ;;  %vm9186_vm5 = vcmp.lt.s32.totalorder %v6740_v23, 16 }
   0x5   :  { %s6635_s21 = sld [smem:[%s9082_s0 + %s9160_s18]]   ;;  %s9174_s27 = smov 16   ;;  %vm9142_vm6 = vcmp.lt.s32.totalorder %v6740_v23, 15  ;;  %vm9187_vm7 = vcmp.lt.s32.totalorder %v6740_v23, 14  ;;  %vm9129_vm8 = vcmp.lt.s32.totalorder %v6740_v23, 13  ;;  %vm9133_vm9 = vcmp.lt.s32.totalorder %v6740_v23, 12 }
   0x6   :  { %s6641_s25 = sld [smem:[%s9082_s0 + %s9115_s22]]   ;;  %s9178_s28 = smov 18   ;;  %vm9119_vm10 = vcmp.lt.s32.totalorder %v6740_v23, 11  ;;  %vm9128_vm11 = vcmp.lt.s32.totalorder %v6740_v23, 10  ;;  %vm9120_vm12 = vcmp.lt.s32.totalorder %v6740_v23, 9  ;;  %vm9121_vm13 = vcmp.lt.s32.totalorder %v6740_v23, 8 }
   0x7   :  { %v6599_v1 = vld [vmem:[%s1_s5] sm:$0xff]  ;;  %s9170_s29 = smov 14   ;;  %s9168_s30 = smov 15   ;;  %vm9122_vm14 = vcmp.lt.s32.totalorder %v6740_v23, 7  ;;  %vm9127_vm15 = vcmp.lt.s32.totalorder %v6740_v23, 6 }
   0x8   :  { %v6603_v2 = vcombine.high %v6599_v1, %v6599_v1  ;;  %v197_v3 = vpack.c.bf16 %v6599_v1, %v6599_v1  ;;  %v193_v6 = vld [vmem:[%s4724_s9] sm:$0xf]  ;;  %s9164_s1 = smov 13   ;;  %s9198_s2 = smov 10  }
   0x9   :  { %9223 = sst [smem:[#allocation2_spill]] %s6623_s13  ;;  %s9180_s3 = smov 11  }
   0xa   :  { %v6609_v4 = vpack.c.bf16 %v6603_v2, %v6603_v2  ;;  %v6612_v5 = vsel %vm9152_vm0, %v197_v3, 0  ;;  %s9195_s4 = smov 8   ;;  %s9193_s5 = smov 9   ;;  %v5308_v13 = vpack.i.bf16 %v6603_v2, %v6599_v1 }
   0xb   :  { %s9162_s7 = smov 6   ;;  %s9156_s8 = smov 4  }
   0xc   :  { %4763 = vmatprep.subr.msk.bf16.mxu0 %vm9152_vm0, %v6609_v4  ;;  %s9154_s9 = smov 5   ;;  %s9158_s11 = smov 3   ;;  %v6478_v12 = vld [vmem:[%s6641_s25 + $0x4] ss:$12 sps:$4 sm:$0xff]  }
   0xd   :  { %211 = vmatpush1.bf16.msra.mxu0 %v6612_v5  ;;  %s9191_s12 = smov 127   ;;  %s9083_s15 = smov 125   ;;  %634 = vmatprep.mubr.bf16.mxu1 %v6478_v12 }
   0xe   :  { %s9085_s16 = smov 126   ;;  %s9087_s19 = smov 123  }
   0xf   :  { %s9089_s20 = smov 124   ;;  %s9091_s23 = smov 121  }
  0x10   :  { %4764 = vmatmul.mubr.msk.bf16.vlgmr.msra.gmra.mrb[0].mxu0 %vm9151_vm1, %v193_v6  ;;  %s9093_s24 = smov 122   ;;  %s9328_s13 = smov 8  }
  0x11   :  { %786 = vmatprep.mubr.bf16.mxu0 %v6522_v0 }
  0xe3   :  { %v6643_v7 = vpop.f32.mrb[0].mxu0 }
  0xe4   :  { %v6645_v8 = vpop.f32.mrb[1].mxu0 }
  0xe5   :  { %v248_v9 = vpop.f32.mrb[2].mxu0  ;;  %v6649_v10 = vpack.i.bf16 %v6645_v8, %v6643_v7 }
  0xe6   :  { %v249_v11 = vpop.f32.mrb[3].mxu0 }
  0xe7   :  { %5134 = vrot.lane.b32.xlu1 %v6649_v10, %s9172_s10  ;;  %5124 = vrot.lane.b32.xlu0 %v6649_v10, %s9176_s26 }
  0xeb   :  { %5139 = vrot.lane.b32.xlu1 %v6649_v10, %s9174_s27  ;;  %5129 = vrot.lane.b32.xlu0 %v6649_v10, %s9178_s28 }
  0xef   :  { %5149 = vrot.lane.b32.xlu1 %v6649_v10, %s9170_s29  ;;  %5144 = vrot.lane.b32.xlu0 %v6649_v10, %s9168_s30 }
  0xf3   :  { %5159 = vrot.lane.b32.xlu1 %v6649_v10, %s9166_s14  ;;  %5154 = vrot.lane.b32.xlu0 %v6649_v10, %s9164_s1 }
  0xf7   :  { %5169 = vrot.lane.b32.xlu1 %v6649_v10, %s9198_s2  ;;  %5164 = vrot.lane.b32.xlu0 %v6649_v10, %s9180_s3 }
  0xfb   :  { %5179 = vrot.lane.b32.xlu1 %v6649_v10, %s9195_s4  ;;  %5174 = vrot.lane.b32.xlu0 %v6649_v10, %s9193_s5 }
  0xff   :  { %5189 = vrot.lane.b32.xlu1 %v6649_v10, %s9162_s7  ;;  %5184 = vrot.lane.b32.xlu0 %v6649_v10, %s9160_s18 }
 0x103   :  { %5199 = vrot.lane.b32.xlu1 %v6649_v10, %s9156_s8  ;;  %5194 = vrot.lane.b32.xlu0 %v6649_v10, %s9154_s9 }
 0x107   :  { %5209 = vrot.lane.b32.xlu1 %v6649_v10, %s9115_s22  ;;  %5204 = vrot.lane.b32.xlu0 %v6649_v10, %s9158_s11  ;;  %s9229_s22 = smov 125  }
 0x10b   :  { %5219 = vrot.lane.b32.xlu1 %v6649_v10, %s9191_s12  ;;  %5214 = vrot.lane.b32.xlu0 %v6649_v10, %s9189_s6 }
 0x10f   :  { %5229 = vrot.lane.b32.xlu1 %v6649_v10, %s9083_s15  ;;  %5224 = vrot.lane.b32.xlu0 %v6649_v10, %s9085_s16  ;;  %s9095_s15 = smov 119   ;;  %s9097_s16 = smov 120  }
 0x113   :  { %5239 = vrot.lane.b32.xlu1 %v6649_v10, %s9087_s19  ;;  %5234 = vrot.lane.b32.xlu0 %v6649_v10, %s9089_s20  ;;  %s9099_s19 = smov 117   ;;  %s9101_s20 = smov 118  }
 0x117   :  { %5249 = vrot.lane.b32.xlu1 %v6649_v10, %s9091_s23  ;;  %5244 = vrot.lane.b32.xlu0 %v6649_v10, %s9093_s24  ;;  %s9103_s23 = smov 115   ;;  %s9105_s24 = smov 116  }
 0x11b   :  { %5259 = vrot.lane.b32.xlu1 %v6649_v10, %s9095_s15  ;;  %5254 = vrot.lane.b32.xlu0 %v6649_v10, %s9097_s16  ;;  %s9109_s15 = smov 113   ;;  %s9107_s16 = smov 114  }
 0x11f   :  { %5269 = vrot.lane.b32.xlu1 %v6649_v10, %s9099_s19  ;;  %5264 = vrot.lane.b32.xlu0 %v6649_v10, %s9101_s20  ;;  %s9111_s19 = smov 111   ;;  %s9113_s20 = smov 112  }
 0x123   :  { %5279 = vrot.lane.b32.xlu1 %v6649_v10, %s9103_s23  ;;  %5274 = vrot.lane.b32.xlu0 %v6649_v10, %s9105_s24  ;;  %s9117_s23 = smov 109   ;;  %s9182_s24 = smov 110  }
 0x127   :  { %5289 = vrot.lane.b32.xlu1 %v6649_v10, %s9109_s15  ;;  %5284 = vrot.lane.b32.xlu0 %v6649_v10, %s9107_s16  ;;  %s4726_s16 = sld [smem:[%s9082_s0 + %s9158_s11]]   ;;  %s9230_s15 = smov 126  }
 0x12b   :  { %5299 = vrot.lane.b32.xlu1 %v6649_v10, %s9111_s19  ;;  %5294 = vrot.lane.b32.xlu0 %v6649_v10, %s9113_s20  ;;  %s4727_s19 = sld [smem:[%s9082_s0 + %s9156_s8]]  }
 0x12c   :  { %s4729_s20 = sld [smem:[%s9082_s0 + %s9162_s7]]  }
 0x12f   :  { %5314 = vrot.lane.b32.xlu1 %v6649_v10, %s9117_s23  ;;  %5304 = vrot.lane.b32.xlu0 %v6649_v10, %s9182_s24  ;;  %s4728_s23 = sld [smem:[%s9082_s0 + %s9154_s9]]  }
 0x131   :  { %v796_v14 = vld [vmem:[%s4727_s19 + $0x8] sm:$0xff]  ;;  %v795_v15 = vld [vmem:[%s4727_s19] sm:$0xff]  ;;  %v797_v18 = vld [vmem:[%s4727_s19 + $0x10] sm:$0xff] }
 0x132   :  { %v798_v19 = vld [vmem:[%s4727_s19 + $0x18] sm:$0xff]  ;;  %s9233_s19 = smov 121  }
 0x133   :  { %5309 = vrot.lane.b32.xlu0 %v5308_v13, %s9189_s6  ;;  %5319 = vrot.lane.b32.xlu1 %v5308_v13, %s9191_s12 }
 0x135   :  { %v827_v16 = vld [vmem:[%s4728_s23] sm:$0xff]  ;;  %v828_v17 = vld [vmem:[%s4728_s23 + $0x8] sm:$0xff]  ;;  %v829_v20 = vld [vmem:[%s4728_s23 + $0x10] sm:$0xff] }
 0x136   :  { %v830_v21 = vld [vmem:[%s4728_s23 + $0x18] sm:$0xff]  ;;  %s9228_s23 = smov 2  }
 0x137   :  { %806 = vperm.xlu1 %5324, %v796_v14   ;;  %801 = vperm.xlu0 %5323, %v795_v15  }
 0x13b   :  { %833 = vperm.xlu1 %5324, %v827_v16   ;;  %838 = vperm.xlu0 %5323, %v828_v17  }
 0x13f   :  { %811 = vperm.xlu1 %5324, %v797_v18   ;;  %816 = vperm.xlu0 %5323, %v798_v19  }
 0x143   :  { %843 = vperm.xlu1 %5324, %v829_v20   ;;  %848 = vperm.xlu0 %5323, %v830_v21  }
 0x159   :  { %v5135_v24 = vpop.permute.xlu1 %5134  ;;  %v5125_v25 = vpop.permute.xlu0 %5124 }
 0x15a   :  { %v5127_v26 = vunpack.i.h.bf16 %v5125_v25  ;;  %v5126_v27 = vunpack.i.l.bf16 %v5125_v25  ;;  %v5137_v28 = vunpack.i.h.bf16 %v5135_v24  ;;  %v5136_v29 = vunpack.i.l.bf16 %v5135_v24 }
 0x15c   :  { %v256_v36 = vsel %vm9184_vm2, %v5126_v27, %v5127_v26  ;;  %v257_v38 = vsel %vm9184_vm2, %v5127_v26, %v5126_v27  ;;  %v270_v45 = vsel %vm9185_vm4, %v5136_v29, %v5137_v28  ;;  %v271_v52 = vsel %vm9185_vm4, %v5137_v28, %v5136_v29 }
 0x15d   :  { %v5140_v30 = vpop.permute.xlu1 %5139  ;;  %v5130_v31 = vpop.permute.xlu0 %5129 }
 0x15e   :  { %v5142_v32 = vunpack.i.h.bf16 %v5140_v30  ;;  %v5141_v33 = vunpack.i.l.bf16 %v5140_v30  ;;  %v5132_v34 = vunpack.i.h.bf16 %v5130_v31  ;;  %v5131_v35 = vunpack.i.l.bf16 %v5130_v31 }
 0x160   :  { %v263_v37 = vsel %vm9188_vm3, %v5131_v35, %v5132_v34  ;;  %v264_v39 = vsel %vm9188_vm3, %v5132_v34, %v5131_v35  ;;  %v277_v40 = vsel %vm9186_vm5, %v5141_v33, %v5142_v32  ;;  %v278_v46 = vsel %vm9186_vm5, %v5142_v32, %v5141_v33 }
 0x161   :  { %v5150_v41 = vpop.permute.xlu1 %5149  ;;  %v5145_v42 = vpop.permute.xlu0 %5144  ;;  %v518_v43 = vpack.c.bf16 %v263_v37, %v256_v36  ;;  %v517_v44 = vpack.c.bf16 %v264_v39, %v257_v38  ;;  %v520_v51 = vpack.c.bf16 %v277_v40, %v270_v45  ;;  %v519_v57 = vpack.c.bf16 %v278_v46, %v271_v52 }
 0x162   :  { %v5152_v47 = vunpack.i.h.bf16 %v5150_v41  ;;  %v5151_v48 = vunpack.i.l.bf16 %v5150_v41  ;;  %v5147_v49 = vunpack.i.h.bf16 %v5145_v42  ;;  %v5146_v50 = vunpack.i.l.bf16 %v5145_v42 }
 0x163   :  { %602 = vmatprep.subr.bf16.mxu1 %v518_v43 }
 0x164   :  { %603 = vmatpush1.bf16.msra.mxu1 %v517_v44  ;;  %v284_v53 = vsel %vm9142_vm6, %v5146_v50, %v5147_v49  ;;  %v291_v54 = vsel %vm9187_vm7, %v5151_v48, %v5152_v47  ;;  %v285_v58 = vsel %vm9142_vm6, %v5147_v49, %v5146_v50  ;;  %v292_v59 = vsel %vm9187_vm7, %v5152_v47, %v5151_v48 }
 0x165   :  { %v5160_v55 = vpop.permute.xlu1 %5159  ;;  %v5155_v56 = vpop.permute.xlu0 %5154  ;;  %604 = vmatprep.subr.bf16.mxu1 %v520_v51  ;;  %v522_v3 = vpack.c.bf16 %v291_v54, %v284_v53  ;;  %v521_v12 = vpack.c.bf16 %v292_v59, %v285_v58  ;;  %vm704_vm6 = vcmp.ge.s32.totalorder %v6740_v23, 1 }
 0x166   :  { %v5162_v60 = vunpack.i.h.bf16 %v5160_v55  ;;  %v5161_v61 = vunpack.i.l.bf16 %v5160_v55  ;;  %v5157_v62 = vunpack.i.h.bf16 %v5155_v56  ;;  %v5156_v63 = vunpack.i.l.bf16 %v5155_v56 }
 0x168   :  { %605 = vmatpush1.bf16.msra.mxu1 %v519_v57  ;;  %v298_v6 = vsel %vm9129_vm8, %v5156_v63, %v5157_v62  ;;  %v305_v9 = vsel %vm9133_vm9, %v5161_v61, %v5162_v60  ;;  %v299_v13 = vsel %vm9129_vm8, %v5157_v62, %v5156_v63  ;;  %v306_v14 = vsel %vm9133_vm9, %v5162_v60, %v5161_v61 }
 0x169   :  { %v5170_v10 = vpop.permute.xlu1 %5169  ;;  %v5165_v11 = vpop.permute.xlu0 %5164  ;;  %606 = vmatprep.subr.bf16.mxu1 %v522_v3  ;;  %v524_v19 = vpack.c.bf16 %v305_v9, %v298_v6  ;;  %v523_v25 = vpack.c.bf16 %v306_v14, %v299_v13  ;;  %vm9134_vm8 = vcmp.lt.s32.totalorder %v6740_v23, 122  ;;  %vm9137_vm9 = vcmp.lt.s32.totalorder %v6740_v23, 118 }
 0x16a   :  { %v5172_v15 = vunpack.i.h.bf16 %v5170_v10  ;;  %v5171_v16 = vunpack.i.l.bf16 %v5170_v10  ;;  %v5167_v17 = vunpack.i.h.bf16 %v5165_v11  ;;  %v5166_v18 = vunpack.i.l.bf16 %v5165_v11 }
 0x16c   :  { %607 = vmatpush1.bf16.msra.mxu1 %v521_v12  ;;  %v312_v20 = vsel %vm9119_vm10, %v5166_v18, %v5167_v17  ;;  %v319_v21 = vsel %vm9128_vm11, %v5171_v16, %v5172_v15  ;;  %v313_v26 = vsel %vm9119_vm10, %v5167_v17, %v5166_v18  ;;  %v320_v27 = vsel %vm9128_vm11, %v5172_v15, %v5171_v16 }
 0x16d   :  { %v5180_v22 = vpop.permute.xlu1 %5179  ;;  %v5175_v24 = vpop.permute.xlu0 %5174  ;;  %608 = vmatprep.subr.bf16.mxu1 %v524_v19  ;;  %v526_v32 = vpack.c.bf16 %v319_v21, %v312_v20  ;;  %v525_v37 = vpack.c.bf16 %v320_v27, %v313_v26  ;;  %vm9123_vm10 = vcmp.lt.s32.totalorder %v6740_v23, 5  ;;  %vm9135_vm11 = vcmp.lt.s32.totalorder %v6740_v23, 123 }
 0x16e   :  { %v5182_v28 = vunpack.i.h.bf16 %v5180_v22  ;;  %v5181_v29 = vunpack.i.l.bf16 %v5180_v22  ;;  %v5177_v30 = vunpack.i.h.bf16 %v5175_v24  ;;  %v5176_v31 = vunpack.i.l.bf16 %v5175_v24 }
 0x170   :  { %609 = vmatpush1.bf16.msra.mxu1 %v523_v25  ;;  %v326_v33 = vsel %vm9120_vm12, %v5176_v31, %v5177_v30  ;;  %v333_v34 = vsel %vm9121_vm13, %v5181_v29, %v5182_v28  ;;  %v327_v38 = vsel %vm9120_vm12, %v5177_v30, %v5176_v31  ;;  %v334_v39 = vsel %vm9121_vm13, %v5182_v28, %v5181_v29 }
 0x171   :  { %v5190_v35 = vpop.permute.xlu1 %5189  ;;  %v5185_v36 = vpop.permute.xlu0 %5184  ;;  %610 = vmatprep.subr.bf16.mxu1 %v526_v32  ;;  %v528_v44 = vpack.c.bf16 %v333_v34, %v326_v33  ;;  %v527_v49 = vpack.c.bf16 %v334_v39, %v327_v38  ;;  %vm9124_vm12 = vcmp.lt.s32.totalorder %v6740_v23, 4  ;;  %vm9125_vm13 = vcmp.lt.s32.totalorder %v6740_v23, 3 }
 0x172   :  { %v5192_v40 = vunpack.i.h.bf16 %v5190_v35  ;;  %v5191_v41 = vunpack.i.l.bf16 %v5190_v35  ;;  %v5187_v42 = vunpack.i.h.bf16 %v5185_v36  ;;  %v5186_v43 = vunpack.i.l.bf16 %v5185_v36 }
 0x174   :  { %611 = vmatpush1.bf16.msra.mxu1 %v525_v37  ;;  %v340_v45 = vsel %vm9122_vm14, %v5186_v43, %v5187_v42  ;;  %v347_v46 = vsel %vm9127_vm15, %v5191_v41, %v5192_v40  ;;  %v341_v50 = vsel %vm9122_vm14, %v5187_v42, %v5186_v43  ;;  %v348_v51 = vsel %vm9127_vm15, %v5192_v40, %v5191_v41 }
 0x175   :  { %v5200_v47 = vpop.permute.xlu1 %5199  ;;  %v5195_v48 = vpop.permute.xlu0 %5194  ;;  %612 = vmatprep.subr.bf16.mxu1 %v528_v44  ;;  %v530_v56 = vpack.c.bf16 %v347_v46, %v340_v45  ;;  %v529_v61 = vpack.c.bf16 %v348_v51, %v341_v50  ;;  %vm9126_vm14 = vcmp.lt.s32.totalorder %v6740_v23, 2  ;;  %vm9131_vm15 = vcmp.lt.s32.totalorder %v6740_v23, 124 }
 0x176   :  { %v5202_v52 = vunpack.i.h.bf16 %v5200_v47  ;;  %v5201_v53 = vunpack.i.l.bf16 %v5200_v47  ;;  %v5197_v54 = vunpack.i.h.bf16 %v5195_v48  ;;  %v5196_v55 = vunpack.i.l.bf16 %v5195_v48 }
 0x178   :  { %613 = vmatpush1.bf16.msra.mxu1 %v527_v49  ;;  %v354_v57 = vsel %vm9123_vm10, %v5196_v55, %v5197_v54  ;;  %v361_v58 = vsel %vm9124_vm12, %v5201_v53, %v5202_v52  ;;  %v355_v62 = vsel %vm9123_vm10, %v5197_v54, %v5196_v55  ;;  %v362_v63 = vsel %vm9124_vm12, %v5202_v52, %v5201_v53 }
 0x179   :  { %v5210_v59 = vpop.permute.xlu1 %5209  ;;  %v5205_v60 = vpop.permute.xlu0 %5204  ;;  %614 = vmatprep.subr.bf16.mxu1 %v530_v56  ;;  %v532_v11 = vpack.c.bf16 %v361_v58, %v354_v57  ;;  %v531_v16 = vpack.c.bf16 %v362_v63, %v355_v62  ;;  %vm381_vm10 = vcmp.lt.s32.totalorder %v6740_v23, 1  ;;  %vm9130_vm12 = vcmp.lt.s32.totalorder %v6740_v23, 126 }
 0x17a   :  { %v5212_v3 = vunpack.i.h.bf16 %v5210_v59  ;;  %v5211_v6 = vunpack.i.l.bf16 %v5210_v59  ;;  %v5207_v9 = vunpack.i.h.bf16 %v5205_v60  ;;  %v5206_v10 = vunpack.i.l.bf16 %v5205_v60 }
 0x17c   :  { %615 = vmatpush1.bf16.msra.mxu1 %v529_v61  ;;  %v368_v12 = vsel %vm9125_vm13, %v5206_v10, %v5207_v9  ;;  %v375_v13 = vsel %vm9126_vm14, %v5211_v6, %v5212_v3  ;;  %v369_v19 = vsel %vm9125_vm13, %v5207_v9, %v5206_v10  ;;  %v376_v20 = vsel %vm9126_vm14, %v5212_v3, %v5211_v6 }
 0x17d   :  { %v5220_v14 = vpop.permute.xlu1 %5219  ;;  %v5215_v15 = vpop.permute.xlu0 %5214  ;;  %616 = vmatprep.subr.bf16.mxu1 %v532_v11  ;;  %v534_v21 = vpack.c.bf16 %v375_v13, %v368_v12  ;;  %v533_v26 = vpack.c.bf16 %v376_v20, %v369_v19  ;;  %vm388_vm13 = vcmp.lt.s32.totalorder %v6740_v23, 127  ;;  %vm9132_vm14 = vcmp.lt.s32.totalorder %v6740_v23, 125 }
 0x17e   :  { %v5217_v17 = vunpack.i.h.bf16 %v5215_v15  ;;  %v5216_v18 = vunpack.i.l.bf16 %v5215_v15  ;;  %v5222_v27 = vunpack.i.h.bf16 %v5220_v14  ;;  %v5221_v28 = vunpack.i.l.bf16 %v5220_v14 }
 0x180   :  { %617 = vmatpush1.bf16.msra.mxu1 %v531_v16  ;;  %v382_v22 = vsel %vm381_vm10, %v5216_v18, %v5217_v17  ;;  %v383_v32 = vsel %vm381_vm10, %v5217_v17, %v5216_v18  ;;  %v390_v40 = vsel %vm388_vm13, %v5222_v27, %v5221_v28 }
 0x181   :  { %v5230_v24 = vpop.permute.xlu1 %5229  ;;  %v5225_v25 = vpop.permute.xlu0 %5224  ;;  %618 = vmatprep.subr.bf16.mxu1 %v534_v21  ;;  %v536_v31 = vpack.c.bf16 %v6645_v8, %v382_v22  ;;  %v535_v39 = vpack.c.bf16 %v6643_v7, %v383_v32  ;;  %v389_v7 = vsel %vm388_vm13, %v5221_v28, %v5222_v27 }
 0x182   :  { %v5227_v29 = vunpack.i.h.bf16 %v5225_v25  ;;  %v5226_v30 = vunpack.i.l.bf16 %v5225_v25  ;;  %v5232_v34 = vunpack.i.h.bf16 %v5230_v24  ;;  %v5231_v35 = vunpack.i.l.bf16 %v5230_v24 }
 0x184   :  { %619 = vmatpush1.bf16.msra.mxu1 %v533_v26  ;;  %v397_v33 = vsel %vm9130_vm12, %v5227_v29, %v5226_v30  ;;  %v396_v42 = vsel %vm9130_vm12, %v5226_v30, %v5227_v29  ;;  %v404_v48 = vsel %vm9132_vm14, %v5232_v34, %v5231_v35  ;;  %v403_v54 = vsel %vm9132_vm14, %v5231_v35, %v5232_v34 }
 0x185   :  { %v5240_v36 = vpop.permute.xlu1 %5239  ;;  %v5235_v37 = vpop.permute.xlu0 %5234  ;;  %620 = vmatprep.subr.bf16.mxu1 %v536_v31  ;;  %v538_v41 = vpack.c.bf16 %v397_v33, %v390_v40  ;;  %v537_v51 = vpack.c.bf16 %v396_v42, %v389_v7  ;;  %vm9136_vm12 = vcmp.lt.s32.totalorder %v6740_v23, 120  ;;  %vm9138_vm14 = vcmp.lt.s32.totalorder %v6740_v23, 119 }
 0x186   :  { %v5237_v38 = vunpack.i.h.bf16 %v5235_v37  ;;  %v5236_v8 = vunpack.i.l.bf16 %v5235_v37  ;;  %v5242_v44 = vunpack.i.h.bf16 %v5240_v36  ;;  %v5241_v45 = vunpack.i.l.bf16 %v5240_v36 }
 0x188   :  { %621 = vmatpush1.bf16.msra.mxu1 %v535_v39  ;;  %v411_v43 = vsel %vm9131_vm15, %v5237_v38, %v5236_v8  ;;  %v410_v52 = vsel %vm9131_vm15, %v5236_v8, %v5237_v38  ;;  %v418_v59 = vsel %vm9135_vm11, %v5242_v44, %v5241_v45  ;;  %vm9139_vm15 = vcmp.lt.s32.totalorder %v6740_v23, 121 }
 0x189   :  { %v5250_v46 = vpop.permute.xlu1 %5249  ;;  %v5245_v47 = vpop.permute.xlu0 %5244  ;;  %622 = vmatprep.subr.bf16.mxu1 %v538_v41  ;;  %v540_v53 = vpack.c.bf16 %v411_v43, %v404_v48  ;;  %v539_v58 = vpack.c.bf16 %v410_v52, %v403_v54  ;;  %v417_v14 = vsel %vm9135_vm11, %v5241_v45, %v5242_v44  ;;  %vm9140_vm11 = vcmp.lt.s32.totalorder %v6740_v23, 116 }
 0x18a   :  { %v5247_v49 = vunpack.i.h.bf16 %v5245_v47  ;;  %v5246_v50 = vunpack.i.l.bf16 %v5245_v47  ;;  %v5252_v60 = vunpack.i.h.bf16 %v5250_v46  ;;  %v5251_v61 = vunpack.i.l.bf16 %v5250_v46 }
 0x18b   :  { %v165_v45 = vadd.s32 128, %v6740_v23 }
 0x18c   :  { %623 = vmatpush1.bf16.msra.mxu1 %v537_v51  ;;  %v425_v55 = vsel %vm9134_vm8, %v5247_v49, %v5246_v50  ;;  %v424_v6 = vsel %vm9134_vm8, %v5246_v50, %v5247_v49  ;;  %v432_v18 = vsel %vm9139_vm15, %v5252_v60, %v5251_v61  ;;  %vm9141_vm8 = vcmp.lt.s32.totalorder %v6740_v23, 117  ;;  %v6909_v51 = vld [vmem:[%s6641_s25 + $0x18] sm:$0xff] }
 0x18d   :  { %v5260_v56 = vpop.permute.xlu1 %5259  ;;  %v5255_v57 = vpop.permute.xlu0 %5254  ;;  %624 = vmatprep.subr.bf16.mxu1 %v540_v53  ;;  %v542_v3 = vpack.c.bf16 %v425_v55, %v418_v59  ;;  %v541_v17 = vpack.c.bf16 %v424_v6, %v417_v14  ;;  %v431_v27 = vsel %vm9139_vm15, %v5251_v61, %v5252_v60  ;;  %vm9145_vm15 = vcmp.lt.s32.totalorder %v6740_v23, 112 }
 0x18e   :  { %v5257_v62 = vunpack.i.h.bf16 %v5255_v57  ;;  %v5256_v63 = vunpack.i.l.bf16 %v5255_v57  ;;  %v5262_v10 = vunpack.i.h.bf16 %v5260_v56  ;;  %v5261_v11 = vunpack.i.l.bf16 %v5260_v56 }
 0x18f   :  { %v6917_v59 = vand.u32 127, %v165_v45  ;;  %v4769_v61 = vcombine.high %v6909_v51, %v6909_v51 }
 0x190   :  { %625 = vmatpush1.bf16.msra.mxu1 %v539_v58  ;;  %v439_v9 = vsel %vm9136_vm12, %v5257_v62, %v5256_v63  ;;  %v438_v20 = vsel %vm9136_vm12, %v5256_v63, %v5257_v62  ;;  %v446_v28 = vsel %vm9138_vm14, %v5262_v10, %v5261_v11  ;;  %v445_v34 = vsel %vm9138_vm14, %v5261_v11, %v5262_v10  ;;  %v6476_v58 = vld [vmem:[%s6641_s25] ss:$12 sps:$4 sm:$0xff]  }
 0x191   :  { %v5270_v12 = vpop.permute.xlu1 %5269  ;;  %v5265_v13 = vpop.permute.xlu0 %5264  ;;  %626 = vmatprep.subr.bf16.mxu1 %v542_v3  ;;  %v544_v19 = vpack.c.bf16 %v439_v9, %v432_v18  ;;  %v543_v31 = vpack.c.bf16 %v438_v20, %v431_v27  ;;  %vm9143_vm12 = vcmp.lt.s32.totalorder %v6740_v23, 114  ;;  %vm9146_vm14 = vcmp.lt.s32.totalorder %v6740_v23, 113 }
 0x192   :  { %v5267_v15 = vunpack.i.h.bf16 %v5265_v13  ;;  %v5266_v16 = vunpack.i.l.bf16 %v5265_v13  ;;  %v5272_v22 = vunpack.i.h.bf16 %v5270_v12  ;;  %v5271_v24 = vunpack.i.l.bf16 %v5270_v12 }
 0x194   :  { %627 = vmatpush1.bf16.msra.mxu1 %v541_v17  ;;  %v453_v21 = vsel %vm9137_vm9, %v5267_v15, %v5266_v16  ;;  %v452_v32 = vsel %vm9137_vm9, %v5266_v16, %v5267_v15  ;;  %v460_v8 = vsel %vm9141_vm8, %v5272_v22, %v5271_v24  ;;  %vm9144_vm9 = vcmp.lt.s32.totalorder %v6740_v23, 115 }
 0x195   :  { %v5280_v25 = vpop.permute.xlu1 %5279  ;;  %v5275_v26 = vpop.permute.xlu0 %5274  ;;  %628 = vmatprep.subr.bf16.mxu1 %v544_v19  ;;  %v546_v33 = vpack.c.bf16 %v453_v21, %v446_v28  ;;  %v545_v38 = vpack.c.bf16 %v452_v32, %v445_v34  ;;  %v459_v50 = vsel %vm9141_vm8, %v5271_v24, %v5272_v22  ;;  %vm9149_vm8 = vcmp.lt.s32.totalorder %v6740_v23, 110 }
 0x196   :  { %v5277_v29 = vunpack.i.h.bf16 %v5275_v26  ;;  %v5276_v30 = vunpack.i.l.bf16 %v5275_v26  ;;  %v5282_v39 = vunpack.i.h.bf16 %v5280_v25  ;;  %v5281_v40 = vunpack.i.l.bf16 %v5280_v25 }
 0x197   :  { %v4768_v25 = vcombine.low %v6909_v51, %v6909_v51  ;;  %v6481_v51 = vld [vmem:[%s6641_s25 + $0x8] ss:$12 sps:$4 sm:$0xff]  }
 0x198   :  { %629 = vmatpush1.bf16.msra.mxu1 %v543_v31  ;;  %v467_v35 = vsel %vm9140_vm11, %v5277_v29, %v5276_v30  ;;  %v466_v44 = vsel %vm9140_vm11, %v5276_v30, %v5277_v29  ;;  %v474_v55 = vsel %vm9144_vm9, %v5282_v39, %v5281_v40  ;;  %vm500_vm11 = vcmp.lt.s32.totalorder %v6740_v23, 111 }
 0x199   :  { %v5290_v36 = vpop.permute.xlu1 %5289  ;;  %v5285_v37 = vpop.permute.xlu0 %5284  ;;  %630 = vmatprep.subr.bf16.mxu1 %v546_v33  ;;  %v548_v43 = vpack.c.bf16 %v467_v35, %v460_v8  ;;  %v547_v54 = vpack.c.bf16 %v466_v44, %v459_v50  ;;  %v473_v62 = vsel %vm9144_vm9, %v5281_v40, %v5282_v39  ;;  %vm9147_vm9 = vcmp.le.s32.totalorder %v6917_v59, 62 }
 0x19a   :  { %v5287_v41 = vunpack.i.h.bf16 %v5285_v37  ;;  %v5286_v42 = vunpack.i.l.bf16 %v5285_v37  ;;  %v5292_v47 = vunpack.i.h.bf16 %v5290_v36  ;;  %v5291_v7 = vunpack.i.l.bf16 %v5290_v36 }
 0x19c   :  { %631 = vmatpush1.bf16.msra.mxu1 %v545_v38  ;;  %v481_v46 = vsel %vm9143_vm12, %v5287_v41, %v5286_v42  ;;  %v480_v56 = vsel %vm9143_vm12, %v5286_v42, %v5287_v41  ;;  %v488_v10 = vsel %vm9146_vm14, %v5292_v47, %v5291_v7  ;;  %vm705_vm12 = vcmp.ge.s32.totalorder %v6917_v59, 1 }
 0x19d   :  { %v6903_v48 = vpop.permute.xlu1 %5299  ;;  %v5295_v49 = vpop.permute.xlu0 %5294  ;;  %632 = vmatprep.subr.bf16.mxu1 %v548_v43  ;;  %v550_v57 = vpack.c.bf16 %v481_v46, %v474_v55  ;;  %v549_v14 = vpack.c.bf16 %v480_v56, %v473_v62  ;;  %v487_v18 = vsel %vm9146_vm14, %v5291_v7, %v5292_v47  ;;  %vm9150_vm14 = vcmp.le.s32.totalorder %v6740_v23, 62 }
 0x19e   :  { %v5297_v52 = vunpack.i.h.bf16 %v5295_v49  ;;  %v5296_v53 = vunpack.i.l.bf16 %v5295_v49  ;;  %v5302_v63 = vunpack.i.h.bf16 %v6903_v48  ;;  %v5301_v3 = vunpack.i.l.bf16 %v6903_v48 }
 0x1a0   :  { %633 = vmatpush1.bf16.msra.mxu1 %v547_v54  ;;  %v495_v60 = vsel %vm9145_vm15, %v5297_v52, %v5296_v53  ;;  %v494_v11 = vsel %vm9145_vm15, %v5296_v53, %v5297_v52  ;;  %vm9148_vm15 = vcmp.lt.s32.totalorder %v6740_v23, 109  ;;  %v502_v24 = vsel %vm500_vm11, %v5302_v63, %v5301_v3  ;;  %v742_v53 = vld [vmem:[%s4726_s16] sm:$0xf]  ;;  %s9231_s16 = smov 123  }
 0x1a1   :  { %v5315_v6 = vpop.permute.xlu1 %5314  ;;  %v5305_v9 = vpop.permute.xlu0 %5304  ;;  %653 = vmatprep.subr.bf16.mxu1 %v550_v57  ;;  %v552_v17 = vpack.c.bf16 %v495_v60, %v488_v10  ;;  %v551_v22 = vpack.c.bf16 %v494_v11, %v487_v18  ;;  %v501_v38 = vsel %vm500_vm11, %v5301_v3, %v5302_v63  ;;  %v6482_v54 = vld [vmem:[%s6641_s25 + $0x20] ss:$0 sps:$4 sm:$0xff]   ;;  %s9232_s25 = smov 124  }
 0x1a2   :  { %v5307_v12 = vunpack.i.h.bf16 %v5305_v9  ;;  %v5306_v13 = vunpack.i.l.bf16 %v5305_v9  ;;  %v5317_v15 = vunpack.i.h.bf16 %v5315_v6  ;;  %v5316_v16 = vunpack.i.l.bf16 %v5315_v6 }
 0x1a3   :  { %635 = vmatmul.mubr.bf16.vlgmr.msra.gmra.mrb[0].mxu1 %v6476_v58 }
 0x1a4   :  { %654 = vmatpush1.bf16.msra.mxu1 %v549_v14  ;;  %v509_v19 = vsel %vm9149_vm8, %v5307_v12, %v5306_v13  ;;  %644 = vmatprep.mubr.bf16.mxu1 %v4769_v61  ;;  %v508_v30 = vsel %vm9149_vm8, %v5306_v13, %v5307_v12  ;;  %v516_v32 = vsel %vm9148_vm15, %v5317_v15, %v5316_v16  ;;  %vm595_vm8 = vcmask 1043456  }
 0x1a5   :  { %v5310_v20 = vpop.permute.xlu0 %5309  ;;  %655 = vmatprep.subr.bf16.mxu1 %v552_v17  ;;  %v5320_v21 = vpop.permute.xlu1 %5319  ;;  %v554_v31 = vpack.c.bf16 %v509_v19, %v502_v24  ;;  %v515_v33 = vsel %vm9148_vm15, %v5316_v16, %v5317_v15  ;;  %v553_v42 = vpack.c.bf16 %v508_v30, %v501_v38  ;;  %v556_v45 = vpack.c.bf16 %v516_v32, %v516_v32 }
 0x1a6   :  { %v5312_v26 = vunpack.i.h.bf16 %v5310_v20  ;;  %v5311_v27 = vunpack.i.l.bf16 %v5310_v20  ;;  %v5322_v28 = vunpack.i.h.bf16 %v5320_v21  ;;  %v5321_v29 = vunpack.i.l.bf16 %v5320_v21 }
 0x1a7   :  { %v555_v46 = vpack.c.bf16 %v515_v33, %v515_v33  ;;  %vm190_vm15 = vcmp.lt.s32.totalorder %v6740_v23, 64 }
 0x1a8   :  { %v710_v34 = vsel %vm381_vm10, %v5311_v27, %v5312_v26  ;;  %v711_v35 = vsel %vm381_vm10, %v5312_v26, %v5311_v27  ;;  %v724_v36 = vsel %vm388_vm13, %v5321_v29, %v5322_v28  ;;  %v725_v37 = vsel %vm388_vm13, %v5322_v28, %v5321_v29  ;;  %656 = vmatpush1.bf16.msra.mxu1 %v551_v22 }
 0x1a9   :  { %v716_v8 = vsel %vm704_vm6, %v711_v35, -3.4028235e+38  ;;  %v717_v39 = vsel %vm705_vm12, %v710_v34, -3.4028235e+38  ;;  %v731_v40 = vsel %vm9147_vm9, %v725_v37, -3.4028235e+38  ;;  %657 = vmatprep.subr.bf16.mxu1 %v554_v31 }
 0x1aa   :  { %v733_v41 = vmax.f32 %v717_v39, %v6603_v2  ;;  %v730_v43 = vsel %vm9150_vm14, %v724_v36, -3.4028235e+38  ;;  %v732_v44 = vmax.f32 %v716_v8, %v6599_v1  ;;  %vm191_vm9 = vcmp.lt.s32.totalorder %v6917_v59, 64 }
 0x1ab   :  { %645 = vmatmul.mubr.bf16.gmra.mrb[4].mxu1 %v4768_v25  ;;  %v597_v48 = vsel %vm595_vm8, %v555_v46, 0  ;;  %vm9153_vm14 = vcmask 457728  }
 0x1ac   :  { %658 = vmatpush1.bf16.msra.mxu1 %v553_v42  ;;  %v735_v2 = vmax.f32 %v733_v41, %v731_v40  ;;  %685 = vmatprep.mubr.bf16.mxu1 %v6522_v0  ;;  %v734_v47 = vmax.f32 %v732_v44, %v730_v43 }
 0x1ad   :  { %4771 = vmatprep.subr.msk.bf16.mxu1 %vm595_vm8, %v556_v45 }
 0x1ae   :  { %v741_v1 = vsel %vm191_vm9, %v735_v2, 0.0  ;;  %v740_v7 = vsel %vm190_vm15, %v734_v47, 0.0 }
 0x1af   :  { %v744_v49 = vpack.c.bf16 %v741_v1, %v741_v1  ;;  %v743_v50 = vpack.c.bf16 %v740_v7, %v740_v7 }
 0x1b0   :  { %660 = vmatpush1.bf16.msra.mxu1 %v597_v48 }
 0x1b1   :  { %4774 = vmatprep.subr.msk.bf16.mxu0 %vm9152_vm0, %v744_v49  ;;  %v749_v52 = vsel %vm9152_vm0, %v743_v50, 0  ;;  %vm7024_vm0 = vmpackc.low %vm190_vm15, %vm190_vm15 }
 0x1b2   :  { %755 = vmatpush1.bf16.msra.mxu0 %v749_v52  ;;  %v875_v52 = vld [vmem:[%s4729_s20] sm:$0xf]  ;;  %s9234_s20 = smov 122  }
 0x1b3   :  { %4772 = vmatmul.mubr.msk.bf16.vlgmr.msra.gmra.mrb[0].mxu1 %vm9153_vm14, %v6481_v51 }
 0x1b4   :  { %695 = vmatprep.mubr.bf16.mxu1 %v6522_v0 }
 0x1b5   :  { %4775 = vmatmul.mubr.msk.bf16.vlgmr.msra.gmra.mrb[4].mxu0 %vm9151_vm1, %v742_v53  ;;  %vm7009_vm1 = vmpackc.low %vm191_vm9, %vm191_vm9 }
 0x1b6   :  { %916 = vmatprep.mubr.bf16.mxu0 %v6522_v0  ;;  %v802_v55 = vpop.permute.xlu0 %801  ;;  %v807_v56 = vpop.permute.xlu1 %806 }
 0x1ba   :  { %v839_v57 = vpop.permute.xlu0 %838  ;;  %v834_v58 = vpop.permute.xlu1 %833 }
 0x1bb   :  { %4773 = vmatmul.mubr.msk.bf16.gmra.mrb[4].mxu1 %vm9153_vm14, %v6482_v54  ;;  %vm880_vm14 = vcmask 261120  }
 0x1bc   :  { %1466 = vmatprep.mubr.bf16.mxu1 %v6522_v0 }
 0x1be   :  { %v817_v61 = vpop.permute.xlu0 %816  ;;  %v812_v14 = vpop.permute.xlu1 %811 }
 0x1c2   :  { %v849_v26 = vpop.permute.xlu0 %848  ;;  %v844_v38 = vpop.permute.xlu1 %843 }
 0x286   :  { %v687_v60 = vpop.f32.mrb[0].mxu1 }
 0x287   :  { %v819_v62 = vmul.f32 %v802_v55, %v687_v60  ;;  %v689_v63 = vpop.f32.mrb[1].mxu1 }
 0x288   :  { %v820_v3 = vmul.f32 %v802_v55, %v689_v63  ;;  %v691_v6 = vpop.f32.mrb[2].mxu1  ;;  %v788_v9 = vpop.f32.mrb[4].mxu0 }
 0x289   :  { %v851_v10 = vadd.f32 %v834_v58, %v819_v62  ;;  %v821_v11 = vmul.f32 %v807_v56, %v691_v6  ;;  %v693_v12 = vpop.f32.mrb[3].mxu1  ;;  %v790_v13 = vpop.f32.mrb[5].mxu0  ;;  %v825_v16 = vmul.f32 %v817_v61, %v788_v9 }
 0x28a   :  { %v852_v15 = vadd.f32 %v834_v58, %v820_v3  ;;  %v822_v17 = vmul.f32 %v807_v56, %v693_v12  ;;  %v826_v18 = vmul.f32 %v817_v61, %v790_v13  ;;  %v792_v19 = vpop.f32.mrb[6].mxu0  ;;  %v6485_v58 = vld [vmem:[%s6635_s21 + $0x4] ss:$12 sps:$4 sm:$0xff]  }
 0x28b   :  { %v859_v20 = vmax.f32 %v851_v10, 0.0  ;;  %v853_v21 = vadd.f32 %v839_v57, %v821_v11  ;;  %v793_v22 = vpop.f32.mrb[7].mxu0  ;;  %v6994_v28 = vadd.f32 %v849_v26, %v825_v16 }
 0x28c   :  { %v860_v24 = vmax.f32 %v852_v15, 0.0  ;;  %v854_v25 = vadd.f32 %v839_v57, %v822_v17  ;;  %v6996_v30 = vadd.f32 %v849_v26, %v826_v18 }
 0x28d   :  { %v861_v27 = vmax.f32 %v853_v21, 0.0  ;;  %v7000_v32 = vsel %vm190_vm15, %v859_v20, 0.0  ;;  %v865_v1 = vmax.f32 %v6994_v28, 0.0 }
 0x28e   :  { %v862_v29 = vmax.f32 %v854_v25, 0.0  ;;  %v697_v31 = vpop.f32.mrb[4].mxu1  ;;  %v7015_v8 = vsel %vm191_vm9, %v860_v24, 0.0  ;;  %v866_v48 = vmax.f32 %v6996_v30, 0.0 }
 0x28f   :  { %v7004_v33 = vsel %vm190_vm15, %v861_v27, 0.0  ;;  %v4780_v34 = vpack.c.bf16 %v861_v27, %v859_v20  ;;  %v823_v35 = vmul.f32 %v812_v14, %v697_v31  ;;  %v699_v36 = vpop.f32.mrb[5].mxu1  ;;  %v7124_v62 = vsel %vm190_vm15, %v865_v1, 0.0 }
 0x290   :  { %v7019_v39 = vsel %vm191_vm9, %v862_v29, 0.0  ;;  %v4777_v40 = vpack.c.bf16 %v862_v29, %v860_v24  ;;  %v824_v41 = vmul.f32 %v812_v14, %v699_v36  ;;  %v701_v42 = vpop.f32.mrb[6].mxu1  ;;  %v7032_v46 = vpack.i.bf16 %v7004_v33, %v7000_v32 }
 0x291   :  { %v7028_v44 = vadd.f32 %v844_v38, %v823_v35  ;;  %v702_v45 = vpop.f32.mrb[7].mxu1  ;;  %v5330_v2 = vpack.i.bf16 %v7019_v39, %v7015_v8  ;;  %v7128_v63 = vsel %vm191_vm9, %v866_v48, 0.0 }
 0x292   :  { %v7040_v47 = vadd.f32 %v844_v38, %v824_v41  ;;  %4778 = vmatprep.subr.msk.bf16.mxu0 %vm7009_vm1, %v4777_v40  ;;  %5326 = vrot.lane.b32.xlu0 %v7032_v46, %s9189_s6 }
 0x293   :  { %v863_v7 = vmax.f32 %v7028_v44, 0.0  ;;  %4781 = vmatpush1.bf16.msk.msra.mxu0 %vm7024_vm0, %v4780_v34  ;;  %5331 = vrot.lane.b32.xlu1 %v5330_v2, %s9189_s6 }
 0x294   :  { %v864_v49 = vmax.f32 %v7040_v47, 0.0 }
 0x295   :  { %v4786_v50 = vpack.c.bf16 %v865_v1, %v863_v7  ;;  %v7107_v60 = vsel %vm190_vm15, %v863_v7, 0.0 }
 0x296   :  { %v4783_v51 = vpack.c.bf16 %v866_v48, %v864_v49  ;;  %v7111_v61 = vsel %vm191_vm9, %v864_v49, 0.0  ;;  %v5530_v6 = vpack.i.bf16 %v7124_v62, %v7107_v60 }
 0x297   :  { %v5540_v3 = vpack.i.bf16 %v7128_v63, %v7111_v61 }
 0x298   :  { %4784 = vmatprep.subr.msk.bf16.mxu0 %vm7009_vm1, %v4783_v51 }
 0x299   :  { %4787 = vmatpush1.bf16.msk.msra.mxu0 %vm7024_vm0, %v4786_v50 }
 0x29c   :  { %4788 = vmatmul.mubr.msk.bf16.vlgmr.msra.gmra.mrb[8].mxu0 %vm880_vm14, %v875_v52 }
 0x29d   :  { %1268 = vmatprep.mubr.bf16.mxu0 %v6485_v58 }
 0x304   :  { %v7142_v17 = vpop.permute.xlu0 %5326 }
 0x305   :  { %v7144_v18 = vpop.permute.xlu1 %5331 }
 0x36f   :  { %v7060_v53 = vpop.f32.mrb[8].mxu0 }
 0x370   :  { %v7062_v54 = vpop.f32.mrb[9].mxu0 }
 0x371   :  { %v922_v55 = vpop.f32.mrb[10].mxu0  ;;  %v5340_v56 = vpack.i.bf16 %v7062_v54, %v7060_v53 }
 0x372   :  { %v923_v57 = vpop.f32.mrb[11].mxu0 }
 0x373   :  { %5341 = vrot.lane.b32.xlu0 %v5340_v56, %s9178_s28  ;;  %5336 = vrot.lane.b32.xlu1 %v5340_v56, %s9176_s26  ;;  %s4731_s26 = sld [smem:[%s9082_s0 + %s9195_s4]]   ;;  %s9321_s28 = smov 19  }
 0x377   :  { %5351 = vrot.lane.b32.xlu0 %v5340_v56, %s9174_s27  ;;  %5346 = vrot.lane.b32.xlu1 %v5340_v56, %s9172_s10  ;;  %s9244_s10 = smov 112   ;;  %s9245_s27 = smov 109  }
 0x37b   :  { %5361 = vrot.lane.b32.xlu0 %v5340_v56, %s9170_s29  ;;  %5356 = vrot.lane.b32.xlu1 %v5340_v56, %s9168_s30  ;;  %s9242_s30 = smov 114   ;;  %s9243_s29 = smov 111  }
 0x37f   :  { %5371 = vrot.lane.b32.xlu0 %v5340_v56, %s9166_s14  ;;  %5366 = vrot.lane.b32.xlu1 %v5340_v56, %s9164_s1  ;;  %s9240_s1 = smov 116   ;;  %s9241_s14 = smov 113  }
 0x383   :  { %5381 = vrot.lane.b32.xlu0 %v5340_v56, %s9198_s2  ;;  %5376 = vrot.lane.b32.xlu1 %v5340_v56, %s9180_s3  ;;  %s4732_s3 = sld [smem:[%s9082_s0 + %s9193_s5]]  }
 0x387   :  { %5391 = vrot.lane.b32.xlu0 %v5340_v56, %s9195_s4  ;;  %5386 = vrot.lane.b32.xlu1 %v5340_v56, %s9193_s5  ;;  %s9326_s5 = smov 12   ;;  %s9327_s4 = smov 13  }
 0x389   :  { %v1476_v9 = vld [vmem:[%s4732_s3 + $0x8] sm:$0xff]  ;;  %v1475_v10 = vld [vmem:[%s4732_s3] sm:$0xff]  ;;  %v1478_v13 = vld [vmem:[%s4732_s3 + $0x18] sm:$0xff] }
 0x38a   :  { %v1477_v14 = vld [vmem:[%s4732_s3 + $0x10] sm:$0xff]  ;;  %s9322_s3 = smov 16  }
 0x38b   :  { %5401 = vrot.lane.b32.xlu0 %v5340_v56, %s9162_s7  ;;  %5396 = vrot.lane.b32.xlu1 %v5340_v56, %s9160_s18  ;;  %s9238_s18 = smov 118   ;;  %s9239_s7 = smov 115  }
 0x38f   :  { %5411 = vrot.lane.b32.xlu0 %v5340_v56, %s9156_s8  ;;  %5406 = vrot.lane.b32.xlu1 %v5340_v56, %s9154_s9  ;;  %s9235_s9 = smov 119   ;;  %s9236_s8 = smov 120  }
 0x393   :  { %5421 = vrot.lane.b32.xlu0 %v5340_v56, %s9228_s23  ;;  %5416 = vrot.lane.b32.xlu1 %v5340_v56, %s9158_s11  ;;  %s9237_s11 = smov 117  }
 0x397   :  { %5431 = vrot.lane.b32.xlu0 %v5340_v56, %s9191_s12  ;;  %5426 = vrot.lane.b32.xlu1 %v5340_v56, %s9189_s6 }
 0x39b   :  { %5441 = vrot.lane.b32.xlu0 %v5340_v56, %s9229_s22  ;;  %5436 = vrot.lane.b32.xlu1 %v5340_v56, %s9230_s15 }
 0x39f   :  { %5451 = vrot.lane.b32.xlu0 %v5340_v56, %s9231_s16  ;;  %5446 = vrot.lane.b32.xlu1 %v5340_v56, %s9232_s25 }
 0x3a3   :  { %5461 = vrot.lane.b32.xlu0 %v5340_v56, %s9233_s19  ;;  %5456 = vrot.lane.b32.xlu1 %v5340_v56, %s9234_s20 }
 0x3a7   :  { %5471 = vrot.lane.b32.xlu0 %v5340_v56, %s9235_s9  ;;  %5466 = vrot.lane.b32.xlu1 %v5340_v56, %s9236_s8 }
 0x3ab   :  { %5481 = vrot.lane.b32.xlu0 %v5340_v56, %s9237_s11  ;;  %5476 = vrot.lane.b32.xlu1 %v5340_v56, %s9238_s18 }
 0x3af   :  { %5491 = vrot.lane.b32.xlu0 %v5340_v56, %s9239_s7  ;;  %5486 = vrot.lane.b32.xlu1 %v5340_v56, %s9240_s1 }
 0x3b3   :  { %5501 = vrot.lane.b32.xlu0 %v5340_v56, %s9241_s14  ;;  %5496 = vrot.lane.b32.xlu1 %v5340_v56, %s9242_s30 }
 0x3b7   :  { %5511 = vrot.lane.b32.xlu0 %v5340_v56, %s9243_s29  ;;  %5506 = vrot.lane.b32.xlu1 %v5340_v56, %s9244_s10 }
 0x3bb   :  { %5526 = vrot.lane.b32.xlu0 %v5330_v2, %s9191_s12  ;;  %5516 = vrot.lane.b32.xlu1 %v5340_v56, %s9182_s24  ;;  %s4733_s24 = sld [smem:[%s9082_s0 + %s9198_s2]]  }
 0x3bf   :  { %5536 = vrot.lane.b32.xlu0 %v5340_v56, %s9245_s27  ;;  %5521 = vrot.lane.b32.xlu1 %v7032_v46, %s9191_s12  ;;  %s9333_s27 = smov 5  }
 0x3c1   :  { %v1508_v11 = vld [vmem:[%s4733_s24 + $0x8] sm:$0xff]  ;;  %v1507_v12 = vld [vmem:[%s4733_s24] sm:$0xff]  ;;  %v1510_v15 = vld [vmem:[%s4733_s24 + $0x18] sm:$0xff] }
 0x3c2   :  { %v1509_v16 = vld [vmem:[%s4733_s24 + $0x10] sm:$0xff] }
 0x3c3   :  { %5541 = vrot.lane.b32.xlu0 %v5540_v3, %s9189_s6  ;;  %5531 = vrot.lane.b32.xlu1 %v5530_v6, %s9189_s6 }
 0x3c7   :  { %5551 = vrot.lane.b32.xlu0 %v5540_v3, %s9191_s12  ;;  %5546 = vrot.lane.b32.xlu1 %v5530_v6, %s9191_s12 }
 0x3cb   :  { %1486 = vperm.xlu0 %5323, %v1476_v9   ;;  %1481 = vperm.xlu1 %5324, %v1475_v10  }
 0x3cf   :  { %1518 = vperm.xlu0 %5323, %v1508_v11   ;;  %1513 = vperm.xlu1 %5324, %v1507_v12  }
 0x3d3   :  { %1496 = vperm.xlu0 %5323, %v1478_v13   ;;  %1491 = vperm.xlu1 %5324, %v1477_v14  }
 0x3d7   :  { %1528 = vperm.xlu0 %5323, %v1510_v15   ;;  %1523 = vperm.xlu1 %5324, %v1509_v16  }
 0x3e5   :  { %v5342_v19 = vpop.permute.xlu0 %5341  ;;  %v5337_v20 = vpop.permute.xlu1 %5336 }
 0x3e6   :  { %v5344_v21 = vunpack.i.h.bf16 %v5342_v19  ;;  %v5343_v22 = vunpack.i.l.bf16 %v5342_v19  ;;  %v5339_v24 = vunpack.i.h.bf16 %v5337_v20  ;;  %v5338_v25 = vunpack.i.l.bf16 %v5337_v20 }
 0x3e8   :  { %v936_v26 = vsel %vm9188_vm3, %v5344_v21, %v5343_v22  ;;  %v930_v27 = vsel %vm9184_vm2, %v5339_v24, %v5338_v25  ;;  %v929_v28 = vsel %vm9184_vm2, %v5338_v25, %v5339_v24  ;;  %v935_v29 = vsel %vm9188_vm3, %v5343_v22, %v5344_v21 }
 0x3e9   :  { %v5352_v30 = vpop.permute.xlu0 %5351  ;;  %v5347_v31 = vpop.permute.xlu1 %5346  ;;  %v1154_v34 = vpack.c.bf16 %v935_v29, %v929_v28  ;;  %v1153_v35 = vpack.c.bf16 %v936_v26, %v930_v27  ;;  %vm9246_vm2 = vcmp.lt.s32.totalorder %v6740_v23, 15  ;;  %vm9282_vm3 = vcmp.lt.s32.totalorder %v6740_v23, 121 }
 0x3ea   :  { %v5354_v36 = vunpack.i.h.bf16 %v5352_v30  ;;  %v5353_v38 = vunpack.i.l.bf16 %v5352_v30  ;;  %v5349_v40 = vunpack.i.h.bf16 %v5347_v31  ;;  %v5348_v41 = vunpack.i.l.bf16 %v5347_v31 }
 0x3eb   :  { %1236 = vmatprep.subr.bf16.mxu0 %v1154_v34 }
 0x3ec   :  { %v948_v42 = vsel %vm9186_vm5, %v5354_v36, %v5353_v38  ;;  %v942_v44 = vsel %vm9185_vm4, %v5349_v40, %v5348_v41  ;;  %1237 = vmatpush1.bf16.msra.mxu0 %v1153_v35  ;;  %v941_v45 = vsel %vm9185_vm4, %v5348_v41, %v5349_v40  ;;  %v947_v46 = vsel %vm9186_vm5, %v5353_v38, %v5354_v36  ;;  %vm9247_vm4 = vmmov %vm9246_vm2 }
 0x3ed   :  { %v5362_v2 = vpop.permute.xlu0 %5361  ;;  %v5357_v47 = vpop.permute.xlu1 %5356  ;;  %v1156_v1 = vpack.c.bf16 %v947_v46, %v941_v45  ;;  %v1155_v7 = vpack.c.bf16 %v948_v42, %v942_v44  ;;  %vm9248_vm5 = vcmp.lt.s32.totalorder %v6740_v23, 12 }
 0x3ee   :  { %v5364_v48 = vunpack.i.h.bf16 %v5362_v2  ;;  %v5363_v49 = vunpack.i.l.bf16 %v5362_v2  ;;  %v5359_v50 = vunpack.i.h.bf16 %v5357_v47  ;;  %v5358_v51 = vunpack.i.l.bf16 %v5357_v47 }
 0x3ef   :  { %1238 = vmatprep.subr.bf16.mxu0 %v1156_v1 }
 0x3f0   :  { %v960_v52 = vsel %vm9187_vm7, %v5364_v48, %v5363_v49  ;;  %v954_v55 = vsel %vm9246_vm2, %v5359_v50, %v5358_v51  ;;  %1239 = vmatpush1.bf16.msra.mxu0 %v1155_v7  ;;  %v953_v56 = vsel %vm9247_vm4, %v5358_v51, %v5359_v50  ;;  %v959_v57 = vsel %vm9187_vm7, %v5363_v49, %v5364_v48  ;;  %vm9251_vm7 = vmmov %vm9248_vm5 }
 0x3f1   :  { %v5372_v58 = vpop.permute.xlu0 %5371  ;;  %v5367_v3 = vpop.permute.xlu1 %5366  ;;  %v1158_v6 = vpack.c.bf16 %v959_v57, %v953_v56  ;;  %v1157_v9 = vpack.c.bf16 %v960_v52, %v954_v55  ;;  %vm9249_vm2 = vcmp.lt.s32.totalorder %v6740_v23, 13 }
 0x3f2   :  { %v5374_v10 = vunpack.i.h.bf16 %v5372_v58  ;;  %v5373_v11 = vunpack.i.l.bf16 %v5372_v58  ;;  %v5369_v12 = vunpack.i.h.bf16 %v5367_v3  ;;  %v5368_v13 = vunpack.i.l.bf16 %v5367_v3  ;;  %vm9250_vm4 = vmmov %vm9249_vm2 }
 0x3f3   :  { %1240 = vmatprep.subr.bf16.mxu0 %v1158_v6 }
 0x3f4   :  { %v972_v14 = vsel %vm9248_vm5, %v5374_v10, %v5373_v11  ;;  %v966_v15 = vsel %vm9249_vm2, %v5369_v12, %v5368_v13  ;;  %1241 = vmatpush1.bf16.msra.mxu0 %v1157_v9  ;;  %v965_v16 = vsel %vm9250_vm4, %v5368_v13, %v5369_v12  ;;  %v971_v19 = vsel %vm9251_vm7, %v5373_v11, %v5374_v10 }
 0x3f5   :  { %v5382_v20 = vpop.permute.xlu0 %5381  ;;  %v5377_v21 = vpop.permute.xlu1 %5376  ;;  %v1160_v22 = vpack.c.bf16 %v971_v19, %v965_v16  ;;  %v1159_v24 = vpack.c.bf16 %v972_v14, %v966_v15  ;;  %vm9252_vm5 = vcmp.lt.s32.totalorder %v6740_v23, 10  ;;  %vm9253_vm2 = vcmp.lt.s32.totalorder %v6740_v23, 11 }
 0x3f6   :  { %v5384_v25 = vunpack.i.h.bf16 %v5382_v20  ;;  %v5383_v26 = vunpack.i.l.bf16 %v5382_v20  ;;  %v5379_v27 = vunpack.i.h.bf16 %v5377_v21  ;;  %v5378_v28 = vunpack.i.l.bf16 %v5377_v21  ;;  %vm9254_vm4 = vmmov %vm9253_vm2 }
 0x3f7   :  { %1242 = vmatprep.subr.bf16.mxu0 %v1160_v22  ;;  %vm9255_vm7 = vmmov %vm9252_vm5 }
 0x3f8   :  { %v984_v29 = vsel %vm9252_vm5, %v5384_v25, %v5383_v26  ;;  %v978_v30 = vsel %vm9253_vm2, %v5379_v27, %v5378_v28  ;;  %1243 = vmatpush1.bf16.msra.mxu0 %v1159_v24  ;;  %v977_v31 = vsel %vm9254_vm4, %v5378_v28, %v5379_v27  ;;  %v983_v34 = vsel %vm9255_vm7, %v5383_v26, %v5384_v25 }
 0x3f9   :  { %v5392_v35 = vpop.permute.xlu0 %5391  ;;  %v5387_v36 = vpop.permute.xlu1 %5386  ;;  %v1162_v38 = vpack.c.bf16 %v983_v34, %v977_v31  ;;  %v1161_v40 = vpack.c.bf16 %v984_v29, %v978_v30  ;;  %vm9256_vm5 = vcmp.lt.s32.totalorder %v6740_v23, 8  ;;  %vm9257_vm2 = vcmp.lt.s32.totalorder %v6740_v23, 9 }
 0x3fa   :  { %v5394_v41 = vunpack.i.h.bf16 %v5392_v35  ;;  %v5393_v42 = vunpack.i.l.bf16 %v5392_v35  ;;  %v5389_v44 = vunpack.i.h.bf16 %v5387_v36  ;;  %v5388_v45 = vunpack.i.l.bf16 %v5387_v36  ;;  %vm9258_vm4 = vmmov %vm9257_vm2 }
 0x3fb   :  { %1244 = vmatprep.subr.bf16.mxu0 %v1162_v38  ;;  %vm9259_vm7 = vmmov %vm9256_vm5 }
 0x3fc   :  { %v996_v46 = vsel %vm9256_vm5, %v5394_v41, %v5393_v42  ;;  %v990_v2 = vsel %vm9257_vm2, %v5389_v44, %v5388_v45  ;;  %1245 = vmatpush1.bf16.msra.mxu0 %v1161_v40  ;;  %v989_v47 = vsel %vm9258_vm4, %v5388_v45, %v5389_v44  ;;  %v995_v1 = vsel %vm9259_vm7, %v5393_v42, %v5394_v41 }
 0x3fd   :  { %v5402_v7 = vpop.permute.xlu0 %5401  ;;  %v5397_v48 = vpop.permute.xlu1 %5396  ;;  %v1164_v49 = vpack.c.bf16 %v995_v1, %v989_v47  ;;  %v1163_v50 = vpack.c.bf16 %v996_v46, %v990_v2  ;;  %vm9260_vm5 = vcmp.lt.s32.totalorder %v6740_v23, 6  ;;  %vm9261_vm2 = vcmp.lt.s32.totalorder %v6740_v23, 7 }
 0x3fe   :  { %v5404_v51 = vunpack.i.h.bf16 %v5402_v7  ;;  %v5403_v52 = vunpack.i.l.bf16 %v5402_v7  ;;  %v5399_v55 = vunpack.i.h.bf16 %v5397_v48  ;;  %v5398_v56 = vunpack.i.l.bf16 %v5397_v48  ;;  %vm9262_vm4 = vmmov %vm9261_vm2 }
 0x3ff   :  { %1246 = vmatprep.subr.bf16.mxu0 %v1164_v49  ;;  %vm9263_vm7 = vmmov %vm9260_vm5 }
 0x400   :  { %v1008_v57 = vsel %vm9260_vm5, %v5404_v51, %v5403_v52  ;;  %v1002_v58 = vsel %vm9261_vm2, %v5399_v55, %v5398_v56  ;;  %1247 = vmatpush1.bf16.msra.mxu0 %v1163_v50  ;;  %v1001_v3 = vsel %vm9262_vm4, %v5398_v56, %v5399_v55  ;;  %v1007_v6 = vsel %vm9263_vm7, %v5403_v52, %v5404_v51 }
 0x401   :  { %v5412_v9 = vpop.permute.xlu0 %5411  ;;  %v5407_v10 = vpop.permute.xlu1 %5406  ;;  %v1166_v11 = vpack.c.bf16 %v1007_v6, %v1001_v3  ;;  %v1165_v12 = vpack.c.bf16 %v1008_v57, %v1002_v58  ;;  %vm9264_vm5 = vcmp.lt.s32.totalorder %v6740_v23, 4  ;;  %vm9265_vm2 = vcmp.lt.s32.totalorder %v6740_v23, 5 }
 0x402   :  { %v5414_v13 = vunpack.i.h.bf16 %v5412_v9  ;;  %v5413_v14 = vunpack.i.l.bf16 %v5412_v9  ;;  %v5409_v15 = vunpack.i.h.bf16 %v5407_v10  ;;  %v5408_v16 = vunpack.i.l.bf16 %v5407_v10  ;;  %vm9266_vm4 = vmmov %vm9265_vm2 }
 0x403   :  { %1248 = vmatprep.subr.bf16.mxu0 %v1166_v11  ;;  %vm9267_vm7 = vmmov %vm9264_vm5 }
 0x404   :  { %v1020_v19 = vsel %vm9264_vm5, %v5414_v13, %v5413_v14  ;;  %v1014_v20 = vsel %vm9265_vm2, %v5409_v15, %v5408_v16  ;;  %1249 = vmatpush1.bf16.msra.mxu0 %v1165_v12  ;;  %v1013_v21 = vsel %vm9266_vm4, %v5408_v16, %v5409_v15  ;;  %v1019_v22 = vsel %vm9267_vm7, %v5413_v14, %v5414_v13 }
 0x405   :  { %v5422_v24 = vpop.permute.xlu0 %5421  ;;  %v5417_v25 = vpop.permute.xlu1 %5416  ;;  %v1168_v26 = vpack.c.bf16 %v1019_v22, %v1013_v21  ;;  %v1167_v27 = vpack.c.bf16 %v1020_v19, %v1014_v20  ;;  %vm9268_vm5 = vcmp.lt.s32.totalorder %v6740_v23, 2  ;;  %vm9269_vm2 = vcmp.lt.s32.totalorder %v6740_v23, 3 }
 0x406   :  { %v5424_v28 = vunpack.i.h.bf16 %v5422_v24  ;;  %v5423_v29 = vunpack.i.l.bf16 %v5422_v24  ;;  %v5419_v30 = vunpack.i.h.bf16 %v5417_v25  ;;  %v5418_v31 = vunpack.i.l.bf16 %v5417_v25  ;;  %vm9270_vm4 = vmmov %vm9269_vm2 }
 0x407   :  { %1250 = vmatprep.subr.bf16.mxu0 %v1168_v26  ;;  %vm9271_vm7 = vmmov %vm9268_vm5 }
 0x408   :  { %v1032_v34 = vsel %vm9268_vm5, %v5424_v28, %v5423_v29  ;;  %v1026_v35 = vsel %vm9269_vm2, %v5419_v30, %v5418_v31  ;;  %1251 = vmatpush1.bf16.msra.mxu0 %v1167_v27  ;;  %v1025_v36 = vsel %vm9270_vm4, %v5418_v31, %v5419_v30  ;;  %v1031_v38 = vsel %vm9271_vm7, %v5423_v29, %v5424_v28 }
 0x409   :  { %v5432_v40 = vpop.permute.xlu0 %5431  ;;  %v5427_v41 = vpop.permute.xlu1 %5426  ;;  %v1170_v42 = vpack.c.bf16 %v1031_v38, %v1025_v36  ;;  %v1169_v44 = vpack.c.bf16 %v1032_v34, %v1026_v35  ;;  %vm9272_vm5 = vcmp.lt.s32.totalorder %v6740_v23, 126  ;;  %vm9274_vm4 = vcmp.lt.s32.totalorder %v6740_v23, 125 }
 0x40a   :  { %v5429_v45 = vunpack.i.h.bf16 %v5427_v41  ;;  %v5428_v46 = vunpack.i.l.bf16 %v5427_v41  ;;  %v5434_v2 = vunpack.i.h.bf16 %v5432_v40  ;;  %v5433_v47 = vunpack.i.l.bf16 %v5432_v40  ;;  %vm9273_vm2 = vmmov %vm9272_vm5 }
 0x40b   :  { %1252 = vmatprep.subr.bf16.mxu0 %v1170_v42  ;;  %vm9275_vm7 = vmmov %vm9274_vm4 }
 0x40c   :  { %v1038_v1 = vsel %vm381_vm10, %v5429_v45, %v5428_v46  ;;  %1253 = vmatpush1.bf16.msra.mxu0 %v1169_v44  ;;  %v1037_v7 = vsel %vm381_vm10, %v5428_v46, %v5429_v45  ;;  %v1043_v58 = vsel %vm388_vm13, %v5433_v47, %v5434_v2  ;;  %v1044_v6 = vsel %vm388_vm13, %v5434_v2, %v5433_v47 }
 0x40d   :  { %v5442_v48 = vpop.permute.xlu0 %5441  ;;  %v5437_v49 = vpop.permute.xlu1 %5436  ;;  %v1172_v50 = vpack.c.bf16 %v7062_v54, %v1037_v7  ;;  %v1171_v51 = vpack.c.bf16 %v7060_v53, %v1038_v1 }
 0x40e   :  { %v5439_v52 = vunpack.i.h.bf16 %v5437_v49  ;;  %v5438_v55 = vunpack.i.l.bf16 %v5437_v49  ;;  %v5444_v56 = vunpack.i.h.bf16 %v5442_v48  ;;  %v5443_v57 = vunpack.i.l.bf16 %v5442_v48 }
 0x40f   :  { %1254 = vmatprep.subr.bf16.mxu0 %v1172_v50 }
 0x410   :  { %v1049_v3 = vsel %vm9272_vm5, %v5438_v55, %v5439_v52  ;;  %1255 = vmatpush1.bf16.msra.mxu0 %v1171_v51  ;;  %v1050_v54 = vsel %vm9273_vm2, %v5439_v52, %v5438_v55  ;;  %v1055_v14 = vsel %vm9274_vm4, %v5443_v57, %v5444_v56  ;;  %v1056_v15 = vsel %vm9275_vm7, %v5444_v56, %v5443_v57 }
 0x411   :  { %v5452_v9 = vpop.permute.xlu0 %5451  ;;  %v5447_v53 = vpop.permute.xlu1 %5446  ;;  %v1174_v10 = vpack.c.bf16 %v1050_v54, %v1044_v6  ;;  %v1173_v11 = vpack.c.bf16 %v1049_v3, %v1043_v58  ;;  %vm9276_vm5 = vcmp.lt.s32.totalorder %v6740_v23, 124  ;;  %vm9278_vm4 = vcmp.lt.s32.totalorder %v6740_v23, 123 }
 0x412   :  { %v5449_v12 = vunpack.i.h.bf16 %v5447_v53  ;;  %v5448_v13 = vunpack.i.l.bf16 %v5447_v53  ;;  %v5454_v16 = vunpack.i.h.bf16 %v5452_v9  ;;  %v5453_v19 = vunpack.i.l.bf16 %v5452_v9  ;;  %vm9277_vm2 = vmmov %vm9276_vm5 }
 0x413   :  { %1256 = vmatprep.subr.bf16.mxu0 %v1174_v10  ;;  %vm9279_vm7 = vcmp.lt.s32.totalorder %v6740_v23, 122 }
 0x414   :  { %v1061_v20 = vsel %vm9276_vm5, %v5448_v13, %v5449_v12  ;;  %1257 = vmatpush1.bf16.msra.mxu0 %v1173_v11  ;;  %v1062_v21 = vsel %vm9277_vm2, %v5449_v12, %v5448_v13  ;;  %v1067_v31 = vsel %vm9278_vm4, %v5453_v19, %v5454_v16  ;;  %vm9280_vm5 = vmmov %vm9278_vm4 }
 0x415   :  { %v5462_v22 = vpop.permute.xlu0 %5461  ;;  %v5457_v24 = vpop.permute.xlu1 %5456  ;;  %v1176_v25 = vpack.c.bf16 %v1062_v21, %v1056_v15  ;;  %v1175_v26 = vpack.c.bf16 %v1061_v20, %v1055_v14  ;;  %v1068_v35 = vsel %vm9280_vm5, %v5454_v16, %v5453_v19  ;;  %vm9281_vm2 = vmmov %vm9279_vm7 }
 0x416   :  { %v5459_v27 = vunpack.i.h.bf16 %v5457_v24  ;;  %v5458_v28 = vunpack.i.l.bf16 %v5457_v24  ;;  %v5464_v29 = vunpack.i.h.bf16 %v5462_v22  ;;  %v5463_v30 = vunpack.i.l.bf16 %v5462_v22  ;;  %vm9283_vm4 = vmmov %vm9282_vm3  ;;  %v7273_v24 = vld [vmem:[%s6635_s21 + $0x18] sm:$0xff] }
 0x417   :  { %1258 = vmatprep.subr.bf16.mxu0 %v1176_v25  ;;  %v5329_v25 = vunpack.i.h.bf16 %v7142_v17 }
 0x418   :  { %v1073_v34 = vsel %vm9279_vm7, %v5458_v28, %v5459_v27  ;;  %1259 = vmatpush1.bf16.msra.mxu0 %v1175_v26  ;;  %v1074_v36 = vsel %vm9281_vm2, %v5459_v27, %v5458_v28  ;;  %v1079_v46 = vsel %vm9282_vm3, %v5463_v30, %v5464_v29  ;;  %v1080_v2 = vsel %vm9283_vm4, %v5464_v29, %v5463_v30 }
 0x419   :  { %v5472_v38 = vpop.permute.xlu0 %5471  ;;  %v5467_v40 = vpop.permute.xlu1 %5466  ;;  %v1178_v41 = vpack.c.bf16 %v1074_v36, %v1068_v35  ;;  %v1177_v42 = vpack.c.bf16 %v1073_v34, %v1067_v31  ;;  %vm9284_vm7 = vcmp.lt.s32.totalorder %v6740_v23, 120  ;;  %vm9286_vm3 = vcmp.lt.s32.totalorder %v6740_v23, 119 }
 0x41a   :  { %v5469_v44 = vunpack.i.h.bf16 %v5467_v40  ;;  %v5468_v45 = vunpack.i.l.bf16 %v5467_v40  ;;  %v5474_v47 = vunpack.i.h.bf16 %v5472_v38  ;;  %v5473_v1 = vunpack.i.l.bf16 %v5472_v38  ;;  %vm9285_vm5 = vmmov %vm9284_vm7 }
 0x41b   :  { %1260 = vmatprep.subr.bf16.mxu0 %v1178_v41  ;;  %vm9287_vm2 = vcmp.lt.s32.totalorder %v6740_v23, 118  ;;  %vm9288_vm4 = vmmov %vm9286_vm3  ;;  %v5328_v30 = vunpack.i.l.bf16 %v7142_v17  ;;  %v5334_v31 = vunpack.i.h.bf16 %v7144_v18  ;;  %v5333_v36 = vunpack.i.l.bf16 %v7144_v18  ;;  %v6483_v41 = vld [vmem:[%s6635_s21] ss:$12 sps:$4 sm:$0xff]  }
 0x41c   :  { %v1085_v7 = vsel %vm9284_vm7, %v5468_v45, %v5469_v44  ;;  %1261 = vmatpush1.bf16.msra.mxu0 %v1177_v42  ;;  %v1086_v48 = vsel %vm9285_vm5, %v5469_v44, %v5468_v45  ;;  %v1091_v3 = vsel %vm9286_vm3, %v5473_v1, %v5474_v47  ;;  %v1092_v54 = vsel %vm9288_vm4, %v5474_v47, %v5473_v1  ;;  %vm9289_vm7 = vmmov %vm9287_vm2 }
 0x41d   :  { %v5482_v49 = vpop.permute.xlu0 %5481  ;;  %v5477_v50 = vpop.permute.xlu1 %5476  ;;  %v1180_v51 = vpack.c.bf16 %v1086_v48, %v1080_v2  ;;  %v1179_v52 = vpack.c.bf16 %v1085_v7, %v1079_v46  ;;  %vm9290_vm5 = vcmp.lt.s32.totalorder %v6740_v23, 117  ;;  %v4793_v42 = vcombine.high %v7273_v24, %v7273_v24 }
 0x41e   :  { %v5479_v55 = vunpack.i.h.bf16 %v5477_v50  ;;  %v5478_v56 = vunpack.i.l.bf16 %v5477_v50  ;;  %v5484_v57 = vunpack.i.h.bf16 %v5482_v49  ;;  %v5483_v58 = vunpack.i.l.bf16 %v5482_v49  ;;  %vm9291_vm3 = vmmov %vm9290_vm5 }
 0x41f   :  { %1262 = vmatprep.subr.bf16.mxu0 %v1180_v51  ;;  %v1355_v7 = vsel %vm381_vm10, %v5329_v25, %v5334_v31  ;;  %v1359_v48 = vsel %vm381_vm10, %v5334_v31, %v5329_v25  ;;  %v1358_v51 = vsel %vm381_vm10, %v5333_v36, %v5328_v30 }
 0x420   :  { %v1097_v6 = vsel %vm9287_vm2, %v5478_v56, %v5479_v55  ;;  %1263 = vmatpush1.bf16.msra.mxu0 %v1179_v52  ;;  %v1098_v9 = vsel %vm9289_vm7, %v5479_v55, %v5478_v56  ;;  %v1103_v15 = vsel %vm9290_vm5, %v5483_v58, %v5484_v57  ;;  %v1104_v16 = vsel %vm9291_vm3, %v5484_v57, %v5483_v58 }
 0x421   :  { %v5492_v53 = vpop.permute.xlu0 %5491  ;;  %v5487_v10 = vpop.permute.xlu1 %5486  ;;  %v1182_v11 = vpack.c.bf16 %v1098_v9, %v1092_v54  ;;  %v1181_v12 = vpack.c.bf16 %v1097_v6, %v1091_v3  ;;  %vm9292_vm2 = vcmp.lt.s32.totalorder %v6740_v23, 116  ;;  %vm9294_vm7 = vcmp.lt.s32.totalorder %v6740_v23, 115 }
 0x422   :  { %v5489_v13 = vunpack.i.h.bf16 %v5487_v10  ;;  %v5488_v14 = vunpack.i.l.bf16 %v5487_v10  ;;  %v5494_v19 = vunpack.i.h.bf16 %v5492_v53  ;;  %v5493_v20 = vunpack.i.l.bf16 %v5492_v53  ;;  %vm9293_vm4 = vmmov %vm9292_vm2 }
 0x423   :  { %1264 = vmatprep.subr.bf16.mxu0 %v1182_v11  ;;  %vm9295_vm5 = vcmp.lt.s32.totalorder %v6740_v23, 114  ;;  %vm9296_vm3 = vmmov %vm9294_vm7  ;;  %v1354_v10 = vsel %vm381_vm10, %v5328_v30, %v5333_v36 }
 0x424   :  { %v1109_v21 = vsel %vm9292_vm2, %v5488_v14, %v5489_v13  ;;  %1265 = vmatpush1.bf16.msra.mxu0 %v1181_v12  ;;  %v1110_v22 = vsel %vm9293_vm4, %v5489_v13, %v5488_v14  ;;  %v1115_v44 = vsel %vm9294_vm7, %v5493_v20, %v5494_v19  ;;  %v1116_v17 = vsel %vm9296_vm3, %v5494_v19, %v5493_v20  ;;  %vm9297_vm2 = vmmov %vm9295_vm5 }
 0x425   :  { %v5502_v26 = vpop.permute.xlu0 %5501  ;;  %v5497_v27 = vpop.permute.xlu1 %5496  ;;  %v1184_v28 = vpack.c.bf16 %v1110_v22, %v1104_v16  ;;  %v1183_v29 = vpack.c.bf16 %v1109_v21, %v1103_v15  ;;  %vm9298_vm4 = vcmp.lt.s32.totalorder %v6740_v23, 113  ;;  %v1364_v13 = vsel %vm704_vm6, %v1359_v48, -3.4028235e+38 }
 0x426   :  { %v5499_v34 = vunpack.i.h.bf16 %v5497_v27  ;;  %v5498_v35 = vunpack.i.l.bf16 %v5497_v27  ;;  %v5504_v38 = vunpack.i.h.bf16 %v5502_v26  ;;  %v5503_v40 = vunpack.i.l.bf16 %v5502_v26  ;;  %vm9299_vm7 = vmmov %vm9298_vm4 }
 0x427   :  { %1266 = vmatprep.subr.bf16.mxu0 %v1184_v28  ;;  %v1365_v14 = vsel %vm705_vm12, %v1355_v7, -3.4028235e+38  ;;  %v1362_v15 = vsel %vm704_vm6, %v1358_v51, -3.4028235e+38  ;;  %v4792_v16 = vcombine.low %v7273_v24, %v7273_v24  ;;  %v1404_v36 = vmax.f32 %v1364_v13, %v7004_v33 }
 0x428   :  { %v1121_v45 = vsel %vm9295_vm5, %v5498_v35, %v5499_v34  ;;  %1267 = vmatpush1.bf16.msra.mxu0 %v1183_v29  ;;  %v1122_v18 = vsel %vm9297_vm2, %v5499_v34, %v5498_v35  ;;  %v1127_v52 = vsel %vm9298_vm4, %v5503_v40, %v5504_v38  ;;  %v1128_v55 = vsel %vm9299_vm7, %v5504_v38, %v5503_v40 }
 0x429   :  { %v5512_v46 = vpop.permute.xlu0 %5511  ;;  %v5507_v2 = vpop.permute.xlu1 %5506  ;;  %v1186_v47 = vpack.c.bf16 %v1122_v18, %v1116_v17  ;;  %v1185_v1 = vpack.c.bf16 %v1121_v45, %v1115_v44  ;;  %vm9300_vm5 = vcmp.lt.s32.totalorder %v6740_v23, 112  ;;  %vm9302_vm2 = vcmp.lt.s32.totalorder %v6740_v23, 110 }
 0x42a   :  { %v5509_v49 = vunpack.i.h.bf16 %v5507_v2  ;;  %v5508_v50 = vunpack.i.l.bf16 %v5507_v2  ;;  %v5514_v56 = vunpack.i.h.bf16 %v5512_v46  ;;  %v5513_v57 = vunpack.i.l.bf16 %v5512_v46  ;;  %vm9301_vm3 = vmmov %vm9300_vm5 }
 0x42b   :  { %1269 = vmatmul.mubr.bf16.vlgmr.msra.gmra.mrb[12].mxu0 %v6483_v41  ;;  %1287 = vmatprep.subr.bf16.mxu0 %v1186_v47  ;;  %vm9303_vm4 = vmmov %vm9302_vm2  ;;  %v1405_v38 = vmax.f32 %v1365_v14, %v7019_v39  ;;  %v1363_v40 = vsel %vm705_vm12, %v1354_v10, -3.4028235e+38  ;;  %v1402_v33 = vmax.f32 %v1362_v15, %v7000_v32  ;;  %vm9304_vm7 = vcmp.le.s32.totalorder %v6740_v23, 62 }
 0x42c   :  { %v1133_v58 = vsel %vm9300_vm5, %v5508_v50, %v5509_v49  ;;  %1288 = vmatpush1.bf16.msra.mxu0 %v1185_v1  ;;  %v1134_v3 = vsel %vm9301_vm3, %v5509_v49, %v5508_v50  ;;  %1278 = vmatprep.mubr.bf16.mxu0 %v4793_v42  ;;  %v1139_v19 = vsel %vm500_vm11, %v5513_v57, %v5514_v56  ;;  %vm9305_vm5 = vmmov %vm9304_vm7  ;;  %vm9306_vm3 = vcmp.lt.s32.totalorder %v6740_v23, 109 }
 0x42d   :  { %v5527_v6 = vpop.permute.xlu0 %5526  ;;  %v5517_v54 = vpop.permute.xlu1 %5516  ;;  %v1188_v9 = vpack.c.bf16 %v1134_v3, %v1128_v55  ;;  %v1187_v53 = vpack.c.bf16 %v1133_v58, %v1127_v52  ;;  %v1140_v21 = vsel %vm500_vm11, %v5514_v56, %v5513_v57  ;;  %v1403_v47 = vmax.f32 %v1363_v40, %v7015_v8 }
 0x42e   :  { %v5519_v11 = vunpack.i.h.bf16 %v5517_v54  ;;  %v5518_v12 = vunpack.i.l.bf16 %v5517_v54  ;;  %v5529_v25 = vunpack.i.h.bf16 %v5527_v6  ;;  %v5528_v26 = vunpack.i.l.bf16 %v5527_v6 }
 0x42f   :  { %1289 = vmatprep.subr.bf16.mxu0 %v1188_v9 }
 0x430   :  { %v1145_v20 = vsel %vm9302_vm2, %v5518_v12, %v5519_v11  ;;  %1290 = vmatpush1.bf16.msra.mxu0 %v1187_v53  ;;  %v1146_v22 = vsel %vm9303_vm4, %v5519_v11, %v5518_v12  ;;  %vm9307_vm2 = vcmp.le.s32.totalorder %v6917_v59, 62 }
 0x431   :  { %v5537_v27 = vpop.permute.xlu0 %5536  ;;  %v5522_v28 = vpop.permute.xlu1 %5521  ;;  %v1190_v29 = vpack.c.bf16 %v1146_v22, %v1140_v21  ;;  %v1189_v30 = vpack.c.bf16 %v1145_v20, %v1139_v19  ;;  %vm9308_vm4 = vmmov %vm9307_vm2  ;;  %v6488_v19 = vld [vmem:[%s6635_s21 + $0x8] ss:$12 sps:$4 sm:$0xff]  }
 0x432   :  { %v5539_v24 = vunpack.i.h.bf16 %v5537_v27  ;;  %v5538_v31 = vunpack.i.l.bf16 %v5537_v27  ;;  %v5524_v34 = vunpack.i.h.bf16 %v5522_v28  ;;  %v5523_v35 = vunpack.i.l.bf16 %v5522_v28 }
 0x433   :  { %1279 = vmatmul.mubr.bf16.gmra.mrb[16].mxu0 %v4792_v16  ;;  %1291 = vmatprep.subr.bf16.mxu0 %v1190_v29 }
 0x434   :  { %v1387_v41 = vsel %vm388_vm13, %v5524_v34, %v5529_v25  ;;  %v1391_v42 = vsel %vm388_vm13, %v5529_v25, %v5524_v34  ;;  %v1386_v44 = vsel %vm388_vm13, %v5523_v35, %v5528_v26  ;;  %v1390_v45 = vsel %vm388_vm13, %v5528_v26, %v5523_v35  ;;  %1292 = vmatpush1.bf16.msra.mxu0 %v1189_v30 }
 0x435   :  { %v1396_v39 = vsel %vm9304_vm7, %v1387_v41, -3.4028235e+38  ;;  %v1394_v17 = vsel %vm9305_vm5, %v1386_v44, -3.4028235e+38  ;;  %v5542_v18 = vpop.permute.xlu0 %5541  ;;  %v5532_v46 = vpop.permute.xlu1 %5531  ;;  %v1152_v2 = vsel %vm9306_vm3, %v5539_v24, %v5538_v31  ;;  %1319 = vmatprep.mubr.bf16.mxu0 %v6522_v0  ;;  %v1397_v1 = vsel %vm9307_vm2, %v1391_v42, -3.4028235e+38  ;;  %vm9309_vm7 = vmmov %vm9306_vm3 }
 0x436   :  { %v1395_v32 = vsel %vm9308_vm4, %v1390_v45, -3.4028235e+38  ;;  %v5544_v7 = vunpack.i.h.bf16 %v5542_v18  ;;  %v5543_v48 = vunpack.i.l.bf16 %v5542_v18  ;;  %v5534_v49 = vunpack.i.h.bf16 %v5532_v46  ;;  %vm9310_vm3 = vmmov %vm9307_vm2  ;;  %v6489_v45 = vld [vmem:[%s6635_s21 + $0x20] ss:$0 sps:$4 sm:$0xff]   ;;  %s9315_s21 = smov 11  }
 0x437   :  { %v5533_v50 = vunpack.i.l.bf16 %v5532_v46  ;;  %v1192_v51 = vpack.c.bf16 %v1152_v2, %v1152_v2  ;;  %v1412_v52 = vmax.f32 %v1404_v36, %v1396_v39  ;;  %v1410_v55 = vmax.f32 %v1402_v33, %v1394_v17  ;;  %vm9311_vm2 = vmmov %vm9305_vm5  ;;  %v1426_v33 = vld [vmem:[%s4731_s26] sm:$0xf]  ;;  %s4734_s24 = sld [smem:[%s9082_s0 + %s9315_s21]]   ;;  %s9320_s26 = smov 18  }
 0x438   :  { %v1151_v56 = vsel %vm9309_vm7, %v5538_v31, %v5539_v24  ;;  %v1411_v57 = vmax.f32 %v1403_v47, %v1395_v32  ;;  %v1357_v8 = vsel %vm381_vm10, %v5534_v49, %v5544_v7  ;;  %v1361_v58 = vsel %vm381_vm10, %v5544_v7, %v5534_v49  ;;  %vm9313_vm7 = vmmov %vm9310_vm3 }
 0x439   :  { %v1360_v3 = vsel %vm381_vm10, %v5543_v48, %v5533_v50  ;;  %4795 = vmatprep.subr.msk.bf16.mxu0 %vm595_vm8, %v1192_v51  ;;  %v5552_v6 = vpop.permute.xlu0 %5551  ;;  %v1413_v54 = vmax.f32 %v1405_v38, %v1397_v1  ;;  %v1356_v9 = vsel %vm381_vm10, %v5533_v50, %v5543_v48  ;;  %v1191_v53 = vpack.c.bf16 %v1151_v56, %v1151_v56  ;;  %v5547_v10 = vpop.permute.xlu1 %5546 }
 0x43a   :  { %v1368_v11 = vsel %vm704_vm6, %v1361_v58, -3.4028235e+38  ;;  %v1369_v12 = vsel %vm705_vm12, %v1357_v8, -3.4028235e+38  ;;  %v1366_v13 = vsel %vm704_vm6, %v1360_v3, -3.4028235e+38  ;;  %v5554_v15 = vunpack.i.h.bf16 %v5552_v6 }
 0x43b   :  { %v1231_v14 = vsel %vm595_vm8, %v1191_v53, 0  ;;  %v5553_v16 = vunpack.i.l.bf16 %v5552_v6  ;;  %v4802_v20 = vpack.c.bf16 %v1412_v52, %v1410_v55  ;;  %v1367_v21 = vsel %vm705_vm12, %v1356_v9, -3.4028235e+38 }
 0x43c   :  { %1294 = vmatpush1.bf16.msra.mxu0 %v1231_v14  ;;  %v5549_v22 = vunpack.i.h.bf16 %v5547_v10  ;;  %v5548_v25 = vunpack.i.l.bf16 %v5547_v10  ;;  %v4799_v26 = vpack.c.bf16 %v1413_v54, %v1411_v57  ;;  %v1408_v27 = vmax.f32 %v1368_v11, %v7124_v62 }
 0x43d   :  { %v1409_v28 = vmax.f32 %v1369_v12, %v7128_v63  ;;  %v1406_v29 = vmax.f32 %v1366_v13, %v7107_v60  ;;  %v1407_v60 = vmax.f32 %v1367_v21, %v7111_v61  ;;  %vm9312_vm4 = vcmask 457728  }
 0x43e   :  { %v1389_v30 = vsel %vm388_vm13, %v5549_v22, %v5554_v15  ;;  %v1393_v24 = vsel %vm388_vm13, %v5554_v15, %v5549_v22  ;;  %v1388_v31 = vsel %vm388_vm13, %v5548_v25, %v5553_v16  ;;  %v1392_v34 = vsel %vm388_vm13, %v5553_v16, %v5548_v25  ;;  %4800 = vmatprep.subr.msk.bf16.mxu1 %vm7009_vm1, %v4799_v26 }
 0x43f   :  { %v1400_v62 = vsel %vm9305_vm5, %v1389_v30, -3.4028235e+38  ;;  %v1401_v63 = vsel %vm9310_vm3, %v1393_v24, -3.4028235e+38  ;;  %v1398_v35 = vsel %vm9311_vm2, %v1388_v31, -3.4028235e+38  ;;  %4796 = vmatmul.mubr.msk.bf16.vlgmr.msra.gmra.mrb[12].mxu0 %vm9312_vm4, %v6488_v19  ;;  %4803 = vmatpush1.bf16.msk.msra.mxu1 %vm7024_vm0, %v4802_v20  ;;  %vm9314_vm5 = vmmov %vm9312_vm4 }
 0x440   :  { %v1399_v36 = vsel %vm9313_vm7, %v1392_v34, -3.4028235e+38  ;;  %v1414_v38 = vmax.f32 %v1406_v29, %v1398_v35  ;;  %v1416_v40 = vmax.f32 %v1408_v27, %v1400_v62  ;;  %1329 = vmatprep.mubr.bf16.mxu0 %v6522_v0  ;;  %v1417_v61 = vmax.f32 %v1409_v28, %v1401_v63  ;;  %vm9316_vm3 = vmmov %vm9311_vm2 }
 0x441   :  { %v1415_v41 = vmax.f32 %v1407_v60, %v1399_v36  ;;  %vm9317_vm2 = vmmov %vm9313_vm7 }
 0x442   :  { %v4808_v42 = vpack.c.bf16 %v1416_v40, %v1414_v38  ;;  %vm9318_vm4 = vmmov %vm9316_vm3 }
 0x443   :  { %v4805_v44 = vpack.c.bf16 %v1417_v61, %v1415_v41  ;;  %vm9319_vm7 = vmmov %vm9317_vm2 }
 0x445   :  { %4806 = vmatprep.subr.msk.bf16.mxu1 %vm7009_vm1, %v4805_v44 }
 0x446   :  { %4809 = vmatpush1.bf16.msk.msra.mxu1 %vm7024_vm0, %v4808_v42 }
 0x447   :  { %4797 = vmatmul.mubr.msk.bf16.gmra.mrb[16].mxu0 %vm9314_vm5, %v6489_v45  ;;  %vm9339_vm5 = vcmp.lt.s32.totalorder %v6740_v23, 18 }
 0x449   :  { %4810 = vmatmul.mubr.msk.bf16.vlgmr.msra.gmra.mrb[8].mxu1 %vm880_vm14, %v1426_v33 }
 0x44a   :  { %1595 = vmatprep.mubr.bf16.mxu1 %v6522_v0  ;;  %v1482_v39 = vpop.permute.xlu1 %1481  ;;  %v1487_v17 = vpop.permute.xlu0 %1486 }
 0x44e   :  { %v1514_v18 = vpop.permute.xlu1 %1513  ;;  %v1519_v2 = vpop.permute.xlu0 %1518 }
 0x452   :  { %v1492_v48 = vpop.permute.xlu1 %1491  ;;  %v1497_v3 = vpop.permute.xlu0 %1496 }
 0x456   :  { %v1524_v53 = vpop.permute.xlu1 %1523  ;;  %v1529_v34 = vpop.permute.xlu0 %1528 }
 0x512   :  { %v1321_v46 = vpop.f32.mrb[12].mxu0 }
 0x513   :  { %v1499_v47 = vmul.f32 %v1482_v39, %v1321_v46  ;;  %v1323_v1 = vpop.f32.mrb[13].mxu0  ;;  %v1555_v46 = vld [vmem:[%s4734_s24] sm:$0xf]  ;;  %s9323_s24 = smov 17  }
 0x514   :  { %v1500_v32 = vmul.f32 %v1482_v39, %v1323_v1  ;;  %v1325_v7 = vpop.f32.mrb[14].mxu0 }
 0x515   :  { %v1531_v49 = vadd.f32 %v1514_v18, %v1499_v47  ;;  %v1501_v50 = vmul.f32 %v1487_v17, %v1325_v7  ;;  %v1327_v51 = vpop.f32.mrb[15].mxu0 }
 0x516   :  { %v1532_v52 = vadd.f32 %v1514_v18, %v1500_v32  ;;  %v1502_v55 = vmul.f32 %v1487_v17, %v1327_v51 }
 0x517   :  { %v1539_v56 = vmax.f32 %v1531_v49, 0.0  ;;  %v1533_v57 = vadd.f32 %v1519_v2, %v1501_v50 }
 0x518   :  { %v1540_v8 = vmax.f32 %v1532_v52, 0.0  ;;  %v1534_v58 = vadd.f32 %v1519_v2, %v1502_v55 }
 0x519   :  { %v1541_v6 = vmax.f32 %v1533_v57, 0.0  ;;  %v7408_v10 = vsel %vm190_vm15, %v1539_v56, 0.0 }
 0x51a   :  { %v1542_v54 = vmax.f32 %v1534_v58, 0.0  ;;  %v1331_v9 = vpop.f32.mrb[16].mxu0  ;;  %v7416_v15 = vsel %vm191_vm9, %v1540_v8, 0.0 }
 0x51b   :  { %v7412_v11 = vsel %vm190_vm15, %v1541_v6, 0.0  ;;  %v4815_v12 = vpack.c.bf16 %v1541_v6, %v1539_v56  ;;  %v1503_v13 = vmul.f32 %v1492_v48, %v1331_v9  ;;  %v1333_v14 = vpop.f32.mrb[17].mxu0 }
 0x51c   :  { %v5555_v16 = vpack.i.bf16 %v7412_v11, %v7408_v10  ;;  %v7422_v19 = vsel %vm191_vm9, %v1542_v54, 0.0  ;;  %v4812_v20 = vpack.c.bf16 %v1542_v54, %v1540_v8  ;;  %v1335_v21 = vpop.f32.mrb[18].mxu0  ;;  %v1468_v22 = vpop.f32.mrb[8].mxu1  ;;  %v1504_v27 = vmul.f32 %v1492_v48, %v1333_v14 }
 0x51d   :  { %v5565_v25 = vpack.i.bf16 %v7422_v19, %v7416_v15  ;;  %v1535_v26 = vadd.f32 %v1524_v53, %v1503_v13  ;;  %v1336_v28 = vpop.f32.mrb[19].mxu0  ;;  %v1470_v29 = vpop.f32.mrb[9].mxu1  ;;  %v1505_v30 = vmul.f32 %v1497_v3, %v1468_v22 }
 0x51e   :  { %v1506_v24 = vmul.f32 %v1497_v3, %v1470_v29  ;;  %5556 = vrot.lane.b32.xlu0 %v5555_v16, %s9189_s6  ;;  %4813 = vmatprep.subr.msk.bf16.mxu1 %vm7009_vm1, %v4812_v20  ;;  %v1472_v31 = vpop.f32.mrb[10].mxu1  ;;  %v1536_v62 = vadd.f32 %v1524_v53, %v1504_v27 }
 0x51f   :  { %v1543_v60 = vmax.f32 %v1535_v26, 0.0  ;;  %4816 = vmatpush1.bf16.msk.msra.mxu1 %vm7024_vm0, %v4815_v12  ;;  %5566 = vrot.lane.b32.xlu1 %v5565_v25, %s9189_s6  ;;  %v1473_v63 = vpop.f32.mrb[11].mxu1  ;;  %v1537_v35 = vadd.f32 %v1529_v34, %v1505_v30 }
 0x520   :  { %v1538_v36 = vadd.f32 %v1529_v34, %v1506_v24  ;;  %v1544_v38 = vmax.f32 %v1536_v62, 0.0 }
 0x521   :  { %v1545_v40 = vmax.f32 %v1537_v35, 0.0  ;;  %v7439_v41 = vsel %vm190_vm15, %v1543_v60, 0.0  ;;  %v6494_v35 = vld [vmem:[%s6629_s17 + $0x4] ss:$12 sps:$4 sm:$0xff]  }
 0x522   :  { %v1546_v61 = vmax.f32 %v1538_v36, 0.0  ;;  %5561 = vrot.lane.b32.xlu0 %v5555_v16, %s9191_s12  ;;  %v7443_v42 = vsel %vm191_vm9, %v1544_v38, 0.0  ;;  %1947 = vmatprep.mubr.bf16.mxu0 %v6494_v35 }
 0x523   :  { %5571 = vrot.lane.b32.xlu1 %v5565_v25, %s9191_s12  ;;  %v7448_v44 = vsel %vm190_vm15, %v1545_v40, 0.0  ;;  %v4821_v45 = vpack.c.bf16 %v1545_v40, %v1543_v60  ;;  %s9325_s12 = smov 15  }
 0x524   :  { %v7452_v33 = vsel %vm191_vm9, %v1546_v61, 0.0  ;;  %v4818_v39 = vpack.c.bf16 %v1546_v61, %v1544_v38  ;;  %v7456_v17 = vpack.i.bf16 %v7448_v44, %v7439_v41 }
 0x525   :  { %v7460_v18 = vpack.i.bf16 %v7452_v33, %v7443_v42 }
 0x526   :  { %4819 = vmatprep.subr.msk.bf16.mxu1 %vm7009_vm1, %v4818_v39  ;;  %5576 = vrot.lane.b32.xlu0 %v7456_v17, %s9189_s6 }
 0x527   :  { %4822 = vmatpush1.bf16.msk.msra.mxu1 %vm7024_vm0, %v4821_v45  ;;  %5581 = vrot.lane.b32.xlu1 %v7460_v18, %s9189_s6  ;;  %s9324_s6 = smov 14  }
 0x52a   :  { %4823 = vmatmul.mubr.msk.bf16.vlgmr.msra.gmra.mrb[12].mxu1 %vm880_vm14, %v1555_v46 }
 0x52b   :  { %2145 = vmatprep.mubr.bf16.mxu1 %v6522_v0 }
 0x590   :  { %v5557_v2 = vpop.permute.xlu0 %5556 }
 0x591   :  { %v5559_v47 = vunpack.i.h.bf16 %v5557_v2  ;;  %v5558_v1 = vunpack.i.l.bf16 %v5557_v2  ;;  %v5567_v32 = vpop.permute.xlu1 %5566 }
 0x592   :  { %v5569_v7 = vunpack.i.h.bf16 %v5567_v32  ;;  %v5568_v48 = vunpack.i.l.bf16 %v5567_v32 }
 0x594   :  { %v2034_v49 = vsel %vm381_vm10, %v5559_v47, %v5569_v7  ;;  %v2038_v50 = vsel %vm381_vm10, %v5569_v7, %v5559_v47  ;;  %v2033_v51 = vsel %vm381_vm10, %v5558_v1, %v5568_v48  ;;  %v2037_v52 = vsel %vm381_vm10, %v5568_v48, %v5558_v1  ;;  %v5562_v55 = vpop.permute.xlu0 %5561 }
 0x595   :  { %v2043_v56 = vsel %vm704_vm6, %v2038_v50, -3.4028235e+38  ;;  %v2044_v57 = vsel %vm705_vm12, %v2034_v49, -3.4028235e+38  ;;  %v2041_v8 = vsel %vm704_vm6, %v2037_v52, -3.4028235e+38  ;;  %v5564_v58 = vunpack.i.h.bf16 %v5562_v55  ;;  %v5572_v3 = vpop.permute.xlu1 %5571 }
 0x596   :  { %v2042_v6 = vsel %vm705_vm12, %v2033_v51, -3.4028235e+38  ;;  %v5563_v54 = vunpack.i.l.bf16 %v5562_v55  ;;  %v5574_v9 = vunpack.i.h.bf16 %v5572_v3  ;;  %v5573_v53 = vunpack.i.l.bf16 %v5572_v3 }
 0x597   :  { %v2083_v12 = vmax.f32 %v2043_v56, %v7412_v11  ;;  %v2084_v13 = vmax.f32 %v2044_v57, %v7422_v19  ;;  %v2081_v14 = vmax.f32 %v2041_v8, %v7408_v10  ;;  %v2082_v25 = vmax.f32 %v2042_v6, %v7416_v15 }
 0x598   :  { %v2066_v16 = vsel %vm388_vm13, %v5564_v58, %v5574_v9  ;;  %v2070_v20 = vsel %vm388_vm13, %v5574_v9, %v5564_v58  ;;  %v2065_v21 = vsel %vm388_vm13, %v5563_v54, %v5573_v53  ;;  %v2069_v22 = vsel %vm388_vm13, %v5573_v53, %v5563_v54  ;;  %v7580_v50 = vpop.permute.xlu0 %5576 }
 0x599   :  { %v2075_v11 = vsel %vm9316_vm3, %v2066_v16, -3.4028235e+38  ;;  %v2076_v10 = vsel %vm9317_vm2, %v2070_v20, -3.4028235e+38  ;;  %v2073_v19 = vsel %vm9318_vm4, %v2065_v21, -3.4028235e+38  ;;  %v7582_v51 = vpop.permute.xlu1 %5581  ;;  %vm9342_vm4 = vmmov %vm9339_vm5 }
 0x59a   :  { %v2074_v26 = vsel %vm9319_vm7, %v2069_v22, -3.4028235e+38  ;;  %v2089_v27 = vmax.f32 %v2081_v14, %v2073_v19  ;;  %v2091_v28 = vmax.f32 %v2083_v12, %v2075_v11  ;;  %v2092_v30 = vmax.f32 %v2084_v13, %v2076_v10 }
 0x59b   :  { %v2090_v29 = vmax.f32 %v2082_v25, %v2074_v26  ;;  %vm9340_vm3 = vcmp.lt.s32.totalorder %v6740_v23, 19  ;;  %vm9343_vm7 = vcmp.lt.s32.totalorder %v6740_v23, 16 }
 0x59c   :  { %v4837_v24 = vpack.c.bf16 %v2091_v28, %v2089_v27  ;;  %vm9341_vm2 = vmmov %vm9340_vm3 }
 0x59d   :  { %v4834_v31 = vpack.c.bf16 %v2092_v30, %v2090_v29 }
 0x59f   :  { %4835 = vmatprep.subr.msk.bf16.mxu1 %vm7009_vm1, %v4834_v31 }
 0x5a0   :  { %4838 = vmatpush1.bf16.msk.msra.mxu1 %vm7024_vm0, %v4837_v24 }
 0x5fd   :  { %v7512_v15 = vpop.f32.mrb[12].mxu1 }
 0x5fe   :  { %v7514_v34 = vpop.f32.mrb[13].mxu1 }
 0x5ff   :  { %v1601_v60 = vpop.f32.mrb[14].mxu1  ;;  %v5590_v62 = vpack.i.bf16 %v7514_v34, %v7512_v15 }
 0x600   :  { %v1602_v63 = vpop.f32.mrb[15].mxu1 }
 0x601   :  { %5591 = vrot.lane.b32.xlu0 %v5590_v62, %s9320_s26  ;;  %5586 = vrot.lane.b32.xlu1 %v5590_v62, %s9321_s28  ;;  %s9329_s26 = smov 9   ;;  %s9330_s28 = smov 6  }
 0x605   :  { %5601 = vrot.lane.b32.xlu0 %v5590_v62, %s9322_s3  ;;  %5596 = vrot.lane.b32.xlu1 %v5590_v62, %s9323_s24  ;;  %s9331_s3 = smov 7   ;;  %s9332_s24 = smov 4  }
 0x609   :  { %5611 = vrot.lane.b32.xlu0 %v5590_v62, %s9324_s6  ;;  %5606 = vrot.lane.b32.xlu1 %v5590_v62, %s9325_s12 }
 0x60d   :  { %5621 = vrot.lane.b32.xlu0 %v5590_v62, %s9326_s5  ;;  %5616 = vrot.lane.b32.xlu1 %v5590_v62, %s9327_s4  ;;  %s9334_s5 = smov 3   ;;  %s9335_s4 = smov 127  }
 0x611   :  { %5631 = vrot.lane.b32.xlu0 %v5590_v62, %s9198_s2  ;;  %5626 = vrot.lane.b32.xlu1 %v5590_v62, %s9315_s21  ;;  %s9336_s2 = smov 1  }
 0x615   :  { %5641 = vrot.lane.b32.xlu0 %v5590_v62, %s9328_s13  ;;  %5636 = vrot.lane.b32.xlu1 %v5590_v62, %s9329_s26 }
 0x619   :  { %5651 = vrot.lane.b32.xlu0 %v5590_v62, %s9330_s28  ;;  %5646 = vrot.lane.b32.xlu1 %v5590_v62, %s9331_s3 }
 0x61d   :  { %5661 = vrot.lane.b32.xlu0 %v5590_v62, %s9332_s24  ;;  %5656 = vrot.lane.b32.xlu1 %v5590_v62, %s9333_s27  ;;  %s6561_s27 = smov 31   ;;  %s4737_s24 = sld [smem:[%s9082_s0 + %s9324_s6]]  }
 0x621   :  { %5671 = vrot.lane.b32.xlu0 %v5590_v62, %s9228_s23  ;;  %5666 = vrot.lane.b32.xlu1 %v5590_v62, %s9334_s5  ;;  %s7547_s5 = sld [smem:[%s9082_s0 + %s6561_s27]]   ;;  %s9423_s23 = smov 12  }
 0x623   :  { %v2155_v36 = vld [vmem:[%s4737_s24 + $0x8] sm:$0xff]  ;;  %v2154_v38 = vld [vmem:[%s4737_s24] sm:$0xff] }
 0x625   :  { %5676 = vrot.lane.b32.xlu0 %v7456_v17, %s9335_s4  ;;  %5681 = vrot.lane.b32.xlu1 %v7460_v18, %s9335_s4  ;;  %v2157_v17 = vld [vmem:[%s4737_s24 + $0x18] sm:$0xff]  ;;  %v2156_v18 = vld [vmem:[%s4737_s24 + $0x10] sm:$0xff] }
 0x629   :  { %5691 = vrot.lane.b32.xlu0 %v5590_v62, %s9335_s4  ;;  %5686 = vrot.lane.b32.xlu1 %v5590_v62, %s9336_s2 }
 0x62d   :  { %5701 = vrot.lane.b32.xlu0 %v5590_v62, %s9229_s22  ;;  %5696 = vrot.lane.b32.xlu1 %v5590_v62, %s9230_s15 }
 0x631   :  { %5711 = vrot.lane.b32.xlu0 %v5590_v62, %s9231_s16  ;;  %5706 = vrot.lane.b32.xlu1 %v5590_v62, %s9232_s25 }
 0x635   :  { %5721 = vrot.lane.b32.xlu0 %v5590_v62, %s9233_s19  ;;  %5716 = vrot.lane.b32.xlu1 %v5590_v62, %s9234_s20 }
 0x639   :  { %5731 = vrot.lane.b32.xlu0 %v5590_v62, %s9235_s9  ;;  %5726 = vrot.lane.b32.xlu1 %v5590_v62, %s9236_s8  ;;  %s9337_s8 = smov 109   ;;  %s9428_s9 = smov 2  }
 0x63d   :  { %5741 = vrot.lane.b32.xlu0 %v5590_v62, %s9237_s11  ;;  %5736 = vrot.lane.b32.xlu1 %v5590_v62, %s9238_s18  ;;  %s6563_s18 = smov 33   ;;  %s9422_s11 = smov 17  }
 0x641   :  { %5751 = vrot.lane.b32.xlu0 %v5590_v62, %s9239_s7  ;;  %5746 = vrot.lane.b32.xlu1 %v5590_v62, %s9240_s1  ;;  %s4738_s7 = sld [smem:[%s9082_s0 + %s9325_s12]]   ;;  %s9338_s1 = smov 110  }
 0x645   :  { %5761 = vrot.lane.b32.xlu0 %v5590_v62, %s9241_s14  ;;  %5756 = vrot.lane.b32.xlu1 %v5590_v62, %s9242_s30  ;;  %s6562_s30 = smov 32   ;;  %s9379_s14 = smov 13  }
 0x646   :  { %s4755_s27 = sld [smem:[%s9082_s0 + %s6562_s30]]   ;;  %s9424_s30 = smov 10  }
 0x647   :  { %v2187_v40 = vld [vmem:[%s4738_s7 + $0x8] sm:$0xff]  ;;  %v2186_v61 = vld [vmem:[%s4738_s7] sm:$0xff]  ;;  %v2189_v47 = vld [vmem:[%s4738_s7 + $0x18] sm:$0xff] }
 0x648   :  { %v2188_v1 = vld [vmem:[%s4738_s7 + $0x10] sm:$0xff]  ;;  %s9425_s7 = smov 4  }
 0x649   :  { %5771 = vrot.lane.b32.xlu0 %v5590_v62, %s9243_s29  ;;  %5766 = vrot.lane.b32.xlu1 %v5590_v62, %s9244_s10 }
 0x64c   :  { %v2300_v45 = vld [vmem:[%s4755_s27 + $0x8] sm:$0xff]  ;;  %v2299_v39 = vld [vmem:[%s4755_s27] sm:$0xff]  ;;  %v2302_v32 = vld [vmem:[%s4755_s27 + $0x18] sm:$0xff] }
 0x64d   :  { %5781 = vrot.lane.b32.xlu0 %v5590_v62, %s9337_s8  ;;  %5776 = vrot.lane.b32.xlu1 %v5590_v62, %s9338_s1  ;;  %s4756_s8 = sld [smem:[%s9082_s0 + %s6563_s18]]   ;;  %v2301_v7 = vld [vmem:[%s4755_s27 + $0x10] sm:$0xff]  ;;  %s9420_s27 = smov 18  }
 0x64e   :  { %s9421_s18 = smov 19  }
 0x651   :  { %2165 = vperm.xlu0 %5323, %v2155_v36   ;;  %2160 = vperm.xlu1 %5324, %v2154_v38  }
 0x653   :  { %v2332_v46 = vld [vmem:[%s4756_s8 + $0x8] sm:$0xff]  ;;  %v2331_v2 = vld [vmem:[%s4756_s8] sm:$0xff]  ;;  %v2334_v48 = vld [vmem:[%s4756_s8 + $0x18] sm:$0xff] }
 0x654   :  { %v2333_v49 = vld [vmem:[%s4756_s8 + $0x10] sm:$0xff]  ;;  %s7700_s8 = sld [smem:[%s9082_s0 + %s9379_s14]]  }
 0x655   :  { %2197 = vperm.xlu0 %5323, %v2187_v40   ;;  %2192 = vperm.xlu1 %5324, %v2186_v61  }
 0x659   :  { %2310 = vperm.xlu0 %5323, %v2300_v45   ;;  %2305 = vperm.xlu1 %5324, %v2299_v39  }
 0x65d   :  { %2175 = vperm.xlu0 %5323, %v2157_v17   ;;  %2170 = vperm.xlu1 %5324, %v2156_v18  }
 0x661   :  { %2342 = vperm.xlu0 %5323, %v2332_v46   ;;  %2337 = vperm.xlu1 %5324, %v2331_v2  }
 0x665   :  { %2207 = vperm.xlu0 %5323, %v2189_v47   ;;  %2202 = vperm.xlu1 %5324, %v2188_v1  }
 0x669   :  { %2320 = vperm.xlu0 %5323, %v2302_v32   ;;  %2315 = vperm.xlu1 %5324, %v2301_v7  }
 0x66d   :  { %2352 = vperm.xlu0 %5323, %v2334_v48   ;;  %2347 = vperm.xlu1 %5324, %v2333_v49  }
 0x673   :  { %v5592_v52 = vpop.permute.xlu0 %5591  ;;  %v5587_v55 = vpop.permute.xlu1 %5586 }
 0x674   :  { %v5594_v56 = vunpack.i.h.bf16 %v5592_v52  ;;  %v5593_v57 = vunpack.i.l.bf16 %v5592_v52  ;;  %v5589_v8 = vunpack.i.h.bf16 %v5587_v55  ;;  %v5588_v58 = vunpack.i.l.bf16 %v5587_v55 }
 0x676   :  { %v1615_v3 = vsel %vm9339_vm5, %v5594_v56, %v5593_v57  ;;  %v1609_v6 = vsel %vm9340_vm3, %v5589_v8, %v5588_v58  ;;  %v1608_v54 = vsel %vm9341_vm2, %v5588_v58, %v5589_v8  ;;  %v1614_v9 = vsel %vm9342_vm4, %v5593_v57, %v5594_v56  ;;  %vm9346_vm2 = vmmov %vm9343_vm7 }
 0x677   :  { %v5602_v53 = vpop.permute.xlu0 %5601  ;;  %v5597_v12 = vpop.permute.xlu1 %5596  ;;  %v1833_v13 = vpack.c.bf16 %v1614_v9, %v1608_v54  ;;  %v1832_v14 = vpack.c.bf16 %v1615_v3, %v1609_v6  ;;  %vm9344_vm5 = vcmp.lt.s32.totalorder %v6740_v23, 17  ;;  %vm9347_vm4 = vcmp.lt.s32.totalorder %v6740_v23, 14 }
 0x678   :  { %v5604_v16 = vunpack.i.h.bf16 %v5602_v53  ;;  %v5603_v20 = vunpack.i.l.bf16 %v5602_v53  ;;  %v5599_v21 = vunpack.i.h.bf16 %v5597_v12  ;;  %v5598_v22 = vunpack.i.l.bf16 %v5597_v12  ;;  %vm9345_vm3 = vmmov %vm9344_vm5 }
 0x679   :  { %1915 = vmatprep.subr.bf16.mxu0 %v1833_v13 }
 0x67a   :  { %v1627_v25 = vsel %vm9343_vm7, %v5604_v16, %v5603_v20  ;;  %v1621_v11 = vsel %vm9344_vm5, %v5599_v21, %v5598_v22  ;;  %1916 = vmatpush1.bf16.msra.mxu0 %v1832_v14  ;;  %v1620_v10 = vsel %vm9345_vm3, %v5598_v22, %v5599_v21  ;;  %v1626_v19 = vsel %vm9346_vm2, %v5603_v20, %v5604_v16  ;;  %vm9350_vm3 = vmmov %vm9347_vm4 }
 0x67b   :  { %v5612_v26 = vpop.permute.xlu0 %5611  ;;  %v5607_v27 = vpop.permute.xlu1 %5606  ;;  %v1835_v28 = vpack.c.bf16 %v1626_v19, %v1620_v10  ;;  %v1834_v29 = vpack.c.bf16 %v1627_v25, %v1621_v11  ;;  %vm9348_vm7 = vcmp.lt.s32.totalorder %v6740_v23, 15  ;;  %vm9351_vm2 = vcmp.lt.s32.totalorder %v6740_v23, 12 }
 0x67c   :  { %v5614_v30 = vunpack.i.h.bf16 %v5612_v26  ;;  %v5613_v24 = vunpack.i.l.bf16 %v5612_v26  ;;  %v5609_v31 = vunpack.i.h.bf16 %v5607_v27  ;;  %v5608_v60 = vunpack.i.l.bf16 %v5607_v27  ;;  %vm9349_vm5 = vmmov %vm9348_vm7 }
 0x67d   :  { %1917 = vmatprep.subr.bf16.mxu0 %v1835_v28 }
 0x67e   :  { %v1639_v62 = vsel %vm9347_vm4, %v5614_v30, %v5613_v24  ;;  %v1633_v63 = vsel %vm9348_vm7, %v5609_v31, %v5608_v60  ;;  %1918 = vmatpush1.bf16.msra.mxu0 %v1834_v29  ;;  %v1632_v35 = vsel %vm9349_vm5, %v5608_v60, %v5609_v31  ;;  %v1638_v36 = vsel %vm9350_vm3, %v5613_v24, %v5614_v30  ;;  %vm9354_vm5 = vmmov %vm9351_vm2 }
 0x67f   :  { %v5622_v38 = vpop.permute.xlu0 %5621  ;;  %v5617_v40 = vpop.permute.xlu1 %5616  ;;  %v1837_v61 = vpack.c.bf16 %v1638_v36, %v1632_v35  ;;  %v1836_v45 = vpack.c.bf16 %v1639_v62, %v1633_v63  ;;  %vm9352_vm4 = vcmp.lt.s32.totalorder %v6740_v23, 13  ;;  %vm9355_vm3 = vcmp.lt.s32.totalorder %v6740_v23, 10 }
 0x680   :  { %v5624_v39 = vunpack.i.h.bf16 %v5622_v38  ;;  %v5623_v17 = vunpack.i.l.bf16 %v5622_v38  ;;  %v5619_v18 = vunpack.i.h.bf16 %v5617_v40  ;;  %v5618_v46 = vunpack.i.l.bf16 %v5617_v40  ;;  %vm9353_vm7 = vmmov %vm9352_vm4 }
 0x681   :  { %1919 = vmatprep.subr.bf16.mxu0 %v1837_v61  ;;  %v5579_v60 = vunpack.i.h.bf16 %v7580_v50  ;;  %v5578_v62 = vunpack.i.l.bf16 %v7580_v50  ;;  %v5584_v63 = vunpack.i.h.bf16 %v7582_v51  ;;  %v5583_v35 = vunpack.i.l.bf16 %v7582_v51 }
 0x682   :  { %v1651_v2 = vsel %vm9351_vm2, %v5624_v39, %v5623_v17  ;;  %v1645_v47 = vsel %vm9352_vm4, %v5619_v18, %v5618_v46  ;;  %1920 = vmatpush1.bf16.msra.mxu0 %v1836_v45  ;;  %v1644_v1 = vsel %vm9353_vm7, %v5618_v46, %v5619_v18  ;;  %v1650_v32 = vsel %vm9354_vm5, %v5623_v17, %v5624_v39  ;;  %vm9358_vm7 = vmmov %vm9355_vm3 }
 0x683   :  { %v5632_v7 = vpop.permute.xlu0 %5631  ;;  %v5627_v48 = vpop.permute.xlu1 %5626  ;;  %v1839_v49 = vpack.c.bf16 %v1650_v32, %v1644_v1  ;;  %v1838_v52 = vpack.c.bf16 %v1651_v2, %v1645_v47  ;;  %vm9356_vm2 = vcmp.lt.s32.totalorder %v6740_v23, 11  ;;  %vm9359_vm5 = vcmp.lt.s32.totalorder %v6740_v23, 8 }
 0x684   :  { %v5634_v55 = vunpack.i.h.bf16 %v5632_v7  ;;  %v5633_v56 = vunpack.i.l.bf16 %v5632_v7  ;;  %v5629_v57 = vunpack.i.h.bf16 %v5627_v48  ;;  %v5628_v8 = vunpack.i.l.bf16 %v5627_v48  ;;  %vm9357_vm4 = vmmov %vm9356_vm2 }
 0x685   :  { %1921 = vmatprep.subr.bf16.mxu0 %v1839_v49  ;;  %v2040_v47 = vsel %vm381_vm10, %v5584_v63, %v5579_v60  ;;  %v2039_v1 = vsel %vm381_vm10, %v5583_v35, %v5578_v62 }
 0x686   :  { %v1663_v58 = vsel %vm9355_vm3, %v5634_v55, %v5633_v56  ;;  %v1657_v3 = vsel %vm9356_vm2, %v5629_v57, %v5628_v8  ;;  %1922 = vmatpush1.bf16.msra.mxu0 %v1838_v52  ;;  %v1656_v6 = vsel %vm9357_vm4, %v5628_v8, %v5629_v57  ;;  %v1662_v54 = vsel %vm9358_vm7, %v5633_v56, %v5634_v55  ;;  %vm9362_vm4 = vmmov %vm9359_vm5 }
 0x687   :  { %v5642_v9 = vpop.permute.xlu0 %5641  ;;  %v5637_v53 = vpop.permute.xlu1 %5636  ;;  %v1841_v12 = vpack.c.bf16 %v1662_v54, %v1656_v6  ;;  %v1840_v13 = vpack.c.bf16 %v1663_v58, %v1657_v3  ;;  %vm9360_vm3 = vcmp.lt.s32.totalorder %v6740_v23, 9  ;;  %vm9363_vm7 = vcmp.lt.s32.totalorder %v6740_v23, 6 }
 0x688   :  { %v5644_v14 = vunpack.i.h.bf16 %v5642_v9  ;;  %v5643_v16 = vunpack.i.l.bf16 %v5642_v9  ;;  %v5639_v20 = vunpack.i.h.bf16 %v5637_v53  ;;  %v5638_v21 = vunpack.i.l.bf16 %v5637_v53  ;;  %vm9361_vm2 = vmmov %vm9360_vm3 }
 0x689   :  { %1923 = vmatprep.subr.bf16.mxu0 %v1841_v12  ;;  %v2035_v52 = vsel %vm381_vm10, %v5578_v62, %v5583_v35  ;;  %v2036_v9 = vsel %vm381_vm10, %v5579_v60, %v5584_v63  ;;  %v2047_v53 = vsel %vm704_vm6, %v2040_v47, -3.4028235e+38  ;;  %v2045_v12 = vsel %vm704_vm6, %v2039_v1, -3.4028235e+38 }
 0x68a   :  { %v1675_v22 = vsel %vm9359_vm5, %v5644_v14, %v5643_v16  ;;  %v1669_v25 = vsel %vm9360_vm3, %v5639_v20, %v5638_v21  ;;  %1924 = vmatpush1.bf16.msra.mxu0 %v1840_v13  ;;  %v1668_v11 = vsel %vm9361_vm2, %v5638_v21, %v5639_v20  ;;  %v1674_v10 = vsel %vm9362_vm4, %v5643_v16, %v5644_v14  ;;  %vm9366_vm2 = vmmov %vm9363_vm7 }
 0x68b   :  { %v5652_v19 = vpop.permute.xlu0 %5651  ;;  %v5647_v26 = vpop.permute.xlu1 %5646  ;;  %v1843_v27 = vpack.c.bf16 %v1674_v10, %v1668_v11  ;;  %v1842_v28 = vpack.c.bf16 %v1675_v22, %v1669_v25  ;;  %vm9364_vm5 = vcmp.lt.s32.totalorder %v6740_v23, 7  ;;  %vm9367_vm4 = vcmp.lt.s32.totalorder %v6740_v23, 4 }
 0x68c   :  { %v5654_v29 = vunpack.i.h.bf16 %v5652_v19  ;;  %v5653_v30 = vunpack.i.l.bf16 %v5652_v19  ;;  %v5649_v24 = vunpack.i.h.bf16 %v5647_v26  ;;  %v5648_v31 = vunpack.i.l.bf16 %v5647_v26  ;;  %vm9365_vm3 = vmmov %vm9364_vm5 }
 0x68d   :  { %1925 = vmatprep.subr.bf16.mxu0 %v1843_v27  ;;  %v2046_v21 = vsel %vm705_vm12, %v2035_v52, -3.4028235e+38 }
 0x68e   :  { %v1687_v36 = vsel %vm9363_vm7, %v5654_v29, %v5653_v30  ;;  %v1681_v38 = vsel %vm9364_vm5, %v5649_v24, %v5648_v31  ;;  %1926 = vmatpush1.bf16.msra.mxu0 %v1842_v28  ;;  %v1680_v40 = vsel %vm9365_vm3, %v5648_v31, %v5649_v24  ;;  %v1686_v61 = vsel %vm9366_vm2, %v5653_v30, %v5654_v29  ;;  %vm9370_vm3 = vmmov %vm9367_vm4 }
 0x68f   :  { %v5662_v45 = vpop.permute.xlu0 %5661  ;;  %v5657_v50 = vpop.permute.xlu1 %5656  ;;  %v1845_v39 = vpack.c.bf16 %v1686_v61, %v1680_v40  ;;  %v1844_v17 = vpack.c.bf16 %v1687_v36, %v1681_v38  ;;  %vm9368_vm7 = vcmp.lt.s32.totalorder %v6740_v23, 5  ;;  %vm9371_vm2 = vcmp.lt.s32.totalorder %v6740_v23, 2 }
 0x690   :  { %v5664_v18 = vunpack.i.h.bf16 %v5662_v45  ;;  %v5663_v51 = vunpack.i.l.bf16 %v5662_v45  ;;  %v5659_v46 = vunpack.i.h.bf16 %v5657_v50  ;;  %v5658_v2 = vunpack.i.l.bf16 %v5657_v50  ;;  %vm9369_vm5 = vmmov %vm9368_vm7 }
 0x691   :  { %1927 = vmatprep.subr.bf16.mxu0 %v1845_v39  ;;  %v2048_v29 = vsel %vm705_vm12, %v2036_v9, -3.4028235e+38  ;;  %v2087_v30 = vmax.f32 %v2047_v53, %v7448_v44  ;;  %v2085_v24 = vmax.f32 %v2045_v12, %v7439_v41  ;;  %v2086_v35 = vmax.f32 %v2046_v21, %v7443_v42 }
 0x692   :  { %v1699_v32 = vsel %vm9367_vm4, %v5664_v18, %v5663_v51  ;;  %v1693_v7 = vsel %vm9368_vm7, %v5659_v46, %v5658_v2  ;;  %1928 = vmatpush1.bf16.msra.mxu0 %v1844_v17  ;;  %v1692_v48 = vsel %vm9369_vm5, %v5658_v2, %v5659_v46  ;;  %v1698_v49 = vsel %vm9370_vm3, %v5663_v51, %v5664_v18  ;;  %vm9374_vm5 = vmmov %vm9371_vm2 }
 0x693   :  { %v5672_v55 = vpop.permute.xlu0 %5671  ;;  %v5667_v56 = vpop.permute.xlu1 %5666  ;;  %v1847_v57 = vpack.c.bf16 %v1698_v49, %v1692_v48  ;;  %v1846_v8 = vpack.c.bf16 %v1699_v32, %v1693_v7  ;;  %vm9372_vm4 = vcmp.lt.s32.totalorder %v6740_v23, 3  ;;  %vm9375_vm3 = vcmp.le.s32.totalorder %v6740_v23, 62 }
 0x694   :  { %v5674_v58 = vunpack.i.h.bf16 %v5672_v55  ;;  %v5673_v3 = vunpack.i.l.bf16 %v5672_v55  ;;  %v5669_v6 = vunpack.i.h.bf16 %v5667_v56  ;;  %v5668_v54 = vunpack.i.l.bf16 %v5667_v56  ;;  %vm9373_vm7 = vmmov %vm9372_vm4 }
 0x695   :  { %1929 = vmatprep.subr.bf16.mxu0 %v1847_v57  ;;  %v2088_v61 = vmax.f32 %v2048_v29, %v7452_v33 }
 0x696   :  { %v1711_v13 = vsel %vm9371_vm2, %v5674_v58, %v5673_v3  ;;  %v1705_v14 = vsel %vm9372_vm4, %v5669_v6, %v5668_v54  ;;  %1930 = vmatpush1.bf16.msra.mxu0 %v1846_v8  ;;  %v1704_v16 = vsel %vm9373_vm7, %v5668_v54, %v5669_v6  ;;  %v1710_v20 = vsel %vm9374_vm5, %v5673_v3, %v5674_v58  ;;  %vm9377_vm4 = vmmov %vm9375_vm3 }
 0x697   :  { %v5677_v22 = vpop.permute.xlu0 %5676  ;;  %v5682_v25 = vpop.permute.xlu1 %5681  ;;  %v1849_v11 = vpack.c.bf16 %v1710_v20, %v1704_v16  ;;  %v1848_v10 = vpack.c.bf16 %v1711_v13, %v1705_v14  ;;  %vm9376_vm2 = vcmp.le.s32.totalorder %v6917_v59, 62  ;;  %vm9380_vm5 = vcmp.lt.s32.totalorder %v6740_v23, 126  ;;  %v2105_v13 = vld [vmem:[%s7700_s8] sm:$0xf]  ;;  %s9426_s8 = smov 5  }
 0x698   :  { %v5679_v19 = vunpack.i.h.bf16 %v5677_v22  ;;  %v5678_v26 = vunpack.i.l.bf16 %v5677_v22  ;;  %v5684_v27 = vunpack.i.h.bf16 %v5682_v25  ;;  %v5683_v28 = vunpack.i.l.bf16 %v5682_v25  ;;  %vm9378_vm7 = vmmov %vm9376_vm2 }
 0x699   :  { %1931 = vmatprep.subr.bf16.mxu0 %v1849_v11 }
 0x69a   :  { %v2068_v31 = vsel %vm388_vm13, %v5679_v19, %v5684_v27  ;;  %v2072_v60 = vsel %vm388_vm13, %v5684_v27, %v5679_v19  ;;  %v2067_v62 = vsel %vm388_vm13, %v5678_v26, %v5683_v28  ;;  %v2071_v63 = vsel %vm388_vm13, %v5683_v28, %v5678_v26  ;;  %1932 = vmatpush1.bf16.msra.mxu0 %v1848_v10 }
 0x69b   :  { %v2079_v44 = vsel %vm9375_vm3, %v2068_v31, -3.4028235e+38  ;;  %v2080_v41 = vsel %vm9376_vm2, %v2072_v60, -3.4028235e+38  ;;  %v2077_v36 = vsel %vm9377_vm4, %v2067_v62, -3.4028235e+38  ;;  %v5692_v38 = vpop.permute.xlu0 %5691  ;;  %v5687_v40 = vpop.permute.xlu1 %5686  ;;  %vm9381_vm3 = vmmov %vm9380_vm5 }
 0x69c   :  { %v2078_v45 = vsel %vm9378_vm7, %v2071_v63, -3.4028235e+38  ;;  %v2093_v50 = vmax.f32 %v2085_v24, %v2077_v36  ;;  %v2095_v39 = vmax.f32 %v2087_v30, %v2079_v44  ;;  %v5689_v42 = vunpack.i.h.bf16 %v5687_v40 }
 0x69d   :  { %v5688_v17 = vunpack.i.l.bf16 %v5687_v40  ;;  %v2094_v18 = vmax.f32 %v2086_v35, %v2078_v45  ;;  %v5694_v51 = vunpack.i.h.bf16 %v5692_v38  ;;  %v5693_v46 = vunpack.i.l.bf16 %v5692_v38  ;;  %v6490_v35 = vld [vmem:[%s7547_s5] sm:$0xff]  }
 0x69e   :  { %v2096_v2 = vmax.f32 %v2088_v61, %v2080_v41  ;;  %v4843_v52 = vpack.c.bf16 %v2095_v39, %v2093_v50  ;;  %vm9382_vm2 = vcmask 1041408   ;;  %vm9383_vm4 = vcmp.lt.s32.totalorder %v6740_v23, 125 }
 0x69f   :  { %v1717_v33 = vsel %vm381_vm10, %v5689_v42, %v5688_v17  ;;  %v5702_v47 = vpop.permute.xlu0 %5701  ;;  %v5697_v1 = vpop.permute.xlu1 %5696  ;;  %v1716_v32 = vsel %vm381_vm10, %v5688_v17, %v5689_v42  ;;  %v1723_v3 = vsel %vm388_vm13, %v5694_v51, %v5693_v46  ;;  %v1722_v54 = vsel %vm388_vm13, %v5693_v46, %v5694_v51 }
 0x6a0   :  { %v5704_v7 = vunpack.i.h.bf16 %v5702_v47  ;;  %v5699_v48 = vunpack.i.h.bf16 %v5697_v1  ;;  %v5698_v49 = vunpack.i.l.bf16 %v5697_v1  ;;  %v5703_v55 = vunpack.i.l.bf16 %v5702_v47 }
 0x6a1   :  { %v4840_v56 = vpack.c.bf16 %v2096_v2, %v2094_v18  ;;  %v1851_v57 = vpack.c.bf16 %v7514_v34, %v1716_v32  ;;  %v1850_v8 = vpack.c.bf16 %v7512_v15, %v1717_v33  ;;  %vm9384_vm7 = vcmp.lt.s32.totalorder %v6740_v23, 124 }
 0x6a2   :  { %v1728_v58 = vsel %vm9380_vm5, %v5698_v49, %v5699_v48  ;;  %v1729_v6 = vsel %vm9381_vm3, %v5699_v48, %v5698_v49  ;;  %v1735_v16 = vsel %vm9383_vm4, %v5704_v7, %v5703_v55  ;;  %vm9385_vm5 = vmmov %vm9384_vm7 }
 0x6a3   :  { %4841 = vmatprep.subr.msk.bf16.mxu1 %vm7009_vm1, %v4840_v56  ;;  %1933 = vmatprep.subr.bf16.mxu0 %v1851_v57  ;;  %v5712_v9 = vpop.permute.xlu0 %5711  ;;  %v5707_v34 = vpop.permute.xlu1 %5706  ;;  %v1853_v53 = vpack.c.bf16 %v1729_v6, %v1723_v3  ;;  %v1852_v14 = vpack.c.bf16 %v1728_v58, %v1722_v54  ;;  %vm9386_vm3 = vmmov %vm9383_vm4  ;;  %vm9388_vm4 = vcmp.lt.s32.totalorder %v6740_v23, 123  ;;  %v6491_v56 = vld [vmem:[%s7547_s5 + $0x8] sm:$0xff]   ;;  %s9427_s5 = sld [smem:[#allocation2_spill]] }
 0x6a4   :  { %4844 = vmatpush1.bf16.msk.msra.mxu1 %vm7024_vm0, %v4843_v52  ;;  %1934 = vmatpush1.bf16.msra.mxu0 %v1850_v8  ;;  %v5709_v15 = vunpack.i.h.bf16 %v5707_v34  ;;  %v5708_v12 = vunpack.i.l.bf16 %v5707_v34  ;;  %v5714_v20 = vunpack.i.h.bf16 %v5712_v9  ;;  %v5713_v21 = vunpack.i.l.bf16 %v5712_v9 }
 0x6a5   :  { %1935 = vmatprep.subr.bf16.mxu0 %v1853_v53  ;;  %4848 = vmatprep.subr.msk.bf16.mxu1 %vm9382_vm2, %v6609_v4  ;;  %v1734_v11 = vsel %vm9386_vm3, %v5703_v55, %v5704_v7  ;;  %vm9387_vm2 = vcmp.lt.s32.totalorder %v6740_v23, 122  ;;  %vm9391_vm3 = vcmp.lt.s32.totalorder %v6740_v23, 121 }
 0x6a6   :  { %v1740_v22 = vsel %vm9384_vm7, %v5708_v12, %v5709_v15  ;;  %v1741_v25 = vsel %vm9385_vm5, %v5709_v15, %v5708_v12  ;;  %v1747_v31 = vsel %vm9388_vm4, %v5714_v20, %v5713_v21  ;;  %vm9389_vm7 = vmmov %vm9387_vm2 }
 0x6a7   :  { %4845 = vmatmul.mubr.msk.bf16.vlgmr.msra.gmra.mrb[16].mxu1 %vm880_vm14, %v2105_v13  ;;  %v5722_v10 = vpop.permute.xlu0 %5721  ;;  %v5717_v19 = vpop.permute.xlu1 %5716  ;;  %v1855_v26 = vpack.c.bf16 %v1741_v25, %v1735_v16  ;;  %v1854_v28 = vpack.c.bf16 %v1740_v22, %v1734_v11  ;;  %vm9390_vm5 = vmmov %vm9388_vm4  ;;  %v1876_v11 = vld [vmem:[%s6629_s17 + $0x18] sm:$0xff] }
 0x6a8   :  { %1936 = vmatpush1.bf16.msra.mxu0 %v1852_v14  ;;  %v5719_v4 = vunpack.i.h.bf16 %v5717_v19  ;;  %v5718_v27 = vunpack.i.l.bf16 %v5717_v19  ;;  %2247 = vmatpush1.bf16.msra.mxu1 %v6612_v5  ;;  %v5724_v29 = vunpack.i.h.bf16 %v5722_v10  ;;  %v5723_v30 = vunpack.i.l.bf16 %v5722_v10 }
 0x6a9   :  { %1937 = vmatprep.subr.bf16.mxu0 %v1855_v26  ;;  %2278 = vmatprep.mubr.bf16.mxu1 %v6522_v0  ;;  %v1746_v62 = vsel %vm9390_vm5, %v5713_v21, %v5714_v20  ;;  %vm9395_vm5 = vcmask 31744  }
 0x6aa   :  { %v1752_v24 = vsel %vm9387_vm2, %v5718_v27, %v5719_v4  ;;  %v1753_v60 = vsel %vm9389_vm7, %v5719_v4, %v5718_v27  ;;  %v1759_v40 = vsel %vm9391_vm3, %v5724_v29, %v5723_v30  ;;  %vm9392_vm2 = vcmp.lt.s32.totalorder %v6740_v23, 120  ;;  %vm9394_vm7 = vmmov %vm9391_vm3 }
 0x6ab   :  { %v5732_v63 = vpop.permute.xlu0 %5731  ;;  %v5727_v5 = vpop.permute.xlu1 %5726  ;;  %v1857_v44 = vpack.c.bf16 %v1753_v60, %v1747_v31  ;;  %v1856_v38 = vpack.c.bf16 %v1752_v24, %v1746_v62  ;;  %vm9393_vm4 = vmmov %vm9392_vm2  ;;  %v1758_v42 = vsel %vm9394_vm7, %v5723_v30, %v5724_v29  ;;  %vm9396_vm3 = vcmp.lt.s32.totalorder %v6740_v23, 118  ;;  %v6492_v29 = vld [vmem:[%s6629_s17] ss:$12 sps:$4 sm:$0xff]  }
 0x6ac   :  { %1938 = vmatpush1.bf16.msra.mxu0 %v1854_v28  ;;  %v5729_v41 = vunpack.i.h.bf16 %v5727_v5  ;;  %v5728_v36 = vunpack.i.l.bf16 %v5727_v5  ;;  %v5734_v61 = vunpack.i.h.bf16 %v5732_v63  ;;  %v5733_v45 = vunpack.i.l.bf16 %v5732_v63 }
 0x6ad   :  { %1939 = vmatprep.subr.bf16.mxu0 %v1857_v44  ;;  %v4828_v62 = vcombine.high %v1876_v11, %v1876_v11 }
 0x6ae   :  { %v1764_v50 = vsel %vm9392_vm2, %v5728_v36, %v5729_v41  ;;  %v1765_v39 = vsel %vm9393_vm4, %v5729_v41, %v5728_v36  ;;  %vm9397_vm2 = vcmp.lt.s32.totalorder %v6740_v23, 119  ;;  %vm9398_vm4 = vmmov %vm9396_vm3 }
 0x6af   :  { %4849 = vmatmul.mubr.msk.bf16.vlgmr.msra.gmra.mrb[20].mxu1 %vm9395_vm5, %v6490_v35  ;;  %v5742_v17 = vpop.permute.xlu0 %5741  ;;  %v5737_v18 = vpop.permute.xlu1 %5736  ;;  %v1859_v51 = vpack.c.bf16 %v1765_v39, %v1759_v40  ;;  %v1858_v33 = vpack.c.bf16 %v1764_v50, %v1758_v42  ;;  %v1771_v7 = vsel %vm9397_vm2, %v5734_v61, %v5733_v45  ;;  %vm9399_vm7 = vmmov %vm9397_vm2  ;;  %vm9400_vm5 = vcmp.lt.s32.totalorder %v6740_v23, 117 }
 0x6b0   :  { %1940 = vmatpush1.bf16.msra.mxu0 %v1856_v38  ;;  %v5739_v46 = vunpack.i.h.bf16 %v5737_v18  ;;  %v5738_v2 = vunpack.i.l.bf16 %v5737_v18  ;;  %2288 = vmatprep.mubr.bf16.mxu1 %v6522_v0  ;;  %v5744_v47 = vunpack.i.h.bf16 %v5742_v17  ;;  %v5743_v1 = vunpack.i.l.bf16 %v5742_v17 }
 0x6b1   :  { %1941 = vmatprep.subr.bf16.mxu0 %v1859_v51  ;;  %v1770_v49 = vsel %vm9399_vm7, %v5733_v45, %v5734_v61  ;;  %vm9404_vm7 = vcmask 31744  }
 0x6b2   :  { %v1776_v32 = vsel %vm9396_vm3, %v5738_v2, %v5739_v46  ;;  %v1777_v48 = vsel %vm9398_vm4, %v5739_v46, %v5738_v2  ;;  %v1783_v6 = vsel %vm9400_vm5, %v5744_v47, %v5743_v1  ;;  %vm9401_vm3 = vcmp.lt.s32.totalorder %v6740_v23, 116  ;;  %vm9403_vm4 = vmmov %vm9400_vm5 }
 0x6b3   :  { %v5752_v52 = vpop.permute.xlu0 %5751  ;;  %v5747_v55 = vpop.permute.xlu1 %5746  ;;  %v1861_v57 = vpack.c.bf16 %v1777_v48, %v1771_v7  ;;  %v1860_v3 = vpack.c.bf16 %v1776_v32, %v1770_v49  ;;  %vm9402_vm2 = vmmov %vm9401_vm3  ;;  %v1782_v15 = vsel %vm9403_vm4, %v5743_v1, %v5744_v47  ;;  %vm9405_vm5 = vcmp.lt.s32.totalorder %v6740_v23, 114 }
 0x6b4   :  { %1942 = vmatpush1.bf16.msra.mxu0 %v1858_v33  ;;  %v5749_v8 = vunpack.i.h.bf16 %v5747_v55  ;;  %v5748_v58 = vunpack.i.l.bf16 %v5747_v55  ;;  %v5754_v54 = vunpack.i.h.bf16 %v5752_v52  ;;  %v5753_v9 = vunpack.i.l.bf16 %v5752_v52  ;;  %v6497_v55 = vld [vmem:[%s6629_s17 + $0x8] ss:$12 sps:$4 sm:$0xff]  }
 0x6b5   :  { %1943 = vmatprep.subr.bf16.mxu0 %v1861_v57  ;;  %v4827_v33 = vcombine.low %v1876_v11, %v1876_v11 }
 0x6b6   :  { %v1788_v34 = vsel %vm9401_vm3, %v5748_v58, %v5749_v8  ;;  %v1789_v53 = vsel %vm9402_vm2, %v5749_v8, %v5748_v58  ;;  %vm9406_vm3 = vcmp.lt.s32.totalorder %v6740_v23, 115  ;;  %vm9407_vm2 = vmmov %vm9405_vm5 }
 0x6b7   :  { %4850 = vmatmul.mubr.msk.bf16.gmra.mrb[24].mxu1 %vm9404_vm7, %v6491_v56  ;;  %v5762_v12 = vpop.permute.xlu0 %5761  ;;  %v5757_v13 = vpop.permute.xlu1 %5756  ;;  %v1863_v14 = vpack.c.bf16 %v1789_v53, %v1783_v6  ;;  %v1862_v21 = vpack.c.bf16 %v1788_v34, %v1782_v15  ;;  %v1795_v19 = vsel %vm9406_vm3, %v5754_v54, %v5753_v9  ;;  %vm9408_vm4 = vmmov %vm9406_vm3  ;;  %vm9409_vm7 = vcmp.lt.s32.totalorder %v6740_v23, 113  ;;  %v6498_v56 = vld [vmem:[%s6629_s17 + $0x20] ss:$0 sps:$4 sm:$0xff]   ;;  %s9419_s17 = smov 16  }
 0x6b8   :  { %1944 = vmatpush1.bf16.msra.mxu0 %v1860_v3  ;;  %v5759_v16 = vunpack.i.h.bf16 %v5757_v13  ;;  %v5758_v20 = vunpack.i.l.bf16 %v5757_v13  ;;  %2427 = vmatprep.mubr.bf16.mxu1 %v6522_v0  ;;  %v5764_v22 = vunpack.i.h.bf16 %v5762_v12  ;;  %v5763_v25 = vunpack.i.l.bf16 %v5762_v12  ;;  %s4739_s24 = sld [smem:[%s9082_s0 + %s9419_s17]]  }
 0x6b9   :  { %1945 = vmatprep.subr.bf16.mxu0 %v1863_v14  ;;  %v1794_v4 = vsel %vm9408_vm4, %v5753_v9, %v5754_v54  ;;  %vm9411_vm3 = vcmp.lt.s32.totalorder %v6740_v23, 112  ;;  %vm9413_vm4 = vcmp.lt.s32.totalorder %v6740_v23, 110 }
 0x6ba   :  { %v1800_v10 = vsel %vm9405_vm5, %v5758_v20, %v5759_v16  ;;  %v1801_v26 = vsel %vm9407_vm2, %v5759_v16, %v5758_v20  ;;  %v1806_v63 = vsel %vm9409_vm7, %v5763_v25, %v5764_v22  ;;  %vm9410_vm5 = vmmov %vm9409_vm7 }
 0x6bb   :  { %v5772_v27 = vpop.permute.xlu0 %5771  ;;  %v5767_v28 = vpop.permute.xlu1 %5766  ;;  %v1865_v30 = vpack.c.bf16 %v1801_v26, %v1795_v19  ;;  %v1864_v60 = vpack.c.bf16 %v1800_v10, %v1794_v4  ;;  %v1807_v5 = vsel %vm9410_vm5, %v5764_v22, %v5763_v25  ;;  %vm9412_vm2 = vmmov %vm9411_vm3  ;;  %vm9415_vm5 = vcmp.lt.s32.totalorder %v6740_v23, 109 }
 0x6bc   :  { %1946 = vmatpush1.bf16.msra.mxu0 %v1862_v21  ;;  %v5769_v24 = vunpack.i.h.bf16 %v5767_v28  ;;  %v5768_v31 = vunpack.i.l.bf16 %v5767_v28  ;;  %v5774_v35 = vunpack.i.h.bf16 %v5772_v27  ;;  %v5773_v44 = vunpack.i.l.bf16 %v5772_v27  ;;  %vm9414_vm7 = vmmov %vm9413_vm4 }
 0x6bd   :  { %1966 = vmatprep.subr.bf16.mxu0 %v1865_v30 }
 0x6be   :  { %v1812_v41 = vsel %vm9411_vm3, %v5768_v31, %v5769_v24  ;;  %v1813_v36 = vsel %vm9412_vm2, %v5769_v24, %v5768_v31  ;;  %v1819_v51 = vsel %vm500_vm11, %v5774_v35, %v5773_v44  ;;  %v1818_v2 = vsel %vm500_vm11, %v5773_v44, %v5774_v35  ;;  %vm9416_vm3 = vmmov %vm9415_vm5 }
 0x6bf   :  { %1948 = vmatmul.mubr.bf16.vlgmr.msra.gmra.mrb[20].mxu0 %v6492_v29  ;;  %v5782_v38 = vpop.permute.xlu0 %5781  ;;  %v5777_v40 = vpop.permute.xlu1 %5776  ;;  %v1867_v61 = vpack.c.bf16 %v1813_v36, %v1807_v5  ;;  %v1866_v45 = vpack.c.bf16 %v1812_v41, %v1806_v63  ;;  %vm9417_vm2 = vcmask 457728  }
 0x6c0   :  { %1967 = vmatpush1.bf16.msra.mxu0 %v1864_v60  ;;  %v5784_v50 = vunpack.i.h.bf16 %v5782_v38  ;;  %v5783_v39 = vunpack.i.l.bf16 %v5782_v38  ;;  %v5779_v42 = vunpack.i.h.bf16 %v5777_v40  ;;  %v5778_v17 = vunpack.i.l.bf16 %v5777_v40  ;;  %1957 = vmatprep.mubr.bf16.mxu0 %v4828_v62 }
 0x6c1   :  { %1968 = vmatprep.subr.bf16.mxu0 %v1867_v61 }
 0x6c2   :  { %v1824_v18 = vsel %vm9413_vm4, %v5778_v17, %v5779_v42  ;;  %v1825_v46 = vsel %vm9414_vm7, %v5779_v42, %v5778_v17  ;;  %v1831_v32 = vsel %vm9415_vm5, %v5784_v50, %v5783_v39  ;;  %v1830_v7 = vsel %vm9416_vm3, %v5783_v39, %v5784_v50  ;;  %vm9418_vm4 = vmmov %vm9417_vm2 }
 0x6c3   :  { %v1869_v47 = vpack.c.bf16 %v1825_v46, %v1819_v51  ;;  %v1868_v1 = vpack.c.bf16 %v1824_v18, %v1818_v2  ;;  %v1871_v48 = vpack.c.bf16 %v1831_v32, %v1831_v32  ;;  %v1870_v49 = vpack.c.bf16 %v1830_v7, %v1830_v7 }
 0x6c4   :  { %1969 = vmatpush1.bf16.msra.mxu0 %v1866_v45  ;;  %vm9439_vm7 = vcmp.lt.s32.totalorder %v6740_v23, 18  ;;  %vm9440_vm5 = vcmp.lt.s32.totalorder %v6740_v23, 19 }
 0x6c5   :  { %1970 = vmatprep.subr.bf16.mxu0 %v1869_v47  ;;  %v1910_v52 = vsel %vm595_vm8, %v1870_v49, 0  ;;  %vm9441_vm3 = vmmov %vm9440_vm5 }
 0x6c7   :  { %1958 = vmatmul.mubr.bf16.gmra.mrb[24].mxu0 %v4827_v33 }
 0x6c8   :  { %1971 = vmatpush1.bf16.msra.mxu0 %v1868_v1  ;;  %1998 = vmatprep.mubr.bf16.mxu0 %v6522_v0 }
 0x6c9   :  { %4830 = vmatprep.subr.msk.bf16.mxu0 %vm595_vm8, %v1871_v48 }
 0x6cc   :  { %1973 = vmatpush1.bf16.msra.mxu0 %v1910_v52 }
 0x6cf   :  { %4831 = vmatmul.mubr.msk.bf16.vlgmr.msra.gmra.mrb[20].mxu0 %vm9417_vm2, %v6497_v55  ;;  %vm9442_vm2 = vmmov %vm9439_vm7 }
 0x6d0   :  { %2008 = vmatprep.mubr.bf16.mxu0 %v6522_v0  ;;  %v2166_v57 = vpop.permute.xlu0 %2165  ;;  %v2161_v15 = vpop.permute.xlu1 %2160 }
 0x6d4   :  { %v2198_v8 = vpop.permute.xlu0 %2197  ;;  %v2193_v22 = vpop.permute.xlu1 %2192 }
 0x6d7   :  { %4832 = vmatmul.mubr.msk.bf16.gmra.mrb[24].mxu0 %vm9418_vm4, %v6498_v56  ;;  %vm9443_vm4 = vcmp.lt.s32.totalorder %v6740_v23, 16 }
 0x6d8   :  { %2977 = vmatprep.mubr.bf16.mxu0 %v6522_v0  ;;  %v2311_v58 = vpop.permute.xlu0 %2310  ;;  %v2306_v30 = vpop.permute.xlu1 %2305 }
 0x6dc   :  { %v2176_v3 = vpop.permute.xlu0 %2175  ;;  %v2171_v41 = vpop.permute.xlu1 %2170 }
 0x6e0   :  { %v2343_v9 = vpop.permute.xlu0 %2342  ;;  %v2338_v36 = vpop.permute.xlu1 %2337 }
 0x6e4   :  { %v2208_v12 = vpop.permute.xlu0 %2207  ;;  %v2203_v38 = vpop.permute.xlu1 %2202 }
 0x6e8   :  { %v2321_v25 = vpop.permute.xlu0 %2320  ;;  %v2316_v33 = vpop.permute.xlu1 %2315 }
 0x6ec   :  { %v2353_v24 = vpop.permute.xlu0 %2352 }
 0x77a   :  { %v2147_v6 = vpop.f32.mrb[16].mxu1 }
 0x77b   :  { %v2149_v54 = vpop.f32.mrb[17].mxu1  ;;  %v2184_v21 = vmul.f32 %v2176_v3, %v2147_v6 }
 0x77c   :  { %v2151_v34 = vpop.f32.mrb[18].mxu1  ;;  %v2185_v11 = vmul.f32 %v2176_v3, %v2149_v54 }
 0x77d   :  { %v2152_v53 = vpop.f32.mrb[19].mxu1  ;;  %v2216_v19 = vadd.f32 %v2208_v12, %v2184_v21 }
 0x77e   :  { %v2217_v4 = vadd.f32 %v2208_v12, %v2185_v11 }
 0x77f   :  { %v2224_v60 = vmax.f32 %v2216_v19, 0.0 }
 0x780   :  { %v2225_v63 = vmax.f32 %v2217_v4, 0.0 }
 0x782   :  { %v2280_v13 = vpop.f32.mrb[20].mxu1 }
 0x783   :  { %v2282_v14 = vpop.f32.mrb[21].mxu1  ;;  %v2323_v61 = vmul.f32 %v2306_v30, %v2280_v13 }
 0x784   :  { %v2284_v16 = vpop.f32.mrb[22].mxu1  ;;  %v2324_v39 = vmul.f32 %v2306_v30, %v2282_v14 }
 0x785   :  { %v2286_v20 = vpop.f32.mrb[23].mxu1  ;;  %v2325_v18 = vmul.f32 %v2311_v58, %v2284_v16  ;;  %v2355_v7 = vadd.f32 %v2338_v36, %v2323_v61 }
 0x786   :  { %v2326_v47 = vmul.f32 %v2311_v58, %v2286_v20  ;;  %v2356_v52 = vadd.f32 %v2338_v36, %v2324_v39 }
 0x787   :  { %v2357_v3 = vadd.f32 %v2343_v9, %v2325_v18 }
 0x788   :  { %v2358_v53 = vadd.f32 %v2343_v9, %v2326_v47 }
 0x78a   :  { %v2290_v10 = vpop.f32.mrb[24].mxu1 }
 0x78b   :  { %v2292_v26 = vpop.f32.mrb[25].mxu1  ;;  %v2327_v6 = vmul.f32 %v2316_v33, %v2290_v10 }
 0x78c   :  { %v2294_v27 = vpop.f32.mrb[26].mxu1 }
 0x78d   :  { %v2329_v28 = vmul.f32 %v2321_v25, %v2294_v27  ;;  %v2296_v29 = vpop.f32.mrb[27].mxu1 }
 0x78e   :  { %v2330_v31 = vmul.f32 %v2321_v25, %v2296_v29 }
 0x78f   :  { %v2361_v62 = vadd.f32 %v2353_v24, %v2329_v28 }
 0x790   :  { %v2362_v5 = vadd.f32 %v2353_v24, %v2330_v31 }
 0x791   :  { %v7811_v35 = vadd.f32 %v2361_v62, %v2224_v60 }
 0x792   :  { %v7813_v44 = vadd.f32 %v2362_v5, %v2225_v63 }
 0x793   :  { %v2377_v61 = vmax.f32 %v7811_v35, 0.0  ;;  %v2387_v35 = vld [vmem:[%s4739_s24] sm:$0xf]  ;;  %s9429_s24 = smov 3  }
 0x7a2   :  { %v2000_v40 = vpop.f32.mrb[20].mxu0 }
 0x7a3   :  { %v2178_v45 = vmul.f32 %v2161_v15, %v2000_v40  ;;  %v2002_v50 = vpop.f32.mrb[21].mxu0 }
 0x7a4   :  { %v2179_v42 = vmul.f32 %v2161_v15, %v2002_v50  ;;  %v2004_v17 = vpop.f32.mrb[22].mxu0  ;;  %v2328_v15 = vmul.f32 %v2316_v33, %v2292_v26  ;;  %v2378_v50 = vmax.f32 %v7813_v44, 0.0  ;;  %v6501_v33 = vld [vmem:[%s9427_s5 + $0x4] ss:$12 sps:$4 sm:$0xff]  }
 0x7a5   :  { %v2210_v51 = vadd.f32 %v2193_v22, %v2178_v45  ;;  %v2180_v46 = vmul.f32 %v2166_v57, %v2004_v17  ;;  %v2006_v2 = vpop.f32.mrb[23].mxu0 }
 0x7a6   :  { %v2211_v1 = vadd.f32 %v2193_v22, %v2179_v42  ;;  %v2181_v32 = vmul.f32 %v2166_v57, %v2006_v2  ;;  %v2348_v57 = vpop.permute.xlu1 %2347 }
 0x7a7   :  { %v2218_v48 = vmax.f32 %v2210_v51, 0.0  ;;  %v2212_v49 = vadd.f32 %v2198_v8, %v2180_v46  ;;  %v2359_v4 = vadd.f32 %v2348_v57, %v2327_v6  ;;  %v2360_v28 = vadd.f32 %v2348_v57, %v2328_v15 }
 0x7a8   :  { %v2219_v55 = vmax.f32 %v2211_v1, 0.0  ;;  %v2213_v56 = vadd.f32 %v2198_v8, %v2181_v32  ;;  %v7932_v32 = vsel %vm190_vm15, %v2377_v61, 0.0 }
 0x7a9   :  { %v2363_v54 = vadd.f32 %v2355_v7, %v2218_v48  ;;  %v2220_v34 = vmax.f32 %v2212_v49, 0.0  ;;  %v7936_v7 = vsel %vm191_vm9, %v2378_v50, 0.0 }
 0x7aa   :  { %v2364_v12 = vadd.f32 %v2356_v52, %v2219_v55  ;;  %v2221_v13 = vmax.f32 %v2213_v56, 0.0  ;;  %v2010_v14 = vpop.f32.mrb[24].mxu0 }
 0x7ab   :  { %v2371_v16 = vmax.f32 %v2363_v54, 0.0  ;;  %v2365_v21 = vadd.f32 %v2357_v3, %v2220_v34  ;;  %v2182_v58 = vmul.f32 %v2171_v41, %v2010_v14  ;;  %v2012_v20 = vpop.f32.mrb[25].mxu0 }
 0x7ac   :  { %v2372_v22 = vmax.f32 %v2364_v12, 0.0  ;;  %v2366_v25 = vadd.f32 %v2358_v53, %v2221_v13  ;;  %v2183_v11 = vmul.f32 %v2171_v41, %v2012_v20  ;;  %v2014_v19 = vpop.f32.mrb[26].mxu0 }
 0x7ad   :  { %v2373_v8 = vmax.f32 %v2365_v21, 0.0  ;;  %v2214_v27 = vadd.f32 %v2203_v38, %v2182_v58  ;;  %v2015_v10 = vpop.f32.mrb[27].mxu0  ;;  %v7817_v9 = vsel %vm190_vm15, %v2371_v16, 0.0 }
 0x7ae   :  { %v2374_v26 = vmax.f32 %v2366_v25, 0.0  ;;  %v2215_v29 = vadd.f32 %v2203_v38, %v2183_v11  ;;  %v7821_v30 = vsel %vm191_vm9, %v2372_v22, 0.0 }
 0x7af   :  { %v7825_v24 = vsel %vm190_vm15, %v2373_v8, 0.0  ;;  %v7827_v31 = vpack.c.bf16 %v2373_v8, %v2371_v16  ;;  %v2222_v60 = vmax.f32 %v2214_v27, 0.0 }
 0x7b0   :  { %v7831_v62 = vsel %vm191_vm9, %v2374_v26, 0.0  ;;  %v2223_v63 = vmax.f32 %v2215_v29, 0.0  ;;  %v7835_v5 = vpack.i.bf16 %v7825_v24, %v7817_v9  ;;  %v7837_v41 = vpack.c.bf16 %v2374_v26, %v2372_v22 }
 0x7b1   :  { %v7839_v36 = vadd.f32 %v2359_v4, %v2222_v60  ;;  %v5790_v38 = vpack.i.bf16 %v7831_v62, %v7821_v30 }
 0x7b2   :  { %v2368_v40 = vadd.f32 %v2360_v28, %v2223_v63  ;;  %5786 = vrot.lane.b32.xlu0 %v7835_v5, %s9336_s2  ;;  %4853 = vmatprep.subr.msk.bf16.mxu1 %vm7009_vm1, %v7837_v41 }
 0x7b3   :  { %v2375_v45 = vmax.f32 %v7839_v36, 0.0  ;;  %4856 = vmatpush1.bf16.msk.msra.mxu1 %vm7024_vm0, %v7827_v31  ;;  %5791 = vrot.lane.b32.xlu1 %v5790_v38, %s9336_s2 }
 0x7b4   :  { %v2376_v39 = vmax.f32 %v2368_v40, 0.0 }
 0x7b5   :  { %v7859_v42 = vpack.c.bf16 %v2377_v61, %v2375_v45  ;;  %v7917_v47 = vsel %vm190_vm15, %v2375_v45, 0.0 }
 0x7b6   :  { %v7861_v17 = vpack.c.bf16 %v2378_v50, %v2376_v39  ;;  %v7921_v1 = vsel %vm191_vm9, %v2376_v39, 0.0  ;;  %v5990_v48 = vpack.i.bf16 %v7932_v32, %v7917_v47 }
 0x7b7   :  { %v6000_v49 = vpack.i.bf16 %v7936_v7, %v7921_v1 }
 0x7b8   :  { %4859 = vmatprep.subr.msk.bf16.mxu1 %vm7009_vm1, %v7861_v17 }
 0x7b9   :  { %4862 = vmatpush1.bf16.msk.msra.mxu1 %vm7024_vm0, %v7859_v42 }
 0x7bc   :  { %4863 = vmatmul.mubr.msk.bf16.vlgmr.msra.gmra.mrb[28].mxu1 %vm880_vm14, %v2387_v35 }
 0x7bd   :  { %2779 = vmatprep.mubr.bf16.mxu1 %v6501_v33 }
 0x824   :  { %v7949_v15 = vpop.permute.xlu0 %5786 }
 0x825   :  { %v7951_v12 = vpop.permute.xlu1 %5791 }
 0x88f   :  { %v7870_v18 = vpop.f32.mrb[28].mxu1 }
 0x890   :  { %v7872_v51 = vpop.f32.mrb[29].mxu1 }
 0x891   :  { %v2433_v44 = vpop.f32.mrb[30].mxu1  ;;  %v5800_v46 = vpack.i.bf16 %v7872_v51, %v7870_v18 }
 0x892   :  { %v2434_v2 = vpop.f32.mrb[31].mxu1 }
 0x893   :  { %5801 = vrot.lane.b32.xlu0 %v5800_v46, %s9420_s27  ;;  %5796 = vrot.lane.b32.xlu1 %v5800_v46, %s9421_s18 }
 0x897   :  { %5811 = vrot.lane.b32.xlu0 %v5800_v46, %s9419_s17  ;;  %5806 = vrot.lane.b32.xlu1 %v5800_v46, %s9422_s11 }
 0x89b   :  { %5821 = vrot.lane.b32.xlu0 %v5800_v46, %s9324_s6  ;;  %5816 = vrot.lane.b32.xlu1 %v5800_v46, %s9325_s12 }
 0x89f   :  { %5831 = vrot.lane.b32.xlu0 %v5800_v46, %s9423_s23  ;;  %5826 = vrot.lane.b32.xlu1 %v5800_v46, %s9379_s14 }
 0x8a3   :  { %5841 = vrot.lane.b32.xlu0 %v5800_v46, %s9424_s30  ;;  %5836 = vrot.lane.b32.xlu1 %v5800_v46, %s9315_s21 }
 0x8a7   :  { %5851 = vrot.lane.b32.xlu0 %v5800_v46, %s9328_s13  ;;  %5846 = vrot.lane.b32.xlu1 %v5800_v46, %s9329_s26 }
 0x8ab   :  { %5861 = vrot.lane.b32.xlu0 %v5800_v46, %s9330_s28  ;;  %5856 = vrot.lane.b32.xlu1 %v5800_v46, %s9331_s3 }
 0x8af   :  { %5871 = vrot.lane.b32.xlu0 %v5800_v46, %s9425_s7  ;;  %5866 = vrot.lane.b32.xlu1 %v5800_v46, %s9426_s8  ;;  %s9430_s8 = smov 119   ;;  %s9433_s7 = smov 118  }
 0x8b3   :  { %5881 = vrot.lane.b32.xlu0 %v5800_v46, %s9428_s9  ;;  %5876 = vrot.lane.b32.xlu1 %v5800_v46, %s9429_s24  ;;  %s9431_s9 = smov 120   ;;  %s9432_s24 = smov 117  }
 0x8b7   :  { %5891 = vrot.lane.b32.xlu0 %v5800_v46, %s9335_s4  ;;  %5886 = vrot.lane.b32.xlu1 %v5800_v46, %s9336_s2 }
 0x8bb   :  { %5901 = vrot.lane.b32.xlu0 %v5800_v46, %s9229_s22  ;;  %5896 = vrot.lane.b32.xlu1 %v5800_v46, %s9230_s15  ;;  %s9434_s22 = smov 115   ;;  %s9435_s15 = smov 116  }
 0x8bf   :  { %5911 = vrot.lane.b32.xlu0 %v5800_v46, %s9231_s16  ;;  %5906 = vrot.lane.b32.xlu1 %v5800_v46, %s9232_s25  ;;  %s9436_s16 = smov 113   ;;  %s9437_s25 = smov 114  }
 0x8c3   :  { %5921 = vrot.lane.b32.xlu0 %v5800_v46, %s9233_s19  ;;  %5916 = vrot.lane.b32.xlu1 %v5800_v46, %s9234_s20 }
 0x8c7   :  { %5931 = vrot.lane.b32.xlu0 %v5800_v46, %s9430_s8  ;;  %5926 = vrot.lane.b32.xlu1 %v5800_v46, %s9431_s9 }
 0x8cb   :  { %5941 = vrot.lane.b32.xlu0 %v5800_v46, %s9432_s24  ;;  %5936 = vrot.lane.b32.xlu1 %v5800_v46, %s9433_s7 }
 0x8cf   :  { %5951 = vrot.lane.b32.xlu0 %v5800_v46, %s9434_s22  ;;  %5946 = vrot.lane.b32.xlu1 %v5800_v46, %s9435_s15  ;;  %s9438_s15 = smov 109  }
 0x8d3   :  { %5961 = vrot.lane.b32.xlu0 %v5800_v46, %s9436_s16  ;;  %5956 = vrot.lane.b32.xlu1 %v5800_v46, %s9437_s25  ;;  %s4742_s25 = sld [smem:[%s9082_s0 + %s9421_s18]]  }
 0x8d7   :  { %5971 = vrot.lane.b32.xlu0 %v5800_v46, %s9243_s29  ;;  %5966 = vrot.lane.b32.xlu1 %v5800_v46, %s9244_s10  ;;  %s6564_s10 = smov 20   ;;  %s9522_s29 = smov 125  }
 0x8d9   :  { %v2986_v52 = vld [vmem:[%s4742_s25] sm:$0xff]  ;;  %v2987_v55 = vld [vmem:[%s4742_s25 + $0x8] sm:$0xff]  ;;  %v2988_v6 = vld [vmem:[%s4742_s25 + $0x10] sm:$0xff] }
 0x8da   :  { %v2989_v54 = vld [vmem:[%s4742_s25 + $0x18] sm:$0xff]  ;;  %s4741_s25 = sld [smem:[%s9082_s0 + %s9420_s27]]  }
 0x8db   :  { %5986 = vrot.lane.b32.xlu0 %v5790_v38, %s9335_s4  ;;  %5976 = vrot.lane.b32.xlu1 %v5800_v46, %s9338_s1  ;;  %s4743_s1 = sld [smem:[%s9082_s0 + %s6564_s10]]   ;;  %s9521_s10 = smov 3  }
 0x8df   :  { %5996 = vrot.lane.b32.xlu0 %v5800_v46, %s9438_s15  ;;  %5981 = vrot.lane.b32.xlu1 %v7835_v5, %s9335_s4  ;;  %s9518_s15 = smov 4  }
 0x8e1   :  { %v3018_v56 = vld [vmem:[%s4743_s1] sm:$0xff]  ;;  %v3019_v3 = vld [vmem:[%s4743_s1 + $0x8] sm:$0xff]  ;;  %v3020_v34 = vld [vmem:[%s4743_s1 + $0x10] sm:$0xff] }
 0x8e2   :  { %v3021_v53 = vld [vmem:[%s4743_s1 + $0x18] sm:$0xff] }
 0x8e3   :  { %5991 = vrot.lane.b32.xlu1 %v5990_v48, %s9336_s2  ;;  %6001 = vrot.lane.b32.xlu0 %v6000_v49, %s9336_s2 }
 0x8e7   :  { %6006 = vrot.lane.b32.xlu1 %v5990_v48, %s9335_s4  ;;  %6011 = vrot.lane.b32.xlu0 %v6000_v49, %s9335_s4 }
 0x8eb   :  { %2992 = vperm.xlu1 %5324, %v2986_v52   ;;  %2997 = vperm.xlu0 %5323, %v2987_v55  }
 0x8ef   :  { %3024 = vperm.xlu1 %5324, %v3018_v56   ;;  %3029 = vperm.xlu0 %5323, %v3019_v3  }
 0x8f3   :  { %3002 = vperm.xlu1 %5324, %v2988_v6   ;;  %3007 = vperm.xlu0 %5323, %v2989_v54  }
 0x8f7   :  { %3034 = vperm.xlu1 %5324, %v3020_v34   ;;  %3039 = vperm.xlu0 %5323, %v3021_v53  }
 0x905   :  { %v5802_v13 = vpop.permute.xlu0 %5801  ;;  %v5797_v14 = vpop.permute.xlu1 %5796 }
 0x906   :  { %v5804_v16 = vunpack.i.h.bf16 %v5802_v13  ;;  %v5803_v21 = vunpack.i.l.bf16 %v5802_v13  ;;  %v5799_v58 = vunpack.i.h.bf16 %v5797_v14  ;;  %v5798_v20 = vunpack.i.l.bf16 %v5797_v14 }
 0x908   :  { %v2447_v57 = vsel %vm9439_vm7, %v5804_v16, %v5803_v21  ;;  %v2441_v22 = vsel %vm9440_vm5, %v5799_v58, %v5798_v20  ;;  %v2440_v25 = vsel %vm9441_vm3, %v5798_v20, %v5799_v58  ;;  %v2446_v11 = vsel %vm9442_vm2, %v5803_v21, %v5804_v16  ;;  %vm9446_vm3 = vmmov %vm9443_vm4 }
 0x909   :  { %v5812_v19 = vpop.permute.xlu0 %5811  ;;  %v5807_v4 = vpop.permute.xlu1 %5806  ;;  %v2665_v8 = vpack.c.bf16 %v2446_v11, %v2440_v25  ;;  %v2664_v27 = vpack.c.bf16 %v2447_v57, %v2441_v22  ;;  %vm9444_vm7 = vcmp.lt.s32.totalorder %v6740_v23, 17  ;;  %vm9447_vm2 = vcmp.lt.s32.totalorder %v6740_v23, 14 }
 0x90a   :  { %v5814_v10 = vunpack.i.h.bf16 %v5812_v19  ;;  %v5813_v28 = vunpack.i.l.bf16 %v5812_v19  ;;  %v5809_v26 = vunpack.i.h.bf16 %v5807_v4  ;;  %v5808_v29 = vunpack.i.l.bf16 %v5807_v4  ;;  %vm9445_vm5 = vmmov %vm9444_vm7 }
 0x90b   :  { %2747 = vmatprep.subr.bf16.mxu1 %v2665_v8 }
 0x90c   :  { %v2459_v60 = vsel %vm9443_vm4, %v5814_v10, %v5813_v28  ;;  %v2453_v63 = vsel %vm9444_vm7, %v5809_v26, %v5808_v29  ;;  %2748 = vmatpush1.bf16.msra.mxu1 %v2664_v27  ;;  %v2452_v5 = vsel %vm9445_vm5, %v5808_v29, %v5809_v26  ;;  %v2458_v36 = vsel %vm9446_vm3, %v5813_v28, %v5814_v10  ;;  %vm9450_vm5 = vmmov %vm9447_vm2 }
 0x90d   :  { %v5822_v38 = vpop.permute.xlu0 %5821  ;;  %v5817_v40 = vpop.permute.xlu1 %5816  ;;  %v2667_v61 = vpack.c.bf16 %v2458_v36, %v2452_v5  ;;  %v2666_v45 = vpack.c.bf16 %v2459_v60, %v2453_v63  ;;  %vm9448_vm4 = vcmp.lt.s32.totalorder %v6740_v23, 15  ;;  %vm9451_vm3 = vcmp.lt.s32.totalorder %v6740_v23, 12 }
 0x90e   :  { %v5824_v50 = vunpack.i.h.bf16 %v5822_v38  ;;  %v5823_v39 = vunpack.i.l.bf16 %v5822_v38  ;;  %v5819_v35 = vunpack.i.h.bf16 %v5817_v40  ;;  %v5818_v44 = vunpack.i.l.bf16 %v5817_v40  ;;  %vm9449_vm7 = vmmov %vm9448_vm4 }
 0x90f   :  { %2749 = vmatprep.subr.bf16.mxu1 %v2667_v61 }
 0x910   :  { %v2471_v46 = vsel %vm9447_vm2, %v5824_v50, %v5823_v39  ;;  %v2465_v2 = vsel %vm9448_vm4, %v5819_v35, %v5818_v44  ;;  %2750 = vmatpush1.bf16.msra.mxu1 %v2666_v45  ;;  %v2464_v33 = vsel %vm9449_vm7, %v5818_v44, %v5819_v35  ;;  %v2470_v48 = vsel %vm9450_vm5, %v5823_v39, %v5824_v50  ;;  %vm9454_vm7 = vmmov %vm9451_vm3 }
 0x911   :  { %v5832_v49 = vpop.permute.xlu0 %5831  ;;  %v5827_v52 = vpop.permute.xlu1 %5826  ;;  %v2669_v55 = vpack.c.bf16 %v2470_v48, %v2464_v33  ;;  %v2668_v56 = vpack.c.bf16 %v2471_v46, %v2465_v2  ;;  %vm9452_vm2 = vcmp.lt.s32.totalorder %v6740_v23, 13  ;;  %vm9455_vm5 = vcmp.lt.s32.totalorder %v6740_v23, 10 }
 0x912   :  { %v5834_v3 = vunpack.i.h.bf16 %v5832_v49  ;;  %v5833_v6 = vunpack.i.l.bf16 %v5832_v49  ;;  %v5829_v54 = vunpack.i.h.bf16 %v5827_v52  ;;  %v5828_v34 = vunpack.i.l.bf16 %v5827_v52  ;;  %vm9453_vm4 = vmmov %vm9452_vm2 }
 0x913   :  { %2751 = vmatprep.subr.bf16.mxu1 %v2669_v55 }
 0x914   :  { %v2483_v53 = vsel %vm9451_vm3, %v5834_v3, %v5833_v6  ;;  %v2477_v13 = vsel %vm9452_vm2, %v5829_v54, %v5828_v34  ;;  %2752 = vmatpush1.bf16.msra.mxu1 %v2668_v56  ;;  %v2476_v14 = vsel %vm9453_vm4, %v5828_v34, %v5829_v54  ;;  %v2482_v16 = vsel %vm9454_vm7, %v5833_v6, %v5834_v3  ;;  %vm9458_vm4 = vmmov %vm9455_vm5 }
 0x915   :  { %v5842_v21 = vpop.permute.xlu0 %5841  ;;  %v5837_v58 = vpop.permute.xlu1 %5836  ;;  %v2671_v20 = vpack.c.bf16 %v2482_v16, %v2476_v14  ;;  %v2670_v57 = vpack.c.bf16 %v2483_v53, %v2477_v13  ;;  %vm9456_vm3 = vcmp.lt.s32.totalorder %v6740_v23, 11  ;;  %vm9459_vm7 = vcmp.lt.s32.totalorder %v6740_v23, 8 }
 0x916   :  { %v5844_v22 = vunpack.i.h.bf16 %v5842_v21  ;;  %v5843_v25 = vunpack.i.l.bf16 %v5842_v21  ;;  %v5839_v11 = vunpack.i.h.bf16 %v5837_v58  ;;  %v5838_v19 = vunpack.i.l.bf16 %v5837_v58  ;;  %vm9457_vm2 = vmmov %vm9456_vm3 }
 0x917   :  { %2753 = vmatprep.subr.bf16.mxu1 %v2671_v20 }
 0x918   :  { %v2495_v4 = vsel %vm9455_vm5, %v5844_v22, %v5843_v25  ;;  %v2489_v8 = vsel %vm9456_vm3, %v5839_v11, %v5838_v19  ;;  %2754 = vmatpush1.bf16.msra.mxu1 %v2670_v57  ;;  %v2488_v27 = vsel %vm9457_vm2, %v5838_v19, %v5839_v11  ;;  %v2494_v10 = vsel %vm9458_vm4, %v5843_v25, %v5844_v22  ;;  %vm9462_vm2 = vmmov %vm9459_vm7 }
 0x919   :  { %v5852_v28 = vpop.permute.xlu0 %5851  ;;  %v5847_v26 = vpop.permute.xlu1 %5846  ;;  %v2673_v29 = vpack.c.bf16 %v2494_v10, %v2488_v27  ;;  %v2672_v60 = vpack.c.bf16 %v2495_v4, %v2489_v8  ;;  %vm9460_vm5 = vcmp.lt.s32.totalorder %v6740_v23, 9  ;;  %vm9463_vm4 = vcmp.lt.s32.totalorder %v6740_v23, 6 }
 0x91a   :  { %v5854_v63 = vunpack.i.h.bf16 %v5852_v28  ;;  %v5853_v5 = vunpack.i.l.bf16 %v5852_v28  ;;  %v5849_v36 = vunpack.i.h.bf16 %v5847_v26  ;;  %v5848_v38 = vunpack.i.l.bf16 %v5847_v26  ;;  %vm9461_vm3 = vmmov %vm9460_vm5 }
 0x91b   :  { %2755 = vmatprep.subr.bf16.mxu1 %v2673_v29 }
 0x91c   :  { %v2507_v40 = vsel %vm9459_vm7, %v5854_v63, %v5853_v5  ;;  %v2501_v61 = vsel %vm9460_vm5, %v5849_v36, %v5848_v38  ;;  %2756 = vmatpush1.bf16.msra.mxu1 %v2672_v60  ;;  %v2500_v45 = vsel %vm9461_vm3, %v5848_v38, %v5849_v36  ;;  %v2506_v50 = vsel %vm9462_vm2, %v5853_v5, %v5854_v63  ;;  %vm9466_vm3 = vmmov %vm9463_vm4 }
 0x91d   :  { %v5862_v39 = vpop.permute.xlu0 %5861  ;;  %v5857_v35 = vpop.permute.xlu1 %5856  ;;  %v2675_v44 = vpack.c.bf16 %v2506_v50, %v2500_v45  ;;  %v2674_v46 = vpack.c.bf16 %v2507_v40, %v2501_v61  ;;  %vm9464_vm7 = vcmp.lt.s32.totalorder %v6740_v23, 7  ;;  %vm9467_vm2 = vcmp.lt.s32.totalorder %v6740_v23, 4 }
 0x91e   :  { %v5864_v2 = vunpack.i.h.bf16 %v5862_v39  ;;  %v5863_v33 = vunpack.i.l.bf16 %v5862_v39  ;;  %v5859_v48 = vunpack.i.h.bf16 %v5857_v35  ;;  %v5858_v49 = vunpack.i.l.bf16 %v5857_v35  ;;  %vm9465_vm5 = vmmov %vm9464_vm7 }
 0x91f   :  { %2757 = vmatprep.subr.bf16.mxu1 %v2675_v44 }
 0x920   :  { %v2519_v52 = vsel %vm9463_vm4, %v5864_v2, %v5863_v33  ;;  %v2513_v55 = vsel %vm9464_vm7, %v5859_v48, %v5858_v49  ;;  %2758 = vmatpush1.bf16.msra.mxu1 %v2674_v46  ;;  %v2512_v56 = vsel %vm9465_vm5, %v5858_v49, %v5859_v48  ;;  %v2518_v3 = vsel %vm9466_vm3, %v5863_v33, %v5864_v2  ;;  %vm9470_vm5 = vmmov %vm9467_vm2 }
 0x921   :  { %v5872_v6 = vpop.permute.xlu0 %5871  ;;  %v5867_v54 = vpop.permute.xlu1 %5866  ;;  %v2677_v34 = vpack.c.bf16 %v2518_v3, %v2512_v56  ;;  %v2676_v53 = vpack.c.bf16 %v2519_v52, %v2513_v55  ;;  %vm9468_vm4 = vcmp.lt.s32.totalorder %v6740_v23, 5  ;;  %vm9471_vm3 = vcmp.lt.s32.totalorder %v6740_v23, 2 }
 0x922   :  { %v5874_v13 = vunpack.i.h.bf16 %v5872_v6  ;;  %v5873_v14 = vunpack.i.l.bf16 %v5872_v6  ;;  %v5869_v16 = vunpack.i.h.bf16 %v5867_v54  ;;  %v5868_v21 = vunpack.i.l.bf16 %v5867_v54  ;;  %vm9469_vm7 = vmmov %vm9468_vm4 }
 0x923   :  { %2759 = vmatprep.subr.bf16.mxu1 %v2677_v34 }
 0x924   :  { %v2531_v58 = vsel %vm9467_vm2, %v5874_v13, %v5873_v14  ;;  %v2525_v20 = vsel %vm9468_vm4, %v5869_v16, %v5868_v21  ;;  %2760 = vmatpush1.bf16.msra.mxu1 %v2676_v53  ;;  %v2524_v57 = vsel %vm9469_vm7, %v5868_v21, %v5869_v16  ;;  %v2530_v22 = vsel %vm9470_vm5, %v5873_v14, %v5874_v13  ;;  %vm9474_vm7 = vmmov %vm9471_vm3 }
 0x925   :  { %v5882_v25 = vpop.permute.xlu0 %5881  ;;  %v5877_v11 = vpop.permute.xlu1 %5876  ;;  %v2679_v19 = vpack.c.bf16 %v2530_v22, %v2524_v57  ;;  %v2678_v4 = vpack.c.bf16 %v2531_v58, %v2525_v20  ;;  %vm9472_vm2 = vcmp.lt.s32.totalorder %v6740_v23, 3  ;;  %vm9475_vm5 = vcmp.lt.s32.totalorder %v6740_v23, 126 }
 0x926   :  { %v5884_v8 = vunpack.i.h.bf16 %v5882_v25  ;;  %v5883_v27 = vunpack.i.l.bf16 %v5882_v25  ;;  %v5879_v10 = vunpack.i.h.bf16 %v5877_v11  ;;  %v5878_v28 = vunpack.i.l.bf16 %v5877_v11  ;;  %vm9473_vm4 = vmmov %vm9472_vm2 }
 0x927   :  { %2761 = vmatprep.subr.bf16.mxu1 %v2679_v19 }
 0x928   :  { %v2543_v26 = vsel %vm9471_vm3, %v5884_v8, %v5883_v27  ;;  %v2537_v29 = vsel %vm9472_vm2, %v5879_v10, %v5878_v28  ;;  %2762 = vmatpush1.bf16.msra.mxu1 %v2678_v4  ;;  %v2536_v60 = vsel %vm9473_vm4, %v5878_v28, %v5879_v10  ;;  %v2542_v63 = vsel %vm9474_vm7, %v5883_v27, %v5884_v8  ;;  %vm9476_vm3 = vmmov %vm9475_vm5 }
 0x929   :  { %v5892_v5 = vpop.permute.xlu0 %5891  ;;  %v5887_v36 = vpop.permute.xlu1 %5886  ;;  %v2681_v38 = vpack.c.bf16 %v2542_v63, %v2536_v60  ;;  %v2680_v40 = vpack.c.bf16 %v2543_v26, %v2537_v29  ;;  %vm9477_vm2 = vcmp.lt.s32.totalorder %v6740_v23, 125  ;;  %vm9479_vm7 = vcmp.lt.s32.totalorder %v6740_v23, 124 }
 0x92a   :  { %v5889_v61 = vunpack.i.h.bf16 %v5887_v36  ;;  %v5888_v45 = vunpack.i.l.bf16 %v5887_v36  ;;  %v5894_v50 = vunpack.i.h.bf16 %v5892_v5  ;;  %v5893_v39 = vunpack.i.l.bf16 %v5892_v5  ;;  %vm9478_vm4 = vmmov %vm9477_vm2 }
 0x92b   :  { %2763 = vmatprep.subr.bf16.mxu1 %v2681_v38 }
 0x92c   :  { %v2549_v35 = vsel %vm381_vm10, %v5889_v61, %v5888_v45  ;;  %2764 = vmatpush1.bf16.msra.mxu1 %v2680_v40  ;;  %v2548_v44 = vsel %vm381_vm10, %v5888_v45, %v5889_v61  ;;  %v2554_v3 = vsel %vm388_vm13, %v5893_v39, %v5894_v50  ;;  %v2555_v54 = vsel %vm388_vm13, %v5894_v50, %v5893_v39 }
 0x92d   :  { %v5902_v46 = vpop.permute.xlu0 %5901  ;;  %v5897_v2 = vpop.permute.xlu1 %5896  ;;  %v2683_v33 = vpack.c.bf16 %v7872_v51, %v2548_v44  ;;  %v2682_v48 = vpack.c.bf16 %v7870_v18, %v2549_v35 }
 0x92e   :  { %v5899_v49 = vunpack.i.h.bf16 %v5897_v2  ;;  %v5898_v52 = vunpack.i.l.bf16 %v5897_v2  ;;  %v5904_v55 = vunpack.i.h.bf16 %v5902_v46  ;;  %v5903_v56 = vunpack.i.l.bf16 %v5902_v46 }
 0x92f   :  { %2765 = vmatprep.subr.bf16.mxu1 %v2683_v33 }
 0x930   :  { %v2560_v6 = vsel %vm9475_vm5, %v5898_v52, %v5899_v49  ;;  %2766 = vmatpush1.bf16.msra.mxu1 %v2682_v48  ;;  %v2561_v51 = vsel %vm9476_vm3, %v5899_v49, %v5898_v52  ;;  %v2566_v21 = vsel %vm9477_vm2, %v5903_v56, %v5904_v55  ;;  %v2567_v58 = vsel %vm9478_vm4, %v5904_v55, %v5903_v56  ;;  %vm9480_vm5 = vmmov %vm9479_vm7 }
 0x931   :  { %v5912_v34 = vpop.permute.xlu0 %5911  ;;  %v5907_v18 = vpop.permute.xlu1 %5906  ;;  %v2685_v53 = vpack.c.bf16 %v2561_v51, %v2555_v54  ;;  %v2684_v13 = vpack.c.bf16 %v2560_v6, %v2554_v3  ;;  %vm9481_vm3 = vcmp.lt.s32.totalorder %v6740_v23, 123  ;;  %vm9482_vm2 = vcmp.lt.s32.totalorder %v6740_v23, 122 }
 0x932   :  { %v5909_v14 = vunpack.i.h.bf16 %v5907_v18  ;;  %v5908_v16 = vunpack.i.l.bf16 %v5907_v18  ;;  %v5914_v20 = vunpack.i.h.bf16 %v5912_v34  ;;  %v5913_v57 = vunpack.i.l.bf16 %v5912_v34  ;;  %vm9483_vm4 = vmmov %vm9481_vm3 }
 0x933   :  { %2767 = vmatprep.subr.bf16.mxu1 %v2685_v53 }
 0x934   :  { %v2572_v22 = vsel %vm9479_vm7, %v5908_v16, %v5909_v14  ;;  %2768 = vmatpush1.bf16.msra.mxu1 %v2684_v13  ;;  %v2573_v25 = vsel %vm9480_vm5, %v5909_v14, %v5908_v16  ;;  %v2578_v29 = vsel %vm9481_vm3, %v5913_v57, %v5914_v20  ;;  %v2579_v63 = vsel %vm9483_vm4, %v5914_v20, %v5913_v57  ;;  %vm9484_vm7 = vmmov %vm9482_vm2 }
 0x935   :  { %v5922_v11 = vpop.permute.xlu0 %5921  ;;  %v5917_v19 = vpop.permute.xlu1 %5916  ;;  %v2687_v4 = vpack.c.bf16 %v2573_v25, %v2567_v58  ;;  %v2686_v8 = vpack.c.bf16 %v2572_v22, %v2566_v21  ;;  %vm9485_vm5 = vcmp.lt.s32.totalorder %v6740_v23, 121 }
 0x936   :  { %v5919_v27 = vunpack.i.h.bf16 %v5917_v19  ;;  %v5918_v10 = vunpack.i.l.bf16 %v5917_v19  ;;  %v5924_v28 = vunpack.i.h.bf16 %v5922_v11  ;;  %v5923_v26 = vunpack.i.l.bf16 %v5922_v11  ;;  %vm9486_vm3 = vmmov %vm9485_vm5 }
 0x937   :  { %2769 = vmatprep.subr.bf16.mxu1 %v2687_v4 }
 0x938   :  { %v2584_v60 = vsel %vm9482_vm2, %v5918_v10, %v5919_v27  ;;  %2770 = vmatpush1.bf16.msra.mxu1 %v2686_v8  ;;  %v2585_v5 = vsel %vm9484_vm7, %v5919_v27, %v5918_v10  ;;  %v2590_v39 = vsel %vm9485_vm5, %v5923_v26, %v5924_v28  ;;  %v2591_v35 = vsel %vm9486_vm3, %v5924_v28, %v5923_v26  ;;  %v8080_v8 = vld [vmem:[%s9427_s5 + $0x18] sm:$0xff] }
 0x939   :  { %v5932_v36 = vpop.permute.xlu0 %5931  ;;  %v5927_v38 = vpop.permute.xlu1 %5926  ;;  %v2689_v40 = vpack.c.bf16 %v2585_v5, %v2579_v63  ;;  %v2688_v61 = vpack.c.bf16 %v2584_v60, %v2578_v29  ;;  %vm9487_vm2 = vcmp.lt.s32.totalorder %v6740_v23, 120  ;;  %vm9489_vm7 = vcmp.lt.s32.totalorder %v6740_v23, 119 }
 0x93a   :  { %v5929_v45 = vunpack.i.h.bf16 %v5927_v38  ;;  %v5928_v50 = vunpack.i.l.bf16 %v5927_v38  ;;  %v5934_v44 = vunpack.i.h.bf16 %v5932_v36  ;;  %v5933_v46 = vunpack.i.l.bf16 %v5932_v36  ;;  %vm9488_vm4 = vmmov %vm9487_vm2 }
 0x93b   :  { %2771 = vmatprep.subr.bf16.mxu1 %v2689_v40  ;;  %vm9490_vm5 = vcmp.lt.s32.totalorder %v6740_v23, 118  ;;  %vm9491_vm3 = vmmov %vm9489_vm7  ;;  %v5789_v27 = vunpack.i.h.bf16 %v7949_v15  ;;  %v5788_v60 = vunpack.i.l.bf16 %v7949_v15  ;;  %v5794_v63 = vunpack.i.h.bf16 %v7951_v12 }
 0x93c   :  { %v2596_v2 = vsel %vm9487_vm2, %v5928_v50, %v5929_v45  ;;  %2772 = vmatpush1.bf16.msra.mxu1 %v2688_v61  ;;  %v2597_v33 = vsel %vm9488_vm4, %v5929_v45, %v5928_v50  ;;  %v2602_v51 = vsel %vm9489_vm7, %v5933_v46, %v5934_v44  ;;  %v2603_v18 = vsel %vm9491_vm3, %v5934_v44, %v5933_v46  ;;  %vm9492_vm2 = vmmov %vm9490_vm5  ;;  %v6499_v45 = vld [vmem:[%s9427_s5] ss:$12 sps:$4 sm:$0xff]  }
 0x93d   :  { %v5942_v48 = vpop.permute.xlu0 %5941  ;;  %v5937_v49 = vpop.permute.xlu1 %5936  ;;  %v2691_v52 = vpack.c.bf16 %v2597_v33, %v2591_v35  ;;  %v2690_v55 = vpack.c.bf16 %v2596_v2, %v2590_v39  ;;  %vm9493_vm4 = vcmp.lt.s32.totalorder %v6740_v23, 117  ;;  %v5793_v38 = vunpack.i.l.bf16 %v7951_v12 }
 0x93e   :  { %v5939_v56 = vunpack.i.h.bf16 %v5937_v49  ;;  %v5938_v3 = vunpack.i.l.bf16 %v5937_v49  ;;  %v5944_v6 = vunpack.i.h.bf16 %v5942_v48  ;;  %v5943_v54 = vunpack.i.l.bf16 %v5942_v48  ;;  %vm9494_vm7 = vmmov %vm9493_vm4 }
 0x93f   :  { %2773 = vmatprep.subr.bf16.mxu1 %v2691_v52  ;;  %v4868_v50 = vcombine.high %v8080_v8, %v8080_v8  ;;  %v2866_v48 = vsel %vm381_vm10, %v5789_v27, %v5794_v63  ;;  %v2870_v49 = vsel %vm381_vm10, %v5794_v63, %v5789_v27 }
 0x940   :  { %v2608_v34 = vsel %vm9490_vm5, %v5938_v3, %v5939_v56  ;;  %2774 = vmatpush1.bf16.msra.mxu1 %v2690_v55  ;;  %v2609_v53 = vsel %vm9492_vm2, %v5939_v56, %v5938_v3  ;;  %v2614_v57 = vsel %vm9493_vm4, %v5943_v54, %v5944_v6  ;;  %v2615_v22 = vsel %vm9494_vm7, %v5944_v6, %v5943_v54 }
 0x941   :  { %v5952_v13 = vpop.permute.xlu0 %5951  ;;  %v5947_v14 = vpop.permute.xlu1 %5946  ;;  %v2693_v16 = vpack.c.bf16 %v2609_v53, %v2603_v18  ;;  %v2692_v21 = vpack.c.bf16 %v2608_v34, %v2602_v51  ;;  %vm9495_vm5 = vcmp.lt.s32.totalorder %v6740_v23, 116  ;;  %vm9497_vm2 = vcmp.lt.s32.totalorder %v6740_v23, 115 }
 0x942   :  { %v5949_v58 = vunpack.i.h.bf16 %v5947_v14  ;;  %v5948_v20 = vunpack.i.l.bf16 %v5947_v14  ;;  %v5954_v25 = vunpack.i.h.bf16 %v5952_v13  ;;  %v5953_v11 = vunpack.i.l.bf16 %v5952_v13  ;;  %vm9496_vm3 = vmmov %vm9495_vm5 }
 0x943   :  { %2775 = vmatprep.subr.bf16.mxu1 %v2693_v16  ;;  %vm9498_vm4 = vcmp.lt.s32.totalorder %v6740_v23, 114  ;;  %vm9499_vm7 = vmmov %vm9497_vm2  ;;  %v2869_v56 = vsel %vm381_vm10, %v5793_v38, %v5788_v60 }
 0x944   :  { %v2620_v19 = vsel %vm9495_vm5, %v5948_v20, %v5949_v58  ;;  %2776 = vmatpush1.bf16.msra.mxu1 %v2692_v21  ;;  %v2621_v4 = vsel %vm9496_vm3, %v5949_v58, %v5948_v20  ;;  %v2626_v39 = vsel %vm9497_vm2, %v5953_v11, %v5954_v25  ;;  %v2627_v15 = vsel %vm9499_vm7, %v5954_v25, %v5953_v11  ;;  %vm9500_vm5 = vmmov %vm9498_vm4 }
 0x945   :  { %v5962_v10 = vpop.permute.xlu0 %5961  ;;  %v5957_v28 = vpop.permute.xlu1 %5956  ;;  %v2695_v26 = vpack.c.bf16 %v2621_v4, %v2615_v22  ;;  %v2694_v29 = vpack.c.bf16 %v2620_v19, %v2614_v57  ;;  %vm9501_vm3 = vcmp.lt.s32.totalorder %v6740_v23, 113  ;;  %v2865_v21 = vsel %vm381_vm10, %v5788_v60, %v5793_v38 }
 0x946   :  { %v5959_v5 = vunpack.i.h.bf16 %v5957_v28  ;;  %v5958_v36 = vunpack.i.l.bf16 %v5957_v28  ;;  %v5964_v40 = vunpack.i.h.bf16 %v5962_v10  ;;  %v5963_v61 = vunpack.i.l.bf16 %v5962_v10  ;;  %vm9502_vm2 = vmmov %vm9501_vm3 }
 0x947   :  { %2777 = vmatprep.subr.bf16.mxu1 %v2695_v26  ;;  %v2875_v57 = vsel %vm704_vm6, %v2870_v49, -3.4028235e+38  ;;  %v2876_v22 = vsel %vm705_vm12, %v2866_v48, -3.4028235e+38  ;;  %v2873_v25 = vsel %vm704_vm6, %v2869_v56, -3.4028235e+38  ;;  %v4867_v11 = vcombine.low %v8080_v8, %v8080_v8 }
 0x948   :  { %v2632_v35 = vsel %vm9498_vm4, %v5958_v36, %v5959_v5  ;;  %2778 = vmatpush1.bf16.msra.mxu1 %v2694_v29  ;;  %v2633_v12 = vsel %vm9500_vm5, %v5959_v5, %v5958_v36  ;;  %v2638_v3 = vsel %vm9501_vm3, %v5963_v61, %v5964_v40  ;;  %v2639_v6 = vsel %vm9502_vm2, %v5964_v40, %v5963_v61 }
 0x949   :  { %v5972_v44 = vpop.permute.xlu0 %5971  ;;  %v5967_v46 = vpop.permute.xlu1 %5966  ;;  %v2697_v2 = vpack.c.bf16 %v2633_v12, %v2627_v15  ;;  %v2696_v33 = vpack.c.bf16 %v2632_v35, %v2626_v39  ;;  %vm9503_vm4 = vcmp.lt.s32.totalorder %v6740_v23, 112  ;;  %vm9505_vm5 = vcmp.lt.s32.totalorder %v6740_v23, 110 }
 0x94a   :  { %v5969_v52 = vunpack.i.h.bf16 %v5967_v46  ;;  %v5968_v55 = vunpack.i.l.bf16 %v5967_v46  ;;  %v5974_v54 = vunpack.i.h.bf16 %v5972_v44  ;;  %v5973_v51 = vunpack.i.l.bf16 %v5972_v44  ;;  %vm9504_vm7 = vmmov %vm9503_vm4 }
 0x94b   :  { %2780 = vmatmul.mubr.bf16.vlgmr.msra.gmra.mrb[32].mxu1 %v6499_v45  ;;  %2798 = vmatprep.subr.bf16.mxu1 %v2697_v2  ;;  %vm9506_vm3 = vmmov %vm9505_vm5  ;;  %v2915_v61 = vmax.f32 %v2875_v57, %v7825_v24  ;;  %v2916_v45 = vmax.f32 %v2876_v22, %v7831_v62  ;;  %v2913_v24 = vmax.f32 %v2873_v25, %v7817_v9  ;;  %vm9507_vm2 = vcmp.le.s32.totalorder %v6740_v23, 62 }
 0x94c   :  { %v2644_v34 = vsel %vm9503_vm4, %v5968_v55, %v5969_v52  ;;  %2799 = vmatpush1.bf16.msra.mxu1 %v2696_v33  ;;  %v2645_v18 = vsel %vm9504_vm7, %v5969_v52, %v5968_v55  ;;  %2789 = vmatprep.mubr.bf16.mxu1 %v4868_v50  ;;  %v2650_v19 = vsel %vm500_vm11, %v5973_v51, %v5974_v54  ;;  %v2874_v50 = vsel %vm705_vm12, %v2865_v21, -3.4028235e+38  ;;  %vm9508_vm4 = vmmov %vm9507_vm2 }
 0x94d   :  { %v5987_v53 = vpop.permute.xlu0 %5986  ;;  %v5977_v13 = vpop.permute.xlu1 %5976  ;;  %v2699_v14 = vpack.c.bf16 %v2645_v18, %v2639_v6  ;;  %v2698_v16 = vpack.c.bf16 %v2644_v34, %v2638_v3  ;;  %v2651_v27 = vsel %vm500_vm11, %v5974_v54, %v5973_v51  ;;  %vm9509_vm7 = vcmp.lt.s32.totalorder %v6740_v23, 109 }
 0x94e   :  { %v5979_v58 = vunpack.i.h.bf16 %v5977_v13  ;;  %v5978_v20 = vunpack.i.l.bf16 %v5977_v13  ;;  %v5989_v28 = vunpack.i.h.bf16 %v5987_v53  ;;  %v5988_v26 = vunpack.i.l.bf16 %v5987_v53 }
 0x94f   :  { %2800 = vmatprep.subr.bf16.mxu1 %v2699_v14  ;;  %v2914_v48 = vmax.f32 %v2874_v50, %v7821_v30 }
 0x950   :  { %v2656_v4 = vsel %vm9505_vm5, %v5978_v20, %v5979_v58  ;;  %2801 = vmatpush1.bf16.msra.mxu1 %v2698_v16  ;;  %v2657_v10 = vsel %vm9506_vm3, %v5979_v58, %v5978_v20  ;;  %vm9510_vm5 = vcmp.le.s32.totalorder %v6917_v59, 62 }
 0x951   :  { %v5997_v29 = vpop.permute.xlu0 %5996  ;;  %v5982_v60 = vpop.permute.xlu1 %5981  ;;  %v2701_v63 = vpack.c.bf16 %v2657_v10, %v2651_v27  ;;  %v2700_v5 = vpack.c.bf16 %v2656_v4, %v2650_v19  ;;  %vm9511_vm3 = vmmov %vm9510_vm5  ;;  %v6504_v27 = vld [vmem:[%s9427_s5 + $0x8] ss:$12 sps:$4 sm:$0xff]  }
 0x952   :  { %v5999_v8 = vunpack.i.h.bf16 %v5997_v29  ;;  %v5998_v36 = vunpack.i.l.bf16 %v5997_v29  ;;  %v5984_v38 = vunpack.i.h.bf16 %v5982_v60  ;;  %v5983_v40 = vunpack.i.l.bf16 %v5982_v60 }
 0x953   :  { %2790 = vmatmul.mubr.bf16.gmra.mrb[36].mxu1 %v4867_v11  ;;  %2802 = vmatprep.subr.bf16.mxu1 %v2701_v63 }
 0x954   :  { %v2898_v39 = vsel %vm388_vm13, %v5984_v38, %v5989_v28  ;;  %v2902_v35 = vsel %vm388_vm13, %v5989_v28, %v5984_v38  ;;  %v2897_v15 = vsel %vm388_vm13, %v5983_v40, %v5988_v26  ;;  %v2901_v12 = vsel %vm388_vm13, %v5988_v26, %v5983_v40  ;;  %2803 = vmatpush1.bf16.msra.mxu1 %v2700_v5 }
 0x955   :  { %v2907_v62 = vsel %vm9507_vm2, %v2898_v39, -3.4028235e+38  ;;  %v2905_v44 = vsel %vm9508_vm4, %v2897_v15, -3.4028235e+38  ;;  %v5992_v46 = vpop.permute.xlu1 %5991  ;;  %v6002_v2 = vpop.permute.xlu0 %6001  ;;  %v2663_v33 = vsel %vm9509_vm7, %v5999_v8, %v5998_v36  ;;  %2830 = vmatprep.mubr.bf16.mxu1 %v6522_v0  ;;  %v2908_v49 = vsel %vm9510_vm5, %v2902_v35, -3.4028235e+38  ;;  %vm9512_vm2 = vmmov %vm9509_vm7 }
 0x956   :  { %v2906_v9 = vsel %vm9511_vm3, %v2901_v12, -3.4028235e+38  ;;  %v5994_v52 = vunpack.i.h.bf16 %v5992_v46  ;;  %v5993_v55 = vunpack.i.l.bf16 %v5992_v46  ;;  %v6004_v56 = vunpack.i.h.bf16 %v6002_v2  ;;  %vm9513_vm7 = vmmov %vm9511_vm3 }
 0x957   :  { %v6003_v3 = vunpack.i.l.bf16 %v6002_v2  ;;  %v2703_v6 = vpack.c.bf16 %v2663_v33, %v2663_v33  ;;  %v2923_v54 = vmax.f32 %v2915_v61, %v2907_v62  ;;  %v2921_v51 = vmax.f32 %v2913_v24, %v2905_v44  ;;  %vm9514_vm5 = vmmov %vm9508_vm4  ;;  %v6505_v62 = vld [vmem:[%s9427_s5 + $0x20] ss:$0 sps:$4 sm:$0xff]   ;;  %s6565_s5 = smov 21  }
 0x958   :  { %v2662_v34 = vsel %vm9512_vm2, %v5998_v36, %v5999_v8  ;;  %v2922_v18 = vmax.f32 %v2914_v48, %v2906_v9  ;;  %v2868_v30 = vsel %vm381_vm10, %v5994_v52, %v6004_v56  ;;  %v2872_v53 = vsel %vm381_vm10, %v6004_v56, %v5994_v52  ;;  %vm9516_vm2 = vmmov %vm9513_vm7  ;;  %v2937_v44 = vld [vmem:[%s4741_s25] sm:$0xf]  ;;  %s4744_s1 = sld [smem:[%s9082_s0 + %s6565_s5]]   ;;  %s9519_s25 = smov 5  }
 0x959   :  { %v2871_v13 = vsel %vm381_vm10, %v6003_v3, %v5993_v55  ;;  %4870 = vmatprep.subr.msk.bf16.mxu1 %vm595_vm8, %v2703_v6  ;;  %v6007_v14 = vpop.permute.xlu1 %6006  ;;  %v2924_v16 = vmax.f32 %v2916_v45, %v2908_v49  ;;  %v2867_v21 = vsel %vm381_vm10, %v5993_v55, %v6003_v3  ;;  %v2702_v58 = vpack.c.bf16 %v2662_v34, %v2662_v34  ;;  %v6012_v20 = vpop.permute.xlu0 %6011  ;;  %s9520_s5 = smov 2  }
 0x95a   :  { %v2879_v57 = vsel %vm704_vm6, %v2872_v53, -3.4028235e+38  ;;  %v2880_v22 = vsel %vm705_vm12, %v2868_v30, -3.4028235e+38  ;;  %v2877_v25 = vsel %vm704_vm6, %v2871_v13, -3.4028235e+38  ;;  %v6009_v19 = vunpack.i.h.bf16 %v6007_v14 }
 0x95b   :  { %v2742_v11 = vsel %vm595_vm8, %v2702_v58, 0  ;;  %v6008_v4 = vunpack.i.l.bf16 %v6007_v14  ;;  %v4877_v10 = vpack.c.bf16 %v2923_v54, %v2921_v51  ;;  %v2878_v28 = vsel %vm705_vm12, %v2867_v21, -3.4028235e+38 }
 0x95c   :  { %2805 = vmatpush1.bf16.msra.mxu1 %v2742_v11  ;;  %v6014_v26 = vunpack.i.h.bf16 %v6012_v20  ;;  %v6013_v29 = vunpack.i.l.bf16 %v6012_v20  ;;  %v4874_v60 = vpack.c.bf16 %v2924_v16, %v2922_v18  ;;  %v2919_v63 = vmax.f32 %v2879_v57, %v7932_v32 }
 0x95d   :  { %v2920_v5 = vmax.f32 %v2880_v22, %v7936_v7  ;;  %v2917_v8 = vmax.f32 %v2877_v25, %v7917_v47  ;;  %v2918_v47 = vmax.f32 %v2878_v28, %v7921_v1  ;;  %vm9515_vm3 = vcmask 457728  }
 0x95e   :  { %v2900_v36 = vsel %vm388_vm13, %v6009_v19, %v6014_v26  ;;  %v2904_v38 = vsel %vm388_vm13, %v6014_v26, %v6009_v19  ;;  %v2899_v40 = vsel %vm388_vm13, %v6008_v4, %v6013_v29  ;;  %v2903_v61 = vsel %vm388_vm13, %v6013_v29, %v6008_v4  ;;  %4875 = vmatprep.subr.msk.bf16.mxu0 %vm7009_vm1, %v4874_v60 }
 0x95f   :  { %v2911_v32 = vsel %vm9508_vm4, %v2900_v36, -3.4028235e+38  ;;  %v2912_v7 = vsel %vm9513_vm7, %v2904_v38, -3.4028235e+38  ;;  %v2909_v45 = vsel %vm9514_vm5, %v2899_v40, -3.4028235e+38  ;;  %4871 = vmatmul.mubr.msk.bf16.vlgmr.msra.gmra.mrb[32].mxu1 %vm9515_vm3, %v6504_v27  ;;  %4878 = vmatpush1.bf16.msk.msra.mxu0 %vm7024_vm0, %v4877_v10  ;;  %vm9517_vm4 = vmmov %vm9515_vm3 }
 0x960   :  { %v2910_v50 = vsel %vm9516_vm2, %v2903_v61, -3.4028235e+38  ;;  %v2925_v39 = vmax.f32 %v2917_v8, %v2909_v45  ;;  %v2927_v35 = vmax.f32 %v2919_v63, %v2911_v32  ;;  %2840 = vmatprep.mubr.bf16.mxu1 %v6522_v0  ;;  %v2928_v1 = vmax.f32 %v2920_v5, %v2912_v7 }
 0x961   :  { %v2926_v15 = vmax.f32 %v2918_v47, %v2910_v50  ;;  %vm9532_vm7 = vcmp.lt.s32.totalorder %v6740_v23, 18  ;;  %vm9533_vm5 = vcmp.lt.s32.totalorder %v6740_v23, 19 }
 0x962   :  { %v4883_v12 = vpack.c.bf16 %v2927_v35, %v2925_v39  ;;  %vm9534_vm3 = vmmov %vm9533_vm5 }
 0x963   :  { %v4880_v24 = vpack.c.bf16 %v2928_v1, %v2926_v15  ;;  %vm9535_vm2 = vmmov %vm9532_vm7 }
 0x965   :  { %4881 = vmatprep.subr.msk.bf16.mxu0 %vm7009_vm1, %v4880_v24 }
 0x966   :  { %4884 = vmatpush1.bf16.msk.msra.mxu0 %vm7024_vm0, %v4883_v12 }
 0x967   :  { %4872 = vmatmul.mubr.msk.bf16.gmra.mrb[36].mxu1 %vm9517_vm4, %v6505_v62  ;;  %vm9536_vm4 = vcmp.lt.s32.totalorder %v6740_v23, 16 }
 0x968   :  { %3656 = vmatprep.mubr.bf16.mxu1 %v6522_v0 }
 0x969   :  { %4885 = vmatmul.mubr.msk.bf16.vlgmr.msra.gmra.mrb[28].mxu0 %vm880_vm14, %v2937_v44  ;;  %v3066_v44 = vld [vmem:[%s4744_s1] sm:$0xf]  ;;  %s9523_s1 = smov 126  }
 0x96a   :  { %3106 = vmatprep.mubr.bf16.mxu0 %v6522_v0  ;;  %v2993_v46 = vpop.permute.xlu1 %2992  ;;  %v2998_v2 = vpop.permute.xlu0 %2997 }
 0x96e   :  { %v3025_v33 = vpop.permute.xlu1 %3024  ;;  %v3030_v49 = vpop.permute.xlu0 %3029 }
 0x972   :  { %v3003_v3 = vpop.permute.xlu1 %3002  ;;  %v3008_v16 = vpop.permute.xlu0 %3007 }
 0x976   :  { %v3035_v57 = vpop.permute.xlu1 %3034  ;;  %v3040_v32 = vpop.permute.xlu0 %3039 }
 0xa32   :  { %v2832_v48 = vpop.f32.mrb[32].mxu1 }
 0xa33   :  { %v3010_v9 = vmul.f32 %v2993_v46, %v2832_v48  ;;  %v2834_v52 = vpop.f32.mrb[33].mxu1 }
 0xa34   :  { %v3011_v55 = vmul.f32 %v2993_v46, %v2834_v52  ;;  %v2836_v56 = vpop.f32.mrb[34].mxu1 }
 0xa35   :  { %v3042_v6 = vadd.f32 %v3025_v33, %v3010_v9  ;;  %v3012_v54 = vmul.f32 %v2998_v2, %v2836_v56  ;;  %v2838_v51 = vpop.f32.mrb[35].mxu1 }
 0xa36   :  { %v3043_v34 = vadd.f32 %v3025_v33, %v3011_v55  ;;  %v3013_v18 = vmul.f32 %v2998_v2, %v2838_v51 }
 0xa37   :  { %v3050_v30 = vmax.f32 %v3042_v6, 0.0  ;;  %v3044_v53 = vadd.f32 %v3030_v49, %v3012_v54 }
 0xa38   :  { %v3051_v13 = vmax.f32 %v3043_v34, 0.0  ;;  %v3045_v14 = vadd.f32 %v3030_v49, %v3013_v18 }
 0xa39   :  { %v3052_v21 = vmax.f32 %v3044_v53, 0.0  ;;  %v8216_v22 = vsel %vm190_vm15, %v3050_v30, 0.0 }
 0xa3a   :  { %v3053_v58 = vmax.f32 %v3045_v14, 0.0  ;;  %v2842_v20 = vpop.f32.mrb[36].mxu1  ;;  %v8224_v27 = vsel %vm191_vm9, %v3051_v13, 0.0 }
 0xa3b   :  { %v8220_v25 = vsel %vm190_vm15, %v3052_v21, 0.0  ;;  %v4890_v11 = vpack.c.bf16 %v3052_v21, %v3050_v30  ;;  %v3014_v19 = vmul.f32 %v3003_v3, %v2842_v20  ;;  %v2844_v4 = vpop.f32.mrb[37].mxu1 }
 0xa3c   :  { %v8228_v10 = vpack.i.bf16 %v8220_v25, %v8216_v22  ;;  %v8232_v28 = vsel %vm191_vm9, %v3053_v58, 0.0  ;;  %v4887_v26 = vpack.c.bf16 %v3053_v58, %v3051_v13  ;;  %v2846_v29 = vpop.f32.mrb[38].mxu1  ;;  %v2979_v60 = vpop.f32.mrb[28].mxu0  ;;  %v3015_v5 = vmul.f32 %v3003_v3, %v2844_v4 }
 0xa3d   :  { %v8236_v63 = vpack.i.bf16 %v8232_v28, %v8224_v27  ;;  %v2847_v8 = vpop.f32.mrb[39].mxu1  ;;  %v2981_v36 = vpop.f32.mrb[29].mxu0  ;;  %v8238_v38 = vadd.f32 %v3035_v57, %v3014_v19  ;;  %v3016_v40 = vmul.f32 %v3008_v16, %v2979_v60 }
 0xa3e   :  { %6016 = vrot.lane.b32.xlu0 %v8228_v10, %s9336_s2  ;;  %v3017_v61 = vmul.f32 %v3008_v16, %v2981_v36  ;;  %4888 = vmatprep.subr.msk.bf16.mxu0 %vm7009_vm1, %v4887_v26  ;;  %v2983_v47 = vpop.f32.mrb[30].mxu0  ;;  %v8244_v7 = vadd.f32 %v3035_v57, %v3015_v5 }
 0xa3f   :  { %6021 = vrot.lane.b32.xlu1 %v8236_v63, %s9336_s2  ;;  %4891 = vmatpush1.bf16.msk.msra.mxu0 %vm7024_vm0, %v4890_v11  ;;  %v2984_v45 = vpop.f32.mrb[31].mxu0  ;;  %v3048_v50 = vadd.f32 %v3040_v32, %v3016_v40  ;;  %v3054_v35 = vmax.f32 %v8238_v38, 0.0 }
 0xa40   :  { %v3049_v39 = vadd.f32 %v3040_v32, %v3017_v61  ;;  %v3055_v1 = vmax.f32 %v8244_v7, 0.0 }
 0xa41   :  { %v3056_v15 = vmax.f32 %v3048_v50, 0.0  ;;  %v8324_v56 = vsel %vm190_vm15, %v3054_v35, 0.0 }
 0xa42   :  { %v3057_v12 = vmax.f32 %v3049_v39, 0.0  ;;  %v8328_v3 = vsel %vm191_vm9, %v3055_v1, 0.0 }
 0xa43   :  { %v4896_v24 = vpack.c.bf16 %v3056_v15, %v3054_v35  ;;  %v8313_v52 = vsel %vm190_vm15, %v3056_v15, 0.0 }
 0xa44   :  { %v4893_v62 = vpack.c.bf16 %v3057_v12, %v3055_v1  ;;  %v8317_v55 = vsel %vm191_vm9, %v3057_v12, 0.0  ;;  %v6220_v6 = vpack.i.bf16 %v8313_v52, %v8324_v56 }
 0xa45   :  { %v6230_v54 = vpack.i.bf16 %v8317_v55, %v8328_v3 }
 0xa46   :  { %4894 = vmatprep.subr.msk.bf16.mxu0 %vm7009_vm1, %v4893_v62 }
 0xa47   :  { %4897 = vmatpush1.bf16.msk.msra.mxu0 %vm7024_vm0, %v4896_v24 }
 0xa4a   :  { %4898 = vmatmul.mubr.msk.bf16.vlgmr.msra.gmra.mrb[32].mxu0 %vm880_vm14, %v3066_v44 }
 0xab0   :  { %v8344_v21 = vpop.permute.xlu0 %6016 }
 0xab1   :  { %v8346_v58 = vpop.permute.xlu1 %6021 }
 0xb1d   :  { %v8260_v46 = vpop.f32.mrb[32].mxu0 }
 0xb1e   :  { %v8262_v2 = vpop.f32.mrb[33].mxu0 }
 0xb1f   :  { %v3112_v33 = vpop.f32.mrb[34].mxu0  ;;  %v6030_v48 = vpack.i.bf16 %v8262_v2, %v8260_v46 }
 0xb20   :  { %v3113_v49 = vpop.f32.mrb[35].mxu0 }
 0xb21   :  { %6031 = vrot.lane.b32.xlu0 %v6030_v48, %s9420_s27  ;;  %6026 = vrot.lane.b32.xlu1 %v6030_v48, %s9421_s18 }
 0xb25   :  { %6041 = vrot.lane.b32.xlu0 %v6030_v48, %s9419_s17  ;;  %6036 = vrot.lane.b32.xlu1 %v6030_v48, %s9422_s11 }
 0xb29   :  { %6051 = vrot.lane.b32.xlu0 %v6030_v48, %s9324_s6  ;;  %6046 = vrot.lane.b32.xlu1 %v6030_v48, %s9325_s12 }
 0xb2d   :  { %6061 = vrot.lane.b32.xlu0 %v6030_v48, %s9423_s23  ;;  %6056 = vrot.lane.b32.xlu1 %v6030_v48, %s9379_s14 }
 0xb31   :  { %6071 = vrot.lane.b32.xlu0 %v6030_v48, %s9424_s30  ;;  %6066 = vrot.lane.b32.xlu1 %v6030_v48, %s9315_s21 }
 0xb35   :  { %6081 = vrot.lane.b32.xlu0 %v6030_v48, %s9328_s13  ;;  %6076 = vrot.lane.b32.xlu1 %v6030_v48, %s9329_s26  ;;  %s9524_s26 = smov 123  }
 0xb39   :  { %6091 = vrot.lane.b32.xlu0 %v6030_v48, %s9330_s28  ;;  %6086 = vrot.lane.b32.xlu1 %v6030_v48, %s9331_s3  ;;  %s9525_s28 = smov 124  }
 0xb3d   :  { %6101 = vrot.lane.b32.xlu0 %v6030_v48, %s9518_s15  ;;  %6096 = vrot.lane.b32.xlu1 %v6030_v48, %s9519_s25 }
 0xb41   :  { %6111 = vrot.lane.b32.xlu0 %v6030_v48, %s9520_s5  ;;  %6106 = vrot.lane.b32.xlu1 %v6030_v48, %s9521_s10  ;;  %s6566_s10 = smov 22   ;;  %s9530_s5 = smov 110  }
 0xb45   :  { %6121 = vrot.lane.b32.xlu0 %v6030_v48, %s9335_s4  ;;  %6116 = vrot.lane.b32.xlu1 %v6030_v48, %s9336_s2 }
 0xb49   :  { %6131 = vrot.lane.b32.xlu0 %v6030_v48, %s9522_s29  ;;  %6126 = vrot.lane.b32.xlu1 %v6030_v48, %s9523_s1  ;;  %s8299_s1 = sld [smem:[%s9082_s0 + %s6566_s10]]   ;;  %s9531_s10 = smov 109  }
 0xb4a   :  { %s6567_s29 = smov 24  }
 0xb4d   :  { %6141 = vrot.lane.b32.xlu0 %v6030_v48, %s9524_s26  ;;  %6136 = vrot.lane.b32.xlu1 %v6030_v48, %s9525_s28 }
 0xb4f   :  { %v6508_v9 = vld [vmem:[%s8299_s1 + $0x4] ss:$12 sps:$4 sm:$0xff]  }
 0xb50   :  { %3458 = vmatprep.mubr.bf16.mxu0 %v6508_v9 }
 0xb51   :  { %6151 = vrot.lane.b32.xlu0 %v6030_v48, %s9233_s19  ;;  %6146 = vrot.lane.b32.xlu1 %v6030_v48, %s9234_s20  ;;  %s9526_s19 = smov 116  }
 0xb55   :  { %6161 = vrot.lane.b32.xlu0 %v6030_v48, %s9430_s8  ;;  %6156 = vrot.lane.b32.xlu1 %v6030_v48, %s9431_s9  ;;  %s9527_s8 = smov 114  }
 0xb59   :  { %6171 = vrot.lane.b32.xlu0 %v6030_v48, %s9432_s24  ;;  %6166 = vrot.lane.b32.xlu1 %v6030_v48, %s9433_s7  ;;  %s9528_s24 = smov 111   ;;  %s9529_s7 = smov 112  }
 0xb5d   :  { %6181 = vrot.lane.b32.xlu0 %v6030_v48, %s9434_s22  ;;  %6176 = vrot.lane.b32.xlu1 %v6030_v48, %s9526_s19 }
 0xb61   :  { %6191 = vrot.lane.b32.xlu0 %v6030_v48, %s9436_s16  ;;  %6186 = vrot.lane.b32.xlu1 %v6030_v48, %s9527_s8  ;;  %s6569_s16 = smov 23  }
 0xb62   :  { %s4746_s8 = sld [smem:[%s9082_s0 + %s6569_s16]]  }
 0xb65   :  { %6201 = vrot.lane.b32.xlu0 %v6030_v48, %s9528_s24  ;;  %6196 = vrot.lane.b32.xlu1 %v6030_v48, %s9529_s7  ;;  %s4747_s24 = sld [smem:[%s9082_s0 + %s6567_s29]]   ;;  %s6583_s7 = smov 39  }
 0xb69   :  { %6216 = vrot.lane.b32.xlu0 %v8236_v63, %s9335_s4  ;;  %6206 = vrot.lane.b32.xlu1 %v6030_v48, %s9530_s5  ;;  %s6574_s5 = smov 30  }
 0xb6b   :  { %v3666_v51 = vld [vmem:[%s4747_s24 + $0x8] sm:$0xff]  ;;  %v3665_v34 = vld [vmem:[%s4747_s24] sm:$0xff]  ;;  %v3668_v53 = vld [vmem:[%s4747_s24 + $0x18] sm:$0xff] }
 0xb6c   :  { %v3667_v13 = vld [vmem:[%s4747_s24 + $0x10] sm:$0xff]  ;;  %s6570_s24 = smov 26  }
 0xb6d   :  { %6226 = vrot.lane.b32.xlu0 %v6030_v48, %s9531_s10  ;;  %6211 = vrot.lane.b32.xlu1 %v8228_v10, %s9335_s4  ;;  %s6568_s10 = smov 25  }
 0xb6e   :  { %s4748_s19 = sld [smem:[%s9082_s0 + %s6568_s10]]  }
 0xb6f   :  { %s4749_s10 = sld [smem:[%s9082_s0 + %s6570_s24]]   ;;  %s9626_s24 = smov 111  }
 0xb71   :  { %6231 = vrot.lane.b32.xlu0 %v6230_v54, %s9336_s2  ;;  %6221 = vrot.lane.b32.xlu1 %v6220_v6, %s9336_s2 }
 0xb74   :  { %v3698_v18 = vld [vmem:[%s4748_s19 + $0x8] sm:$0xff]  ;;  %v3697_v30 = vld [vmem:[%s4748_s19] sm:$0xff]  ;;  %v3700_v14 = vld [vmem:[%s4748_s19 + $0x18] sm:$0xff] }
 0xb75   :  { %6241 = vrot.lane.b32.xlu0 %v6230_v54, %s9335_s4  ;;  %6236 = vrot.lane.b32.xlu1 %v6220_v6, %s9335_s4  ;;  %v3699_v16 = vld [vmem:[%s4748_s19 + $0x10] sm:$0xff] }
 0xb79   :  { %3676 = vperm.xlu0 %5323, %v3666_v51   ;;  %3671 = vperm.xlu1 %5324, %v3665_v34  }
 0xb7d   :  { %3708 = vperm.xlu0 %5323, %v3698_v18   ;;  %3703 = vperm.xlu1 %5324, %v3697_v30  }
 0xb81   :  { %3686 = vperm.xlu0 %5323, %v3668_v53   ;;  %3681 = vperm.xlu1 %5324, %v3667_v13  }
 0xb85   :  { %3718 = vperm.xlu0 %5323, %v3700_v14   ;;  %3713 = vperm.xlu1 %5324, %v3699_v16  }
 0xb93   :  { %v6032_v20 = vpop.permute.xlu0 %6031  ;;  %v6027_v57 = vpop.permute.xlu1 %6026 }
 0xb94   :  { %v6034_v11 = vunpack.i.h.bf16 %v6032_v20  ;;  %v6033_v19 = vunpack.i.l.bf16 %v6032_v20  ;;  %v6029_v4 = vunpack.i.h.bf16 %v6027_v57  ;;  %v6028_v10 = vunpack.i.l.bf16 %v6027_v57 }
 0xb96   :  { %v3126_v26 = vsel %vm9532_vm7, %v6034_v11, %v6033_v19  ;;  %v3120_v29 = vsel %vm9533_vm5, %v6029_v4, %v6028_v10  ;;  %v3119_v60 = vsel %vm9534_vm3, %v6028_v10, %v6029_v4  ;;  %v3125_v63 = vsel %vm9535_vm2, %v6033_v19, %v6034_v11  ;;  %vm9539_vm3 = vmmov %vm9536_vm4 }
 0xb97   :  { %v6042_v5 = vpop.permute.xlu0 %6041  ;;  %v6037_v8 = vpop.permute.xlu1 %6036  ;;  %v3344_v36 = vpack.c.bf16 %v3125_v63, %v3119_v60  ;;  %v3343_v38 = vpack.c.bf16 %v3126_v26, %v3120_v29  ;;  %vm9537_vm7 = vcmp.lt.s32.totalorder %v6740_v23, 17  ;;  %vm9540_vm2 = vcmp.lt.s32.totalorder %v6740_v23, 14 }
 0xb98   :  { %v6044_v40 = vunpack.i.h.bf16 %v6042_v5  ;;  %v6043_v61 = vunpack.i.l.bf16 %v6042_v5  ;;  %v6039_v47 = vunpack.i.h.bf16 %v6037_v8  ;;  %v6038_v32 = vunpack.i.l.bf16 %v6037_v8  ;;  %vm9538_vm5 = vmmov %vm9537_vm7 }
 0xb99   :  { %3426 = vmatprep.subr.bf16.mxu0 %v3344_v36 }
 0xb9a   :  { %v3138_v7 = vsel %vm9536_vm4, %v6044_v40, %v6043_v61  ;;  %v3132_v45 = vsel %vm9537_vm7, %v6039_v47, %v6038_v32  ;;  %3427 = vmatpush1.bf16.msra.mxu0 %v3343_v38  ;;  %v3131_v50 = vsel %vm9538_vm5, %v6038_v32, %v6039_v47  ;;  %v3137_v39 = vsel %vm9539_vm3, %v6043_v61, %v6044_v40  ;;  %vm9543_vm5 = vmmov %vm9540_vm2 }
 0xb9b   :  { %v6052_v35 = vpop.permute.xlu0 %6051  ;;  %v6047_v1 = vpop.permute.xlu1 %6046  ;;  %v3346_v15 = vpack.c.bf16 %v3137_v39, %v3131_v50  ;;  %v3345_v12 = vpack.c.bf16 %v3138_v7, %v3132_v45  ;;  %vm9541_vm4 = vcmp.lt.s32.totalorder %v6740_v23, 15  ;;  %vm9544_vm3 = vcmp.lt.s32.totalorder %v6740_v23, 12 }
 0xb9c   :  { %v6054_v24 = vunpack.i.h.bf16 %v6052_v35  ;;  %v6053_v62 = vunpack.i.l.bf16 %v6052_v35  ;;  %v6049_v44 = vunpack.i.h.bf16 %v6047_v1  ;;  %v6048_v33 = vunpack.i.l.bf16 %v6047_v1  ;;  %vm9542_vm7 = vmmov %vm9541_vm4 }
 0xb9d   :  { %3428 = vmatprep.subr.bf16.mxu0 %v3346_v15 }
 0xb9e   :  { %v3150_v48 = vsel %vm9540_vm2, %v6054_v24, %v6053_v62  ;;  %v3144_v49 = vsel %vm9541_vm4, %v6049_v44, %v6048_v33  ;;  %3429 = vmatpush1.bf16.msra.mxu0 %v3345_v12  ;;  %v3143_v9 = vsel %vm9542_vm7, %v6048_v33, %v6049_v44  ;;  %v3149_v6 = vsel %vm9543_vm5, %v6053_v62, %v6054_v24  ;;  %vm9547_vm7 = vmmov %vm9544_vm3 }
 0xb9f   :  { %v6062_v54 = vpop.permute.xlu0 %6061  ;;  %v6057_v51 = vpop.permute.xlu1 %6056  ;;  %v3348_v34 = vpack.c.bf16 %v3149_v6, %v3143_v9  ;;  %v3347_v18 = vpack.c.bf16 %v3150_v48, %v3144_v49  ;;  %vm9545_vm2 = vcmp.lt.s32.totalorder %v6740_v23, 13  ;;  %vm9548_vm5 = vcmp.lt.s32.totalorder %v6740_v23, 10 }
 0xba0   :  { %v6064_v30 = vunpack.i.h.bf16 %v6062_v54  ;;  %v6063_v53 = vunpack.i.l.bf16 %v6062_v54  ;;  %v6059_v13 = vunpack.i.h.bf16 %v6057_v51  ;;  %v6058_v14 = vunpack.i.l.bf16 %v6057_v51  ;;  %vm9546_vm4 = vmmov %vm9545_vm2 }
 0xba1   :  { %3430 = vmatprep.subr.bf16.mxu0 %v3348_v34 }
 0xba2   :  { %v3162_v16 = vsel %vm9544_vm3, %v6064_v30, %v6063_v53  ;;  %v3156_v20 = vsel %vm9545_vm2, %v6059_v13, %v6058_v14  ;;  %3431 = vmatpush1.bf16.msra.mxu0 %v3347_v18  ;;  %v3155_v57 = vsel %vm9546_vm4, %v6058_v14, %v6059_v13  ;;  %v3161_v11 = vsel %vm9547_vm7, %v6063_v53, %v6064_v30  ;;  %vm9551_vm4 = vmmov %vm9548_vm5 }
 0xba3   :  { %v6072_v19 = vpop.permute.xlu0 %6071  ;;  %v6067_v4 = vpop.permute.xlu1 %6066  ;;  %v3350_v10 = vpack.c.bf16 %v3161_v11, %v3155_v57  ;;  %v3349_v26 = vpack.c.bf16 %v3162_v16, %v3156_v20  ;;  %vm9549_vm3 = vcmp.lt.s32.totalorder %v6740_v23, 11  ;;  %vm9552_vm7 = vcmp.lt.s32.totalorder %v6740_v23, 8 }
 0xba4   :  { %v6074_v29 = vunpack.i.h.bf16 %v6072_v19  ;;  %v6073_v60 = vunpack.i.l.bf16 %v6072_v19  ;;  %v6069_v63 = vunpack.i.h.bf16 %v6067_v4  ;;  %v6068_v5 = vunpack.i.l.bf16 %v6067_v4  ;;  %vm9550_vm2 = vmmov %vm9549_vm3 }
 0xba5   :  { %3432 = vmatprep.subr.bf16.mxu0 %v3350_v10 }
 0xba6   :  { %v3174_v8 = vsel %vm9548_vm5, %v6074_v29, %v6073_v60  ;;  %v3168_v36 = vsel %vm9549_vm3, %v6069_v63, %v6068_v5  ;;  %3433 = vmatpush1.bf16.msra.mxu0 %v3349_v26  ;;  %v3167_v38 = vsel %vm9550_vm2, %v6068_v5, %v6069_v63  ;;  %v3173_v40 = vsel %vm9551_vm4, %v6073_v60, %v6074_v29  ;;  %vm9555_vm2 = vmmov %vm9552_vm7 }
 0xba7   :  { %v6082_v61 = vpop.permute.xlu0 %6081  ;;  %v6077_v47 = vpop.permute.xlu1 %6076  ;;  %v3352_v32 = vpack.c.bf16 %v3173_v40, %v3167_v38  ;;  %v3351_v7 = vpack.c.bf16 %v3174_v8, %v3168_v36  ;;  %vm9553_vm5 = vcmp.lt.s32.totalorder %v6740_v23, 9  ;;  %vm9556_vm4 = vcmp.lt.s32.totalorder %v6740_v23, 6 }
 0xba8   :  { %v6084_v45 = vunpack.i.h.bf16 %v6082_v61  ;;  %v6083_v50 = vunpack.i.l.bf16 %v6082_v61  ;;  %v6079_v39 = vunpack.i.h.bf16 %v6077_v47  ;;  %v6078_v35 = vunpack.i.l.bf16 %v6077_v47  ;;  %vm9554_vm3 = vmmov %vm9553_vm5 }
 0xba9   :  { %3434 = vmatprep.subr.bf16.mxu0 %v3352_v32 }
 0xbaa   :  { %v3186_v1 = vsel %vm9552_vm7, %v6084_v45, %v6083_v50  ;;  %v3180_v15 = vsel %vm9553_vm5, %v6079_v39, %v6078_v35  ;;  %3435 = vmatpush1.bf16.msra.mxu0 %v3351_v7  ;;  %v3179_v12 = vsel %vm9554_vm3, %v6078_v35, %v6079_v39  ;;  %v3185_v24 = vsel %vm9555_vm2, %v6083_v50, %v6084_v45  ;;  %vm9559_vm3 = vmmov %vm9556_vm4 }
 0xbab   :  { %v6092_v62 = vpop.permute.xlu0 %6091  ;;  %v6087_v44 = vpop.permute.xlu1 %6086  ;;  %v3354_v33 = vpack.c.bf16 %v3185_v24, %v3179_v12  ;;  %v3353_v48 = vpack.c.bf16 %v3186_v1, %v3180_v15  ;;  %vm9557_vm7 = vcmp.lt.s32.totalorder %v6740_v23, 7  ;;  %vm9560_vm2 = vcmp.lt.s32.totalorder %v6740_v23, 4 }
 0xbac   :  { %v6094_v49 = vunpack.i.h.bf16 %v6092_v62  ;;  %v6093_v9 = vunpack.i.l.bf16 %v6092_v62  ;;  %v6089_v6 = vunpack.i.h.bf16 %v6087_v44  ;;  %v6088_v54 = vunpack.i.l.bf16 %v6087_v44  ;;  %vm9558_vm5 = vmmov %vm9557_vm7 }
 0xbad   :  { %3436 = vmatprep.subr.bf16.mxu0 %v3354_v33 }
 0xbae   :  { %v3198_v51 = vsel %vm9556_vm4, %v6094_v49, %v6093_v9  ;;  %v3192_v34 = vsel %vm9557_vm7, %v6089_v6, %v6088_v54  ;;  %3437 = vmatpush1.bf16.msra.mxu0 %v3353_v48  ;;  %v3191_v18 = vsel %vm9558_vm5, %v6088_v54, %v6089_v6  ;;  %v3197_v30 = vsel %vm9559_vm3, %v6093_v9, %v6094_v49  ;;  %vm9563_vm5 = vmmov %vm9560_vm2 }
 0xbaf   :  { %v6102_v53 = vpop.permute.xlu0 %6101  ;;  %v6097_v13 = vpop.permute.xlu1 %6096  ;;  %v3356_v14 = vpack.c.bf16 %v3197_v30, %v3191_v18  ;;  %v3355_v16 = vpack.c.bf16 %v3198_v51, %v3192_v34  ;;  %vm9561_vm4 = vcmp.lt.s32.totalorder %v6740_v23, 5  ;;  %vm9564_vm3 = vcmp.lt.s32.totalorder %v6740_v23, 2 }
 0xbb0   :  { %v6104_v20 = vunpack.i.h.bf16 %v6102_v53  ;;  %v6103_v57 = vunpack.i.l.bf16 %v6102_v53  ;;  %v6099_v11 = vunpack.i.h.bf16 %v6097_v13  ;;  %v6098_v19 = vunpack.i.l.bf16 %v6097_v13  ;;  %vm9562_vm7 = vmmov %vm9561_vm4 }
 0xbb1   :  { %3438 = vmatprep.subr.bf16.mxu0 %v3356_v14 }
 0xbb2   :  { %v3210_v4 = vsel %vm9560_vm2, %v6104_v20, %v6103_v57  ;;  %v3204_v10 = vsel %vm9561_vm4, %v6099_v11, %v6098_v19  ;;  %3439 = vmatpush1.bf16.msra.mxu0 %v3355_v16  ;;  %v3203_v26 = vsel %vm9562_vm7, %v6098_v19, %v6099_v11  ;;  %v3209_v29 = vsel %vm9563_vm5, %v6103_v57, %v6104_v20  ;;  %vm9567_vm7 = vmmov %vm9564_vm3 }
 0xbb3   :  { %v6112_v60 = vpop.permute.xlu0 %6111  ;;  %v6107_v63 = vpop.permute.xlu1 %6106  ;;  %v3358_v5 = vpack.c.bf16 %v3209_v29, %v3203_v26  ;;  %v3357_v8 = vpack.c.bf16 %v3210_v4, %v3204_v10  ;;  %vm9565_vm2 = vcmp.lt.s32.totalorder %v6740_v23, 3  ;;  %vm9568_vm5 = vcmp.lt.s32.totalorder %v6740_v23, 126 }
 0xbb4   :  { %v6114_v36 = vunpack.i.h.bf16 %v6112_v60  ;;  %v6113_v38 = vunpack.i.l.bf16 %v6112_v60  ;;  %v6109_v40 = vunpack.i.h.bf16 %v6107_v63  ;;  %v6108_v61 = vunpack.i.l.bf16 %v6107_v63  ;;  %vm9566_vm4 = vmmov %vm9565_vm2 }
 0xbb5   :  { %3440 = vmatprep.subr.bf16.mxu0 %v3358_v5 }
 0xbb6   :  { %v3222_v47 = vsel %vm9564_vm3, %v6114_v36, %v6113_v38  ;;  %v3216_v32 = vsel %vm9565_vm2, %v6109_v40, %v6108_v61  ;;  %3441 = vmatpush1.bf16.msra.mxu0 %v3357_v8  ;;  %v3215_v7 = vsel %vm9566_vm4, %v6108_v61, %v6109_v40  ;;  %v3221_v45 = vsel %vm9567_vm7, %v6113_v38, %v6114_v36  ;;  %vm9569_vm3 = vmmov %vm9568_vm5 }
 0xbb7   :  { %v6122_v50 = vpop.permute.xlu0 %6121  ;;  %v6117_v39 = vpop.permute.xlu1 %6116  ;;  %v3360_v35 = vpack.c.bf16 %v3221_v45, %v3215_v7  ;;  %v3359_v1 = vpack.c.bf16 %v3222_v47, %v3216_v32  ;;  %vm9570_vm2 = vcmp.lt.s32.totalorder %v6740_v23, 125  ;;  %vm9572_vm7 = vcmp.lt.s32.totalorder %v6740_v23, 124 }
 0xbb8   :  { %v6119_v15 = vunpack.i.h.bf16 %v6117_v39  ;;  %v6118_v12 = vunpack.i.l.bf16 %v6117_v39  ;;  %v6124_v24 = vunpack.i.h.bf16 %v6122_v50  ;;  %v6123_v62 = vunpack.i.l.bf16 %v6122_v50  ;;  %vm9571_vm4 = vmmov %vm9570_vm2 }
 0xbb9   :  { %3442 = vmatprep.subr.bf16.mxu0 %v3360_v35 }
 0xbba   :  { %v3228_v44 = vsel %vm381_vm10, %v6119_v15, %v6118_v12  ;;  %3443 = vmatpush1.bf16.msra.mxu0 %v3359_v1  ;;  %v3227_v33 = vsel %vm381_vm10, %v6118_v12, %v6119_v15  ;;  %v3233_v30 = vsel %vm388_vm13, %v6123_v62, %v6124_v24  ;;  %v3234_v13 = vsel %vm388_vm13, %v6124_v24, %v6123_v62 }
 0xbbb   :  { %v6132_v48 = vpop.permute.xlu0 %6131  ;;  %v6127_v49 = vpop.permute.xlu1 %6126  ;;  %v3362_v9 = vpack.c.bf16 %v8262_v2, %v3227_v33  ;;  %v3361_v6 = vpack.c.bf16 %v8260_v46, %v3228_v44 }
 0xbbc   :  { %v6129_v54 = vunpack.i.h.bf16 %v6127_v49  ;;  %v6128_v51 = vunpack.i.l.bf16 %v6127_v49  ;;  %v6134_v34 = vunpack.i.h.bf16 %v6132_v48  ;;  %v6133_v18 = vunpack.i.l.bf16 %v6132_v48 }
 0xbbd   :  { %3444 = vmatprep.subr.bf16.mxu0 %v3362_v9 }
 0xbbe   :  { %v3239_v53 = vsel %vm9568_vm5, %v6128_v51, %v6129_v54  ;;  %3445 = vmatpush1.bf16.msra.mxu0 %v3361_v6  ;;  %v3240_v2 = vsel %vm9569_vm3, %v6129_v54, %v6128_v51  ;;  %v3245_v19 = vsel %vm9570_vm2, %v6133_v18, %v6134_v34  ;;  %v3246_v4 = vsel %vm9571_vm4, %v6134_v34, %v6133_v18  ;;  %vm9573_vm5 = vmmov %vm9572_vm7 }
 0xbbf   :  { %v6142_v14 = vpop.permute.xlu0 %6141  ;;  %v6137_v46 = vpop.permute.xlu1 %6136  ;;  %v3364_v16 = vpack.c.bf16 %v3240_v2, %v3234_v13  ;;  %v3363_v20 = vpack.c.bf16 %v3239_v53, %v3233_v30  ;;  %vm9574_vm3 = vcmp.lt.s32.totalorder %v6740_v23, 123  ;;  %vm9575_vm2 = vcmp.lt.s32.totalorder %v6740_v23, 122 }
 0xbc0   :  { %v6139_v57 = vunpack.i.h.bf16 %v6137_v46  ;;  %v6138_v11 = vunpack.i.l.bf16 %v6137_v46  ;;  %v6144_v10 = vunpack.i.h.bf16 %v6142_v14  ;;  %v6143_v26 = vunpack.i.l.bf16 %v6142_v14  ;;  %vm9576_vm4 = vmmov %vm9574_vm3 }
 0xbc1   :  { %3446 = vmatprep.subr.bf16.mxu0 %v3364_v16 }
 0xbc2   :  { %v3251_v29 = vsel %vm9572_vm7, %v6138_v11, %v6139_v57  ;;  %3447 = vmatpush1.bf16.msra.mxu0 %v3363_v20  ;;  %v3252_v60 = vsel %vm9573_vm5, %v6139_v57, %v6138_v11  ;;  %v3257_v32 = vsel %vm9574_vm3, %v6143_v26, %v6144_v10  ;;  %v3258_v45 = vsel %vm9576_vm4, %v6144_v10, %v6143_v26  ;;  %vm9577_vm7 = vmmov %vm9575_vm2 }
 0xbc3   :  { %v6152_v63 = vpop.permute.xlu0 %6151  ;;  %v6147_v5 = vpop.permute.xlu1 %6146  ;;  %v3366_v8 = vpack.c.bf16 %v3252_v60, %v3246_v4  ;;  %v3365_v36 = vpack.c.bf16 %v3251_v29, %v3245_v19  ;;  %vm9578_vm5 = vcmp.lt.s32.totalorder %v6740_v23, 121  ;;  %v6018_v26 = vunpack.i.l.bf16 %v8344_v21 }
 0xbc4   :  { %v6149_v38 = vunpack.i.h.bf16 %v6147_v5  ;;  %v6148_v40 = vunpack.i.l.bf16 %v6147_v5  ;;  %v6154_v61 = vunpack.i.h.bf16 %v6152_v63  ;;  %v6153_v47 = vunpack.i.l.bf16 %v6152_v63  ;;  %vm9579_vm3 = vmmov %vm9578_vm5 }
 0xbc5   :  { %3448 = vmatprep.subr.bf16.mxu0 %v3366_v8  ;;  %v6023_v29 = vunpack.i.l.bf16 %v8346_v58 }
 0xbc6   :  { %v3263_v7 = vsel %vm9575_vm2, %v6148_v40, %v6149_v38  ;;  %3449 = vmatpush1.bf16.msra.mxu0 %v3365_v36  ;;  %v3264_v50 = vsel %vm9577_vm7, %v6149_v38, %v6148_v40  ;;  %v3269_v62 = vsel %vm9578_vm5, %v6153_v47, %v6154_v61  ;;  %v3270_v44 = vsel %vm9579_vm3, %v6154_v61, %v6153_v47  ;;  %v8477_v40 = vld [vmem:[%s8299_s1 + $0x18] sm:$0xff] }
 0xbc7   :  { %v6162_v39 = vpop.permute.xlu0 %6161  ;;  %v6157_v35 = vpop.permute.xlu1 %6156  ;;  %v3368_v1 = vpack.c.bf16 %v3264_v50, %v3258_v45  ;;  %v3367_v15 = vpack.c.bf16 %v3263_v7, %v3257_v32  ;;  %vm9580_vm2 = vcmp.lt.s32.totalorder %v6740_v23, 120  ;;  %vm9582_vm7 = vcmp.lt.s32.totalorder %v6740_v23, 119 }
 0xbc8   :  { %v6159_v12 = vunpack.i.h.bf16 %v6157_v35  ;;  %v6158_v24 = vunpack.i.l.bf16 %v6157_v35  ;;  %v6164_v33 = vunpack.i.h.bf16 %v6162_v39  ;;  %v6163_v48 = vunpack.i.l.bf16 %v6162_v39  ;;  %vm9581_vm4 = vmmov %vm9580_vm2 }
 0xbc9   :  { %3450 = vmatprep.subr.bf16.mxu0 %v3368_v1  ;;  %vm9583_vm5 = vcmp.lt.s32.totalorder %v6740_v23, 118  ;;  %vm9584_vm3 = vmmov %vm9582_vm7  ;;  %v6019_v45 = vunpack.i.h.bf16 %v8344_v21  ;;  %v6024_v50 = vunpack.i.h.bf16 %v8346_v58  ;;  %v3548_v1 = vsel %vm381_vm10, %v6023_v29, %v6018_v26 }
 0xbca   :  { %v3275_v49 = vsel %vm9580_vm2, %v6158_v24, %v6159_v12  ;;  %3451 = vmatpush1.bf16.msra.mxu0 %v3367_v15  ;;  %v3276_v9 = vsel %vm9581_vm4, %v6159_v12, %v6158_v24  ;;  %v3281_v2 = vsel %vm9582_vm7, %v6163_v48, %v6164_v33  ;;  %v3282_v46 = vsel %vm9584_vm3, %v6164_v33, %v6163_v48  ;;  %vm9585_vm2 = vmmov %vm9583_vm5  ;;  %v6506_v24 = vld [vmem:[%s8299_s1] ss:$12 sps:$4 sm:$0xff]  }
 0xbcb   :  { %v6172_v6 = vpop.permute.xlu0 %6171  ;;  %v6167_v54 = vpop.permute.xlu1 %6166  ;;  %v3370_v51 = vpack.c.bf16 %v3276_v9, %v3270_v44  ;;  %v3369_v34 = vpack.c.bf16 %v3275_v49, %v3269_v62  ;;  %vm9586_vm4 = vcmp.lt.s32.totalorder %v6740_v23, 117  ;;  %v4903_v62 = vcombine.high %v8477_v40, %v8477_v40 }
 0xbcc   :  { %v6169_v18 = vunpack.i.h.bf16 %v6167_v54  ;;  %v6168_v30 = vunpack.i.l.bf16 %v6167_v54  ;;  %v6174_v53 = vunpack.i.h.bf16 %v6172_v6  ;;  %v6173_v13 = vunpack.i.l.bf16 %v6172_v6  ;;  %vm9587_vm7 = vmmov %vm9586_vm4 }
 0xbcd   :  { %3452 = vmatprep.subr.bf16.mxu0 %v3370_v51  ;;  %v3544_v54 = vsel %vm381_vm10, %v6018_v26, %v6023_v29  ;;  %v3545_v51 = vsel %vm381_vm10, %v6019_v45, %v6024_v50 }
 0xbce   :  { %v3287_v14 = vsel %vm9583_vm5, %v6168_v30, %v6169_v18  ;;  %3453 = vmatpush1.bf16.msra.mxu0 %v3369_v34  ;;  %v3288_v16 = vsel %vm9585_vm2, %v6169_v18, %v6168_v30  ;;  %v3293_v60 = vsel %vm9586_vm4, %v6173_v13, %v6174_v53  ;;  %v3294_v63 = vsel %vm9587_vm7, %v6174_v53, %v6173_v13 }
 0xbcf   :  { %v6182_v20 = vpop.permute.xlu0 %6181  ;;  %v6177_v57 = vpop.permute.xlu1 %6176  ;;  %v3372_v11 = vpack.c.bf16 %v3288_v16, %v3282_v46  ;;  %v3371_v19 = vpack.c.bf16 %v3287_v14, %v3281_v2  ;;  %vm9588_vm5 = vcmp.lt.s32.totalorder %v6740_v23, 116  ;;  %vm9590_vm2 = vcmp.lt.s32.totalorder %v6740_v23, 115 }
 0xbd0   :  { %v6179_v4 = vunpack.i.h.bf16 %v6177_v57  ;;  %v6178_v10 = vunpack.i.l.bf16 %v6177_v57  ;;  %v6184_v5 = vunpack.i.h.bf16 %v6182_v20  ;;  %v6183_v8 = vunpack.i.l.bf16 %v6182_v20  ;;  %vm9589_vm3 = vmmov %vm9588_vm5 }
 0xbd1   :  { %3454 = vmatprep.subr.bf16.mxu0 %v3372_v11  ;;  %vm9591_vm4 = vcmp.lt.s32.totalorder %v6740_v23, 114  ;;  %vm9592_vm7 = vmmov %vm9590_vm2  ;;  %v3549_v30 = vsel %vm381_vm10, %v6024_v50, %v6019_v45  ;;  %v3552_v53 = vsel %vm704_vm6, %v3548_v1, -3.4028235e+38 }
 0xbd2   :  { %v3299_v36 = vsel %vm9588_vm5, %v6178_v10, %v6179_v4  ;;  %3455 = vmatpush1.bf16.msra.mxu0 %v3371_v19  ;;  %v3300_v38 = vsel %vm9589_vm3, %v6179_v4, %v6178_v10  ;;  %v3305_v44 = vsel %vm9590_vm2, %v6183_v8, %v6184_v5  ;;  %v3306_v58 = vsel %vm9592_vm7, %v6184_v5, %v6183_v8  ;;  %vm9593_vm5 = vmmov %vm9591_vm4 }
 0xbd3   :  { %v6192_v61 = vpop.permute.xlu0 %6191  ;;  %v6187_v47 = vpop.permute.xlu1 %6186  ;;  %v3374_v32 = vpack.c.bf16 %v3300_v38, %v3294_v63  ;;  %v3373_v7 = vpack.c.bf16 %v3299_v36, %v3293_v60  ;;  %vm9594_vm3 = vcmp.lt.s32.totalorder %v6740_v23, 113  ;;  %v3553_v10 = vsel %vm705_vm12, %v3544_v54, -3.4028235e+38 }
 0xbd4   :  { %v6189_v39 = vunpack.i.h.bf16 %v6187_v47  ;;  %v6188_v35 = vunpack.i.l.bf16 %v6187_v47  ;;  %v6194_v15 = vunpack.i.h.bf16 %v6192_v61  ;;  %v6193_v12 = vunpack.i.l.bf16 %v6192_v61  ;;  %vm9595_vm2 = vmmov %vm9594_vm3 }
 0xbd5   :  { %3456 = vmatprep.subr.bf16.mxu0 %v3374_v32  ;;  %v3554_v60 = vsel %vm704_vm6, %v3549_v30, -3.4028235e+38  ;;  %v3555_v63 = vsel %vm705_vm12, %v3545_v51, -3.4028235e+38  ;;  %v3592_v5 = vmax.f32 %v3552_v53, %v8216_v22  ;;  %v4902_v8 = vcombine.low %v8477_v40, %v8477_v40 }
 0xbd6   :  { %v3311_v21 = vsel %vm9591_vm4, %v6188_v35, %v6189_v39  ;;  %3457 = vmatpush1.bf16.msra.mxu0 %v3373_v7  ;;  %v3312_v33 = vsel %vm9593_vm5, %v6189_v39, %v6188_v35  ;;  %v3317_v13 = vsel %vm9594_vm3, %v6193_v12, %v6194_v15  ;;  %v3318_v2 = vsel %vm9595_vm2, %v6194_v15, %v6193_v12 }
 0xbd7   :  { %v3375_v48 = vpack.c.bf16 %v3311_v21, %v3305_v44  ;;  %v6202_v49 = vpop.permute.xlu0 %6201  ;;  %v6197_v9 = vpop.permute.xlu1 %6196  ;;  %v3376_v6 = vpack.c.bf16 %v3312_v33, %v3306_v58  ;;  %vm9596_vm4 = vcmp.lt.s32.totalorder %v6740_v23, 112  ;;  %vm9598_vm5 = vcmp.lt.s32.totalorder %v6740_v23, 110 }
 0xbd8   :  { %v6199_v34 = vunpack.i.h.bf16 %v6197_v9  ;;  %v6198_v18 = vunpack.i.l.bf16 %v6197_v9  ;;  %v6204_v14 = vunpack.i.h.bf16 %v6202_v49  ;;  %v6203_v46 = vunpack.i.l.bf16 %v6202_v49  ;;  %vm9597_vm7 = vmmov %vm9596_vm4 }
 0xbd9   :  { %3459 = vmatmul.mubr.bf16.vlgmr.msra.gmra.mrb[36].mxu0 %v6506_v24  ;;  %3477 = vmatprep.subr.bf16.mxu0 %v3376_v6  ;;  %vm9599_vm3 = vmmov %vm9598_vm5  ;;  %v3593_v12 = vmax.f32 %v3553_v10, %v8224_v27  ;;  %v3594_v24 = vmax.f32 %v3554_v60, %v8220_v25  ;;  %vm9600_vm2 = vcmp.lt.s32.totalorder %v6740_v23, 109 }
 0xbda   :  { %v3323_v16 = vsel %vm9596_vm4, %v6198_v18, %v6199_v34  ;;  %3478 = vmatpush1.bf16.msra.mxu0 %v3375_v48  ;;  %v3324_v20 = vsel %vm9597_vm7, %v6199_v34, %v6198_v18  ;;  %3468 = vmatprep.mubr.bf16.mxu0 %v4903_v62  ;;  %v3329_v36 = vsel %vm500_vm11, %v6203_v46, %v6204_v14  ;;  %vm9601_vm4 = vcmp.le.s32.totalorder %v6740_v23, 62 }
 0xbdb   :  { %v3377_v57 = vpack.c.bf16 %v3323_v16, %v3317_v13  ;;  %v6217_v11 = vpop.permute.xlu0 %6216  ;;  %v6207_v19 = vpop.permute.xlu1 %6206  ;;  %v3378_v4 = vpack.c.bf16 %v3324_v20, %v3318_v2  ;;  %v3330_v61 = vsel %vm500_vm11, %v6204_v14, %v6203_v46  ;;  %v3595_v62 = vmax.f32 %v3555_v63, %v8232_v28 }
 0xbdc   :  { %v6209_v26 = vunpack.i.h.bf16 %v6207_v19  ;;  %v6208_v29 = vunpack.i.l.bf16 %v6207_v19  ;;  %v6219_v32 = vunpack.i.h.bf16 %v6217_v11  ;;  %v6218_v7 = vunpack.i.l.bf16 %v6217_v11 }
 0xbdd   :  { %3479 = vmatprep.subr.bf16.mxu0 %v3378_v4  ;;  %vm9602_vm7 = vcmp.le.s32.totalorder %v6917_v59, 62 }
 0xbde   :  { %v3335_v38 = vsel %vm9598_vm5, %v6208_v29, %v6209_v26  ;;  %3480 = vmatpush1.bf16.msra.mxu0 %v3377_v57  ;;  %v3336_v47 = vsel %vm9599_vm3, %v6209_v26, %v6208_v29  ;;  %vm9603_vm5 = vmmov %vm9601_vm4 }
 0xbdf   :  { %v3379_v22 = vpack.c.bf16 %v3335_v38, %v3329_v36  ;;  %v6227_v45 = vpop.permute.xlu0 %6226  ;;  %v6212_v50 = vpop.permute.xlu1 %6211  ;;  %v3380_v39 = vpack.c.bf16 %v3336_v47, %v3330_v61  ;;  %vm9604_vm3 = vmmov %vm9602_vm7 }
 0xbe0   :  { %v6229_v40 = vunpack.i.h.bf16 %v6227_v45  ;;  %v6228_v35 = vunpack.i.l.bf16 %v6227_v45  ;;  %v6214_v1 = vunpack.i.h.bf16 %v6212_v50  ;;  %v6213_v15 = vunpack.i.l.bf16 %v6212_v50 }
 0xbe1   :  { %3469 = vmatmul.mubr.bf16.gmra.mrb[40].mxu0 %v4902_v8  ;;  %3481 = vmatprep.subr.bf16.mxu0 %v3380_v39 }
 0xbe2   :  { %v3342_v44 = vsel %vm9600_vm2, %v6229_v40, %v6228_v35  ;;  %v3577_v21 = vsel %vm388_vm13, %v6214_v1, %v6219_v32  ;;  %v3581_v58 = vsel %vm388_vm13, %v6219_v32, %v6214_v1  ;;  %v3576_v33 = vsel %vm388_vm13, %v6213_v15, %v6218_v7  ;;  %3482 = vmatpush1.bf16.msra.mxu0 %v3379_v22  ;;  %v6511_v32 = vld [vmem:[%s8299_s1 + $0x8] ss:$12 sps:$4 sm:$0xff]  }
 0xbe3   :  { %v3382_v27 = vpack.c.bf16 %v3342_v44, %v3342_v44  ;;  %v3586_v25 = vsel %vm9601_vm4, %v3577_v21, -3.4028235e+38  ;;  %v3587_v28 = vsel %vm9602_vm7, %v3581_v58, -3.4028235e+38  ;;  %v3580_v48 = vsel %vm388_vm13, %v6218_v7, %v6213_v15  ;;  %v6232_v49 = vpop.permute.xlu0 %6231  ;;  %v6222_v9 = vpop.permute.xlu1 %6221  ;;  %3509 = vmatprep.mubr.bf16.mxu0 %v6522_v0  ;;  %vm9605_vm7 = vmmov %vm9604_vm3 }
 0xbe4   :  { %v3602_v6 = vmax.f32 %v3594_v24, %v3586_v25  ;;  %v3603_v54 = vmax.f32 %v3595_v62, %v3587_v28  ;;  %v3584_v51 = vsel %vm9603_vm5, %v3576_v33, -3.4028235e+38  ;;  %v3585_v34 = vsel %vm9604_vm3, %v3580_v48, -3.4028235e+38  ;;  %vm9606_vm5 = vmmov %vm9601_vm4  ;;  %v6512_v33 = vld [vmem:[%s8299_s1 + $0x20] ss:$0 sps:$4 sm:$0xff]  }
 0xbe5   :  { %v3600_v18 = vmax.f32 %v3592_v5, %v3584_v51  ;;  %v3601_v30 = vmax.f32 %v3593_v12, %v3585_v34  ;;  %v6234_v53 = vunpack.i.h.bf16 %v6232_v49  ;;  %v6233_v13 = vunpack.i.l.bf16 %v6232_v49  ;;  %4905 = vmatprep.subr.msk.bf16.mxu0 %vm595_vm8, %v3382_v27  ;;  %v3616_v27 = vld [vmem:[%s4746_s8] sm:$0xf]  ;;  %s9627_s1 = smov 112  }
 0xbe6   :  { %v6224_v2 = vunpack.i.h.bf16 %v6222_v9  ;;  %v6223_v14 = vunpack.i.l.bf16 %v6222_v9  ;;  %v3341_v46 = vsel %vm9600_vm2, %v6228_v35, %v6229_v40  ;;  %vm9607_vm2 = vcmask 457728  }
 0xbe7   :  { %v4912_v16 = vpack.c.bf16 %v3602_v6, %v3600_v18  ;;  %v3381_v20 = vpack.c.bf16 %v3341_v46, %v3341_v46  ;;  %v6242_v57 = vpop.permute.xlu0 %6241  ;;  %v4909_v11 = vpack.c.bf16 %v3603_v54, %v3601_v30  ;;  %v6237_v29 = vpop.permute.xlu1 %6236 }
 0xbe8   :  { %v3547_v19 = vsel %vm381_vm10, %v6224_v2, %v6234_v53  ;;  %v3551_v4 = vsel %vm381_vm10, %v6234_v53, %v6224_v2  ;;  %v3546_v10 = vsel %vm381_vm10, %v6223_v14, %v6233_v13  ;;  %v3550_v26 = vsel %vm381_vm10, %v6233_v13, %v6223_v14 }
 0xbe9   :  { %v3558_v60 = vsel %vm704_vm6, %v3551_v4, -3.4028235e+38  ;;  %v3559_v63 = vsel %vm705_vm12, %v3547_v19, -3.4028235e+38  ;;  %v6244_v5 = vunpack.i.h.bf16 %v6242_v57  ;;  %4910 = vmatprep.subr.msk.bf16.mxu1 %vm7009_vm1, %v4909_v11  ;;  %v3556_v8 = vsel %vm704_vm6, %v3550_v26, -3.4028235e+38 }
 0xbea   :  { %v3557_v36 = vsel %vm705_vm12, %v3546_v10, -3.4028235e+38  ;;  %4913 = vmatpush1.bf16.msk.msra.mxu1 %vm7024_vm0, %v4912_v16  ;;  %v3421_v38 = vsel %vm595_vm8, %v3381_v20, 0  ;;  %v6243_v61 = vunpack.i.l.bf16 %v6242_v57  ;;  %v6239_v47 = vunpack.i.h.bf16 %v6237_v29 }
 0xbeb   :  { %v3598_v7 = vmax.f32 %v3558_v60, %v8313_v52  ;;  %v3599_v22 = vmax.f32 %v3559_v63, %v8317_v55  ;;  %3484 = vmatpush1.bf16.msra.mxu0 %v3421_v38  ;;  %v6238_v45 = vunpack.i.l.bf16 %v6237_v29  ;;  %v3596_v50 = vmax.f32 %v3556_v8, %v8324_v56 }
 0xbec   :  { %v3597_v39 = vmax.f32 %v3557_v36, %v8328_v3  ;;  %v3579_v40 = vsel %vm388_vm13, %v6239_v47, %v6244_v5  ;;  %v3583_v35 = vsel %vm388_vm13, %v6244_v5, %v6239_v47 }
 0xbed   :  { %v3590_v52 = vsel %vm9601_vm4, %v3579_v40, -3.4028235e+38  ;;  %v3591_v55 = vsel %vm9605_vm7, %v3583_v35, -3.4028235e+38  ;;  %v3578_v56 = vsel %vm388_vm13, %v6238_v45, %v6243_v61  ;;  %v3582_v3 = vsel %vm388_vm13, %v6243_v61, %v6238_v45  ;;  %vm9608_vm4 = vmmov %vm9607_vm2 }
 0xbee   :  { %v3588_v1 = vsel %vm9606_vm5, %v3578_v56, -3.4028235e+38  ;;  %v3589_v15 = vsel %vm9604_vm3, %v3582_v3, -3.4028235e+38  ;;  %v3606_v12 = vmax.f32 %v3598_v7, %v3590_v52  ;;  %v3607_v24 = vmax.f32 %v3599_v22, %v3591_v55  ;;  %4906 = vmatmul.mubr.msk.bf16.vlgmr.msra.gmra.mrb[36].mxu0 %vm9607_vm2, %v6511_v32  ;;  %vm9609_vm7 = vmmov %vm9606_vm5 }
 0xbef   :  { %v3604_v62 = vmax.f32 %v3596_v50, %v3588_v1  ;;  %v3605_v44 = vmax.f32 %v3597_v39, %v3589_v15  ;;  %3519 = vmatprep.mubr.bf16.mxu0 %v6522_v0  ;;  %vm9610_vm5 = vmmov %vm9604_vm3 }
 0xbf0   :  { %vm9611_vm3 = vmmov %vm9609_vm7 }
 0xbf1   :  { %v4918_v21 = vpack.c.bf16 %v3606_v12, %v3604_v62  ;;  %v4915_v58 = vpack.c.bf16 %v3607_v24, %v3605_v44  ;;  %vm9612_vm2 = vmmov %vm9610_vm5 }
 0xbf3   :  { %4916 = vmatprep.subr.msk.bf16.mxu1 %vm7009_vm1, %v4915_v58 }
 0xbf4   :  { %4919 = vmatpush1.bf16.msk.msra.mxu1 %vm7024_vm0, %v4918_v21 }
 0xbf6   :  { %4907 = vmatmul.mubr.msk.bf16.gmra.mrb[40].mxu0 %vm9608_vm4, %v6512_v33  ;;  %vm9630_vm4 = vcmp.lt.s32.totalorder %v6740_v23, 18 }
 0xbf7   :  { %4920 = vmatmul.mubr.msk.bf16.vlgmr.msra.gmra.mrb[40].mxu1 %vm880_vm14, %v3616_v27  ;;  %4335 = vmatprep.mubr.bf16.mxu0 %v6522_v0 }
 0xbf8   :  { %3785 = vmatprep.mubr.bf16.mxu1 %v6522_v0  ;;  %v3672_v25 = vpop.permute.xlu1 %3671  ;;  %v3677_v28 = vpop.permute.xlu0 %3676 }
 0xbfc   :  { %v3704_v48 = vpop.permute.xlu1 %3703  ;;  %v3709_v9 = vpop.permute.xlu0 %3708 }
 0xc00   :  { %v3682_v51 = vpop.permute.xlu1 %3681  ;;  %v3687_v11 = vpop.permute.xlu0 %3686 }
 0xc04   :  { %v3714_v4 = vpop.permute.xlu1 %3713  ;;  %v3719_v3 = vpop.permute.xlu0 %3718 }
 0xcc1   :  { %v3511_v49 = vpop.f32.mrb[36].mxu0 }
 0xcc2   :  { %v3689_v6 = vmul.f32 %v3672_v25, %v3511_v49  ;;  %v3513_v54 = vpop.f32.mrb[37].mxu0 }
 0xcc3   :  { %v3690_v34 = vmul.f32 %v3672_v25, %v3513_v54  ;;  %v3515_v18 = vpop.f32.mrb[38].mxu0 }
 0xcc4   :  { %v3721_v30 = vadd.f32 %v3704_v48, %v3689_v6  ;;  %v3691_v53 = vmul.f32 %v3677_v28, %v3515_v18  ;;  %v3517_v13 = vpop.f32.mrb[39].mxu0  ;;  %v3745_v6 = vld [vmem:[%s4749_s10] sm:$0xf] }
 0xcc5   :  { %v3722_v2 = vadd.f32 %v3704_v48, %v3690_v34  ;;  %v3692_v14 = vmul.f32 %v3677_v28, %v3517_v13 }
 0xcc6   :  { %v3729_v46 = vmax.f32 %v3721_v30, 0.0  ;;  %v3723_v16 = vadd.f32 %v3709_v9, %v3691_v53 }
 0xcc7   :  { %v3730_v20 = vmax.f32 %v3722_v2, 0.0  ;;  %v3724_v57 = vadd.f32 %v3709_v9, %v3692_v14 }
 0xcc8   :  { %v3731_v19 = vmax.f32 %v3723_v16, 0.0  ;;  %v8610_v29 = vsel %vm190_vm15, %v3729_v46, 0.0 }
 0xcc9   :  { %v3732_v10 = vmax.f32 %v3724_v57, 0.0  ;;  %v3521_v26 = vpop.f32.mrb[40].mxu0  ;;  %v8618_v38 = vsel %vm191_vm9, %v3730_v20, 0.0 }
 0xcca   :  { %v8614_v60 = vsel %vm190_vm15, %v3731_v19, 0.0  ;;  %v4925_v63 = vpack.c.bf16 %v3731_v19, %v3729_v46  ;;  %v3693_v5 = vmul.f32 %v3682_v51, %v3521_v26  ;;  %v3523_v8 = vpop.f32.mrb[41].mxu0  ;;  %v3658_v36 = vpop.f32.mrb[40].mxu1 }
 0xccb   :  { %v6245_v61 = vpack.i.bf16 %v8614_v60, %v8610_v29  ;;  %v8624_v47 = vsel %vm191_vm9, %v3732_v10, 0.0  ;;  %v4922_v32 = vpack.c.bf16 %v3732_v10, %v3730_v20  ;;  %v3525_v7 = vpop.f32.mrb[42].mxu0  ;;  %v3660_v22 = vpop.f32.mrb[41].mxu1  ;;  %v3694_v39 = vmul.f32 %v3682_v51, %v3523_v8 }
 0xccc   :  { %v6255_v45 = vpack.i.bf16 %v8624_v47, %v8618_v38  ;;  %v3725_v50 = vadd.f32 %v3714_v4, %v3693_v5  ;;  %v3526_v40 = vpop.f32.mrb[43].mxu0  ;;  %v3662_v35 = vpop.f32.mrb[42].mxu1  ;;  %v3695_v52 = vmul.f32 %v3687_v11, %v3658_v36  ;;  %v3696_v55 = vmul.f32 %v3687_v11, %v3660_v22 }
 0xccd   :  { %6246 = vrot.lane.b32.xlu0 %v6245_v61, %s9336_s2  ;;  %4923 = vmatprep.subr.msk.bf16.mxu1 %vm7009_vm1, %v4922_v32  ;;  %v3663_v56 = vpop.f32.mrb[43].mxu1  ;;  %v3726_v15 = vadd.f32 %v3714_v4, %v3694_v39 }
 0xcce   :  { %v3733_v1 = vmax.f32 %v3725_v50, 0.0  ;;  %4926 = vmatpush1.bf16.msk.msra.mxu1 %vm7024_vm0, %v4925_v63  ;;  %6256 = vrot.lane.b32.xlu1 %v6255_v45, %s9336_s2  ;;  %v3727_v12 = vadd.f32 %v3719_v3, %v3695_v52  ;;  %v3728_v24 = vadd.f32 %v3719_v3, %v3696_v55 }
 0xccf   :  { %v3734_v62 = vmax.f32 %v3726_v15, 0.0 }
 0xcd0   :  { %v3735_v44 = vmax.f32 %v3727_v12, 0.0  ;;  %v3736_v21 = vmax.f32 %v3728_v24, 0.0  ;;  %v8640_v58 = vsel %vm190_vm15, %v3733_v1, 0.0 }
 0xcd1   :  { %6251 = vrot.lane.b32.xlu0 %v6245_v61, %s9335_s4  ;;  %v8644_v33 = vsel %vm191_vm9, %v3734_v62, 0.0 }
 0xcd2   :  { %6261 = vrot.lane.b32.xlu1 %v6255_v45, %s9335_s4  ;;  %v8649_v27 = vsel %vm190_vm15, %v3735_v44, 0.0  ;;  %v4931_v25 = vpack.c.bf16 %v3735_v44, %v3733_v1  ;;  %v8653_v28 = vsel %vm191_vm9, %v3736_v21, 0.0  ;;  %v4928_v48 = vpack.c.bf16 %v3736_v21, %v3734_v62 }
 0xcd3   :  { %v8657_v49 = vpack.i.bf16 %v8649_v27, %v8640_v58  ;;  %v8661_v9 = vpack.i.bf16 %v8653_v28, %v8644_v33 }
 0xcd4   :  { %4929 = vmatprep.subr.msk.bf16.mxu1 %vm7009_vm1, %v4928_v48 }
 0xcd5   :  { %6266 = vrot.lane.b32.xlu0 %v8657_v49, %s9336_s2  ;;  %4932 = vmatpush1.bf16.msk.msra.mxu1 %vm7024_vm0, %v4931_v25 }
 0xcd6   :  { %6271 = vrot.lane.b32.xlu1 %v8661_v9, %s9336_s2 }
 0xcd8   :  { %4933 = vmatmul.mubr.msk.bf16.vlgmr.msra.gmra.mrb[44].mxu1 %vm880_vm14, %v3745_v6 }
 0xd3f   :  { %v6247_v54 = vpop.permute.xlu0 %6246 }
 0xd40   :  { %v6249_v51 = vunpack.i.h.bf16 %v6247_v54  ;;  %v6248_v34 = vunpack.i.l.bf16 %v6247_v54  ;;  %v6257_v18 = vpop.permute.xlu1 %6256 }
 0xd41   :  { %v6259_v30 = vunpack.i.h.bf16 %v6257_v18  ;;  %v6258_v53 = vunpack.i.l.bf16 %v6257_v18 }
 0xd43   :  { %v4224_v13 = vsel %vm381_vm10, %v6249_v51, %v6259_v30  ;;  %v4228_v2 = vsel %vm381_vm10, %v6259_v30, %v6249_v51  ;;  %v4223_v14 = vsel %vm381_vm10, %v6248_v34, %v6258_v53  ;;  %v4227_v46 = vsel %vm381_vm10, %v6258_v53, %v6248_v34  ;;  %v6252_v16 = vpop.permute.xlu0 %6251 }
 0xd44   :  { %v4233_v20 = vsel %vm704_vm6, %v4228_v2, -3.4028235e+38  ;;  %v4234_v57 = vsel %vm705_vm12, %v4224_v13, -3.4028235e+38  ;;  %v4231_v11 = vsel %vm704_vm6, %v4227_v46, -3.4028235e+38  ;;  %v6254_v19 = vunpack.i.h.bf16 %v6252_v16  ;;  %v6262_v4 = vpop.permute.xlu1 %6261 }
 0xd45   :  { %v4232_v10 = vsel %vm705_vm12, %v4223_v14, -3.4028235e+38  ;;  %v6253_v26 = vunpack.i.l.bf16 %v6252_v16  ;;  %v6264_v63 = vunpack.i.h.bf16 %v6262_v4  ;;  %v6263_v5 = vunpack.i.l.bf16 %v6262_v4 }
 0xd46   :  { %v4273_v8 = vmax.f32 %v4233_v20, %v8614_v60  ;;  %v4274_v36 = vmax.f32 %v4234_v57, %v8624_v47  ;;  %v4271_v61 = vmax.f32 %v4231_v11, %v8610_v29  ;;  %v4272_v50 = vmax.f32 %v4232_v10, %v8618_v38 }
 0xd47   :  { %v4256_v32 = vsel %vm388_vm13, %v6254_v19, %v6264_v63  ;;  %v4260_v7 = vsel %vm388_vm13, %v6264_v63, %v6254_v19  ;;  %v4255_v22 = vsel %vm388_vm13, %v6253_v26, %v6263_v5  ;;  %v4259_v45 = vsel %vm388_vm13, %v6263_v5, %v6253_v26  ;;  %v8783_v46 = vpop.permute.xlu0 %6266 }
 0xd48   :  { %v4265_v60 = vsel %vm9609_vm7, %v4256_v32, -3.4028235e+38  ;;  %v4266_v29 = vsel %vm9610_vm5, %v4260_v7, -3.4028235e+38  ;;  %v4263_v47 = vsel %vm9611_vm3, %v4255_v22, -3.4028235e+38  ;;  %v8785_v16 = vpop.permute.xlu1 %6271  ;;  %vm9633_vm3 = vmmov %vm9630_vm4 }
 0xd49   :  { %v4264_v39 = vsel %vm9612_vm2, %v4259_v45, -3.4028235e+38  ;;  %v4279_v40 = vmax.f32 %v4271_v61, %v4263_v47  ;;  %v4281_v35 = vmax.f32 %v4273_v8, %v4265_v60  ;;  %v4282_v52 = vmax.f32 %v4274_v36, %v4266_v29 }
 0xd4a   :  { %v4280_v55 = vmax.f32 %v4272_v50, %v4264_v39  ;;  %vm9631_vm7 = vcmp.lt.s32.totalorder %v6740_v23, 19  ;;  %vm9634_vm2 = vcmp.lt.s32.totalorder %v6740_v23, 16 }
 0xd4b   :  { %v4947_v56 = vpack.c.bf16 %v4281_v35, %v4279_v40  ;;  %vm9632_vm5 = vmmov %vm9631_vm7 }
 0xd4c   :  { %v4944_v3 = vpack.c.bf16 %v4282_v52, %v4280_v55 }
 0xd4e   :  { %4945 = vmatprep.subr.msk.bf16.mxu0 %vm7009_vm1, %v4944_v3 }
 0xd4f   :  { %4948 = vmatpush1.bf16.msk.msra.mxu0 %vm7024_vm0, %v4947_v56 }
 0xdab   :  { %v8712_v38 = vpop.f32.mrb[44].mxu1 }
 0xdac   :  { %v8714_v1 = vpop.f32.mrb[45].mxu1 }
 0xdad   :  { %v6280_v15 = vpack.i.bf16 %v8714_v1, %v8712_v38  ;;  %v3791_v12 = vpop.f32.mrb[46].mxu1 }
 0xdae   :  { %v3792_v24 = vpop.f32.mrb[47].mxu1 }
 0xdaf   :  { %6281 = vrot.lane.b32.xlu0 %v6280_v15, %s9420_s27  ;;  %6276 = vrot.lane.b32.xlu1 %v6280_v15, %s9421_s18  ;;  %s9613_s27 = smov 9   ;;  %s9614_s18 = smov 6  }
 0xdb3   :  { %6291 = vrot.lane.b32.xlu0 %v6280_v15, %s9419_s17  ;;  %6286 = vrot.lane.b32.xlu1 %v6280_v15, %s9422_s11 }
 0xdb7   :  { %6301 = vrot.lane.b32.xlu0 %v6280_v15, %s9324_s6  ;;  %6296 = vrot.lane.b32.xlu1 %v6280_v15, %s9325_s12  ;;  %s9615_s6 = smov 2   ;;  %s9616_s12 = smov 3  }
 0xdbb   :  { %6311 = vrot.lane.b32.xlu0 %v6280_v15, %s9423_s23  ;;  %6306 = vrot.lane.b32.xlu1 %v6280_v15, %s9379_s14  ;;  %s9619_s23 = smov 121   ;;  %s6576_s14 = smov 36  }
 0xdbf   :  { %6321 = vrot.lane.b32.xlu0 %v6280_v15, %s9424_s30  ;;  %6316 = vrot.lane.b32.xlu1 %v6280_v15, %s9315_s21  ;;  %s9618_s21 = smov 126   ;;  %s9622_s30 = smov 118  }
 0xdc3   :  { %6331 = vrot.lane.b32.xlu0 %v6280_v15, %s9328_s13  ;;  %6326 = vrot.lane.b32.xlu1 %v6280_v15, %s9613_s27  ;;  %s9617_s13 = smov 125   ;;  %s4753_s27 = sld [smem:[%s9082_s0 + %s6574_s5]]  }
 0xdc7   :  { %6341 = vrot.lane.b32.xlu0 %v6280_v15, %s9614_s18  ;;  %6336 = vrot.lane.b32.xlu1 %v6280_v15, %s9331_s3  ;;  %s6571_s3 = smov 34   ;;  %s9628_s18 = smov 109  }
 0xdc8   :  { %s8747_s11 = sld [smem:[%s9082_s0 + %s6571_s3]]  }
 0xdc9   :  { %v4377_v25 = vld [vmem:[%s4753_s27 + $0x8] sm:$0xff]  ;;  %v4376_v48 = vld [vmem:[%s4753_s27] sm:$0xff]  ;;  %v4379_v18 = vld [vmem:[%s4753_s27 + $0x18] sm:$0xff] }
 0xdca   :  { %v4378_v30 = vld [vmem:[%s4753_s27 + $0x10] sm:$0xff] }
 0xdcb   :  { %6351 = vrot.lane.b32.xlu0 %v6280_v15, %s9518_s15  ;;  %6346 = vrot.lane.b32.xlu1 %v6280_v15, %s9519_s25  ;;  %s6572_s15 = smov 27  }
 0xdcc   :  { %s8760_s16 = sld [smem:[%s9082_s0 + %s6572_s15]]  }
 0xdcf   :  { %6361 = vrot.lane.b32.xlu0 %v6280_v15, %s9615_s6  ;;  %6356 = vrot.lane.b32.xlu1 %v6280_v15, %s9616_s12  ;;  %s9629_s6 = smov 110   ;;  %s6575_s12 = smov 35  }
 0xdd0   :  { %s4758_s3 = sld [smem:[%s9082_s0 + %s6575_s12]]  }
 0xdd2   :  { %v6517_v62 = vld [vmem:[%s8760_s16 + $0x4] ss:$12 sps:$4 sm:$0xff]  }
 0xdd3   :  { %6366 = vrot.lane.b32.xlu0 %v8657_v49, %s9335_s4  ;;  %6371 = vrot.lane.b32.xlu1 %v8661_v9, %s9335_s4 }
 0xdd4   :  { %4137 = vmatprep.mubr.bf16.mxu1 %v6517_v62 }
 0xdd6   :  { %v4490_v49 = vld [vmem:[%s4758_s3 + $0x8] sm:$0xff]  ;;  %v4489_v9 = vld [vmem:[%s4758_s3] sm:$0xff]  ;;  %v4492_v53 = vld [vmem:[%s4758_s3 + $0x18] sm:$0xff] }
 0xdd7   :  { %6381 = vrot.lane.b32.xlu0 %v6280_v15, %s9335_s4  ;;  %6376 = vrot.lane.b32.xlu1 %v6280_v15, %s9336_s2  ;;  %s9620_s4 = smov 119   ;;  %s9621_s2 = smov 117   ;;  %v4491_v13 = vld [vmem:[%s4758_s3 + $0x10] sm:$0xff] }
 0xddb   :  { %6391 = vrot.lane.b32.xlu0 %v6280_v15, %s9617_s13  ;;  %6386 = vrot.lane.b32.xlu1 %v6280_v15, %s9618_s21 }
 0xddf   :  { %6401 = vrot.lane.b32.xlu0 %v6280_v15, %s9524_s26  ;;  %6396 = vrot.lane.b32.xlu1 %v6280_v15, %s9525_s28  ;;  %s9623_s26 = smov 116   ;;  %s9625_s28 = smov 114  }
 0xde3   :  { %6411 = vrot.lane.b32.xlu0 %v6280_v15, %s9619_s23  ;;  %6406 = vrot.lane.b32.xlu1 %v6280_v15, %s9234_s20  ;;  %s9624_s20 = smov 113  }
 0xde7   :  { %6421 = vrot.lane.b32.xlu0 %v6280_v15, %s9620_s4  ;;  %6416 = vrot.lane.b32.xlu1 %v6280_v15, %s9431_s9  ;;  %s6573_s9 = smov 29   ;;  %s4759_s4 = sld [smem:[%s9082_s0 + %s6576_s14]]  }
 0xde8   :  { %s4752_s8 = sld [smem:[%s9082_s0 + %s6573_s9]]  }
 0xdeb   :  { %6431 = vrot.lane.b32.xlu0 %v6280_v15, %s9621_s2  ;;  %6426 = vrot.lane.b32.xlu1 %v6280_v15, %s9622_s30  ;;  %s6577_s2 = smov 28  }
 0xdec   :  { %s4751_s25 = sld [smem:[%s9082_s0 + %s6577_s2]]  }
 0xded   :  { %v4522_v51 = vld [vmem:[%s4759_s4 + $0x8] sm:$0xff]  ;;  %v4521_v34 = vld [vmem:[%s4759_s4] sm:$0xff]  ;;  %v4524_v2 = vld [vmem:[%s4759_s4 + $0x18] sm:$0xff] }
 0xdee   :  { %v4345_v44 = vld [vmem:[%s4752_s8 + $0x8] sm:$0xff]  ;;  %v4344_v21 = vld [vmem:[%s4752_s8] sm:$0xff]  ;;  %v4347_v6 = vld [vmem:[%s4752_s8 + $0x18] sm:$0xff] }
 0xdef   :  { %6441 = vrot.lane.b32.xlu0 %v6280_v15, %s9434_s22  ;;  %6436 = vrot.lane.b32.xlu1 %v6280_v15, %s9623_s26  ;;  %v4346_v54 = vld [vmem:[%s4752_s8 + $0x10] sm:$0xff] }
 0xdf0   :  { %v4523_v14 = vld [vmem:[%s4759_s4 + $0x10] sm:$0xff] }
 0xdf3   :  { %6451 = vrot.lane.b32.xlu0 %v6280_v15, %s9624_s20  ;;  %6446 = vrot.lane.b32.xlu1 %v6280_v15, %s9625_s28  ;;  %s6582_s20 = smov 37  }
 0xdf4   :  { %s4760_s19 = sld [smem:[%s9082_s0 + %s6582_s20]]  }
 0xdf7   :  { %6461 = vrot.lane.b32.xlu0 %v6280_v15, %s9626_s24  ;;  %6456 = vrot.lane.b32.xlu1 %v6280_v15, %s9627_s1  ;;  %s4762_s1 = sld [smem:[%s9082_s0 + %s6583_s7]]  }
 0xdfb   :  { %6471 = vrot.lane.b32.xlu0 %v6280_v15, %s9628_s18  ;;  %6466 = vrot.lane.b32.xlu1 %v6280_v15, %s9629_s6 }
 0xdff   :  { %4355 = vperm.xlu0 %5323, %v4345_v44   ;;  %4350 = vperm.xlu1 %5324, %v4344_v21  }
 0xe03   :  { %4387 = vperm.xlu0 %5323, %v4377_v25   ;;  %4382 = vperm.xlu1 %5324, %v4376_v48  }
 0xe07   :  { %4500 = vperm.xlu0 %5323, %v4490_v49   ;;  %4495 = vperm.xlu1 %5324, %v4489_v9  }
 0xe0b   :  { %4365 = vperm.xlu0 %5323, %v4347_v6   ;;  %4360 = vperm.xlu1 %5324, %v4346_v54  }
 0xe0f   :  { %4532 = vperm.xlu0 %5323, %v4522_v51   ;;  %4527 = vperm.xlu1 %5324, %v4521_v34  }
 0xe13   :  { %4397 = vperm.xlu0 %5323, %v4379_v18   ;;  %4392 = vperm.xlu1 %5324, %v4378_v30  }
 0xe17   :  { %4510 = vperm.xlu0 %5323, %v4492_v53   ;;  %4505 = vperm.xlu1 %5324, %v4491_v13  }
 0xe1b   :  { %4542 = vperm.xlu0 %5323, %v4524_v2   ;;  %4537 = vperm.xlu1 %5324, %v4523_v14  }
 0xe21   :  { %v6282_v20 = vpop.permute.xlu0 %6281  ;;  %v6277_v57 = vpop.permute.xlu1 %6276 }
 0xe22   :  { %v6284_v11 = vunpack.i.h.bf16 %v6282_v20  ;;  %v6283_v19 = vunpack.i.l.bf16 %v6282_v20  ;;  %v6279_v4 = vunpack.i.h.bf16 %v6277_v57  ;;  %v6278_v10 = vunpack.i.l.bf16 %v6277_v57 }
 0xe24   :  { %v3805_v26 = vsel %vm9630_vm4, %v6284_v11, %v6283_v19  ;;  %v3799_v63 = vsel %vm9631_vm7, %v6279_v4, %v6278_v10  ;;  %v3798_v5 = vsel %vm9632_vm5, %v6278_v10, %v6279_v4  ;;  %v3804_v8 = vsel %vm9633_vm3, %v6283_v19, %v6284_v11  ;;  %vm9637_vm5 = vmmov %vm9634_vm2 }
 0xe25   :  { %v4022_v36 = vpack.c.bf16 %v3805_v26, %v3799_v63  ;;  %v6292_v61 = vpop.permute.xlu0 %6291  ;;  %v6287_v32 = vpop.permute.xlu1 %6286  ;;  %v4023_v7 = vpack.c.bf16 %v3804_v8, %v3798_v5  ;;  %vm9635_vm4 = vcmp.lt.s32.totalorder %v6740_v23, 17  ;;  %vm9638_vm3 = vcmp.lt.s32.totalorder %v6740_v23, 14 }
 0xe26   :  { %v6294_v22 = vunpack.i.h.bf16 %v6292_v61  ;;  %v6293_v45 = vunpack.i.l.bf16 %v6292_v61  ;;  %v6289_v50 = vunpack.i.h.bf16 %v6287_v32  ;;  %v6288_v60 = vunpack.i.l.bf16 %v6287_v32  ;;  %vm9636_vm7 = vmmov %vm9635_vm4 }
 0xe27   :  { %4105 = vmatprep.subr.bf16.mxu1 %v4023_v7 }
 0xe28   :  { %v3817_v29 = vsel %vm9634_vm2, %v6294_v22, %v6293_v45  ;;  %v3811_v47 = vsel %vm9635_vm4, %v6289_v50, %v6288_v60  ;;  %4106 = vmatpush1.bf16.msra.mxu1 %v4022_v36  ;;  %v3810_v39 = vsel %vm9636_vm7, %v6288_v60, %v6289_v50  ;;  %v3816_v40 = vsel %vm9637_vm5, %v6293_v45, %v6294_v22  ;;  %vm9641_vm7 = vmmov %vm9638_vm3 }
 0xe29   :  { %v4024_v35 = vpack.c.bf16 %v3817_v29, %v3811_v47  ;;  %v6302_v52 = vpop.permute.xlu0 %6301  ;;  %v6297_v55 = vpop.permute.xlu1 %6296  ;;  %v4025_v56 = vpack.c.bf16 %v3816_v40, %v3810_v39  ;;  %vm9639_vm2 = vcmp.lt.s32.totalorder %v6740_v23, 15  ;;  %vm9642_vm5 = vcmp.lt.s32.totalorder %v6740_v23, 12 }
 0xe2a   :  { %v6304_v3 = vunpack.i.h.bf16 %v6302_v52  ;;  %v6303_v15 = vunpack.i.l.bf16 %v6302_v52  ;;  %v6299_v12 = vunpack.i.h.bf16 %v6297_v55  ;;  %v6298_v24 = vunpack.i.l.bf16 %v6297_v55  ;;  %vm9640_vm4 = vmmov %vm9639_vm2 }
 0xe2b   :  { %4107 = vmatprep.subr.bf16.mxu1 %v4025_v56 }
 0xe2c   :  { %v3829_v62 = vsel %vm9638_vm3, %v6304_v3, %v6303_v15  ;;  %v3823_v44 = vsel %vm9639_vm2, %v6299_v12, %v6298_v24  ;;  %4108 = vmatpush1.bf16.msra.mxu1 %v4024_v35  ;;  %v3822_v21 = vsel %vm9640_vm4, %v6298_v24, %v6299_v12  ;;  %v3828_v25 = vsel %vm9641_vm7, %v6303_v15, %v6304_v3  ;;  %vm9645_vm4 = vmmov %vm9642_vm5 }
 0xe2d   :  { %v4026_v48 = vpack.c.bf16 %v3829_v62, %v3823_v44  ;;  %v6312_v49 = vpop.permute.xlu0 %6311  ;;  %v6307_v9 = vpop.permute.xlu1 %6306  ;;  %v4027_v6 = vpack.c.bf16 %v3828_v25, %v3822_v21  ;;  %vm9643_vm3 = vcmp.lt.s32.totalorder %v6740_v23, 13  ;;  %vm9646_vm7 = vcmp.lt.s32.totalorder %v6740_v23, 10 }
 0xe2e   :  { %v6314_v54 = vunpack.i.h.bf16 %v6312_v49  ;;  %v6313_v51 = vunpack.i.l.bf16 %v6312_v49  ;;  %v6309_v34 = vunpack.i.h.bf16 %v6307_v9  ;;  %v6308_v18 = vunpack.i.l.bf16 %v6307_v9  ;;  %vm9644_vm2 = vmmov %vm9643_vm3 }
 0xe2f   :  { %4109 = vmatprep.subr.bf16.mxu1 %v4027_v6  ;;  %v6269_v44 = vunpack.i.h.bf16 %v8783_v46  ;;  %v6268_v21 = vunpack.i.l.bf16 %v8783_v46  ;;  %v6274_v25 = vunpack.i.h.bf16 %v8785_v16 }
 0xe30   :  { %v3841_v30 = vsel %vm9642_vm5, %v6314_v54, %v6313_v51  ;;  %v3835_v53 = vsel %vm9643_vm3, %v6309_v34, %v6308_v18  ;;  %4110 = vmatpush1.bf16.msra.mxu1 %v4026_v48  ;;  %v3834_v13 = vsel %vm9644_vm2, %v6308_v18, %v6309_v34  ;;  %v3840_v2 = vsel %vm9645_vm4, %v6313_v51, %v6314_v54  ;;  %vm9649_vm2 = vmmov %vm9646_vm7 }
 0xe31   :  { %v4028_v14 = vpack.c.bf16 %v3841_v30, %v3835_v53  ;;  %v6322_v20 = vpop.permute.xlu0 %6321  ;;  %v6317_v57 = vpop.permute.xlu1 %6316  ;;  %v4029_v11 = vpack.c.bf16 %v3840_v2, %v3834_v13  ;;  %vm9647_vm5 = vcmp.lt.s32.totalorder %v6740_v23, 11  ;;  %vm9650_vm4 = vcmp.lt.s32.totalorder %v6740_v23, 8 }
 0xe32   :  { %v6324_v19 = vunpack.i.h.bf16 %v6322_v20  ;;  %v6323_v4 = vunpack.i.l.bf16 %v6322_v20  ;;  %v6319_v10 = vunpack.i.h.bf16 %v6317_v57  ;;  %v6318_v26 = vunpack.i.l.bf16 %v6317_v57  ;;  %vm9648_vm3 = vmmov %vm9647_vm5 }
 0xe33   :  { %4111 = vmatprep.subr.bf16.mxu1 %v4029_v11  ;;  %v6273_v48 = vunpack.i.l.bf16 %v8785_v16  ;;  %v4226_v2 = vsel %vm381_vm10, %v6269_v44, %v6274_v25 }
 0xe34   :  { %v3853_v63 = vsel %vm9646_vm7, %v6324_v19, %v6323_v4  ;;  %v3847_v5 = vsel %vm9647_vm5, %v6319_v10, %v6318_v26  ;;  %4112 = vmatpush1.bf16.msra.mxu1 %v4028_v14  ;;  %v3846_v8 = vsel %vm9648_vm3, %v6318_v26, %v6319_v10  ;;  %v3852_v36 = vsel %vm9649_vm2, %v6323_v4, %v6324_v19  ;;  %vm9653_vm3 = vmmov %vm9650_vm4 }
 0xe35   :  { %v4030_v61 = vpack.c.bf16 %v3853_v63, %v3847_v5  ;;  %v6332_v32 = vpop.permute.xlu0 %6331  ;;  %v6327_v7 = vpop.permute.xlu1 %6326  ;;  %v4031_v22 = vpack.c.bf16 %v3852_v36, %v3846_v8  ;;  %vm9651_vm7 = vcmp.lt.s32.totalorder %v6740_v23, 9  ;;  %vm9654_vm2 = vcmp.lt.s32.totalorder %v6740_v23, 6 }
 0xe36   :  { %v6334_v45 = vunpack.i.h.bf16 %v6332_v32  ;;  %v6333_v50 = vunpack.i.l.bf16 %v6332_v32  ;;  %v6329_v60 = vunpack.i.h.bf16 %v6327_v7  ;;  %v6328_v29 = vunpack.i.l.bf16 %v6327_v7  ;;  %vm9652_vm5 = vmmov %vm9651_vm7 }
 0xe37   :  { %4113 = vmatprep.subr.bf16.mxu1 %v4031_v22  ;;  %v4230_v14 = vsel %vm381_vm10, %v6274_v25, %v6269_v44  ;;  %v4229_v20 = vsel %vm381_vm10, %v6273_v48, %v6268_v21  ;;  %v4225_v10 = vsel %vm381_vm10, %v6268_v21, %v6273_v48 }
 0xe38   :  { %v3865_v47 = vsel %vm9650_vm4, %v6334_v45, %v6333_v50  ;;  %v3859_v39 = vsel %vm9651_vm7, %v6329_v60, %v6328_v29  ;;  %4114 = vmatpush1.bf16.msra.mxu1 %v4030_v61  ;;  %v3858_v40 = vsel %vm9652_vm5, %v6328_v29, %v6329_v60  ;;  %v3864_v35 = vsel %vm9653_vm3, %v6333_v50, %v6334_v45  ;;  %vm9657_vm5 = vmmov %vm9654_vm2 }
 0xe39   :  { %v4032_v52 = vpack.c.bf16 %v3865_v47, %v3859_v39  ;;  %v6342_v55 = vpop.permute.xlu0 %6341  ;;  %v6337_v56 = vpop.permute.xlu1 %6336  ;;  %v4033_v3 = vpack.c.bf16 %v3864_v35, %v3858_v40  ;;  %vm9655_vm4 = vcmp.lt.s32.totalorder %v6740_v23, 7  ;;  %vm9658_vm3 = vcmp.lt.s32.totalorder %v6740_v23, 4 }
 0xe3a   :  { %v6344_v15 = vunpack.i.h.bf16 %v6342_v55  ;;  %v6343_v12 = vunpack.i.l.bf16 %v6342_v55  ;;  %v6339_v24 = vunpack.i.h.bf16 %v6337_v56  ;;  %v6338_v62 = vunpack.i.l.bf16 %v6337_v56  ;;  %vm9656_vm7 = vmmov %vm9655_vm4 }
 0xe3b   :  { %4115 = vmatprep.subr.bf16.mxu1 %v4033_v3  ;;  %v4237_v22 = vsel %vm704_vm6, %v4230_v14, -3.4028235e+38  ;;  %v4238_v45 = vsel %vm705_vm12, %v4226_v2, -3.4028235e+38  ;;  %v4235_v50 = vsel %vm704_vm6, %v4229_v20, -3.4028235e+38 }
 0xe3c   :  { %v3877_v49 = vsel %vm9654_vm2, %v6344_v15, %v6343_v12  ;;  %v3871_v9 = vsel %vm9655_vm4, %v6339_v24, %v6338_v62  ;;  %4116 = vmatpush1.bf16.msra.mxu1 %v4032_v52  ;;  %v3870_v6 = vsel %vm9656_vm7, %v6338_v62, %v6339_v24  ;;  %v3876_v54 = vsel %vm9657_vm5, %v6343_v12, %v6344_v15  ;;  %vm9661_vm7 = vmmov %vm9658_vm3 }
 0xe3d   :  { %v4034_v51 = vpack.c.bf16 %v3877_v49, %v3871_v9  ;;  %v6352_v46 = vpop.permute.xlu0 %6351  ;;  %v6347_v34 = vpop.permute.xlu1 %6346  ;;  %v4035_v18 = vpack.c.bf16 %v3876_v54, %v3870_v6  ;;  %vm9659_vm2 = vcmp.lt.s32.totalorder %v6740_v23, 5  ;;  %vm9662_vm5 = vcmp.lt.s32.totalorder %v6740_v23, 2 }
 0xe3e   :  { %v6354_v30 = vunpack.i.h.bf16 %v6352_v46  ;;  %v6353_v16 = vunpack.i.l.bf16 %v6352_v46  ;;  %v6349_v53 = vunpack.i.h.bf16 %v6347_v34  ;;  %v6348_v13 = vunpack.i.l.bf16 %v6347_v34  ;;  %vm9660_vm4 = vmmov %vm9659_vm2 }
 0xe3f   :  { %4117 = vmatprep.subr.bf16.mxu1 %v4035_v18  ;;  %v4236_v40 = vsel %vm705_vm12, %v4225_v10, -3.4028235e+38  ;;  %v4277_v62 = vmax.f32 %v4237_v22, %v8649_v27  ;;  %v4278_v44 = vmax.f32 %v4238_v45, %v8653_v28  ;;  %v4275_v21 = vmax.f32 %v4235_v50, %v8640_v58 }
 0xe40   :  { %v3889_v57 = vsel %vm9658_vm3, %v6354_v30, %v6353_v16  ;;  %v3883_v11 = vsel %vm9659_vm2, %v6349_v53, %v6348_v13  ;;  %4118 = vmatpush1.bf16.msra.mxu1 %v4034_v51  ;;  %v3882_v19 = vsel %vm9660_vm4, %v6348_v13, %v6349_v53  ;;  %v3888_v4 = vsel %vm9661_vm7, %v6353_v16, %v6354_v30  ;;  %vm9665_vm4 = vmmov %vm9662_vm5 }
 0xe41   :  { %v4036_v26 = vpack.c.bf16 %v3889_v57, %v3883_v11  ;;  %v6362_v63 = vpop.permute.xlu0 %6361  ;;  %v6357_v5 = vpop.permute.xlu1 %6356  ;;  %v4037_v8 = vpack.c.bf16 %v3888_v4, %v3882_v19  ;;  %vm9663_vm3 = vcmp.lt.s32.totalorder %v6740_v23, 3  ;;  %v4276_v58 = vmax.f32 %v4236_v40, %v8644_v33 }
 0xe42   :  { %v6364_v36 = vunpack.i.h.bf16 %v6362_v63  ;;  %v6363_v61 = vunpack.i.l.bf16 %v6362_v63  ;;  %v6359_v32 = vunpack.i.h.bf16 %v6357_v5  ;;  %v6358_v7 = vunpack.i.l.bf16 %v6357_v5  ;;  %vm9664_vm2 = vmmov %vm9663_vm3 }
 0xe43   :  { %4119 = vmatprep.subr.bf16.mxu1 %v4037_v8  ;;  %vm9666_vm6 = vcmp.le.s32.totalorder %v6740_v23, 62  ;;  %vm9667_vm12 = vcmp.le.s32.totalorder %v6917_v59, 62  ;;  %v4295_v8 = vld [vmem:[%s4751_s25] sm:$0xf]  ;;  %v6581_v59 = vmov 0.0  }
 0xe44   :  { %v3901_v60 = vsel %vm9662_vm5, %v6364_v36, %v6363_v61  ;;  %v3895_v29 = vsel %vm9663_vm3, %v6359_v32, %v6358_v7  ;;  %4120 = vmatpush1.bf16.msra.mxu1 %v4036_v26  ;;  %v3894_v47 = vsel %vm9664_vm2, %v6358_v7, %v6359_v32  ;;  %v3900_v39 = vsel %vm9665_vm4, %v6363_v61, %v6364_v36  ;;  %vm9668_vm7 = vmmov %vm9666_vm6 }
 0xe45   :  { %v4038_v35 = vpack.c.bf16 %v3901_v60, %v3895_v29  ;;  %v6367_v52 = vpop.permute.xlu0 %6366  ;;  %v6372_v55 = vpop.permute.xlu1 %6371  ;;  %v4039_v56 = vpack.c.bf16 %v3900_v39, %v3894_v47  ;;  %vm9669_vm5 = vmmov %vm9667_vm12  ;;  %vm9670_vm3 = vcmp.lt.s32.totalorder %v6740_v23, 126  ;;  %vm9673_vm4 = vcmp.lt.s32.totalorder %v6740_v23, 124 }
 0xe46   :  { %v6369_v3 = vunpack.i.h.bf16 %v6367_v52  ;;  %v6368_v15 = vunpack.i.l.bf16 %v6367_v52  ;;  %v6374_v12 = vunpack.i.h.bf16 %v6372_v55  ;;  %v6373_v24 = vunpack.i.l.bf16 %v6372_v55  ;;  %vm9671_vm2 = vmmov %vm9670_vm3 }
 0xe47   :  { %4121 = vmatprep.subr.bf16.mxu1 %v4039_v56 }
 0xe48   :  { %v4258_v25 = vsel %vm388_vm13, %v6369_v3, %v6374_v12  ;;  %v4262_v48 = vsel %vm388_vm13, %v6374_v12, %v6369_v3  ;;  %v4257_v49 = vsel %vm388_vm13, %v6368_v15, %v6373_v24  ;;  %v4261_v9 = vsel %vm388_vm13, %v6373_v24, %v6368_v15  ;;  %4122 = vmatpush1.bf16.msra.mxu1 %v4038_v35 }
 0xe49   :  { %v4269_v27 = vsel %vm9666_vm6, %v4258_v25, -3.4028235e+38  ;;  %v4270_v28 = vsel %vm9667_vm12, %v4262_v48, -3.4028235e+38  ;;  %v4267_v6 = vsel %vm9668_vm7, %v4257_v49, -3.4028235e+38  ;;  %v6382_v54 = vpop.permute.xlu0 %6381  ;;  %v6377_v51 = vpop.permute.xlu1 %6376 }
 0xe4a   :  { %v4268_v46 = vsel %vm9669_vm5, %v4261_v9, -3.4028235e+38  ;;  %v4283_v34 = vmax.f32 %v4275_v21, %v4267_v6  ;;  %v4285_v18 = vmax.f32 %v4277_v62, %v4269_v27  ;;  %v4286_v30 = vmax.f32 %v4278_v44, %v4270_v28  ;;  %v6513_v62 = vld [vmem:[%s8747_s11] sm:$0xff]  }
 0xe4b   :  { %v4284_v16 = vmax.f32 %v4276_v58, %v4268_v46  ;;  %v6379_v53 = vunpack.i.h.bf16 %v6377_v51  ;;  %v6378_v13 = vunpack.i.l.bf16 %v6377_v51  ;;  %v6384_v57 = vunpack.i.h.bf16 %v6382_v54 }
 0xe4c   :  { %v4953_v33 = vpack.c.bf16 %v4285_v18, %v4283_v34  ;;  %v6383_v11 = vunpack.i.l.bf16 %v6382_v54  ;;  %vm9678_vm7 = vcmp.lt.s32.totalorder %v6740_v23, 123 }
 0xe4d   :  { %v6392_v2 = vpop.permute.xlu0 %6391  ;;  %v6387_v14 = vpop.permute.xlu1 %6386  ;;  %v4950_v20 = vpack.c.bf16 %v4286_v30, %v4284_v16  ;;  %v3907_v19 = vsel %vm381_vm10, %v6379_v53, %v6378_v13  ;;  %v3906_v63 = vsel %vm381_vm10, %v6378_v13, %v6379_v53  ;;  %vm9672_vm10 = vcmp.lt.s32.totalorder %v6740_v23, 125  ;;  %vm9679_vm5 = vmmov %vm9678_vm7 }
 0xe4e   :  { %v6389_v4 = vunpack.i.h.bf16 %v6387_v14  ;;  %v4040_v10 = vpack.c.bf16 %v8712_v38, %v3907_v19  ;;  %v6388_v26 = vunpack.i.l.bf16 %v6387_v14  ;;  %v4041_v5 = vpack.c.bf16 %v8714_v1, %v3906_v63  ;;  %vm9675_vm6 = vmmov %vm9672_vm10 }
 0xe4f   :  { %4951 = vmatprep.subr.msk.bf16.mxu0 %vm7009_vm1, %v4950_v20  ;;  %v6394_v36 = vunpack.i.h.bf16 %v6392_v2  ;;  %v6393_v61 = vunpack.i.l.bf16 %v6392_v2  ;;  %v3912_v1 = vsel %vm388_vm13, %v6383_v11, %v6384_v57  ;;  %v3913_v50 = vsel %vm388_vm13, %v6384_v57, %v6383_v11  ;;  %vm9674_vm13 = vmmov %vm9673_vm4  ;;  %v6514_v2 = vld [vmem:[%s8747_s11 + $0x8] sm:$0xff]   ;;  %s6579_s11 = smov 38  }
 0xe50   :  { %4954 = vmatpush1.bf16.msk.msra.mxu0 %vm7024_vm0, %v4953_v33  ;;  %v3918_v32 = vsel %vm9670_vm3, %v6388_v26, %v6389_v4  ;;  %v3919_v22 = vsel %vm9671_vm2, %v6389_v4, %v6388_v26  ;;  %4123 = vmatprep.subr.bf16.mxu1 %v4041_v5  ;;  %vm9681_vm3 = vcmp.lt.s32.totalorder %v6740_v23, 120  ;;  %s4761_s26 = sld [smem:[%s9082_s0 + %s6579_s11]]  }
 0xe51   :  { %4960 = vmatprep.subr.msk.bf16.mxu0 %vm7009_vm1, %v7837_v41  ;;  %v6402_v38 = vpop.permute.xlu0 %6401  ;;  %v6397_v7 = vpop.permute.xlu1 %6396  ;;  %v4042_v60 = vpack.c.bf16 %v3918_v32, %v3912_v1  ;;  %4124 = vmatpush1.bf16.msra.mxu1 %v4040_v10  ;;  %v4043_v47 = vpack.c.bf16 %v3919_v22, %v3913_v50  ;;  %v3924_v41 = vsel %vm9672_vm10, %v6393_v61, %v6394_v36  ;;  %vm9682_vm2 = vmmov %vm9681_vm3 }
 0xe52   :  { %v6399_v45 = vunpack.i.h.bf16 %v6397_v7  ;;  %v6398_v29 = vunpack.i.l.bf16 %v6397_v7  ;;  %v6403_v55 = vunpack.i.l.bf16 %v6402_v38  ;;  %v3925_v3 = vsel %vm9675_vm6, %v6394_v36, %v6393_v61 }
 0xe53   :  { %4955 = vmatmul.mubr.msk.bf16.vlgmr.msra.gmra.mrb[44].mxu0 %vm880_vm14, %v4295_v8  ;;  %4125 = vmatprep.subr.bf16.mxu1 %v4043_v47  ;;  %vm9686_vm6 = vcmp.lt.s32.totalorder %v6740_v23, 119 }
 0xe54   :  { %4963 = vmatpush1.bf16.msk.msra.mxu0 %vm7024_vm0, %v7827_v31  ;;  %4468 = vmatprep.mubr.bf16.mxu0 %v6522_v0  ;;  %v3930_v39 = vsel %vm9673_vm4, %v6398_v29, %v6399_v45  ;;  %v3931_v52 = vsel %vm9674_vm13, %v6399_v45, %v6398_v29  ;;  %v6404_v31 = vunpack.i.h.bf16 %v6402_v38  ;;  %vm9684_vm4 = vcmp.lt.s32.totalorder %v6740_v23, 118 }
 0xe55   :  { %4966 = vmatprep.subr.msk.bf16.mxu0 %vm7009_vm1, %v7861_v17  ;;  %v6412_v40 = vpop.permute.xlu0 %6411  ;;  %v6407_v35 = vpop.permute.xlu1 %6406  ;;  %v4044_v15 = vpack.c.bf16 %v3930_v39, %v3924_v41  ;;  %4126 = vmatpush1.bf16.msra.mxu1 %v4042_v60  ;;  %v4045_v24 = vpack.c.bf16 %v3931_v52, %v3925_v3  ;;  %vm9676_vm1 = vcmp.lt.s32.totalorder %v6740_v23, 122  ;;  %vm9685_vm13 = vmmov %vm9684_vm4 }
 0xe56   :  { %v6409_v56 = vunpack.i.h.bf16 %v6407_v35  ;;  %v6408_v12 = vunpack.i.l.bf16 %v6407_v35  ;;  %v6414_v37 = vunpack.i.h.bf16 %v6412_v40  ;;  %v6413_v17 = vunpack.i.l.bf16 %v6412_v40  ;;  %vm9677_vm12 = vmmov %vm9676_vm1  ;;  %v4066_v35 = vld [vmem:[%s8760_s16 + $0x18] sm:$0xff] }
 0xe57   :  { %4127 = vmatprep.subr.bf16.mxu1 %v4045_v24  ;;  %v3936_v49 = vsel %vm9678_vm7, %v6403_v55, %v6404_v31  ;;  %v3937_v58 = vsel %vm9679_vm5, %v6404_v31, %v6403_v55  ;;  %vm9689_vm7 = vcmp.lt.s32.totalorder %v6740_v23, 116 }
 0xe58   :  { %4969 = vmatpush1.bf16.msk.msra.mxu0 %vm7024_vm0, %v7859_v42  ;;  %v3942_v44 = vsel %vm9676_vm1, %v6408_v12, %v6409_v56  ;;  %v3943_v48 = vsel %vm9677_vm12, %v6409_v56, %v6408_v12  ;;  %vm9680_vm0 = vcmp.lt.s32.totalorder %v6740_v23, 121  ;;  %vm9687_vm1 = vmmov %vm9686_vm6  ;;  %vm9688_vm12 = vcmp.lt.s32.totalorder %v6740_v23, 117  ;;  %v6515_v12 = vld [vmem:[%s8760_s16] ss:$12 sps:$4 sm:$0xff]  }
 0xe59   :  { %v6422_v21 = vpop.permute.xlu0 %6421  ;;  %v6417_v25 = vpop.permute.xlu1 %6416  ;;  %v4046_v43 = vpack.c.bf16 %v3942_v44, %v3936_v49  ;;  %4128 = vmatpush1.bf16.msra.mxu1 %v4044_v15  ;;  %v4047_v27 = vpack.c.bf16 %v3943_v48, %v3937_v58  ;;  %v3948_v28 = vsel %vm9680_vm0, %v6413_v17, %v6414_v37  ;;  %vm9683_vm10 = vmmov %vm9680_vm0  ;;  %v4938_v44 = vcombine.high %v4066_v35, %v4066_v35 }
 0xe5a   :  { %v6419_v9 = vunpack.i.h.bf16 %v6417_v25  ;;  %v6418_v42 = vunpack.i.l.bf16 %v6417_v25  ;;  %v6424_v34 = vunpack.i.h.bf16 %v6422_v21  ;;  %v6423_v18 = vunpack.i.l.bf16 %v6422_v21  ;;  %vm9690_vm5 = vmmov %vm9689_vm7 }
 0xe5b   :  { %4970 = vmatmul.mubr.msk.bf16.vlgmr.msra.gmra.mrb[48].mxu0 %vm880_vm14, %v6513_v62  ;;  %4129 = vmatprep.subr.bf16.mxu1 %v4047_v27  ;;  %v3949_v16 = vsel %vm9683_vm10, %v6414_v37, %v6413_v17  ;;  %vm9691_vm0 = vmmov %vm9688_vm12 }
 0xe5c   :  { %4478 = vmatprep.mubr.bf16.mxu0 %v6522_v0  ;;  %v3954_v6 = vsel %vm9681_vm3, %v6418_v42, %v6419_v9  ;;  %v3955_v46 = vsel %vm9682_vm2, %v6419_v9, %v6418_v42  ;;  %v3960_v10 = vsel %vm9686_vm6, %v6423_v18, %v6424_v34  ;;  %v3961_v63 = vsel %vm9687_vm1, %v6424_v34, %v6423_v18 }
 0xe5d   :  { %v6432_v54 = vpop.permute.xlu0 %6431  ;;  %v6427_v51 = vpop.permute.xlu1 %6426  ;;  %v4048_v53 = vpack.c.bf16 %v3954_v6, %v3948_v28  ;;  %4130 = vmatpush1.bf16.msra.mxu1 %v4046_v43  ;;  %v4049_v13 = vpack.c.bf16 %v3955_v46, %v3949_v16  ;;  %vm9694_vm2 = vcmp.lt.s32.totalorder %v6740_v23, 115 }
 0xe5e   :  { %v6429_v30 = vunpack.i.h.bf16 %v6427_v51  ;;  %v6428_v33 = vunpack.i.l.bf16 %v6427_v51  ;;  %v6434_v14 = vunpack.i.h.bf16 %v6432_v54  ;;  %v6433_v20 = vunpack.i.l.bf16 %v6432_v54  ;;  %vm9695_vm10 = vmmov %vm9694_vm2 }
 0xe5f   :  { %4131 = vmatprep.subr.bf16.mxu1 %v4049_v13 }
 0xe60   :  { %v3966_v57 = vsel %vm9684_vm4, %v6428_v33, %v6429_v30  ;;  %v3967_v4 = vsel %vm9685_vm13, %v6429_v30, %v6428_v33  ;;  %v3972_v61 = vsel %vm9688_vm12, %v6433_v20, %v6434_v14  ;;  %v3973_v60 = vsel %vm9691_vm0, %v6434_v14, %v6433_v20 }
 0xe61   :  { %v6442_v11 = vpop.permute.xlu0 %6441  ;;  %v6437_v19 = vpop.permute.xlu1 %6436  ;;  %v4050_v5 = vpack.c.bf16 %v3966_v57, %v3960_v10  ;;  %4132 = vmatpush1.bf16.msra.mxu1 %v4048_v53  ;;  %v4051_v36 = vpack.c.bf16 %v3967_v4, %v3961_v63  ;;  %vm9696_vm4 = vcmp.lt.s32.totalorder %v6740_v23, 113  ;;  %vm9697_vm13 = vcmp.lt.s32.totalorder %v6740_v23, 112  ;;  %v6521_v4 = vld [vmem:[%s8760_s16 + $0x20] ss:$0 sps:$4 sm:$0xff]  }
 0xe62   :  { %v6439_v26 = vunpack.i.h.bf16 %v6437_v19  ;;  %v6438_v8 = vunpack.i.l.bf16 %v6437_v19  ;;  %v6444_v1 = vunpack.i.h.bf16 %v6442_v11  ;;  %v6443_v45 = vunpack.i.l.bf16 %v6442_v11  ;;  %vm9698_vm6 = vmmov %vm9697_vm13  ;;  %v6520_v19 = vld [vmem:[%s8760_s16 + $0x8] ss:$12 sps:$4 sm:$0xff]  }
 0xe63   :  { %4971 = vmatmul.mubr.msk.bf16.gmra.mrb[52].mxu0 %vm880_vm14, %v6514_v2  ;;  %4133 = vmatprep.subr.bf16.mxu1 %v4051_v36  ;;  %vm9692_vm14 = vcmp.lt.s32.totalorder %v6740_v23, 114  ;;  %vm9699_vm1 = vmmov %vm9696_vm4  ;;  %vm9700_vm12 = vcmp.lt.s32.totalorder %v6740_v23, 110  ;;  %v4937_v53 = vcombine.low %v4066_v35, %v4066_v35 }
 0xe64   :  { %v3978_v32 = vsel %vm9689_vm7, %v6438_v8, %v6439_v26  ;;  %v3979_v22 = vsel %vm9690_vm5, %v6439_v26, %v6438_v8  ;;  %vm9693_vm3 = vmmov %vm9692_vm14  ;;  %v3984_v3 = vsel %vm9694_vm2, %v6443_v45, %v6444_v1  ;;  %v3985_v24 = vsel %vm9695_vm10, %v6444_v1, %v6443_v45 }
 0xe65   :  { %v6452_v38 = vpop.permute.xlu0 %6451  ;;  %v6447_v7 = vpop.permute.xlu1 %6446  ;;  %v4052_v29 = vpack.c.bf16 %v3978_v32, %v3972_v61  ;;  %4134 = vmatpush1.bf16.msra.mxu1 %v4050_v5  ;;  %v4053_v41 = vpack.c.bf16 %v3979_v22, %v3973_v60  ;;  %vm9701_vm7 = vmmov %vm9700_vm12  ;;  %vm9702_vm5 = vcmp.lt.s32.totalorder %v6740_v23, 109 }
 0xe66   :  { %v6449_v50 = vunpack.i.h.bf16 %v6447_v7  ;;  %v6448_v47 = vunpack.i.l.bf16 %v6447_v7  ;;  %v6454_v39 = vunpack.i.h.bf16 %v6452_v38  ;;  %v6453_v40 = vunpack.i.l.bf16 %v6452_v38  ;;  %vm9703_vm0 = vmmov %vm9702_vm5 }
 0xe67   :  { %4135 = vmatprep.subr.bf16.mxu1 %v4053_v41 }
 0xe68   :  { %v3990_v52 = vsel %vm9692_vm14, %v6448_v47, %v6449_v50  ;;  %v3991_v56 = vsel %vm9693_vm3, %v6449_v50, %v6448_v47  ;;  %v3996_v21 = vsel %vm9696_vm4, %v6453_v40, %v6454_v39  ;;  %v3997_v28 = vsel %vm9699_vm1, %v6454_v39, %v6453_v40 }
 0xe69   :  { %v6462_v31 = vpop.permute.xlu0 %6461  ;;  %v6457_v55 = vpop.permute.xlu1 %6456  ;;  %v4054_v62 = vpack.c.bf16 %v3990_v52, %v3984_v3  ;;  %4136 = vmatpush1.bf16.msra.mxu1 %v4052_v29  ;;  %v4055_v17 = vpack.c.bf16 %v3991_v56, %v3985_v24  ;;  %vm4718_vm3 = vcmask 12288  }
 0xe6a   :  { %v6459_v15 = vunpack.i.h.bf16 %v6457_v55  ;;  %v6458_v37 = vunpack.i.l.bf16 %v6457_v55  ;;  %v6464_v25 = vunpack.i.h.bf16 %v6462_v31  ;;  %v6463_v48 = vunpack.i.l.bf16 %v6462_v31 }
 0xe6b   :  { %4156 = vmatprep.subr.bf16.mxu1 %v4055_v17 }
 0xe6c   :  { %v4002_v49 = vsel %vm9697_vm13, %v6458_v37, %v6459_v15  ;;  %v4003_v43 = vsel %vm9698_vm6, %v6459_v15, %v6458_v37  ;;  %4138 = vmatmul.mubr.bf16.vlgmr.msra.gmra.mrb[48].mxu1 %v6515_v12  ;;  %v4009_v18 = vsel %vm500_vm11, %v6464_v25, %v6463_v48  ;;  %v4008_v16 = vsel %vm500_vm11, %v6463_v48, %v6464_v25 }
 0xe6d   :  { %v6472_v9 = vpop.permute.xlu0 %6471  ;;  %v6467_v58 = vpop.permute.xlu1 %6466  ;;  %v4056_v42 = vpack.c.bf16 %v4002_v49, %v3996_v21  ;;  %4157 = vmatpush1.bf16.msra.mxu1 %v4054_v62  ;;  %v4057_v46 = vpack.c.bf16 %v4003_v43, %v3997_v28  ;;  %4147 = vmatprep.mubr.bf16.mxu1 %v4938_v44  ;;  %vm9704_vm11 = vcmask 457728  }
 0xe6e   :  { %v6469_v27 = vunpack.i.h.bf16 %v6467_v58  ;;  %v6474_v6 = vunpack.i.h.bf16 %v6472_v9  ;;  %v6473_v54 = vunpack.i.l.bf16 %v6472_v9  ;;  %v6468_v51 = vunpack.i.l.bf16 %v6467_v58  ;;  %vm9705_vm14 = vmmov %vm9704_vm11 }
 0xe6f   :  { %4158 = vmatprep.subr.bf16.mxu1 %v4057_v46 }
 0xe70   :  { %v4014_v34 = vsel %vm9700_vm12, %v6468_v51, %v6469_v27  ;;  %v4015_v30 = vsel %vm9701_vm7, %v6469_v27, %v6468_v51  ;;  %v4021_v13 = vsel %vm9702_vm5, %v6474_v6, %v6473_v54  ;;  %v4020_v14 = vsel %vm9703_vm0, %v6473_v54, %v6474_v6 }
 0xe71   :  { %v4059_v33 = vpack.c.bf16 %v4015_v30, %v4009_v18  ;;  %v4058_v2 = vpack.c.bf16 %v4014_v34, %v4008_v16  ;;  %4159 = vmatpush1.bf16.msra.mxu1 %v4056_v42  ;;  %v4061_v20 = vpack.c.bf16 %v4021_v13, %v4021_v13  ;;  %v4060_v57 = vpack.c.bf16 %v4020_v14, %v4020_v14 }
 0xe73   :  { %4160 = vmatprep.subr.bf16.mxu1 %v4059_v33  ;;  %v4100_v11 = vsel %vm595_vm8, %v4060_v57, 0 }
 0xe74   :  { %4148 = vmatmul.mubr.bf16.gmra.mrb[52].mxu1 %v4937_v53 }
 0xe75   :  { %4161 = vmatpush1.bf16.msra.mxu1 %v4058_v2  ;;  %4188 = vmatprep.mubr.bf16.mxu1 %v6522_v0 }
 0xe76   :  { %4940 = vmatprep.subr.msk.bf16.mxu1 %vm595_vm8, %v4061_v20  ;;  %vm6580_vm8 = vmmov 0  }
 0xe77   :  { %4998 = vmatprep.mubr.msk.f32.mxu0 %vm6580_vm8, %v6581_v59 }
 0xe79   :  { %4163 = vmatpush1.bf16.msra.mxu1 %v4100_v11 }
 0xe7c   :  { %4941 = vmatmul.mubr.msk.bf16.vlgmr.msra.gmra.mrb[48].mxu1 %vm9704_vm11, %v6520_v19 }
 0xe7d   :  { %4198 = vmatprep.mubr.bf16.mxu1 %v6522_v0 }
 0xe7e   :  { %v4356_v10 = vpop.permute.xlu0 %4355  ;;  %v4351_v0 = vpop.permute.xlu1 %4350 }
 0xe82   :  { %v9017_v26 = vpop.permute.xlu0 %4387  ;;  %v4383_v31 = vpop.permute.xlu1 %4382 }
 0xe84   :  { %4942 = vmatmul.mubr.msk.bf16.gmra.mrb[52].mxu1 %vm9705_vm14, %v6521_v4 }
 0xe86   :  { %v4501_v63 = vpop.permute.xlu0 %4500  ;;  %v4496_v21 = vpop.permute.xlu1 %4495 }
 0xe8a   :  { %v4366_v5 = vpop.permute.xlu0 %4365  ;;  %v4361_v43 = vpop.permute.xlu1 %4360 }
 0xe8e   :  { %v9019_v61 = vpop.permute.xlu0 %4532  ;;  %v4528_v27 = vpop.permute.xlu1 %4527 }
 0xe92   :  { %v4398_v7 = vpop.permute.xlu0 %4397  ;;  %v4393_v28 = vpop.permute.xlu1 %4392 }
 0xe96   :  { %v4511_v29 = vpop.permute.xlu0 %4510  ;;  %v4506_v4 = vpop.permute.xlu1 %4505 }
 0xe9a   :  { %v4543_v3 = vpop.permute.xlu0 %4542 }
 0xf26   :  { %v4337_v8 = vpop.f32.mrb[44].mxu0 }
 0xf27   :  { %v4339_v36 = vpop.f32.mrb[45].mxu0  ;;  %v4374_v60 = vmul.f32 %v4366_v5, %v4337_v8 }
 0xf28   :  { %v4341_v32 = vpop.f32.mrb[46].mxu0  ;;  %v4375_v47 = vmul.f32 %v4366_v5, %v4339_v36 }
 0xf29   :  { %v4342_v38 = vpop.f32.mrb[47].mxu0  ;;  %v4406_v39 = vadd.f32 %v4398_v7, %v4374_v60 }
 0xf2a   :  { %v4407_v35 = vadd.f32 %v4398_v7, %v4375_v47 }
 0xf2b   :  { %v4414_v12 = vmax.f32 %v4406_v39, 0.0 }
 0xf2c   :  { %v4415_v62 = vmax.f32 %v4407_v35, 0.0 }
 0xf2e   :  { %v4470_v22 = vpop.f32.mrb[48].mxu0 }
 0xf2f   :  { %v4472_v1 = vpop.f32.mrb[49].mxu0  ;;  %v4513_v54 = vmul.f32 %v4496_v21, %v4470_v22 }
 0xf30   :  { %v4474_v45 = vpop.f32.mrb[50].mxu0  ;;  %v4514_v34 = vmul.f32 %v4496_v21, %v4472_v1 }
 0xf31   :  { %v4476_v50 = vpop.f32.mrb[51].mxu0  ;;  %v4515_v16 = vmul.f32 %v4501_v63, %v4474_v45  ;;  %v4545_v57 = vadd.f32 %v4528_v27, %v4513_v54 }
 0xf32   :  { %v4516_v2 = vmul.f32 %v4501_v63, %v4476_v50  ;;  %v4546_v5 = vadd.f32 %v4528_v27, %v4514_v34  ;;  %v6578_v34 = vmov 0.0|0.0  }
 0xf33   :  { %v4547_v32 = vadd.f32 %v9019_v61, %v4515_v16  ;;  %5001 = vmatprep.subr.bf16.mxu0 %v6578_v34 }
 0xf34   :  { %v4548_v22 = vadd.f32 %v9019_v61, %v4516_v2 }
 0xf36   :  { %v4480_v41 = vpop.f32.mrb[52].mxu0 }
 0xf37   :  { %v4482_v40 = vpop.f32.mrb[53].mxu0  ;;  %v4517_v50 = vmul.f32 %v4506_v4, %v4480_v41 }
 0xf38   :  { %v4484_v52 = vpop.f32.mrb[54].mxu0  ;;  %v4518_v47 = vmul.f32 %v4506_v4, %v4482_v40 }
 0xf39   :  { %v4519_v55 = vmul.f32 %v4511_v29, %v4484_v52  ;;  %v4486_v56 = vpop.f32.mrb[55].mxu0 }
 0xf3a   :  { %v4520_v15 = vmul.f32 %v4511_v29, %v4486_v56 }
 0xf3b   :  { %v4551_v24 = vadd.f32 %v4543_v3, %v4519_v55 }
 0xf3c   :  { %v4552_v37 = vadd.f32 %v4543_v3, %v4520_v15  ;;  %v4538_v3 = vpop.permute.xlu1 %4537 }
 0xf3d   :  { %v4559_v17 = vadd.f32 %v4551_v24, %v4414_v12  ;;  %v4549_v12 = vadd.f32 %v4538_v3, %v4517_v50 }
 0xf3e   :  { %v4560_v44 = vadd.f32 %v4552_v37, %v4415_v62  ;;  %v4550_v62 = vadd.f32 %v4538_v3, %v4518_v47 }
 0xf3f   :  { %v4567_v25 = vmax.f32 %v4559_v17, 0.0 }
 0xf40   :  { %v4568_v48 = vmax.f32 %v4560_v44, 0.0 }
 0xf41   :  { %v9023_v49 = vsel %vm190_vm15, %v4567_v25, 0.0 }
 0xf42   :  { %v4583_v9 = vsel %vm190_vm15, %v9023_v49, -3.4028235e+38  ;;  %v9030_v58 = vsel %vm191_vm9, %v4568_v48, 0.0 }
 0xf43   :  { %4590 = vmax.xlane.f32.xlu1 %v4583_v9  ;;  %v4607_v42 = vsel %vm190_vm15, %v9030_v58, -3.4028235e+38 }
 0xf47   :  { %4614 = vmax.xlane.f32.xlu1 %v4607_v42 }
 0xf4f   :  { %v4190_v6 = vpop.f32.mrb[48].mxu1 }
 0xf50   :  { %v4368_v51 = vmul.f32 %v4351_v0, %v4190_v6  ;;  %v4192_v46 = vpop.f32.mrb[49].mxu1 }
 0xf51   :  { %v4369_v18 = vmul.f32 %v4351_v0, %v4192_v46  ;;  %v4194_v30 = vpop.f32.mrb[50].mxu1 }
 0xf52   :  { %v4400_v53 = vadd.f32 %v4383_v31, %v4368_v51  ;;  %v4370_v33 = vmul.f32 %v4356_v10, %v4194_v30  ;;  %v4196_v13 = vpop.f32.mrb[51].mxu1 }
 0xf53   :  { %v4401_v14 = vadd.f32 %v4383_v31, %v4369_v18  ;;  %v4371_v20 = vmul.f32 %v4356_v10, %v4196_v13  ;;  %v4638_v18 = vld [vmem:[%s4761_s26] sm:$0x1f] }
 0xf54   :  { %v4408_v11 = vmax.f32 %v4400_v53, 0.0  ;;  %v4402_v19 = vadd.f32 %v9017_v26, %v4370_v33 }
 0xf55   :  { %v4409_v8 = vmax.f32 %v4401_v14, 0.0  ;;  %v4403_v36 = vadd.f32 %v9017_v26, %v4371_v20 }
 0xf56   :  { %v4410_v38 = vmax.f32 %v4402_v19, 0.0  ;;  %v4553_v7 = vadd.f32 %v4545_v57, %v4408_v11 }
 0xf57   :  { %v4411_v1 = vmax.f32 %v4403_v36, 0.0  ;;  %v4200_v45 = vpop.f32.mrb[52].mxu1  ;;  %v4554_v63 = vadd.f32 %v4546_v5, %v4409_v8 }
 0xf58   :  { %v4372_v10 = vmul.f32 %v4361_v43, %v4200_v45  ;;  %v4202_v0 = vpop.f32.mrb[53].mxu1  ;;  %v4561_v60 = vmax.f32 %v4553_v7, 0.0  ;;  %v4555_v29 = vadd.f32 %v4547_v32, %v4410_v38 }
 0xf59   :  { %v4556_v39 = vadd.f32 %v4548_v22, %v4411_v1  ;;  %v4373_v35 = vmul.f32 %v4361_v43, %v4202_v0  ;;  %v4204_v52 = vpop.f32.mrb[54].mxu1  ;;  %v4562_v56 = vmax.f32 %v4554_v63, 0.0 }
 0xf5a   :  { %v4404_v31 = vadd.f32 %v4393_v28, %v4372_v10  ;;  %v4205_v26 = vpop.f32.mrb[55].mxu1  ;;  %v4569_v55 = vsel %vm190_vm15, %v4561_v60, 0.0  ;;  %v4563_v15 = vmax.f32 %v4555_v29, 0.0 }
 0xf5b   :  { %v4405_v61 = vadd.f32 %v4393_v28, %v4373_v35  ;;  %4592 = vadd.xlane.f32.xlu0 %v4569_v55  ;;  %v4580_v41 = vsel %vm190_vm15, %v4569_v55, -3.4028235e+38  ;;  %v4564_v40 = vmax.f32 %v4556_v39, 0.0  ;;  %v4570_v44 = vsel %vm191_vm9, %v4562_v56, 0.0  ;;  %v4637_v55 = vld [vmem:[%s4760_s19] sm:$0x1f] }
 0xf5c   :  { %v4412_v24 = vmax.f32 %v4404_v31, 0.0  ;;  %4584 = vmax.xlane.f32.xlu1 %v4580_v41  ;;  %v4571_v25 = vsel %vm190_vm15, %v4563_v15, 0.0  ;;  %v4604_v9 = vsel %vm190_vm15, %v4570_v44, -3.4028235e+38 }
 0xf5d   :  { %v4413_v37 = vmax.f32 %v4405_v61, 0.0  ;;  %v4572_v48 = vsel %vm191_vm9, %v4564_v40, 0.0  ;;  %v4581_v27 = vsel %vm190_vm15, %v4571_v25, -3.4028235e+38 }
 0xf5e   :  { %v4557_v17 = vadd.f32 %v4549_v12, %v4412_v24  ;;  %v4605_v43 = vsel %vm190_vm15, %v4572_v48, -3.4028235e+38 }
 0xf5f   :  { %v4558_v21 = vadd.f32 %v4550_v62, %v4413_v37  ;;  %4616 = vadd.xlane.f32.xlu0 %v4570_v44 }
 0xf60   :  { %4594 = vadd.xlane.f32.xlu1 %v4571_v25  ;;  %v4565_v42 = vmax.f32 %v4557_v17, 0.0 }
 0xf61   :  { %v4566_v6 = vmax.f32 %v4558_v21, 0.0 }
 0xf62   :  { %v4573_v28 = vsel %vm190_vm15, %v4565_v42, 0.0 }
 0xf63   :  { %4608 = vmax.xlane.f32.xlu0 %v4604_v9  ;;  %v4582_v54 = vsel %vm190_vm15, %v4573_v28, -3.4028235e+38  ;;  %v4574_v51 = vsel %vm191_vm9, %v4566_v6, 0.0  ;;  %vm4628_vm9 = vcmask 7168  }
 0xf64   :  { %4610 = vmax.xlane.f32.xlu1 %v4605_v43  ;;  %v4606_v46 = vsel %vm190_vm15, %v4574_v51, -3.4028235e+38  ;;  %vm4644_vm15 = vcmask 523264  }
 0xf67   :  { %4586 = vmax.xlane.f32.xlu0 %v4581_v27 }
 0xf68   :  { %4618 = vadd.xlane.f32.xlu1 %v4572_v48 }
 0xf6b   :  { %4588 = vmax.xlane.f32.xlu0 %v4582_v54 }
 0xf6c   :  { %4598 = vadd.xlane.f32.xlu1 %v9023_v49 }
 0xf6f   :  { %4612 = vmax.xlane.f32.xlu0 %v4606_v46 }
 0xf70   :  { %4622 = vadd.xlane.f32.xlu1 %v9030_v58 }
 0xf73   :  { %4596 = vadd.xlane.f32.xlu0 %v4573_v28 }
 0xf77   :  { %4620 = vadd.xlane.f32.xlu0 %v4574_v51 }
 0xf8d   :  { %4641 = vperm.xlu0 %5323, %v4638_v18  }
 0xfd0   :  { %v4591_v49 = vpop.xlane.xlu1 %4590 }
 0xfd4   :  { %v4615_v23 = vpop.xlane.xlu1 %4614 }
 0xfd5   :  { %v4632_v36 = vsel %vm4628_vm9, %v4591_v49, %v4615_v23 }
 0xfe8   :  { %v4593_v30 = vpop.xlane.xlu0 %4592 }
 0xfe9   :  { %v4585_v16 = vpop.xlane.xlu1 %4584  ;;  %v4600_v1 = vmul.f32 0.015625, %v4593_v30 }
 0xfec   :  { %v4617_v53 = vpop.xlane.xlu0 %4616 }
 0xfed   :  { %v4595_v58 = vpop.xlane.xlu1 %4594  ;;  %v4624_v32 = vmul.f32 0.015625, %v4617_v53 }
 0xfee   :  { %v4601_v38 = vmul.f32 0.015625, %v4595_v58 }
 0xfef   :  { %v4633_v10 = vsel %vm4628_vm9, %v4600_v1, %v4624_v32 }
 0xff0   :  { %v4609_v33 = vpop.xlane.xlu0 %4608 }
 0xff1   :  { %v4611_v13 = vpop.xlane.xlu1 %4610  ;;  %v4629_v14 = vsel %vm4628_vm9, %v4585_v16, %v4609_v33 }
 0xff4   :  { %v4587_v2 = vpop.xlane.xlu0 %4586 }
 0xff5   :  { %v4630_v20 = vsel %vm4628_vm9, %v4587_v2, %v4611_v13  ;;  %v4619_v57 = vpop.xlane.xlu1 %4618 }
 0xff6   :  { %v5002_v11 = vpack.c.bf16 %v4630_v20, %v4629_v14  ;;  %v4625_v5 = vmul.f32 0.015625, %v4619_v57 }
 0xff8   :  { %v4589_v19 = vpop.xlane.xlu0 %4588  ;;  %5003 = vmatpush3.bf16.msra.mxu0 %v5002_v11  ;;  %v4634_v45 = vsel %vm4628_vm9, %v4601_v38, %v4625_v5 }
 0xff9   :  { %5004 = vmatprep.subr.bf16.mxu0 %v6578_v34  ;;  %v4599_v4 = vpop.xlane.xlu1 %4598  ;;  %v5008_v0 = vpack.c.bf16 %v4634_v45, %v4633_v10 }
 0xffa   :  { %v4603_v47 = vmul.f32 0.015625, %v4599_v4 }
 0xffc   :  { %v4613_v8 = vpop.xlane.xlu0 %4612 }
 0xffd   :  { %v4631_v7 = vsel %vm4628_vm9, %v4589_v19, %v4613_v8  ;;  %v4623_v63 = vpop.xlane.xlu1 %4622 }
 0xffe   :  { %v5005_v22 = vpack.c.bf16 %v4632_v36, %v4631_v7  ;;  %v4627_v60 = vmul.f32 0.015625, %v4623_v63 }
0x1000   :  { %v4597_v50 = vpop.xlane.xlu0 %4596  ;;  %5006 = vmatpush3.bf16.msra.mxu0 %v5005_v22  ;;  %v4636_v52 = vsel %vm4628_vm9, %v4603_v47, %v4627_v60 }
0x1001   :  { %5007 = vmatprep.subr.bf16.mxu0 %v6578_v34  ;;  %v4602_v39 = vmul.f32 0.015625, %v4597_v50 }
0x1004   :  { %v4621_v29 = vpop.xlane.xlu0 %4620  ;;  %5009 = vmatpush3.bf16.msra.mxu0 %v5008_v0 }
0x1005   :  { %v4626_v35 = vmul.f32 0.015625, %v4621_v29  ;;  %5010 = vmatprep.subr.bf16.mxu0 %v6578_v34 }
0x1007   :  { %v4635_v31 = vsel %vm4628_vm9, %v4602_v39, %v4626_v35 }
0x1008   :  { %v5011_v26 = vpack.c.bf16 %v4636_v52, %v4635_v31 }
0x100a   :  { %5012 = vmatpush3.bf16.msra.mxu0 %v5011_v26 }
0x100c   :  { %v4642_v56 = vpop.permute.xlu0 %4641 }
0x100d   :  { %4999 = vmatmul.mubr.msk.f32.vlgmr.msra.gmra.mrb[56].mxu0 %vm4644_vm15, %v4637_v55 }
0x10e0   :  { %v4714_v3 = vpop.f32.mrb[56].mxu0 }
0x10e1   :  { %v4715_v61 = vadd.f32 %v4714_v3, %v4642_v56  ;;  %v5000_v41 = vpop.f32.mrb[57].mxu0 }
0x10e3   :  { %4719 = vst.msk [vmem:[%s4762_s1] sm:$0x1f] %vm4718_vm3, %v4715_v61 }

</bundles_post_ra>
